<compile_context>
chip_gen: v7x
topology: tpu7x:2x2x1
jax: 0.10.0
libtpu: 0.0.40
codegen_flags: <defaults>
</compile_context>

<pallas_src>
import functools

import jax
import jax.numpy as jnp
from jax.experimental import pallas as pl
from jax.experimental.pallas import tpu as pltpu

LANE = 128


def _round_up(a, b):
    return (a + b - 1) // b * b


# ----------------------------------------------------------------------------
# Pallas kernel: out = act(x @ w + bias [+ residual])   (bf16 MXU, f32 epilogue)
# ----------------------------------------------------------------------------
def _apply_act(y, act):
    if act == "relu":
        return jnp.maximum(y, 0.0)
    if act == "sigmoid":
        return jax.nn.sigmoid(y)
    return y


def _mm_kernel(x_ref, w_ref, b_ref, o_ref, *, act):
    y = jnp.dot(x_ref[...], w_ref[...], preferred_element_type=jnp.float32)
    y = y + b_ref[...]
    o_ref[...] = _apply_act(y, act).astype(o_ref.dtype)


def _mm_res_kernel(x_ref, w_ref, b_ref, r_ref, o_ref, *, act):
    y = jnp.dot(x_ref[...], w_ref[...], preferred_element_type=jnp.float32)
    y = y + b_ref[...] + r_ref[...].astype(jnp.float32)
    o_ref[...] = _apply_act(y, act).astype(o_ref.dtype)


def matmul_bias_act(x2d, w2d, bias, residual=None, act="none",
                    out_dtype=jnp.float32):
    """Tiled over rows (M); K and N are single blocks (small model).

    - bf16 operands feed the MXU at its native rate on every generation.
    - N is padded to a multiple of 128 for lane-dense (unmasked) stores.
    - TM <= 256: either a full-M block or a multiple of 16, so blocks always
      satisfy the TPU tiling constraints for bf16/f32.
    """
    M, K = x2d.shape
    _, N = w2d.shape
    N_pad = _round_up(N, LANE)

    x2d = x2d.astype(jnp.bfloat16)
    w2d = w2d.astype(jnp.bfloat16)
    if N_pad != N:
        w2d = jnp.pad(w2d, ((0, 0), (0, N_pad - N)))
        bias = jnp.pad(bias, ((0, N_pad - N),))
    b2 = bias.reshape(1, N_pad).astype(jnp.float32)

    # >=2 grid steps for large M (keeps both v7x TensorCores busy); M is a
    # multiple of 8 for every conv layer so the row pad is only hit by the
    # tiny fc head.
    TM = 256 if M > 256 else _round_up(M, 8)
    M_pad = _round_up(M, TM)
    if M_pad != M:
        x2d = jnp.pad(x2d, ((0, M_pad - M), (0, 0)))

    in_specs = [
        pl.BlockSpec((TM, K), lambda i: (i, 0)),
        pl.BlockSpec((K, N_pad), lambda i: (0, 0)),
        pl.BlockSpec((1, N_pad), lambda i: (0, 0)),
    ]
    args = [x2d, w2d, b2]

    if residual is not None:
        r = residual.astype(jnp.bfloat16)
        if N_pad != N:
            r = jnp.pad(r, ((0, 0), (0, N_pad - N)))
        if M_pad != M:
            r = jnp.pad(r, ((0, M_pad - M), (0, 0)))
        in_specs.append(pl.BlockSpec((TM, N_pad), lambda i: (i, 0)))
        args.append(r)
        kernel = functools.partial(_mm_res_kernel, act=act)
    else:
        kernel = functools.partial(_mm_kernel, act=act)

    out = pl.pallas_call(
        kernel,
        out_shape=jax.ShapeDtypeStruct((M_pad, N_pad), out_dtype),
        grid=(M_pad // TM,),
        in_specs=in_specs,
        out_specs=pl.BlockSpec((TM, N_pad), lambda i: (i, 0)),
        compiler_params=pltpu.CompilerParams(
            dimension_semantics=("parallel",),
            vmem_limit_bytes=32 * 1024 * 1024,
        ),
    )(*args)
    if M_pad != M or N_pad != N:
        out = out[:M, :N]
    return out


# ----------------------------------------------------------------------------
# Glue: im2col, pooling, BN folding (data movement only — runs under jit)
# ----------------------------------------------------------------------------
def _im2col(x, kh, kw, stride, pad):
    # TODO(synk): replace HBM-materialized im2col with an in-kernel tap
    # reduction (grid axis over kh*kw + f32 accumulator) reading shifted
    # windows of the padded NHWC input directly; patches are kept in bf16
    # here to halve the materialized traffic in the meantime.
    n, h, w, c = x.shape
    ho = (h + 2 * pad - kh) // stride + 1
    wo = (w + 2 * pad - kw) // stride + 1
    xp = jnp.pad(x, ((0, 0), (pad, pad), (pad, pad), (0, 0)))
    cols = []
    for i in range(kh):
        for j in range(kw):
            cols.append(xp[:, i:i + ho * stride:stride, j:j + wo * stride:stride, :])
    patches = jnp.concatenate(cols, axis=-1)          # (n, ho, wo, kh*kw*c)
    return patches.reshape(n * ho * wo, kh * kw * c), (n, ho, wo)


def _fold_bn(bn, eps=1e-5):
    # inference-mode BatchNorm: y = gamma*(x-mean)/sqrt(var+eps) + beta
    scale = bn["gamma"] / jnp.sqrt(bn["var"] + eps)
    shift = bn["beta"] - bn["mean"] * scale
    return scale, shift


def conv_bn_act(x, w, bn, stride, pad, act, residual2d=None,
                out_dtype=jnp.bfloat16):
    kh, kw, cin, cout = w.shape
    scale, shift = _fold_bn(bn)
    w_folded = (w * scale[None, None, None, :]).reshape(kh * kw * cin, cout)
    cols, (n, ho, wo) = _im2col(x, kh, kw, stride, pad)
    y = matmul_bias_act(cols, w_folded, shift, residual=residual2d, act=act,
                        out_dtype=out_dtype)
    return y.reshape(n, ho, wo, cout)


def upconv2x2(x, w, b, act, out_dtype=jnp.bfloat16):
    # w layout: (cin, kh, kw, cout).  NOTE: PyTorch ConvTranspose2d stores
    # (cin, cout, kh, kw); permute(0, 2, 3, 1) before loading real weights.
    n, h, wd, cin = x.shape
    cout = w.shape[-1]
    w2 = w.reshape(cin, 4 * cout)
    bias = jnp.tile(b, 4)                 # column (2i+j)*cout + co -> b[co]
    y = matmul_bias_act(x.reshape(n * h * wd, cin), w2, bias, act=act,
                        out_dtype=out_dtype)
    y = y.reshape(n, h, wd, 2, 2, cout)
    # TODO(synk): fold this pixel-shuffle transpose into the out_spec / next
    # stage's tap indexing to drop one HBM round-trip per decoder stage.
    y = y.transpose(0, 1, 3, 2, 4, 5).reshape(n, 2 * h, 2 * wd, cout)
    return y


def maxpool_3x3_s2_p1(x):
    n, h, w, c = x.shape
    ho = (h + 2 - 3) // 2 + 1
    wo = (w + 2 - 3) // 2 + 1
    xp = jnp.pad(x, ((0, 0), (1, 1), (1, 1), (0, 0)),
                 constant_values=-jnp.inf)
    vals = [xp[:, i:i + ho * 2:2, j:j + wo * 2:2, :]
            for i in range(3) for j in range(3)]
    return jnp.max(jnp.stack(vals, axis=0), axis=0)


def res_block(x, p, stride):
    cin = x.shape[-1]
    cout = p["conv1_w"].shape[-1]
    if "sc_w" in p:
        # Fuse the 1x1 shortcut conv into the 3x3 conv1 matmul: embed the 1x1
        # (with its BN folded) as the centre tap of a zero 3x3 kernel and
        # concatenate along the output channels -> one read of the patches,
        # one pallas_call, N = 2*cout.
        s1, b1 = _fold_bn(p["bn1"])
        ssc, bsc = _fold_bn(p["sc_bn"])
        w1 = p["conv1_w"] * s1[None, None, None, :]
        wsc = jnp.zeros((3, 3, cin, cout), jnp.float32)
        wsc = wsc.at[1, 1].set(p["sc_w"][0, 0] * ssc[None, :])
        w_comb = jnp.concatenate([w1, wsc], axis=-1).reshape(9 * cin, 2 * cout)
        b_comb = jnp.concatenate([b1, bsc])
        cols, (n, ho, wo) = _im2col(x, 3, 3, stride, 1)
        y = matmul_bias_act(cols, w_comb, b_comb, act="none",
                            out_dtype=jnp.bfloat16)
        out = jnp.maximum(y[:, :cout], 0).reshape(n, ho, wo, cout)
        sc2d = y[:, cout:]                       # bn_sc(conv_sc(x)), no relu
    else:
        out = conv_bn_act(x, p["conv1_w"], p["bn1"], stride, 1, "relu")
        n, ho, wo, _ = out.shape
        sc2d = x.reshape(n * ho * wo, cout)      # identity shortcut
    # relu(bn2(conv2(out)) + shortcut)  -- residual add fused in the kernel
    out = conv_bn_act(out, p["conv2_w"], p["bn2"], 1, 1, "relu",
                      residual2d=sc2d)
    return out


# ----------------------------------------------------------------------------
# Parameter init (deterministic, synthetic)
# ----------------------------------------------------------------------------
def _init_bn(key, c):
    k1, k2 = jax.random.split(key)
    return {
        "gamma": 1.0 + 0.1 * jax.random.normal(k1, (c,), jnp.float32),
        "beta": 0.05 * jax.random.normal(k2, (c,), jnp.float32),
        "mean": jnp.zeros((c,), jnp.float32),
        "var": jnp.ones((c,), jnp.float32),
    }


def _init_resblock(key, cin, cout, stride):
    ks = jax.random.split(key, 6)
    p = {
        "conv1_w": 0.05 * jax.random.normal(ks[0], (3, 3, cin, cout), jnp.float32),
        "bn1": _init_bn(ks[1], cout),
        "conv2_w": 0.05 * jax.random.normal(ks[2], (3, 3, cout, cout), jnp.float32),
        "bn2": _init_bn(ks[3], cout),
    }
    if stride != 1 or cin != cout:
        p["sc_w"] = 0.05 * jax.random.normal(ks[4], (1, 1, cin, cout), jnp.float32)
        p["sc_bn"] = _init_bn(ks[5], cout)
    return p


def init_params(key):
    ks = jax.random.split(key, 20)
    return {
        "conv1_w": 0.05 * jax.random.normal(ks[0], (7, 7, 3, 64), jnp.float32),
        "bn1": _init_bn(ks[1], 64),
        "layer1": [_init_resblock(ks[2], 64, 64, 1),
                   _init_resblock(ks[3], 64, 64, 1)],
        "layer2": [_init_resblock(ks[4], 64, 128, 2),
                   _init_resblock(ks[5], 128, 128, 1)],
        "layer3": [_init_resblock(ks[6], 128, 256, 2),
                   _init_resblock(ks[7], 256, 256, 1)],
        "up1_w": 0.05 * jax.random.normal(ks[8], (256, 2, 2, 128), jnp.float32),
        "up1_b": 0.05 * jax.random.normal(ks[9], (128,), jnp.float32),
        "up2_w": 0.05 * jax.random.normal(ks[10], (128, 2, 2, 64), jnp.float32),
        "up2_b": 0.05 * jax.random.normal(ks[11], (64,), jnp.float32),
        "up3_w": 0.05 * jax.random.normal(ks[12], (64, 2, 2, 32), jnp.float32),
        "up3_b": 0.05 * jax.random.normal(ks[13], (32,), jnp.float32),
        "up4_w": 0.05 * jax.random.normal(ks[14], (32, 2, 2, 1), jnp.float32),
        "up4_b": 0.05 * jax.random.normal(ks[15], (1,), jnp.float32),
        "fc1_w": 0.05 * jax.random.normal(ks[16], (256, 128), jnp.float32),
        "fc1_b": 0.05 * jax.random.normal(ks[17], (128,), jnp.float32),
        "fc2_w": 0.05 * jax.random.normal(ks[18], (128, 1), jnp.float32),
        "fc2_b": 0.05 * jax.random.normal(ks[19], (1,), jnp.float32),
    }


# ----------------------------------------------------------------------------
# Forward pass (matches NeuronCounter.forward in eval mode)
# ----------------------------------------------------------------------------
def neuron_counter_forward(params, x_nchw):
    x = jnp.transpose(x_nchw, (0, 2, 3, 1)).astype(jnp.bfloat16)  # NCHW -> NHWC

    x = conv_bn_act(x, params["conv1_w"], params["bn1"], stride=2, pad=3,
                    act="relu")
    x = maxpool_3x3_s2_p1(x)

    for blk, stride in zip(params["layer1"], (1, 1)):
        x = res_block(x, blk, stride)
    for blk, stride in zip(params["layer2"], (2, 1)):
        x = res_block(x, blk, stride)
    for blk, stride in zip(params["layer3"], (2, 1)):
        x = res_block(x, blk, stride)
    features = x                               # (N, S/16, S/16, 256), bf16

    seg = upconv2x2(features, params["up1_w"], params["up1_b"], act="relu")
    seg = upconv2x2(seg, params["up2_w"], params["up2_b"], act="relu")
    seg = upconv2x2(seg, params["up3_w"], params["up3_b"], act="relu")
    seg = upconv2x2(seg, params["up4_w"], params["up4_b"], act="sigmoid",
                    out_dtype=jnp.float32)
    seg_out = jnp.transpose(seg, (0, 3, 1, 2))  # -> NCHW (N, 1, S, S)

    # AdaptiveAvgPool2d((1,1)) + flatten
    count = jnp.mean(features.astype(jnp.float32), axis=(1, 2))
    h = matmul_bias_act(count, params["fc1_w"], params["fc1_b"], act="relu",
                        out_dtype=jnp.float32)
    # TODO(synk): Dropout(0.5) is identity in eval/inference mode (no-op here).
    count_out = matmul_bias_act(h, params["fc2_w"], params["fc2_b"],
                                act="none", out_dtype=jnp.float32)
    return seg_out, count_out


neuron_counter_forward_jit = jax.jit(neuron_counter_forward)


# ----------------------------------------------------------------------------
if __name__ == "__main__":
    key = jax.random.PRNGKey(0)
    k_params, k_x = jax.random.split(key)

    input_size = 32          # small, divisible by 16 (4 stride-2 stages)
    batch = 2
    x = jax.random.normal(k_x, (batch, 3, input_size, input_size), jnp.float32)

    params = init_params(k_params)
    seg_out, count_out = neuron_counter_forward_jit(params, x)
    jax.block_until_ready((seg_out, count_out))

    assert seg_out.shape == (batch, 1, input_size, input_size), seg_out.shape
    assert count_out.shape == (batch, 1), count_out.shape
    assert bool(jnp.all(jnp.isfinite(seg_out))) and bool(jnp.all(jnp.isfinite(count_out)))
    assert bool(jnp.all(seg_out >= 0.0)) and bool(jnp.all(seg_out <= 1.0))

    print("KERNEL_OK")
</pallas_src>

<mosaic_0001>
module attributes {stable_mosaic.version = 11 : i64} {
  func.func @_mm_kernel(%arg0: i32, %arg1: memref<256x147xbf16, #tpu.memory_space<vmem>>, %arg2: memref<147x128xbf16, #tpu.memory_space<vmem>>, %arg3: memref<1x128xf32, #tpu.memory_space<vmem>>, %arg4: memref<256x128xbf16, #tpu.memory_space<vmem>>) attributes {dimension_semantics = [#tpu.dimension_semantics<parallel>], iteration_bounds = array<i64: 2>, scalar_prefetch = 0 : i64, scratch_operands = 0 : i64, tpu.core_type = #tpu.core_type<tc>, window_params = [{transform_indices = @transform_0, window_bounds = array<i64: 256, 147>}, {pipeline_mode = #tpu.pipeline_mode<synchronous>, transform_indices = @transform_1, window_bounds = array<i64: 147, 128>}, {pipeline_mode = #tpu.pipeline_mode<synchronous>, transform_indices = @transform_2, window_bounds = array<i64: 1, 128>}, {transform_indices = @transform_3, window_bounds = array<i64: 256, 128>}]} {
    %c0 = arith.constant 0 : index
    %c0_0 = arith.constant 0 : index
    %0 = vector.load %arg1[%c0, %c0_0] : memref<256x147xbf16, #tpu.memory_space<vmem>>, vector<256x147xbf16>
    %c0_1 = arith.constant 0 : index
    %c0_2 = arith.constant 0 : index
    %1 = vector.load %arg2[%c0_1, %c0_2] : memref<147x128xbf16, #tpu.memory_space<vmem>>, vector<147x128xbf16>
    %cst = arith.constant dense<0.000000e+00> : vector<256x128xf32>
    %2 = tpu.matmul %0, %1, %cst {dimension_numbers = #tpu.dot_dimension_numbers<[1], [0], [0], [1], [0, 0, 1, 1], [], []>} : vector<256x147xbf16>, vector<147x128xbf16>, vector<256x128xf32> -> vector<256x128xf32>
    %c0_3 = arith.constant 0 : index
    %c0_4 = arith.constant 0 : index
    %3 = vector.load %arg3[%c0_3, %c0_4] : memref<1x128xf32, #tpu.memory_space<vmem>>, vector<1x128xf32>
    %4 = vector.broadcast %3 : vector<1x128xf32> to vector<256x128xf32>
    %5 = arith.addf %2, %4 : vector<256x128xf32>
    %cst_5 = arith.constant 0.000000e+00 : f32
    %6 = vector.broadcast %cst_5 : f32 to vector<256x128xf32>
    %7 = arith.maximumf %5, %6 : vector<256x128xf32>
    %8 = arith.truncf %7 : vector<256x128xf32> to vector<256x128xbf16>
    %c0_6 = arith.constant 0 : index
    %c0_7 = arith.constant 0 : index
    %9 = vector.load %arg4[%c0_6, %c0_7] : memref<256x128xbf16, #tpu.memory_space<vmem>>, vector<256x128xbf16>
    tpu.vector_store %arg4[%c0_6, %c0_7], %8 {strides = array<i32>} : memref<256x128xbf16, #tpu.memory_space<vmem>>, vector<256x128xbf16>,
    return
  }
  func.func @transform_0(%arg0: i32) -> (i32, i32) {
    %c0_i32 = arith.constant 0 : i32
    %c0_i32_0 = arith.constant 0 : i32
    return %arg0, %c0_i32 : i32, i32
  }
  func.func @transform_1(%arg0: i32) -> (i32, i32) {
    %c0_i32 = arith.constant 0 : i32
    %c0_i32_0 = arith.constant 0 : i32
    %c0_i32_1 = arith.constant 0 : i32
    return %c0_i32, %c0_i32_0 : i32, i32
  }
  func.func @transform_2(%arg0: i32) -> (i32, i32) {
    %c0_i32 = arith.constant 0 : i32
    %c0_i32_0 = arith.constant 0 : i32
    %c0_i32_1 = arith.constant 0 : i32
    return %c0_i32, %c0_i32_0 : i32, i32
  }
  func.func @transform_3(%arg0: i32) -> (i32, i32) {
    %c0_i32 = arith.constant 0 : i32
    %c0_i32_0 = arith.constant 0 : i32
    return %arg0, %c0_i32 : i32, i32
  }
}

module attributes {stable_mosaic.version = 11 : i64} {
  func.func @_mm_res_kernel(%arg0: i32, %arg1: memref<128x576xbf16, #tpu.memory_space<vmem>>, %arg2: memref<576x128xbf16, #tpu.memory_space<vmem>>, %arg3: memref<1x128xf32, #tpu.memory_space<vmem>>, %arg4: memref<128x128xbf16, #tpu.memory_space<vmem>>, %arg5: memref<128x128xbf16, #tpu.memory_space<vmem>>) attributes {dimension_semantics = [#tpu.dimension_semantics<parallel>], iteration_bounds = array<i64: 1>, scalar_prefetch = 0 : i64, scratch_operands = 0 : i64, tpu.core_type = #tpu.core_type<tc>, window_params = [{transform_indices = @transform_0, window_bounds = array<i64: 128, 576>}, {pipeline_mode = #tpu.pipeline_mode<synchronous>, transform_indices = @transform_1, window_bounds = array<i64: 576, 128>}, {pipeline_mode = #tpu.pipeline_mode<synchronous>, transform_indices = @transform_2, window_bounds = array<i64: 1, 128>}, {transform_indices = @transform_3, window_bounds = array<i64: 128, 128>}, {transform_indices = @transform_4, window_bounds = array<i64: 128, 128>}]} {
    %c0 = arith.constant 0 : index
    %c0_0 = arith.constant 0 : index
    %0 = vector.load %arg1[%c0, %c0_0] : memref<128x576xbf16, #tpu.memory_space<vmem>>, vector<128x576xbf16>
    %c0_1 = arith.constant 0 : index
    %c0_2 = arith.constant 0 : index
    %1 = vector.load %arg2[%c0_1, %c0_2] : memref<576x128xbf16, #tpu.memory_space<vmem>>, vector<576x128xbf16>
    %cst = arith.constant dense<0.000000e+00> : vector<128x128xf32>
    %2 = tpu.matmul %0, %1, %cst {dimension_numbers = #tpu.dot_dimension_numbers<[1], [0], [0], [1], [0, 0, 1, 1], [], []>} : vector<128x576xbf16>, vector<576x128xbf16>, vector<128x128xf32> -> vector<128x128xf32>
    %c0_3 = arith.constant 0 : index
    %c0_4 = arith.constant 0 : index
    %3 = vector.load %arg3[%c0_3, %c0_4] : memref<1x128xf32, #tpu.memory_space<vmem>>, vector<1x128xf32>
    %4 = vector.broadcast %3 : vector<1x128xf32> to vector<128x128xf32>
    %5 = arith.addf %2, %4 : vector<128x128xf32>
    %c0_5 = arith.constant 0 : index
    %c0_6 = arith.constant 0 : index
    %6 = vector.load %arg4[%c0_5, %c0_6] : memref<128x128xbf16, #tpu.memory_space<vmem>>, vector<128x128xbf16>
    %7 = arith.extf %6 : vector<128x128xbf16> to vector<128x128xf32>
    %8 = arith.addf %5, %7 : vector<128x128xf32>
    %cst_7 = arith.constant 0.000000e+00 : f32
    %9 = vector.broadcast %cst_7 : f32 to vector<128x128xf32>
    %10 = arith.maximumf %8, %9 : vector<128x128xf32>
    %11 = arith.truncf %10 : vector<128x128xf32> to vector<128x128xbf16>
    %c0_8 = arith.constant 0 : index
    %c0_9 = arith.constant 0 : index
    %12 = vector.load %arg5[%c0_8, %c0_9] : memref<128x128xbf16, #tpu.memory_space<vmem>>, vector<128x128xbf16>
    tpu.vector_store %arg5[%c0_8, %c0_9], %11 {strides = array<i32>} : memref<128x128xbf16, #tpu.memory_space<vmem>>, vector<128x128xbf16>,
    return
  }
  func.func @transform_0(%arg0: i32) -> (i32, i32) {
    %c0_i32 = arith.constant 0 : i32
    %c0_i32_0 = arith.constant 0 : i32
    return %arg0, %c0_i32 : i32, i32
  }
  func.func @transform_1(%arg0: i32) -> (i32, i32) {
    %c0_i32 = arith.constant 0 : i32
    %c0_i32_0 = arith.constant 0 : i32
    %c0_i32_1 = arith.constant 0 : i32
    return %c0_i32, %c0_i32_0 : i32, i32
  }
  func.func @transform_2(%arg0: i32) -> (i32, i32) {
    %c0_i32 = arith.constant 0 : i32
    %c0_i32_0 = arith.constant 0 : i32
    %c0_i32_1 = arith.constant 0 : i32
    return %c0_i32, %c0_i32_0 : i32, i32
  }
  func.func @transform_3(%arg0: i32) -> (i32, i32) {
    %c0_i32 = arith.constant 0 : i32
    %c0_i32_0 = arith.constant 0 : i32
    return %arg0, %c0_i32 : i32, i32
  }
  func.func @transform_4(%arg0: i32) -> (i32, i32) {
    %c0_i32 = arith.constant 0 : i32
    %c0_i32_0 = arith.constant 0 : i32
    return %arg0, %c0_i32 : i32, i32
  }
}

module attributes {stable_mosaic.version = 11 : i64} {
  func.func @_mm_kernel(%arg0: i32, %arg1: memref<128x576xbf16, #tpu.memory_space<vmem>>, %arg2: memref<576x128xbf16, #tpu.memory_space<vmem>>, %arg3: memref<1x128xf32, #tpu.memory_space<vmem>>, %arg4: memref<128x128xbf16, #tpu.memory_space<vmem>>) attributes {dimension_semantics = [#tpu.dimension_semantics<parallel>], iteration_bounds = array<i64: 1>, scalar_prefetch = 0 : i64, scratch_operands = 0 : i64, tpu.core_type = #tpu.core_type<tc>, window_params = [{transform_indices = @transform_0, window_bounds = array<i64: 128, 576>}, {pipeline_mode = #tpu.pipeline_mode<synchronous>, transform_indices = @transform_1, window_bounds = array<i64: 576, 128>}, {pipeline_mode = #tpu.pipeline_mode<synchronous>, transform_indices = @transform_2, window_bounds = array<i64: 1, 128>}, {transform_indices = @transform_3, window_bounds = array<i64: 128, 128>}]} {
    %c0 = arith.constant 0 : index
    %c0_0 = arith.constant 0 : index
    %0 = vector.load %arg1[%c0, %c0_0] : memref<128x576xbf16, #tpu.memory_space<vmem>>, vector<128x576xbf16>
    %c0_1 = arith.constant 0 : index
    %c0_2 = arith.constant 0 : index
    %1 = vector.load %arg2[%c0_1, %c0_2] : memref<576x128xbf16, #tpu.memory_space<vmem>>, vector<576x128xbf16>
    %cst = arith.constant dense<0.000000e+00> : vector<128x128xf32>
    %2 = tpu.matmul %0, %1, %cst {dimension_numbers = #tpu.dot_dimension_numbers<[1], [0], [0], [1], [0, 0, 1, 1], [], []>} : vector<128x576xbf16>, vector<576x128xbf16>, vector<128x128xf32> -> vector<128x128xf32>
    %c0_3 = arith.constant 0 : index
    %c0_4 = arith.constant 0 : index
    %3 = vector.load %arg3[%c0_3, %c0_4] : memref<1x128xf32, #tpu.memory_space<vmem>>, vector<1x128xf32>
    %4 = vector.broadcast %3 : vector<1x128xf32> to vector<128x128xf32>
    %5 = arith.addf %2, %4 : vector<128x128xf32>
    %cst_5 = arith.constant 0.000000e+00 : f32
    %6 = vector.broadcast %cst_5 : f32 to vector<128x128xf32>
    %7 = arith.maximumf %5, %6 : vector<128x128xf32>
    %8 = arith.truncf %7 : vector<128x128xf32> to vector<128x128xbf16>
    %c0_6 = arith.constant 0 : index
    %c0_7 = arith.constant 0 : index
    %9 = vector.load %arg4[%c0_6, %c0_7] : memref<128x128xbf16, #tpu.memory_space<vmem>>, vector<128x128xbf16>
    tpu.vector_store %arg4[%c0_6, %c0_7], %8 {strides = array<i32>} : memref<128x128xbf16, #tpu.memory_space<vmem>>, vector<128x128xbf16>,
    return
  }
  func.func @transform_0(%arg0: i32) -> (i32, i32) {
    %c0_i32 = arith.constant 0 : i32
    %c0_i32_0 = arith.constant 0 : i32
    return %arg0, %c0_i32 : i32, i32
  }
  func.func @transform_1(%arg0: i32) -> (i32, i32) {
    %c0_i32 = arith.constant 0 : i32
    %c0_i32_0 = arith.constant 0 : i32
    %c0_i32_1 = arith.constant 0 : i32
    return %c0_i32, %c0_i32_0 : i32, i32
  }
  func.func @transform_2(%arg0: i32) -> (i32, i32) {
    %c0_i32 = arith.constant 0 : i32
    %c0_i32_0 = arith.constant 0 : i32
    %c0_i32_1 = arith.constant 0 : i32
    return %c0_i32, %c0_i32_0 : i32, i32
  }
  func.func @transform_3(%arg0: i32) -> (i32, i32) {
    %c0_i32 = arith.constant 0 : i32
    %c0_i32_0 = arith.constant 0 : i32
    return %arg0, %c0_i32 : i32, i32
  }
}

module attributes {stable_mosaic.version = 11 : i64} {
  func.func @_mm_kernel(%arg0: i32, %arg1: memref<32x576xbf16, #tpu.memory_space<vmem>>, %arg2: memref<576x256xbf16, #tpu.memory_space<vmem>>, %arg3: memref<1x256xf32, #tpu.memory_space<vmem>>, %arg4: memref<32x256xbf16, #tpu.memory_space<vmem>>) attributes {dimension_semantics = [#tpu.dimension_semantics<parallel>], iteration_bounds = array<i64: 1>, scalar_prefetch = 0 : i64, scratch_operands = 0 : i64, tpu.core_type = #tpu.core_type<tc>, window_params = [{transform_indices = @transform_0, window_bounds = array<i64: 32, 576>}, {pipeline_mode = #tpu.pipeline_mode<synchronous>, transform_indices = @transform_1, window_bounds = array<i64: 576, 256>}, {pipeline_mode = #tpu.pipeline_mode<synchronous>, transform_indices = @transform_2, window_bounds = array<i64: 1, 256>}, {transform_indices = @transform_3, window_bounds = array<i64: 32, 256>}]} {
    %c0 = arith.constant 0 : index
    %c0_0 = arith.constant 0 : index
    %0 = vector.load %arg1[%c0, %c0_0] : memref<32x576xbf16, #tpu.memory_space<vmem>>, vector<32x576xbf16>
    %c0_1 = arith.constant 0 : index
    %c0_2 = arith.constant 0 : index
    %1 = vector.load %arg2[%c0_1, %c0_2] : memref<576x256xbf16, #tpu.memory_space<vmem>>, vector<576x256xbf16>
    %cst = arith.constant dense<0.000000e+00> : vector<32x256xf32>
    %2 = tpu.matmul %0, %1, %cst {dimension_numbers = #tpu.dot_dimension_numbers<[1], [0], [0], [1], [0, 0, 1, 1], [], []>} : vector<32x576xbf16>, vector<576x256xbf16>, vector<32x256xf32> -> vector<32x256xf32>
    %c0_3 = arith.constant 0 : index
    %c0_4 = arith.constant 0 : index
    %3 = vector.load %arg3[%c0_3, %c0_4] : memref<1x256xf32, #tpu.memory_space<vmem>>, vector<1x256xf32>
    %4 = vector.broadcast %3 : vector<1x256xf32> to vector<32x256xf32>
    %5 = arith.addf %2, %4 : vector<32x256xf32>
    %6 = arith.truncf %5 : vector<32x256xf32> to vector<32x256xbf16>
    %c0_5 = arith.constant 0 : index
    %c0_6 = arith.constant 0 : index
    %7 = vector.load %arg4[%c0_5, %c0_6] : memref<32x256xbf16, #tpu.memory_space<vmem>>, vector<32x256xbf16>
    tpu.vector_store %arg4[%c0_5, %c0_6], %6 {strides = array<i32>} : memref<32x256xbf16, #tpu.memory_space<vmem>>, vector<32x256xbf16>,
    return
  }
  func.func @transform_0(%arg0: i32) -> (i32, i32) {
    %c0_i32 = arith.constant 0 : i32
    %c0_i32_0 = arith.constant 0 : i32
    return %arg0, %c0_i32 : i32, i32
  }
  func.func @transform_1(%arg0: i32) -> (i32, i32) {
    %c0_i32 = arith.constant 0 : i32
    %c0_i32_0 = arith.constant 0 : i32
    %c0_i32_1 = arith.constant 0 : i32
    return %c0_i32, %c0_i32_0 : i32, i32
  }
  func.func @transform_2(%arg0: i32) -> (i32, i32) {
    %c0_i32 = arith.constant 0 : i32
    %c0_i32_0 = arith.constant 0 : i32
    %c0_i32_1 = arith.constant 0 : i32
    return %c0_i32, %c0_i32_0 : i32, i32
  }
  func.func @transform_3(%arg0: i32) -> (i32, i32) {
    %c0_i32 = arith.constant 0 : i32
    %c0_i32_0 = arith.constant 0 : i32
    return %arg0, %c0_i32 : i32, i32
  }
}

module attributes {stable_mosaic.version = 11 : i64} {
  func.func @_mm_kernel(%arg0: i32, %arg1: memref<32x1152xbf16, #tpu.memory_space<vmem>>, %arg2: memref<1152x128xbf16, #tpu.memory_space<vmem>>, %arg3: memref<1x128xf32, #tpu.memory_space<vmem>>, %arg4: memref<32x128xbf16, #tpu.memory_space<vmem>>) attributes {dimension_semantics = [#tpu.dimension_semantics<parallel>], iteration_bounds = array<i64: 1>, scalar_prefetch = 0 : i64, scratch_operands = 0 : i64, tpu.core_type = #tpu.core_type<tc>, window_params = [{transform_indices = @transform_0, window_bounds = array<i64: 32, 1152>}, {pipeline_mode = #tpu.pipeline_mode<synchronous>, transform_indices = @transform_1, window_bounds = array<i64: 1152, 128>}, {pipeline_mode = #tpu.pipeline_mode<synchronous>, transform_indices = @transform_2, window_bounds = array<i64: 1, 128>}, {transform_indices = @transform_3, window_bounds = array<i64: 32, 128>}]} {
    %c0 = arith.constant 0 : index
    %c0_0 = arith.constant 0 : index
    %0 = vector.load %arg1[%c0, %c0_0] : memref<32x1152xbf16, #tpu.memory_space<vmem>>, vector<32x1152xbf16>
    %c0_1 = arith.constant 0 : index
    %c0_2 = arith.constant 0 : index
    %1 = vector.load %arg2[%c0_1, %c0_2] : memref<1152x128xbf16, #tpu.memory_space<vmem>>, vector<1152x128xbf16>
    %cst = arith.constant dense<0.000000e+00> : vector<32x128xf32>
    %2 = tpu.matmul %0, %1, %cst {dimension_numbers = #tpu.dot_dimension_numbers<[1], [0], [0], [1], [0, 0, 1, 1], [], []>} : vector<32x1152xbf16>, vector<1152x128xbf16>, vector<32x128xf32> -> vector<32x128xf32>
    %c0_3 = arith.constant 0 : index
    %c0_4 = arith.constant 0 : index
    %3 = vector.load %arg3[%c0_3, %c0_4] : memref<1x128xf32, #tpu.memory_space<vmem>>, vector<1x128xf32>
    %4 = vector.broadcast %3 : vector<1x128xf32> to vector<32x128xf32>
    %5 = arith.addf %2, %4 : vector<32x128xf32>
    %cst_5 = arith.constant 0.000000e+00 : f32
    %6 = vector.broadcast %cst_5 : f32 to vector<32x128xf32>
    %7 = arith.maximumf %5, %6 : vector<32x128xf32>
    %8 = arith.truncf %7 : vector<32x128xf32> to vector<32x128xbf16>
    %c0_6 = arith.constant 0 : index
    %c0_7 = arith.constant 0 : index
    %9 = vector.load %arg4[%c0_6, %c0_7] : memref<32x128xbf16, #tpu.memory_space<vmem>>, vector<32x128xbf16>
    tpu.vector_store %arg4[%c0_6, %c0_7], %8 {strides = array<i32>} : memref<32x128xbf16, #tpu.memory_space<vmem>>, vector<32x128xbf16>,
    return
  }
  func.func @transform_0(%arg0: i32) -> (i32, i32) {
    %c0_i32 = arith.constant 0 : i32
    %c0_i32_0 = arith.constant 0 : i32
    return %arg0, %c0_i32 : i32, i32
  }
  func.func @transform_1(%arg0: i32) -> (i32, i32) {
    %c0_i32 = arith.constant 0 : i32
    %c0_i32_0 = arith.constant 0 : i32
    %c0_i32_1 = arith.constant 0 : i32
    return %c0_i32, %c0_i32_0 : i32, i32
  }
  func.func @transform_2(%arg0: i32) -> (i32, i32) {
    %c0_i32 = arith.constant 0 : i32
    %c0_i32_0 = arith.constant 0 : i32
    %c0_i32_1 = arith.constant 0 : i32
    return %c0_i32, %c0_i32_0 : i32, i32
  }
  func.func @transform_3(%arg0: i32) -> (i32, i32) {
    %c0_i32 = arith.constant 0 : i32
    %c0_i32_0 = arith.constant 0 : i32
    return %arg0, %c0_i32 : i32, i32
  }
}

module attributes {stable_mosaic.version = 11 : i64} {
  func.func @_mm_res_kernel(%arg0: i32, %arg1: memref<32x1152xbf16, #tpu.memory_space<vmem>>, %arg2: memref<1152x128xbf16, #tpu.memory_space<vmem>>, %arg3: memref<1x128xf32, #tpu.memory_space<vmem>>, %arg4: memref<32x128xbf16, #tpu.memory_space<vmem>>, %arg5: memref<32x128xbf16, #tpu.memory_space<vmem>>) attributes {dimension_semantics = [#tpu.dimension_semantics<parallel>], iteration_bounds = array<i64: 1>, scalar_prefetch = 0 : i64, scratch_operands = 0 : i64, tpu.core_type = #tpu.core_type<tc>, window_params = [{transform_indices = @transform_0, window_bounds = array<i64: 32, 1152>}, {pipeline_mode = #tpu.pipeline_mode<synchronous>, transform_indices = @transform_1, window_bounds = array<i64: 1152, 128>}, {pipeline_mode = #tpu.pipeline_mode<synchronous>, transform_indices = @transform_2, window_bounds = array<i64: 1, 128>}, {transform_indices = @transform_3, window_bounds = array<i64: 32, 128>}, {transform_indices = @transform_4, window_bounds = array<i64: 32, 128>}]} {
    %c0 = arith.constant 0 : index
    %c0_0 = arith.constant 0 : index
    %0 = vector.load %arg1[%c0, %c0_0] : memref<32x1152xbf16, #tpu.memory_space<vmem>>, vector<32x1152xbf16>
    %c0_1 = arith.constant 0 : index
    %c0_2 = arith.constant 0 : index
    %1 = vector.load %arg2[%c0_1, %c0_2] : memref<1152x128xbf16, #tpu.memory_space<vmem>>, vector<1152x128xbf16>
    %cst = arith.constant dense<0.000000e+00> : vector<32x128xf32>
    %2 = tpu.matmul %0, %1, %cst {dimension_numbers = #tpu.dot_dimension_numbers<[1], [0], [0], [1], [0, 0, 1, 1], [], []>} : vector<32x1152xbf16>, vector<1152x128xbf16>, vector<32x128xf32> -> vector<32x128xf32>
    %c0_3 = arith.constant 0 : index
    %c0_4 = arith.constant 0 : index
    %3 = vector.load %arg3[%c0_3, %c0_4] : memref<1x128xf32, #tpu.memory_space<vmem>>, vector<1x128xf32>
    %4 = vector.broadcast %3 : vector<1x128xf32> to vector<32x128xf32>
    %5 = arith.addf %2, %4 : vector<32x128xf32>
    %c0_5 = arith.constant 0 : index
    %c0_6 = arith.constant 0 : index
    %6 = vector.load %arg4[%c0_5, %c0_6] : memref<32x128xbf16, #tpu.memory_space<vmem>>, vector<32x128xbf16>
    %7 = arith.extf %6 : vector<32x128xbf16> to vector<32x128xf32>
    %8 = arith.addf %5, %7 : vector<32x128xf32>
    %cst_7 = arith.constant 0.000000e+00 : f32
    %9 = vector.broadcast %cst_7 : f32 to vector<32x128xf32>
    %10 = arith.maximumf %8, %9 : vector<32x128xf32>
    %11 = arith.truncf %10 : vector<32x128xf32> to vector<32x128xbf16>
    %c0_8 = arith.constant 0 : index
    %c0_9 = arith.constant 0 : index
    %12 = vector.load %arg5[%c0_8, %c0_9] : memref<32x128xbf16, #tpu.memory_space<vmem>>, vector<32x128xbf16>
    tpu.vector_store %arg5[%c0_8, %c0_9], %11 {strides = array<i32>} : memref<32x128xbf16, #tpu.memory_space<vmem>>, vector<32x128xbf16>,
    return
  }
  func.func @transform_0(%arg0: i32) -> (i32, i32) {
    %c0_i32 = arith.constant 0 : i32
    %c0_i32_0 = arith.constant 0 : i32
    return %arg0, %c0_i32 : i32, i32
  }
  func.func @transform_1(%arg0: i32) -> (i32, i32) {
    %c0_i32 = arith.constant 0 : i32
    %c0_i32_0 = arith.constant 0 : i32
    %c0_i32_1 = arith.constant 0 : i32
    return %c0_i32, %c0_i32_0 : i32, i32
  }
  func.func @transform_2(%arg0: i32) -> (i32, i32) {
    %c0_i32 = arith.constant 0 : i32
    %c0_i32_0 = arith.constant 0 : i32
    %c0_i32_1 = arith.constant 0 : i32
    return %c0_i32, %c0_i32_0 : i32, i32
  }
  func.func @transform_3(%arg0: i32) -> (i32, i32) {
    %c0_i32 = arith.constant 0 : i32
    %c0_i32_0 = arith.constant 0 : i32
    return %arg0, %c0_i32 : i32, i32
  }
  func.func @transform_4(%arg0: i32) -> (i32, i32) {
    %c0_i32 = arith.constant 0 : i32
    %c0_i32_0 = arith.constant 0 : i32
    return %arg0, %c0_i32 : i32, i32
  }
}

module attributes {stable_mosaic.version = 11 : i64} {
  func.func @_mm_kernel(%arg0: i32, %arg1: memref<8x1152xbf16, #tpu.memory_space<vmem>>, %arg2: memref<1152x512xbf16, #tpu.memory_space<vmem>>, %arg3: memref<1x512xf32, #tpu.memory_space<vmem>>, %arg4: memref<8x512xbf16, #tpu.memory_space<vmem>>) attributes {dimension_semantics = [#tpu.dimension_semantics<parallel>], iteration_bounds = array<i64: 1>, scalar_prefetch = 0 : i64, scratch_operands = 0 : i64, tpu.core_type = #tpu.core_type<tc>, window_params = [{transform_indices = @transform_0, window_bounds = array<i64: 8, 1152>}, {pipeline_mode = #tpu.pipeline_mode<synchronous>, transform_indices = @transform_1, window_bounds = array<i64: 1152, 512>}, {pipeline_mode = #tpu.pipeline_mode<synchronous>, transform_indices = @transform_2, window_bounds = array<i64: 1, 512>}, {transform_indices = @transform_3, window_bounds = array<i64: 8, 512>}]} {
    %c0 = arith.constant 0 : index
    %c0_0 = arith.constant 0 : index
    %0 = vector.load %arg1[%c0, %c0_0] : memref<8x1152xbf16, #tpu.memory_space<vmem>>, vector<8x1152xbf16>
    %c0_1 = arith.constant 0 : index
    %c0_2 = arith.constant 0 : index
    %1 = vector.load %arg2[%c0_1, %c0_2] : memref<1152x512xbf16, #tpu.memory_space<vmem>>, vector<1152x512xbf16>
    %cst = arith.constant dense<0.000000e+00> : vector<8x512xf32>
    %2 = tpu.matmul %0, %1, %cst {dimension_numbers = #tpu.dot_dimension_numbers<[1], [0], [0], [1], [0, 0, 1, 1], [], []>} : vector<8x1152xbf16>, vector<1152x512xbf16>, vector<8x512xf32> -> vector<8x512xf32>
    %c0_3 = arith.constant 0 : index
    %c0_4 = arith.constant 0 : index
    %3 = vector.load %arg3[%c0_3, %c0_4] : memref<1x512xf32, #tpu.memory_space<vmem>>, vector<1x512xf32>
    %4 = vector.broadcast %3 : vector<1x512xf32> to vector<8x512xf32>
    %5 = arith.addf %2, %4 : vector<8x512xf32>
    %6 = arith.truncf %5 : vector<8x512xf32> to vector<8x512xbf16>
    %c0_5 = arith.constant 0 : index
    %c0_6 = arith.constant 0 : index
    %7 = vector.load %arg4[%c0_5, %c0_6] : memref<8x512xbf16, #tpu.memory_space<vmem>>, vector<8x512xbf16>
    tpu.vector_store %arg4[%c0_5, %c0_6], %6 {strides = array<i32>} : memref<8x512xbf16, #tpu.memory_space<vmem>>, vector<8x512xbf16>,
    return
  }
  func.func @transform_0(%arg0: i32) -> (i32, i32) {
    %c0_i32 = arith.constant 0 : i32
    %c0_i32_0 = arith.constant 0 : i32
    return %arg0, %c0_i32 : i32, i32
  }
  func.func @transform_1(%arg0: i32) -> (i32, i32) {
    %c0_i32 = arith.constant 0 : i32
    %c0_i32_0 = arith.constant 0 : i32
    %c0_i32_1 = arith.constant 0 : i32
    return %c0_i32, %c0_i32_0 : i32, i32
  }
  func.func @transform_2(%arg0: i32) -> (i32, i32) {
    %c0_i32 = arith.constant 0 : i32
    %c0_i32_0 = arith.constant 0 : i32
    %c0_i32_1 = arith.constant 0 : i32
    return %c0_i32, %c0_i32_0 : i32, i32
  }
  func.func @transform_3(%arg0: i32) -> (i32, i32) {
    %c0_i32 = arith.constant 0 : i32
    %c0_i32_0 = arith.constant 0 : i32
    return %arg0, %c0_i32 : i32, i32
  }
}

module attributes {stable_mosaic.version = 11 : i64} {
  func.func @_mm_res_kernel(%arg0: i32, %arg1: memref<8x2304xbf16, #tpu.memory_space<vmem>>, %arg2: memref<2304x256xbf16, #tpu.memory_space<vmem>>, %arg3: memref<1x256xf32, #tpu.memory_space<vmem>>, %arg4: memref<8x256xbf16, #tpu.memory_space<vmem>>, %arg5: memref<8x256xbf16, #tpu.memory_space<vmem>>) attributes {dimension_semantics = [#tpu.dimension_semantics<parallel>], iteration_bounds = array<i64: 1>, scalar_prefetch = 0 : i64, scratch_operands = 0 : i64, tpu.core_type = #tpu.core_type<tc>, window_params = [{transform_indices = @transform_0, window_bounds = array<i64: 8, 2304>}, {pipeline_mode = #tpu.pipeline_mode<synchronous>, transform_indices = @transform_1, window_bounds = array<i64: 2304, 256>}, {pipeline_mode = #tpu.pipeline_mode<synchronous>, transform_indices = @transform_2, window_bounds = array<i64: 1, 256>}, {transform_indices = @transform_3, window_bounds = array<i64: 8, 256>}, {transform_indices = @transform_4, window_bounds = array<i64: 8, 256>}]} {
    %c0 = arith.constant 0 : index
    %c0_0 = arith.constant 0 : index
    %0 = vector.load %arg1[%c0, %c0_0] : memref<8x2304xbf16, #tpu.memory_space<vmem>>, vector<8x2304xbf16>
    %c0_1 = arith.constant 0 : index
    %c0_2 = arith.constant 0 : index
    %1 = vector.load %arg2[%c0_1, %c0_2] : memref<2304x256xbf16, #tpu.memory_space<vmem>>, vector<2304x256xbf16>
    %cst = arith.constant dense<0.000000e+00> : vector<8x256xf32>
    %2 = tpu.matmul %0, %1, %cst {dimension_numbers = #tpu.dot_dimension_numbers<[1], [0], [0], [1], [0, 0, 1, 1], [], []>} : vector<8x2304xbf16>, vector<2304x256xbf16>, vector<8x256xf32> -> vector<8x256xf32>
    %c0_3 = arith.constant 0 : index
    %c0_4 = arith.constant 0 : index
    %3 = vector.load %arg3[%c0_3, %c0_4] : memref<1x256xf32, #tpu.memory_space<vmem>>, vector<1x256xf32>
    %4 = vector.broadcast %3 : vector<1x256xf32> to vector<8x256xf32>
    %5 = arith.addf %2, %4 : vector<8x256xf32>
    %c0_5 = arith.constant 0 : index
    %c0_6 = arith.constant 0 : index
    %6 = vector.load %arg4[%c0_5, %c0_6] : memref<8x256xbf16, #tpu.memory_space<vmem>>, vector<8x256xbf16>
    %7 = arith.extf %6 : vector<8x256xbf16> to vector<8x256xf32>
    %8 = arith.addf %5, %7 : vector<8x256xf32>
    %cst_7 = arith.constant 0.000000e+00 : f32
    %9 = vector.broadcast %cst_7 : f32 to vector<8x256xf32>
    %10 = arith.maximumf %8, %9 : vector<8x256xf32>
    %11 = arith.truncf %10 : vector<8x256xf32> to vector<8x256xbf16>
    %c0_8 = arith.constant 0 : index
    %c0_9 = arith.constant 0 : index
    %12 = vector.load %arg5[%c0_8, %c0_9] : memref<8x256xbf16, #tpu.memory_space<vmem>>, vector<8x256xbf16>
    tpu.vector_store %arg5[%c0_8, %c0_9], %11 {strides = array<i32>} : memref<8x256xbf16, #tpu.memory_space<vmem>>, vector<8x256xbf16>,
    return
  }
  func.func @transform_0(%arg0: i32) -> (i32, i32) {
    %c0_i32 = arith.constant 0 : i32
    %c0_i32_0 = arith.constant 0 : i32
    return %arg0, %c0_i32 : i32, i32
  }
  func.func @transform_1(%arg0: i32) -> (i32, i32) {
    %c0_i32 = arith.constant 0 : i32
    %c0_i32_0 = arith.constant 0 : i32
    %c0_i32_1 = arith.constant 0 : i32
    return %c0_i32, %c0_i32_0 : i32, i32
  }
  func.func @transform_2(%arg0: i32) -> (i32, i32) {
    %c0_i32 = arith.constant 0 : i32
    %c0_i32_0 = arith.constant 0 : i32
    %c0_i32_1 = arith.constant 0 : i32
    return %c0_i32, %c0_i32_0 : i32, i32
  }
  func.func @transform_3(%arg0: i32) -> (i32, i32) {
    %c0_i32 = arith.constant 0 : i32
    %c0_i32_0 = arith.constant 0 : i32
    return %arg0, %c0_i32 : i32, i32
  }
  func.func @transform_4(%arg0: i32) -> (i32, i32) {
    %c0_i32 = arith.constant 0 : i32
    %c0_i32_0 = arith.constant 0 : i32
    return %arg0, %c0_i32 : i32, i32
  }
}

module attributes {stable_mosaic.version = 11 : i64} {
  func.func @_mm_kernel(%arg0: i32, %arg1: memref<8x2304xbf16, #tpu.memory_space<vmem>>, %arg2: memref<2304x256xbf16, #tpu.memory_space<vmem>>, %arg3: memref<1x256xf32, #tpu.memory_space<vmem>>, %arg4: memref<8x256xbf16, #tpu.memory_space<vmem>>) attributes {dimension_semantics = [#tpu.dimension_semantics<parallel>], iteration_bounds = array<i64: 1>, scalar_prefetch = 0 : i64, scratch_operands = 0 : i64, tpu.core_type = #tpu.core_type<tc>, window_params = [{transform_indices = @transform_0, window_bounds = array<i64: 8, 2304>}, {pipeline_mode = #tpu.pipeline_mode<synchronous>, transform_indices = @transform_1, window_bounds = array<i64: 2304, 256>}, {pipeline_mode = #tpu.pipeline_mode<synchronous>, transform_indices = @transform_2, window_bounds = array<i64: 1, 256>}, {transform_indices = @transform_3, window_bounds = array<i64: 8, 256>}]} {
    %c0 = arith.constant 0 : index
    %c0_0 = arith.constant 0 : index
    %0 = vector.load %arg1[%c0, %c0_0] : memref<8x2304xbf16, #tpu.memory_space<vmem>>, vector<8x2304xbf16>
    %c0_1 = arith.constant 0 : index
    %c0_2 = arith.constant 0 : index
    %1 = vector.load %arg2[%c0_1, %c0_2] : memref<2304x256xbf16, #tpu.memory_space<vmem>>, vector<2304x256xbf16>
    %cst = arith.constant dense<0.000000e+00> : vector<8x256xf32>
    %2 = tpu.matmul %0, %1, %cst {dimension_numbers = #tpu.dot_dimension_numbers<[1], [0], [0], [1], [0, 0, 1, 1], [], []>} : vector<8x2304xbf16>, vector<2304x256xbf16>, vector<8x256xf32> -> vector<8x256xf32>
    %c0_3 = arith.constant 0 : index
    %c0_4 = arith.constant 0 : index
    %3 = vector.load %arg3[%c0_3, %c0_4] : memref<1x256xf32, #tpu.memory_space<vmem>>, vector<1x256xf32>
    %4 = vector.broadcast %3 : vector<1x256xf32> to vector<8x256xf32>
    %5 = arith.addf %2, %4 : vector<8x256xf32>
    %cst_5 = arith.constant 0.000000e+00 : f32
    %6 = vector.broadcast %cst_5 : f32 to vector<8x256xf32>
    %7 = arith.maximumf %5, %6 : vector<8x256xf32>
    %8 = arith.truncf %7 : vector<8x256xf32> to vector<8x256xbf16>
    %c0_6 = arith.constant 0 : index
    %c0_7 = arith.constant 0 : index
    %9 = vector.load %arg4[%c0_6, %c0_7] : memref<8x256xbf16, #tpu.memory_space<vmem>>, vector<8x256xbf16>
    tpu.vector_store %arg4[%c0_6, %c0_7], %8 {strides = array<i32>} : memref<8x256xbf16, #tpu.memory_space<vmem>>, vector<8x256xbf16>,
    return
  }
  func.func @transform_0(%arg0: i32) -> (i32, i32) {
    %c0_i32 = arith.constant 0 : i32
    %c0_i32_0 = arith.constant 0 : i32
    return %arg0, %c0_i32 : i32, i32
  }
  func.func @transform_1(%arg0: i32) -> (i32, i32) {
    %c0_i32 = arith.constant 0 : i32
    %c0_i32_0 = arith.constant 0 : i32
    %c0_i32_1 = arith.constant 0 : i32
    return %c0_i32, %c0_i32_0 : i32, i32
  }
  func.func @transform_2(%arg0: i32) -> (i32, i32) {
    %c0_i32 = arith.constant 0 : i32
    %c0_i32_0 = arith.constant 0 : i32
    %c0_i32_1 = arith.constant 0 : i32
    return %c0_i32, %c0_i32_0 : i32, i32
  }
  func.func @transform_3(%arg0: i32) -> (i32, i32) {
    %c0_i32 = arith.constant 0 : i32
    %c0_i32_0 = arith.constant 0 : i32
    return %arg0, %c0_i32 : i32, i32
  }
}

module attributes {stable_mosaic.version = 11 : i64} {
  func.func @_mm_kernel(%arg0: i32, %arg1: memref<8x256xbf16, #tpu.memory_space<vmem>>, %arg2: memref<256x512xbf16, #tpu.memory_space<vmem>>, %arg3: memref<1x512xf32, #tpu.memory_space<vmem>>, %arg4: memref<8x512xbf16, #tpu.memory_space<vmem>>) attributes {dimension_semantics = [#tpu.dimension_semantics<parallel>], iteration_bounds = array<i64: 1>, scalar_prefetch = 0 : i64, scratch_operands = 0 : i64, tpu.core_type = #tpu.core_type<tc>, window_params = [{transform_indices = @transform_0, window_bounds = array<i64: 8, 256>}, {pipeline_mode = #tpu.pipeline_mode<synchronous>, transform_indices = @transform_1, window_bounds = array<i64: 256, 512>}, {pipeline_mode = #tpu.pipeline_mode<synchronous>, transform_indices = @transform_2, window_bounds = array<i64: 1, 512>}, {transform_indices = @transform_3, window_bounds = array<i64: 8, 512>}]} {
    %c0 = arith.constant 0 : index
    %c0_0 = arith.constant 0 : index
    %0 = vector.load %arg1[%c0, %c0_0] : memref<8x256xbf16, #tpu.memory_space<vmem>>, vector<8x256xbf16>
    %c0_1 = arith.constant 0 : index
    %c0_2 = arith.constant 0 : index
    %1 = vector.load %arg2[%c0_1, %c0_2] : memref<256x512xbf16, #tpu.memory_space<vmem>>, vector<256x512xbf16>
    %cst = arith.constant dense<0.000000e+00> : vector<8x512xf32>
    %2 = tpu.matmul %0, %1, %cst {dimension_numbers = #tpu.dot_dimension_numbers<[1], [0], [0], [1], [0, 0, 1, 1], [], []>} : vector<8x256xbf16>, vector<256x512xbf16>, vector<8x512xf32> -> vector<8x512xf32>
    %c0_3 = arith.constant 0 : index
    %c0_4 = arith.constant 0 : index
    %3 = vector.load %arg3[%c0_3, %c0_4] : memref<1x512xf32, #tpu.memory_space<vmem>>, vector<1x512xf32>
    %4 = vector.broadcast %3 : vector<1x512xf32> to vector<8x512xf32>
    %5 = arith.addf %2, %4 : vector<8x512xf32>
    %cst_5 = arith.constant 0.000000e+00 : f32
    %6 = vector.broadcast %cst_5 : f32 to vector<8x512xf32>
    %7 = arith.maximumf %5, %6 : vector<8x512xf32>
    %8 = arith.truncf %7 : vector<8x512xf32> to vector<8x512xbf16>
    %c0_6 = arith.constant 0 : index
    %c0_7 = arith.constant 0 : index
    %9 = vector.load %arg4[%c0_6, %c0_7] : memref<8x512xbf16, #tpu.memory_space<vmem>>, vector<8x512xbf16>
    tpu.vector_store %arg4[%c0_6, %c0_7], %8 {strides = array<i32>} : memref<8x512xbf16, #tpu.memory_space<vmem>>, vector<8x512xbf16>,
    return
  }
  func.func @transform_0(%arg0: i32) -> (i32, i32) {
    %c0_i32 = arith.constant 0 : i32
    %c0_i32_0 = arith.constant 0 : i32
    return %arg0, %c0_i32 : i32, i32
  }
  func.func @transform_1(%arg0: i32) -> (i32, i32) {
    %c0_i32 = arith.constant 0 : i32
    %c0_i32_0 = arith.constant 0 : i32
    %c0_i32_1 = arith.constant 0 : i32
    return %c0_i32, %c0_i32_0 : i32, i32
  }
  func.func @transform_2(%arg0: i32) -> (i32, i32) {
    %c0_i32 = arith.constant 0 : i32
    %c0_i32_0 = arith.constant 0 : i32
    %c0_i32_1 = arith.constant 0 : i32
    return %c0_i32, %c0_i32_0 : i32, i32
  }
  func.func @transform_3(%arg0: i32) -> (i32, i32) {
    %c0_i32 = arith.constant 0 : i32
    %c0_i32_0 = arith.constant 0 : i32
    return %arg0, %c0_i32 : i32, i32
  }
}

module attributes {stable_mosaic.version = 11 : i64} {
  func.func @_mm_kernel(%arg0: i32, %arg1: memref<32x128xbf16, #tpu.memory_space<vmem>>, %arg2: memref<128x256xbf16, #tpu.memory_space<vmem>>, %arg3: memref<1x256xf32, #tpu.memory_space<vmem>>, %arg4: memref<32x256xbf16, #tpu.memory_space<vmem>>) attributes {dimension_semantics = [#tpu.dimension_semantics<parallel>], iteration_bounds = array<i64: 1>, scalar_prefetch = 0 : i64, scratch_operands = 0 : i64, tpu.core_type = #tpu.core_type<tc>, window_params = [{transform_indices = @transform_0, window_bounds = array<i64: 32, 128>}, {pipeline_mode = #tpu.pipeline_mode<synchronous>, transform_indices = @transform_1, window_bounds = array<i64: 128, 256>}, {pipeline_mode = #tpu.pipeline_mode<synchronous>, transform_indices = @transform_2, window_bounds = array<i64: 1, 256>}, {transform_indices = @transform_3, window_bounds = array<i64: 32, 256>}]} {
    %c0 = arith.constant 0 : index
    %c0_0 = arith.constant 0 : index
    %0 = vector.load %arg1[%c0, %c0_0] : memref<32x128xbf16, #tpu.memory_space<vmem>>, vector<32x128xbf16>
    %c0_1 = arith.constant 0 : index
    %c0_2 = arith.constant 0 : index
    %1 = vector.load %arg2[%c0_1, %c0_2] : memref<128x256xbf16, #tpu.memory_space<vmem>>, vector<128x256xbf16>
    %cst = arith.constant dense<0.000000e+00> : vector<32x256xf32>
    %2 = tpu.matmul %0, %1, %cst {dimension_numbers = #tpu.dot_dimension_numbers<[1], [0], [0], [1], [0, 0, 1, 1], [], []>} : vector<32x128xbf16>, vector<128x256xbf16>, vector<32x256xf32> -> vector<32x256xf32>
    %c0_3 = arith.constant 0 : index
    %c0_4 = arith.constant 0 : index
    %3 = vector.load %arg3[%c0_3, %c0_4] : memref<1x256xf32, #tpu.memory_space<vmem>>, vector<1x256xf32>
    %4 = vector.broadcast %3 : vector<1x256xf32> to vector<32x256xf32>
    %5 = arith.addf %2, %4 : vector<32x256xf32>
    %cst_5 = arith.constant 0.000000e+00 : f32
    %6 = vector.broadcast %cst_5 : f32 to vector<32x256xf32>
    %7 = arith.maximumf %5, %6 : vector<32x256xf32>
    %8 = arith.truncf %7 : vector<32x256xf32> to vector<32x256xbf16>
    %c0_6 = arith.constant 0 : index
    %c0_7 = arith.constant 0 : index
    %9 = vector.load %arg4[%c0_6, %c0_7] : memref<32x256xbf16, #tpu.memory_space<vmem>>, vector<32x256xbf16>
    tpu.vector_store %arg4[%c0_6, %c0_7], %8 {strides = array<i32>} : memref<32x256xbf16, #tpu.memory_space<vmem>>, vector<32x256xbf16>,
    return
  }
  func.func @transform_0(%arg0: i32) -> (i32, i32) {
    %c0_i32 = arith.constant 0 : i32
    %c0_i32_0 = arith.constant 0 : i32
    return %arg0, %c0_i32 : i32, i32
  }
  func.func @transform_1(%arg0: i32) -> (i32, i32) {
    %c0_i32 = arith.constant 0 : i32
    %c0_i32_0 = arith.constant 0 : i32
    %c0_i32_1 = arith.constant 0 : i32
    return %c0_i32, %c0_i32_0 : i32, i32
  }
  func.func @transform_2(%arg0: i32) -> (i32, i32) {
    %c0_i32 = arith.constant 0 : i32
    %c0_i32_0 = arith.constant 0 : i32
    %c0_i32_1 = arith.constant 0 : i32
    return %c0_i32, %c0_i32_0 : i32, i32
  }
  func.func @transform_3(%arg0: i32) -> (i32, i32) {
    %c0_i32 = arith.constant 0 : i32
    %c0_i32_0 = arith.constant 0 : i32
    return %arg0, %c0_i32 : i32, i32
  }
}

module attributes {stable_mosaic.version = 11 : i64} {
  func.func @_mm_kernel(%arg0: i32, %arg1: memref<128x64xbf16, #tpu.memory_space<vmem>>, %arg2: memref<64x128xbf16, #tpu.memory_space<vmem>>, %arg3: memref<1x128xf32, #tpu.memory_space<vmem>>, %arg4: memref<128x128xbf16, #tpu.memory_space<vmem>>) attributes {dimension_semantics = [#tpu.dimension_semantics<parallel>], iteration_bounds = array<i64: 1>, scalar_prefetch = 0 : i64, scratch_operands = 0 : i64, tpu.core_type = #tpu.core_type<tc>, window_params = [{transform_indices = @transform_0, window_bounds = array<i64: 128, 64>}, {pipeline_mode = #tpu.pipeline_mode<synchronous>, transform_indices = @transform_1, window_bounds = array<i64: 64, 128>}, {pipeline_mode = #tpu.pipeline_mode<synchronous>, transform_indices = @transform_2, window_bounds = array<i64: 1, 128>}, {transform_indices = @transform_3, window_bounds = array<i64: 128, 128>}]} {
    %c0 = arith.constant 0 : index
    %c0_0 = arith.constant 0 : index
    %0 = vector.load %arg1[%c0, %c0_0] : memref<128x64xbf16, #tpu.memory_space<vmem>>, vector<128x64xbf16>
    %c0_1 = arith.constant 0 : index
    %c0_2 = arith.constant 0 : index
    %1 = vector.load %arg2[%c0_1, %c0_2] : memref<64x128xbf16, #tpu.memory_space<vmem>>, vector<64x128xbf16>
    %cst = arith.constant dense<0.000000e+00> : vector<128x128xf32>
    %2 = tpu.matmul %0, %1, %cst {dimension_numbers = #tpu.dot_dimension_numbers<[1], [0], [0], [1], [0, 0, 1, 1], [], []>} : vector<128x64xbf16>, vector<64x128xbf16>, vector<128x128xf32> -> vector<128x128xf32>
    %c0_3 = arith.constant 0 : index
    %c0_4 = arith.constant 0 : index
    %3 = vector.load %arg3[%c0_3, %c0_4] : memref<1x128xf32, #tpu.memory_space<vmem>>, vector<1x128xf32>
    %4 = vector.broadcast %3 : vector<1x128xf32> to vector<128x128xf32>
    %5 = arith.addf %2, %4 : vector<128x128xf32>
    %cst_5 = arith.constant 0.000000e+00 : f32
    %6 = vector.broadcast %cst_5 : f32 to vector<128x128xf32>
    %7 = arith.maximumf %5, %6 : vector<128x128xf32>
    %8 = arith.truncf %7 : vector<128x128xf32> to vector<128x128xbf16>
    %c0_6 = arith.constant 0 : index
    %c0_7 = arith.constant 0 : index
    %9 = vector.load %arg4[%c0_6, %c0_7] : memref<128x128xbf16, #tpu.memory_space<vmem>>, vector<128x128xbf16>
    tpu.vector_store %arg4[%c0_6, %c0_7], %8 {strides = array<i32>} : memref<128x128xbf16, #tpu.memory_space<vmem>>, vector<128x128xbf16>,
    return
  }
  func.func @transform_0(%arg0: i32) -> (i32, i32) {
    %c0_i32 = arith.constant 0 : i32
    %c0_i32_0 = arith.constant 0 : i32
    return %arg0, %c0_i32 : i32, i32
  }
  func.func @transform_1(%arg0: i32) -> (i32, i32) {
    %c0_i32 = arith.constant 0 : i32
    %c0_i32_0 = arith.constant 0 : i32
    %c0_i32_1 = arith.constant 0 : i32
    return %c0_i32, %c0_i32_0 : i32, i32
  }
  func.func @transform_2(%arg0: i32) -> (i32, i32) {
    %c0_i32 = arith.constant 0 : i32
    %c0_i32_0 = arith.constant 0 : i32
    %c0_i32_1 = arith.constant 0 : i32
    return %c0_i32, %c0_i32_0 : i32, i32
  }
  func.func @transform_3(%arg0: i32) -> (i32, i32) {
    %c0_i32 = arith.constant 0 : i32
    %c0_i32_0 = arith.constant 0 : i32
    return %arg0, %c0_i32 : i32, i32
  }
}

module attributes {stable_mosaic.version = 11 : i64} {
  func.func @_mm_kernel(%arg0: i32, %arg1: memref<256x32xbf16, #tpu.memory_space<vmem>>, %arg2: memref<32x128xbf16, #tpu.memory_space<vmem>>, %arg3: memref<1x128xf32, #tpu.memory_space<vmem>>, %arg4: memref<256x128xf32, #tpu.memory_space<vmem>>) attributes {dimension_semantics = [#tpu.dimension_semantics<parallel>], iteration_bounds = array<i64: 2>, scalar_prefetch = 0 : i64, scratch_operands = 0 : i64, tpu.core_type = #tpu.core_type<tc>, window_params = [{transform_indices = @transform_0, window_bounds = array<i64: 256, 32>}, {pipeline_mode = #tpu.pipeline_mode<synchronous>, transform_indices = @transform_1, window_bounds = array<i64: 32, 128>}, {pipeline_mode = #tpu.pipeline_mode<synchronous>, transform_indices = @transform_2, window_bounds = array<i64: 1, 128>}, {transform_indices = @transform_3, window_bounds = array<i64: 256, 128>}]} {
    %c0 = arith.constant 0 : index
    %c0_0 = arith.constant 0 : index
    %0 = vector.load %arg1[%c0, %c0_0] : memref<256x32xbf16, #tpu.memory_space<vmem>>, vector<256x32xbf16>
    %c0_1 = arith.constant 0 : index
    %c0_2 = arith.constant 0 : index
    %1 = vector.load %arg2[%c0_1, %c0_2] : memref<32x128xbf16, #tpu.memory_space<vmem>>, vector<32x128xbf16>
    %cst = arith.constant dense<0.000000e+00> : vector<256x128xf32>
    %2 = tpu.matmul %0, %1, %cst {dimension_numbers = #tpu.dot_dimension_numbers<[1], [0], [0], [1], [0, 0, 1, 1], [], []>} : vector<256x32xbf16>, vector<32x128xbf16>, vector<256x128xf32> -> vector<256x128xf32>
    %c0_3 = arith.constant 0 : index
    %c0_4 = arith.constant 0 : index
    %3 = vector.load %arg3[%c0_3, %c0_4] : memref<1x128xf32, #tpu.memory_space<vmem>>, vector<1x128xf32>
    %4 = vector.broadcast %3 : vector<1x128xf32> to vector<256x128xf32>
    %5 = arith.addf %2, %4 : vector<256x128xf32>
    %6 = arith.negf %5 : vector<256x128xf32>
    %7 = math.exp %6 : vector<256x128xf32>
    %cst_5 = arith.constant 1.000000e+00 : f32
    %8 = vector.broadcast %cst_5 : f32 to vector<256x128xf32>
    %9 = arith.addf %8, %7 : vector<256x128xf32>
    %10 = arith.divf %8, %9 : vector<256x128xf32>
    %c0_6 = arith.constant 0 : index
    %c0_7 = arith.constant 0 : index
    %11 = vector.load %arg4[%c0_6, %c0_7] : memref<256x128xf32, #tpu.memory_space<vmem>>, vector<256x128xf32>
    tpu.vector_store %arg4[%c0_6, %c0_7], %10 {strides = array<i32>} : memref<256x128xf32, #tpu.memory_space<vmem>>, vector<256x128xf32>,
    return
  }
  func.func @transform_0(%arg0: i32) -> (i32, i32) {
    %c0_i32 = arith.constant 0 : i32
    %c0_i32_0 = arith.constant 0 : i32
    return %arg0, %c0_i32 : i32, i32
  }
  func.func @transform_1(%arg0: i32) -> (i32, i32) {
    %c0_i32 = arith.constant 0 : i32
    %c0_i32_0 = arith.constant 0 : i32
    %c0_i32_1 = arith.constant 0 : i32
    return %c0_i32, %c0_i32_0 : i32, i32
  }
  func.func @transform_2(%arg0: i32) -> (i32, i32) {
    %c0_i32 = arith.constant 0 : i32
    %c0_i32_0 = arith.constant 0 : i32
    %c0_i32_1 = arith.constant 0 : i32
    return %c0_i32, %c0_i32_0 : i32, i32
  }
  func.func @transform_3(%arg0: i32) -> (i32, i32) {
    %c0_i32 = arith.constant 0 : i32
    %c0_i32_0 = arith.constant 0 : i32
    return %arg0, %c0_i32 : i32, i32
  }
}

module attributes {stable_mosaic.version = 11 : i64} {
  func.func @_mm_kernel(%arg0: i32, %arg1: memref<8x256xbf16, #tpu.memory_space<vmem>>, %arg2: memref<256x128xbf16, #tpu.memory_space<vmem>>, %arg3: memref<1x128xf32, #tpu.memory_space<vmem>>, %arg4: memref<8x128xf32, #tpu.memory_space<vmem>>) attributes {dimension_semantics = [#tpu.dimension_semantics<parallel>], iteration_bounds = array<i64: 1>, scalar_prefetch = 0 : i64, scratch_operands = 0 : i64, tpu.core_type = #tpu.core_type<tc>, window_params = [{transform_indices = @transform_0, window_bounds = array<i64: 8, 256>}, {pipeline_mode = #tpu.pipeline_mode<synchronous>, transform_indices = @transform_1, window_bounds = array<i64: 256, 128>}, {pipeline_mode = #tpu.pipeline_mode<synchronous>, transform_indices = @transform_2, window_bounds = array<i64: 1, 128>}, {transform_indices = @transform_3, window_bounds = array<i64: 8, 128>}]} {
    %c0 = arith.constant 0 : index
    %c0_0 = arith.constant 0 : index
    %0 = vector.load %arg1[%c0, %c0_0] : memref<8x256xbf16, #tpu.memory_space<vmem>>, vector<8x256xbf16>
    %c0_1 = arith.constant 0 : index
    %c0_2 = arith.constant 0 : index
    %1 = vector.load %arg2[%c0_1, %c0_2] : memref<256x128xbf16, #tpu.memory_space<vmem>>, vector<256x128xbf16>
    %cst = arith.constant dense<0.000000e+00> : vector<8x128xf32>
    %2 = tpu.matmul %0, %1, %cst {dimension_numbers = #tpu.dot_dimension_numbers<[1], [0], [0], [1], [0, 0, 1, 1], [], []>} : vector<8x256xbf16>, vector<256x128xbf16>, vector<8x128xf32> -> vector<8x128xf32>
    %c0_3 = arith.constant 0 : index
    %c0_4 = arith.constant 0 : index
    %3 = vector.load %arg3[%c0_3, %c0_4] : memref<1x128xf32, #tpu.memory_space<vmem>>, vector<1x128xf32>
    %4 = vector.broadcast %3 : vector<1x128xf32> to vector<8x128xf32>
    %5 = arith.addf %2, %4 : vector<8x128xf32>
    %cst_5 = arith.constant 0.000000e+00 : f32
    %6 = vector.broadcast %cst_5 : f32 to vector<8x128xf32>
    %7 = arith.maximumf %5, %6 : vector<8x128xf32>
    %c0_6 = arith.constant 0 : index
    %c0_7 = arith.constant 0 : index
    %8 = vector.load %arg4[%c0_6, %c0_7] : memref<8x128xf32, #tpu.memory_space<vmem>>, vector<8x128xf32>
    tpu.vector_store %arg4[%c0_6, %c0_7], %7 {strides = array<i32>} : memref<8x128xf32, #tpu.memory_space<vmem>>, vector<8x128xf32>,
    return
  }
  func.func @transform_0(%arg0: i32) -> (i32, i32) {
    %c0_i32 = arith.constant 0 : i32
    %c0_i32_0 = arith.constant 0 : i32
    return %arg0, %c0_i32 : i32, i32
  }
  func.func @transform_1(%arg0: i32) -> (i32, i32) {
    %c0_i32 = arith.constant 0 : i32
    %c0_i32_0 = arith.constant 0 : i32
    %c0_i32_1 = arith.constant 0 : i32
    return %c0_i32, %c0_i32_0 : i32, i32
  }
  func.func @transform_2(%arg0: i32) -> (i32, i32) {
    %c0_i32 = arith.constant 0 : i32
    %c0_i32_0 = arith.constant 0 : i32
    %c0_i32_1 = arith.constant 0 : i32
    return %c0_i32, %c0_i32_0 : i32, i32
  }
  func.func @transform_3(%arg0: i32) -> (i32, i32) {
    %c0_i32 = arith.constant 0 : i32
    %c0_i32_0 = arith.constant 0 : i32
    return %arg0, %c0_i32 : i32, i32
  }
}

module attributes {stable_mosaic.version = 11 : i64} {
  func.func @_mm_kernel(%arg0: i32, %arg1: memref<8x128xbf16, #tpu.memory_space<vmem>>, %arg2: memref<128x128xbf16, #tpu.memory_space<vmem>>, %arg3: memref<1x128xf32, #tpu.memory_space<vmem>>, %arg4: memref<8x128xf32, #tpu.memory_space<vmem>>) attributes {dimension_semantics = [#tpu.dimension_semantics<parallel>], iteration_bounds = array<i64: 1>, scalar_prefetch = 0 : i64, scratch_operands = 0 : i64, tpu.core_type = #tpu.core_type<tc>, window_params = [{transform_indices = @transform_0, window_bounds = array<i64: 8, 128>}, {pipeline_mode = #tpu.pipeline_mode<synchronous>, transform_indices = @transform_1, window_bounds = array<i64: 128, 128>}, {pipeline_mode = #tpu.pipeline_mode<synchronous>, transform_indices = @transform_2, window_bounds = array<i64: 1, 128>}, {transform_indices = @transform_3, window_bounds = array<i64: 8, 128>}]} {
    %c0 = arith.constant 0 : index
    %c0_0 = arith.constant 0 : index
    %0 = vector.load %arg1[%c0, %c0_0] : memref<8x128xbf16, #tpu.memory_space<vmem>>, vector<8x128xbf16>
    %c0_1 = arith.constant 0 : index
    %c0_2 = arith.constant 0 : index
    %1 = vector.load %arg2[%c0_1, %c0_2] : memref<128x128xbf16, #tpu.memory_space<vmem>>, vector<128x128xbf16>
    %cst = arith.constant dense<0.000000e+00> : vector<8x128xf32>
    %2 = tpu.matmul %0, %1, %cst {dimension_numbers = #tpu.dot_dimension_numbers<[1], [0], [0], [1], [0, 0, 1, 1], [], []>} : vector<8x128xbf16>, vector<128x128xbf16>, vector<8x128xf32> -> vector<8x128xf32>
    %c0_3 = arith.constant 0 : index
    %c0_4 = arith.constant 0 : index
    %3 = vector.load %arg3[%c0_3, %c0_4] : memref<1x128xf32, #tpu.memory_space<vmem>>, vector<1x128xf32>
    %4 = vector.broadcast %3 : vector<1x128xf32> to vector<8x128xf32>
    %5 = arith.addf %2, %4 : vector<8x128xf32>
    %c0_5 = arith.constant 0 : index
    %c0_6 = arith.constant 0 : index
    %6 = vector.load %arg4[%c0_5, %c0_6] : memref<8x128xf32, #tpu.memory_space<vmem>>, vector<8x128xf32>
    tpu.vector_store %arg4[%c0_5, %c0_6], %5 {strides = array<i32>} : memref<8x128xf32, #tpu.memory_space<vmem>>, vector<8x128xf32>,
    return
  }
  func.func @transform_0(%arg0: i32) -> (i32, i32) {
    %c0_i32 = arith.constant 0 : i32
    %c0_i32_0 = arith.constant 0 : i32
    return %arg0, %c0_i32 : i32, i32
  }
  func.func @transform_1(%arg0: i32) -> (i32, i32) {
    %c0_i32 = arith.constant 0 : i32
    %c0_i32_0 = arith.constant 0 : i32
    %c0_i32_1 = arith.constant 0 : i32
    return %c0_i32, %c0_i32_0 : i32, i32
  }
  func.func @transform_2(%arg0: i32) -> (i32, i32) {
    %c0_i32 = arith.constant 0 : i32
    %c0_i32_0 = arith.constant 0 : i32
    %c0_i32_1 = arith.constant 0 : i32
    return %c0_i32, %c0_i32_0 : i32, i32
  }
  func.func @transform_3(%arg0: i32) -> (i32, i32) {
    %c0_i32 = arith.constant 0 : i32
    %c0_i32_0 = arith.constant 0 : i32
    return %arg0, %c0_i32 : i32, i32
  }
}

</mosaic_0001>

<bundles_post_ra>
// kernel: neuron_counter_forward.19
= control target key start
LH: loop header
LB: loop body
LE: loop exit
PB: predicated region body
PF: predicated region fallthrough
CT: control target
= control target key end

     0   :  { %s1251_s12 = smov 0   ;;  %s1407_s0 = inlined_call_operand.vmem [shape: bf16[512,147], index: 0, kind: input, shape index: {}]   ;;  %s1408_s1 = inlined_call_operand.vmem [shape: bf16[147,128], index: 1, kind: input, shape index: {}]   ;;  %s1409_s2 = inlined_call_operand.vmem [shape: f32[1,128], index: 2, kind: input, shape index: {}]   ;;  %s1410_s3 = inlined_call_operand.vmem [shape: bf16[512,128], index: 3, kind: output, shape index: {}]  }
   0x1 LB: > { %s902_s13 = sadd.s32 4294967295, %s1227_s12   ;;  %p906_p0 = scmp.ge.s32.totalorder %s1227_s12, 1  ;;  %s1227_s12 = sphi %s1251_s12, %s13_s12  }
   0x2   : > { %p139_p1 = scmp.lt.s32.totalorder %s1227_s12, 3 }
   0x4   : > { %p140_p2 = pnand %p906_p0, %p139_p1 }
   0x5   : > { %v1163_v0 = vld [vmem:[%s1408_s1] sm:$0xff] (!%p140_p2)   ;;  %v1229_v1 = vmov (!%p140_p2), 0   ;;  %v1164_v2 = vld [vmem:[%s1408_s1 + $0x8] sm:$0xff] (!%p140_p2)   ;;  %v1165_v3 = vld [vmem:[%s1408_s1 + $0x10] sm:$0xff] (!%p140_p2)   ;;  %s907_s20 = sshll.u32 (!%p140_p2), %s902_s13, 5  ;;  %vm437_vm0 = vcmask (!%p140_p2), 154624  }
   0x6   : > { %143 = sbr.rel (%p140_p2) target bundleno = 323 (0x143), region = 32  ;;  %493 = vmatprep.subr.bf16.mxu0 (!%p140_p2), %v1229_v1  ;;  %1133 = vmatprep.subr.bf16.mxu1 (!%p140_p2), %v1229_v1  ;;  %p165_p3 = scmp.lt.s32.totalorder (!%p140_p2), %s907_s20, 63  ;;  %v1166_v4 = vld [vmem:[%s1408_s1 + $0x18] sm:$0xff] (!%p140_p2)   ;;  %v1167_v5 = vld [vmem:[%s1408_s1 + $0x20] sm:$0xff] (!%p140_p2)   ;;  %v1168_v8 = vld [vmem:[%s1408_s1 + $0x28] sm:$0xff] (!%p140_p2)   ;;  %vm486_vm1 = vcmask (!%p140_p2), 1040384  }
   0x7   : > { %494 = vmatpush1.bf16.msra.mxu0 (!%p140_p2), %v1163_v0  ;;  %1143 = vmatpush1.bf16.msra.mxu1 (!%p140_p2), %v1163_v0  ;;  %v1169_v9 = vld [vmem:[%s1408_s1 + $0x30] sm:$0xff] (!%p140_p2)   ;;  %v1170_v10 = vld [vmem:[%s1408_s1 + $0x38] sm:$0xff] (!%p140_p2)   ;;  %vm487_vm2 = vcmask (!%p140_p2), 1041408   ;;  %v1230_v11 = vmov (!%p140_p2), 65535   ;;  %v1171_v13 = vld [vmem:[%s1408_s1 + $0x40] sm:$0xff] (!%p140_p2)  }
   0x8   : > { %495 = vmatprep.subr.bf16.mxu0 (!%p140_p2), %v1229_v1  ;;  %1134 = vmatprep.subr.bf16.mxu1 (!%p140_p2), %v1229_v1  ;;  %v488_v12 = vsel (!%p140_p2), %vm486_vm1, 4294967295, %v1230_v11  ;;  %v1172_v14 = vld [vmem:[%s1408_s1 + $0x48] ss:$0 sps:$4 sm:$0x33] (!%p140_p2)   ;;  %v1348_v47 = vld [vmem:[%s1409_s2] ss:$0 sm:$0xff] (!%p140_p2) }
   0x9   : > { %v489_v15 = vsel (!%p140_p2), %vm487_vm2, %v488_v12, 0 }
   0xa   : > { %v491_v16 = vand.u32 (!%p140_p2), %v1172_v14, %v489_v15 }
   0xb   : > { %496 = vmatpush1.bf16.msra.mxu0 (!%p140_p2), %v1164_v2  ;;  %1144 = vmatpush1.bf16.msra.mxu1 (!%p140_p2), %v1164_v2 }
   0xc   : > { %497 = vmatprep.subr.bf16.mxu0 (!%p140_p2), %v1229_v1  ;;  %1135 = vmatprep.subr.bf16.mxu1 (!%p140_p2), %v1229_v1 }
   0xd   : > { %s1412_s20 = smov (!%p165_p3, %s907_s20), 63 }
   0xe   : > { %s1005_s23 = sshll.u32 %s1412_s20, 3  ;;  %s911_s15 = sshll.u32 %s1412_s20, 2 }
   0xf   : > { %498 = vmatpush1.bf16.msra.mxu0 %v1165_v3  ;;  %1145 = vmatpush1.bf16.msra.mxu1 %v1165_v3  ;;  %s1277_s26 = scalar_lea.vmem %s1407_s0, %s1005_s23  ;;  %s1358_s18 = scalar_lea.vmem %s1410_s3, %s911_s15 }
  0x10   : > { %499 = vmatprep.subr.bf16.mxu0 %v1229_v1  ;;  %1136 = vmatprep.subr.bf16.mxu1 %v1229_v1  ;;  %v1175_v6 = vld [vmem:[%s1277_s26 + $0x4] ss:$8 sps:$4 sm:$0xff]   ;;  %v1173_v17 = vld [vmem:[%s1277_s26] ss:$8 sps:$4 sm:$0xff]   ;;  %v1179_v19 = vld [vmem:[%s1277_s26 + $0x14] ss:$8 sps:$4 sm:$0xff]  }
  0x11   : > { %v1178_v7 = vld [vmem:[%s1277_s26 + $0x84] ss:$8 sps:$4 sm:$0xff]   ;;  %955 = vmatprep.mubr.msk.bf16.mxu0 %vm437_vm0, %v1175_v6  ;;  %v1176_v18 = vld [vmem:[%s1277_s26 + $0x80] ss:$8 sps:$4 sm:$0xff]   ;;  %v1181_v20 = vld [vmem:[%s1277_s26 + $0x94] ss:$8 sps:$4 sm:$0xff]  }
  0x12   : > { %963 = vmatprep.mubr.msk.bf16.mxu1 %vm437_vm0, %v1178_v7  ;;  %v1183_v21 = vld [vmem:[%s1277_s26 + $0x10] ss:$8 sps:$4 sm:$0xff]   ;;  %v1185_v23 = vld [vmem:[%s1277_s26 + $0x24] ss:$8 sps:$4 sm:$0xff]   ;;  %v1189_v25 = vld [vmem:[%s1277_s26 + $0x20] ss:$8 sps:$4 sm:$0xff]  }
  0x13   : > { %500 = vmatpush1.bf16.msra.mxu0 %v1166_v4  ;;  %1146 = vmatpush1.bf16.msra.mxu1 %v1166_v4  ;;  %v1184_v22 = vld [vmem:[%s1277_s26 + $0x90] ss:$8 sps:$4 sm:$0xff]   ;;  %v1187_v24 = vld [vmem:[%s1277_s26 + $0xa4] ss:$8 sps:$4 sm:$0xff]   ;;  %v1190_v26 = vld [vmem:[%s1277_s26 + $0xa0] ss:$8 sps:$4 sm:$0xff]  }
  0x14   : > { %501 = vmatprep.subr.bf16.mxu0 %v1229_v1  ;;  %1137 = vmatprep.subr.bf16.mxu1 %v1229_v1  ;;  %v1191_v27 = vld [vmem:[%s1277_s26 + $0x34] ss:$8 sps:$4 sm:$0xff]   ;;  %v1195_v29 = vld [vmem:[%s1277_s26 + $0x30] ss:$8 sps:$4 sm:$0xff]   ;;  %v1197_v31 = vld [vmem:[%s1277_s26 + $0x44] ss:$8 sps:$4 sm:$0xff]  }
  0x15   : > { %v1193_v28 = vld [vmem:[%s1277_s26 + $0xb4] ss:$8 sps:$4 sm:$0xff]   ;;  %v1196_v30 = vld [vmem:[%s1277_s26 + $0xb0] ss:$8 sps:$4 sm:$0xff]   ;;  %v1199_v32 = vld [vmem:[%s1277_s26 + $0xc4] ss:$8 sps:$4 sm:$0xff]  }
  0x16   : > { %v1201_v33 = vld [vmem:[%s1277_s26 + $0x40] ss:$8 sps:$4 sm:$0xff]   ;;  %v1203_v35 = vld [vmem:[%s1277_s26 + $0x54] ss:$8 sps:$4 sm:$0xff]   ;;  %v1207_v37 = vld [vmem:[%s1277_s26 + $0x50] ss:$8 sps:$4 sm:$0xff]  }
  0x17   : > { %502 = vmatpush1.bf16.msra.mxu0 %v1167_v5  ;;  %1147 = vmatpush1.bf16.msra.mxu1 %v1167_v5  ;;  %v1202_v34 = vld [vmem:[%s1277_s26 + $0xc0] ss:$8 sps:$4 sm:$0xff]   ;;  %v1205_v36 = vld [vmem:[%s1277_s26 + $0xd4] ss:$8 sps:$4 sm:$0xff]   ;;  %v1208_v38 = vld [vmem:[%s1277_s26 + $0xd0] ss:$8 sps:$4 sm:$0xff]  }
  0x18   : > { %503 = vmatprep.subr.bf16.mxu0 %v1229_v1  ;;  %1138 = vmatprep.subr.bf16.mxu1 %v1229_v1  ;;  %v1209_v39 = vld [vmem:[%s1277_s26 + $0x64] ss:$8 sps:$4 sm:$0xff]   ;;  %v1213_v41 = vld [vmem:[%s1277_s26 + $0x60] ss:$8 sps:$4 sm:$0xff]   ;;  %v1215_v43 = vld [vmem:[%s1277_s26 + $0x74] ss:$8 sps:$4 sm:$0xff]  }
  0x19   : > { %v1211_v40 = vld [vmem:[%s1277_s26 + $0xe4] ss:$8 sps:$4 sm:$0xff]   ;;  %v1214_v42 = vld [vmem:[%s1277_s26 + $0xe0] ss:$8 sps:$4 sm:$0xff]   ;;  %v1217_v44 = vld [vmem:[%s1277_s26 + $0xf4] ss:$8 sps:$4 sm:$0xff]  }
  0x1a   : > { %v1219_v45 = vld [vmem:[%s1277_s26 + $0x70] ss:$8 sps:$4 sm:$0xff]  }
  0x1b   : > { %504 = vmatpush1.bf16.msra.mxu0 %v1168_v8  ;;  %1148 = vmatpush1.bf16.msra.mxu1 %v1168_v8  ;;  %v1220_v46 = vld [vmem:[%s1277_s26 + $0xf0] ss:$8 sps:$4 sm:$0xff]  }
  0x1c   : > { %505 = vmatprep.subr.bf16.mxu0 %v1229_v1  ;;  %1139 = vmatprep.subr.bf16.mxu1 %v1229_v1 }
  0x1f   : > { %506 = vmatpush1.bf16.msra.mxu0 %v1169_v9  ;;  %1149 = vmatpush1.bf16.msra.mxu1 %v1169_v9 }
  0x20   : > { %507 = vmatprep.subr.bf16.mxu0 %v1229_v1  ;;  %1140 = vmatprep.subr.bf16.mxu1 %v1229_v1 }
  0x23   : > { %508 = vmatpush1.bf16.msra.mxu0 %v1170_v10  ;;  %1150 = vmatpush1.bf16.msra.mxu1 %v1170_v10 }
  0x24   : > { %509 = vmatprep.subr.bf16.mxu0 %v1229_v1  ;;  %1141 = vmatprep.subr.bf16.mxu1 %v1229_v1 }
  0x27   : > { %510 = vmatpush1.bf16.msra.mxu0 %v1171_v13  ;;  %1151 = vmatpush1.bf16.msra.mxu1 %v1171_v13 }
  0x28   : > { %511 = vmatprep.subr.bf16.mxu0 %v1229_v1  ;;  %1142 = vmatprep.subr.bf16.mxu1 %v1229_v1 }
  0x2b   : > { %512 = vmatpush1.bf16.msra.mxu0 %v491_v16  ;;  %1152 = vmatpush1.bf16.msra.mxu1 %v491_v16 }
  0x2e   : > { %526 = vmatmul.mubr.bf16.vlgmr.msra.gmra.mrb[0].mxu0 %v1173_v17  ;;  %590 = vmatmul.mubr.bf16.vlgmr.msra.gmra.mrb[0].mxu1 %v1176_v18 }
  0x2f   : > { %956 = vmatprep.mubr.msk.bf16.mxu0 %vm437_vm0, %v1179_v19  ;;  %964 = vmatprep.mubr.msk.bf16.mxu1 %vm437_vm0, %v1181_v20 }
  0x36   : > { %534 = vmatmul.mubr.bf16.gmra.mrb[4].mxu0 %v1183_v21  ;;  %598 = vmatmul.mubr.bf16.gmra.mrb[4].mxu1 %v1184_v22 }
  0x37   : > { %957 = vmatprep.mubr.msk.bf16.mxu0 %vm437_vm0, %v1185_v23  ;;  %965 = vmatprep.mubr.msk.bf16.mxu1 %vm437_vm0, %v1187_v24 }
  0x3e   : > { %542 = vmatmul.mubr.bf16.gmra.mrb[8].mxu0 %v1189_v25  ;;  %606 = vmatmul.mubr.bf16.gmra.mrb[8].mxu1 %v1190_v26 }
  0x3f   : > { %958 = vmatprep.mubr.msk.bf16.mxu0 %vm437_vm0, %v1191_v27  ;;  %966 = vmatprep.mubr.msk.bf16.mxu1 %vm437_vm0, %v1193_v28 }
  0x46   : > { %550 = vmatmul.mubr.bf16.gmra.mrb[12].mxu0 %v1195_v29  ;;  %614 = vmatmul.mubr.bf16.gmra.mrb[12].mxu1 %v1196_v30 }
  0x47   : > { %959 = vmatprep.mubr.msk.bf16.mxu0 %vm437_vm0, %v1197_v31  ;;  %967 = vmatprep.mubr.msk.bf16.mxu1 %vm437_vm0, %v1199_v32 }
  0x4e   : > { %558 = vmatmul.mubr.bf16.gmra.mrb[16].mxu0 %v1201_v33  ;;  %622 = vmatmul.mubr.bf16.gmra.mrb[16].mxu1 %v1202_v34 }
  0x4f   : > { %960 = vmatprep.mubr.msk.bf16.mxu0 %vm437_vm0, %v1203_v35  ;;  %968 = vmatprep.mubr.msk.bf16.mxu1 %vm437_vm0, %v1205_v36 }
  0x56   : > { %566 = vmatmul.mubr.bf16.gmra.mrb[20].mxu0 %v1207_v37  ;;  %630 = vmatmul.mubr.bf16.gmra.mrb[20].mxu1 %v1208_v38 }
  0x57   : > { %961 = vmatprep.mubr.msk.bf16.mxu0 %vm437_vm0, %v1209_v39  ;;  %969 = vmatprep.mubr.msk.bf16.mxu1 %vm437_vm0, %v1211_v40 }
  0x5e   : > { %574 = vmatmul.mubr.bf16.gmra.mrb[24].mxu0 %v1213_v41  ;;  %638 = vmatmul.mubr.bf16.gmra.mrb[24].mxu1 %v1214_v42 }
  0x5f   : > { %962 = vmatprep.mubr.msk.bf16.mxu0 %vm437_vm0, %v1215_v43  ;;  %970 = vmatprep.mubr.msk.bf16.mxu1 %vm437_vm0, %v1217_v44 }
  0x66   : > { %582 = vmatmul.mubr.bf16.gmra.mrb[28].mxu0 %v1219_v45  ;;  %646 = vmatmul.mubr.bf16.gmra.mrb[28].mxu1 %v1220_v46 }
 0x101   : > { %v527_v48 = vpop.f32.mrb[0].mxu0  ;;  %v591_v49 = vpop.f32.mrb[0].mxu1 }
 0x102   : > { %v528_v50 = vadd.f32 %v1348_v47, %v527_v48  ;;  %v592_v51 = vadd.f32 %v1348_v47, %v591_v49  ;;  %v529_v52 = vpop.f32.mrb[1].mxu0  ;;  %v593_v53 = vpop.f32.mrb[1].mxu1 }
 0x103   : > { %v530_v54 = vpop.f32.mrb[2].mxu0  ;;  %v594_v55 = vpop.f32.mrb[2].mxu1 }
 0x104   : > { %v531_v56 = vadd.f32 %v1348_v47, %v530_v54  ;;  %v595_v57 = vadd.f32 %v1348_v47, %v594_v55  ;;  %v532_v58 = vpop.f32.mrb[3].mxu0  ;;  %v596_v59 = vpop.f32.mrb[3].mxu1  ;;  %v654_v60 = vmax.f32 %v528_v50, 0.0  ;;  %v670_v61 = vmax.f32 %v592_v51, 0.0 }
 0x106   : > { %v655_v62 = vmax.f32 %v531_v56, 0.0  ;;  %v671_v63 = vmax.f32 %v595_v57, 0.0 }
 0x108   : > { %v1041_v0 = vpack.c.bf16 %v655_v62, %v654_v60  ;;  %v1081_v1 = vpack.c.bf16 %v671_v63, %v670_v61 }
 0x109   : > { %v535_v2 = vpop.f32.mrb[4].mxu0  ;;  %v599_v3 = vpop.f32.mrb[4].mxu1 }
 0x10a   : > { %1042 = vst [vmem:[%s1358_s18] sm:$0xff] %v1041_v0   ;;  %1125 = vst [vmem:[%s1358_s18 + $0x40] sm:$0xff] %v1081_v1   ;;  %v536_v4 = vadd.f32 %v1348_v47, %v535_v2  ;;  %v600_v5 = vadd.f32 %v1348_v47, %v599_v3  ;;  %v537_v6 = vpop.f32.mrb[5].mxu0  ;;  %v601_v7 = vpop.f32.mrb[5].mxu1 }
 0x10b   : > { %v538_v8 = vpop.f32.mrb[6].mxu0  ;;  %v602_v9 = vpop.f32.mrb[6].mxu1 }
 0x10c   : > { %v539_v10 = vadd.f32 %v1348_v47, %v538_v8  ;;  %v603_v11 = vadd.f32 %v1348_v47, %v602_v9  ;;  %v540_v12 = vpop.f32.mrb[7].mxu0  ;;  %v604_v13 = vpop.f32.mrb[7].mxu1  ;;  %v656_v14 = vmax.f32 %v536_v4, 0.0  ;;  %v672_v15 = vmax.f32 %v600_v5, 0.0 }
 0x10e   : > { %v657_v16 = vmax.f32 %v539_v10, 0.0  ;;  %v673_v17 = vmax.f32 %v603_v11, 0.0 }
 0x110   : > { %v1046_v18 = vpack.c.bf16 %v657_v16, %v656_v14  ;;  %v1086_v19 = vpack.c.bf16 %v673_v17, %v672_v15 }
 0x111   : > { %v543_v20 = vpop.f32.mrb[8].mxu0  ;;  %v607_v21 = vpop.f32.mrb[8].mxu1 }
 0x112   : > { %1118 = vst [vmem:[%s1358_s18 + $0x8] sm:$0xff] %v1046_v18   ;;  %1126 = vst [vmem:[%s1358_s18 + $0x48] sm:$0xff] %v1086_v19   ;;  %v544_v22 = vadd.f32 %v1348_v47, %v543_v20  ;;  %v608_v23 = vadd.f32 %v1348_v47, %v607_v21  ;;  %v545_v24 = vpop.f32.mrb[9].mxu0  ;;  %v609_v25 = vpop.f32.mrb[9].mxu1 }
 0x113   : > { %v546_v26 = vpop.f32.mrb[10].mxu0  ;;  %v610_v27 = vpop.f32.mrb[10].mxu1 }
 0x114   : > { %v547_v28 = vadd.f32 %v1348_v47, %v546_v26  ;;  %v611_v29 = vadd.f32 %v1348_v47, %v610_v27  ;;  %v548_v30 = vpop.f32.mrb[11].mxu0  ;;  %v612_v31 = vpop.f32.mrb[11].mxu1  ;;  %v658_v32 = vmax.f32 %v544_v22, 0.0  ;;  %v674_v33 = vmax.f32 %v608_v23, 0.0 }
 0x116   : > { %v659_v34 = vmax.f32 %v547_v28, 0.0  ;;  %v675_v35 = vmax.f32 %v611_v29, 0.0 }
 0x118   : > { %v1051_v36 = vpack.c.bf16 %v659_v34, %v658_v32  ;;  %v1091_v37 = vpack.c.bf16 %v675_v35, %v674_v33 }
 0x119   : > { %v551_v38 = vpop.f32.mrb[12].mxu0  ;;  %v615_v39 = vpop.f32.mrb[12].mxu1 }
 0x11a   : > { %1119 = vst [vmem:[%s1358_s18 + $0x10] sm:$0xff] %v1051_v36   ;;  %1127 = vst [vmem:[%s1358_s18 + $0x50] sm:$0xff] %v1091_v37   ;;  %v552_v40 = vadd.f32 %v1348_v47, %v551_v38  ;;  %v616_v41 = vadd.f32 %v1348_v47, %v615_v39  ;;  %v553_v42 = vpop.f32.mrb[13].mxu0  ;;  %v617_v43 = vpop.f32.mrb[13].mxu1 }
 0x11b   : > { %v554_v44 = vpop.f32.mrb[14].mxu0  ;;  %v618_v45 = vpop.f32.mrb[14].mxu1 }
 0x11c   : > { %v555_v46 = vadd.f32 %v1348_v47, %v554_v44  ;;  %v619_v48 = vadd.f32 %v1348_v47, %v618_v45  ;;  %v556_v49 = vpop.f32.mrb[15].mxu0  ;;  %v620_v50 = vpop.f32.mrb[15].mxu1  ;;  %v660_v51 = vmax.f32 %v552_v40, 0.0  ;;  %v676_v52 = vmax.f32 %v616_v41, 0.0 }
 0x11e   : > { %v661_v53 = vmax.f32 %v555_v46, 0.0  ;;  %v677_v54 = vmax.f32 %v619_v48, 0.0 }
 0x120   : > { %v1056_v55 = vpack.c.bf16 %v661_v53, %v660_v51  ;;  %v1096_v56 = vpack.c.bf16 %v677_v54, %v676_v52 }
 0x121   : > { %v559_v57 = vpop.f32.mrb[16].mxu0  ;;  %v623_v58 = vpop.f32.mrb[16].mxu1 }
 0x122   : > { %1120 = vst [vmem:[%s1358_s18 + $0x18] sm:$0xff] %v1056_v55   ;;  %1128 = vst [vmem:[%s1358_s18 + $0x58] sm:$0xff] %v1096_v56   ;;  %v560_v59 = vadd.f32 %v1348_v47, %v559_v57  ;;  %v624_v60 = vadd.f32 %v1348_v47, %v623_v58  ;;  %v561_v61 = vpop.f32.mrb[17].mxu0  ;;  %v625_v62 = vpop.f32.mrb[17].mxu1 }
 0x123   : > { %v562_v63 = vpop.f32.mrb[18].mxu0  ;;  %v626_v0 = vpop.f32.mrb[18].mxu1 }
 0x124   : > { %v563_v1 = vadd.f32 %v1348_v47, %v562_v63  ;;  %v627_v2 = vadd.f32 %v1348_v47, %v626_v0  ;;  %v564_v3 = vpop.f32.mrb[19].mxu0  ;;  %v628_v4 = vpop.f32.mrb[19].mxu1  ;;  %v662_v5 = vmax.f32 %v560_v59, 0.0  ;;  %v678_v6 = vmax.f32 %v624_v60, 0.0 }
 0x126   : > { %v663_v7 = vmax.f32 %v563_v1, 0.0  ;;  %v679_v8 = vmax.f32 %v627_v2, 0.0 }
 0x128   : > { %v1061_v9 = vpack.c.bf16 %v663_v7, %v662_v5  ;;  %v1101_v10 = vpack.c.bf16 %v679_v8, %v678_v6 }
 0x129   : > { %v567_v11 = vpop.f32.mrb[20].mxu0  ;;  %v631_v12 = vpop.f32.mrb[20].mxu1 }
 0x12a   : > { %1121 = vst [vmem:[%s1358_s18 + $0x20] sm:$0xff] %v1061_v9   ;;  %1129 = vst [vmem:[%s1358_s18 + $0x60] sm:$0xff] %v1101_v10   ;;  %v568_v13 = vadd.f32 %v1348_v47, %v567_v11  ;;  %v632_v14 = vadd.f32 %v1348_v47, %v631_v12  ;;  %v569_v15 = vpop.f32.mrb[21].mxu0  ;;  %v633_v16 = vpop.f32.mrb[21].mxu1 }
 0x12b   : > { %v570_v17 = vpop.f32.mrb[22].mxu0  ;;  %v634_v18 = vpop.f32.mrb[22].mxu1 }
 0x12c   : > { %v571_v19 = vadd.f32 %v1348_v47, %v570_v17  ;;  %v635_v20 = vadd.f32 %v1348_v47, %v634_v18  ;;  %v572_v21 = vpop.f32.mrb[23].mxu0  ;;  %v636_v22 = vpop.f32.mrb[23].mxu1  ;;  %v664_v23 = vmax.f32 %v568_v13, 0.0  ;;  %v680_v24 = vmax.f32 %v632_v14, 0.0 }
 0x12e   : > { %v665_v25 = vmax.f32 %v571_v19, 0.0  ;;  %v681_v26 = vmax.f32 %v635_v20, 0.0 }
 0x130   : > { %v1066_v27 = vpack.c.bf16 %v665_v25, %v664_v23  ;;  %v1106_v28 = vpack.c.bf16 %v681_v26, %v680_v24 }
 0x131   : > { %v575_v29 = vpop.f32.mrb[24].mxu0  ;;  %v639_v30 = vpop.f32.mrb[24].mxu1 }
 0x132   : > { %1122 = vst [vmem:[%s1358_s18 + $0x28] sm:$0xff] %v1066_v27   ;;  %1130 = vst [vmem:[%s1358_s18 + $0x68] sm:$0xff] %v1106_v28   ;;  %v576_v31 = vadd.f32 %v1348_v47, %v575_v29  ;;  %v640_v32 = vadd.f32 %v1348_v47, %v639_v30  ;;  %v577_v33 = vpop.f32.mrb[25].mxu0  ;;  %v641_v34 = vpop.f32.mrb[25].mxu1 }
 0x133   : > { %v578_v35 = vpop.f32.mrb[26].mxu0  ;;  %v642_v36 = vpop.f32.mrb[26].mxu1 }
 0x134   : > { %v579_v37 = vadd.f32 %v1348_v47, %v578_v35  ;;  %v643_v38 = vadd.f32 %v1348_v47, %v642_v36  ;;  %v580_v39 = vpop.f32.mrb[27].mxu0  ;;  %v644_v40 = vpop.f32.mrb[27].mxu1  ;;  %v666_v41 = vmax.f32 %v576_v31, 0.0  ;;  %v682_v42 = vmax.f32 %v640_v32, 0.0 }
 0x136   : > { %v667_v43 = vmax.f32 %v579_v37, 0.0  ;;  %v683_v44 = vmax.f32 %v643_v38, 0.0 }
 0x138   : > { %v1071_v45 = vpack.c.bf16 %v667_v43, %v666_v41  ;;  %v1111_v46 = vpack.c.bf16 %v683_v44, %v682_v42 }
 0x139   : > { %v583_v48 = vpop.f32.mrb[28].mxu0  ;;  %v647_v49 = vpop.f32.mrb[28].mxu1 }
 0x13a   : > { %1123 = vst [vmem:[%s1358_s18 + $0x30] sm:$0xff] %v1071_v45   ;;  %1131 = vst [vmem:[%s1358_s18 + $0x70] sm:$0xff] %v1111_v46   ;;  %v584_v50 = vadd.f32 %v1348_v47, %v583_v48  ;;  %v648_v51 = vadd.f32 %v1348_v47, %v647_v49  ;;  %v585_v52 = vpop.f32.mrb[29].mxu0  ;;  %v649_v53 = vpop.f32.mrb[29].mxu1 }
 0x13b   : > { %v586_v54 = vpop.f32.mrb[30].mxu0  ;;  %v650_v55 = vpop.f32.mrb[30].mxu1 }
 0x13c   : > { %v587_v56 = vadd.f32 %v1348_v47, %v586_v54  ;;  %v651_v57 = vadd.f32 %v1348_v47, %v650_v55  ;;  %v588_v58 = vpop.f32.mrb[31].mxu0  ;;  %v652_v59 = vpop.f32.mrb[31].mxu1  ;;  %v668_v60 = vmax.f32 %v584_v50, 0.0  ;;  %v684_v61 = vmax.f32 %v648_v51, 0.0 }
 0x13e   : > { %v669_v62 = vmax.f32 %v587_v56, 0.0  ;;  %v685_v63 = vmax.f32 %v651_v57, 0.0 }
 0x140   : > { %v1076_v0 = vpack.c.bf16 %v669_v62, %v668_v60  ;;  %v1116_v1 = vpack.c.bf16 %v685_v63, %v684_v61 }
 0x142   : > { %1124 = vst [vmem:[%s1358_s18 + $0x38] sm:$0xff] %v1076_v0   ;;  %1132 = vst [vmem:[%s1358_s18 + $0x78] sm:$0xff] %v1116_v1  }
 0x143 PF: > { %s13_s12 = sadd.s32 1, %s1227_s12  }
 0x144   : > { %p10_p4 = scmp.ge.s32.totalorder %s13_s12, 4  }
 0x146   :  { %12 = sbr.rel (!%p10_p4) target bundleno = 1 (0x1), region = 62 }

// kernel: neuron_counter_forward.21
= control target key start
LH: loop header
LB: loop body
LE: loop exit
PB: predicated region body
PF: predicated region fallthrough
CT: control target
= control target key end

     0   :  { %vm561_vm0 = vcmask 523264   ;;  %s1880_s1 = inlined_call_operand.vmem [shape: bf16[576,128], index: 1, kind: input, shape index: {}]   ;;  %s1881_s0 = inlined_call_operand.vmem [shape: bf16[128,576], index: 0, kind: input, shape index: {}]   ;;  %s1882_s2 = inlined_call_operand.vmem [shape: f32[1,128], index: 2, kind: input, shape index: {}]   ;;  %s1883_s3 = inlined_call_operand.vmem [shape: bf16[128,128], index: 3, kind: input, shape index: {}]   ;;  %s1884_s4 = inlined_call_operand.vmem [shape: bf16[128,128], index: 4, kind: output, shape index: {}]  }
   0x1   :  { %v1400_v0 = vld [vmem:[%s1880_s1 + $0x40] sm:$0xff]   ;;  %v1404_v4 = vld [vmem:[%s1880_s1 + $0x48] sm:$0xff]   ;;  %v1408_v8 = vld [vmem:[%s1880_s1 + $0x50] sm:$0xff]  }
   0x2   :  { %v1401_v1 = vld [vmem:[%s1880_s1 + $0xc0] sm:$0xff]   ;;  %1228 = vmatprep.subr.bf16.mxu0 %v1400_v0  ;;  %v1405_v5 = vld [vmem:[%s1880_s1 + $0xc8] sm:$0xff]   ;;  %v1409_v9 = vld [vmem:[%s1880_s1 + $0xd0] sm:$0xff]  }
   0x3   :  { %v1402_v2 = vld [vmem:[%s1880_s1] sm:$0xff]   ;;  %1292 = vmatprep.subr.bf16.mxu1 %v1401_v1  ;;  %v1406_v6 = vld [vmem:[%s1880_s1 + $0x8] sm:$0xff]   ;;  %v1410_v10 = vld [vmem:[%s1880_s1 + $0x10] sm:$0xff]  }
   0x4   :  { %v1403_v3 = vld [vmem:[%s1880_s1 + $0x80] sm:$0xff]   ;;  %1229 = vmatpush3.bf16.msra.mxu0 %v1402_v2  ;;  %v1407_v7 = vld [vmem:[%s1880_s1 + $0x88] sm:$0xff]   ;;  %v1411_v11 = vld [vmem:[%s1880_s1 + $0x90] sm:$0xff]  }
   0x5   :  { %1293 = vmatpush3.bf16.msra.mxu1 %v1403_v3  ;;  %1230 = vmatprep.subr.bf16.mxu0 %v1404_v4  ;;  %v1412_v12 = vld [vmem:[%s1880_s1 + $0x58] sm:$0xff]   ;;  %v1416_v16 = vld [vmem:[%s1880_s1 + $0x60] sm:$0xff]   ;;  %v1420_v20 = vld [vmem:[%s1880_s1 + $0x68] sm:$0xff]  }
   0x6   :  { %1294 = vmatprep.subr.bf16.mxu1 %v1405_v5  ;;  %v1413_v13 = vld [vmem:[%s1880_s1 + $0xd8] sm:$0xff]   ;;  %v1417_v17 = vld [vmem:[%s1880_s1 + $0xe0] sm:$0xff]   ;;  %v1421_v21 = vld [vmem:[%s1880_s1 + $0xe8] sm:$0xff]  }
   0x7   :  { %v1414_v14 = vld [vmem:[%s1880_s1 + $0x18] sm:$0xff]   ;;  %v1418_v18 = vld [vmem:[%s1880_s1 + $0x20] sm:$0xff]   ;;  %v1422_v22 = vld [vmem:[%s1880_s1 + $0x28] sm:$0xff]  }
   0x8   :  { %1231 = vmatpush3.bf16.msra.mxu0 %v1406_v6  ;;  %v1415_v15 = vld [vmem:[%s1880_s1 + $0x98] sm:$0xff]   ;;  %v1419_v19 = vld [vmem:[%s1880_s1 + $0xa0] sm:$0xff]   ;;  %v1423_v23 = vld [vmem:[%s1880_s1 + $0xa8] sm:$0xff]  }
   0x9   :  { %1295 = vmatpush3.bf16.msra.mxu1 %v1407_v7  ;;  %1232 = vmatprep.subr.bf16.mxu0 %v1408_v8  ;;  %v1424_v24 = vld [vmem:[%s1880_s1 + $0x70] sm:$0xff]   ;;  %v1428_v28 = vld [vmem:[%s1880_s1 + $0x78] sm:$0xff]   ;;  %v1437_v35 = vld [vmem:[%s1881_s0 + $0xc] ss:$20 sps:$4 sm:$0xff]  }
   0xa   :  { %1296 = vmatprep.subr.bf16.mxu1 %v1409_v9  ;;  %v1425_v25 = vld [vmem:[%s1880_s1 + $0xf0] sm:$0xff]   ;;  %v1429_v29 = vld [vmem:[%s1880_s1 + $0xf8] sm:$0xff]   ;;  %v1438_v36 = vld [vmem:[%s1880_s1 + $0x100] sm:$0xff]   ;;  %715 = vmatprep.mubr.bf16.mxu1 %v1437_v35 }
   0xb   :  { %v1426_v26 = vld [vmem:[%s1880_s1 + $0x30] sm:$0xff]   ;;  %v1430_v30 = vld [vmem:[%s1880_s1 + $0x38] sm:$0xff]   ;;  %v1439_v37 = vld [vmem:[%s1881_s0 + $0x2c] ss:$20 sps:$4 sm:$0xff]  }
   0xc   :  { %1233 = vmatpush3.bf16.msra.mxu0 %v1410_v10  ;;  %v1427_v27 = vld [vmem:[%s1880_s1 + $0xb0] sm:$0xff]   ;;  %v1431_v31 = vld [vmem:[%s1880_s1 + $0xb8] sm:$0xff]   ;;  %v1451_v42 = vld [vmem:[%s1880_s1 + $0x108] sm:$0xff]  }
   0xd   :  { %1297 = vmatpush3.bf16.msra.mxu1 %v1411_v11  ;;  %1234 = vmatprep.subr.bf16.mxu0 %v1412_v12  ;;  %v1432_v32 = vld [vmem:[%s1881_s0] ss:$20 sps:$4 sm:$0xff]   ;;  %v1434_v33 = vld [vmem:[%s1881_s0 + $0x4] ss:$20 sps:$4 sm:$0xff]   ;;  %v1435_v34 = vld [vmem:[%s1881_s0 + $0x8] ss:$20 sps:$4 sm:$0xff]  }
   0xe   :  { %1298 = vmatprep.subr.bf16.mxu1 %v1413_v13  ;;  %618 = vmatprep.mubr.bf16.mxu0 %v1434_v33  ;;  %v1441_v38 = vld [vmem:[%s1881_s0 + $0x34] ss:$20 sps:$4 sm:$0xff]   ;;  %v1444_v40 = vld [vmem:[%s1881_s0 + $0x30] ss:$20 sps:$4 sm:$0xff]   ;;  %v1450_v45 = vld [vmem:[%s1881_s0 + $0x58] ss:$20 sps:$4 sm:$0xff]  }
   0xf   :  { %v1443_v39 = vld [vmem:[%s1881_s0 + $0x28] ss:$20 sps:$4 sm:$0xff]   ;;  %v1449_v44 = vld [vmem:[%s1881_s0 + $0x50] ss:$20 sps:$4 sm:$0xff]   ;;  %v1456_v50 = vld [vmem:[%s1881_s0 + $0x78] ss:$20 sps:$4 sm:$0xff]  }
  0x10   :  { %1235 = vmatpush3.bf16.msra.mxu0 %v1414_v14  ;;  %v1445_v41 = vld [vmem:[%s1881_s0 + $0x54] ss:$20 sps:$4 sm:$0xff]   ;;  %v1447_v43 = vld [vmem:[%s1881_s0 + $0x5c] ss:$20 sps:$4 sm:$0xff]   ;;  %v1454_v48 = vld [vmem:[%s1881_s0 + $0x84] ss:$20 sps:$4 sm:$0xff]  }
  0x11   :  { %1299 = vmatpush3.bf16.msra.mxu1 %v1415_v15  ;;  %1236 = vmatprep.subr.bf16.mxu0 %v1416_v16  ;;  %v1464_v46 = vld [vmem:[%s1880_s1 + $0x110] sm:$0xff]   ;;  %v1477_v49 = vld [vmem:[%s1880_s1 + $0x118] sm:$0xff]   ;;  %v1460_v53 = vld [vmem:[%s1881_s0 + $0xac] ss:$20 sps:$4 sm:$0xff]  }
  0x12   :  { %1300 = vmatprep.subr.bf16.mxu1 %v1417_v17  ;;  %v1452_v47 = vld [vmem:[%s1881_s0 + $0x7c] ss:$20 sps:$4 sm:$0xff]   ;;  %v1457_v51 = vld [vmem:[%s1881_s0 + $0x80] ss:$20 sps:$4 sm:$0xff]   ;;  %v1458_v52 = vld [vmem:[%s1881_s0 + $0xa4] ss:$20 sps:$4 sm:$0xff]  }
  0x13   :  { %v1462_v54 = vld [vmem:[%s1881_s0 + $0xa0] ss:$20 sps:$4 sm:$0xff]   ;;  %v1463_v55 = vld [vmem:[%s1881_s0 + $0xa8] ss:$20 sps:$4 sm:$0xff]   ;;  %v1470_v59 = vld [vmem:[%s1881_s0 + $0xd0] ss:$20 sps:$4 sm:$0xff]  }
  0x14   :  { %1237 = vmatpush3.bf16.msra.mxu0 %v1418_v18  ;;  %v1465_v56 = vld [vmem:[%s1881_s0 + $0xcc] ss:$20 sps:$4 sm:$0xff]   ;;  %v1467_v57 = vld [vmem:[%s1881_s0 + $0xd4] ss:$20 sps:$4 sm:$0xff]   ;;  %v1473_v61 = vld [vmem:[%s1881_s0 + $0xfc] ss:$20 sps:$4 sm:$0xff]  }
  0x15   :  { %1301 = vmatpush3.bf16.msra.mxu1 %v1419_v19  ;;  %1238 = vmatprep.subr.bf16.mxu0 %v1420_v20  ;;  %v1469_v58 = vld [vmem:[%s1881_s0 + $0xc8] ss:$20 sps:$4 sm:$0xff]   ;;  %v1475_v62 = vld [vmem:[%s1881_s0 + $0xf0] ss:$20 sps:$4 sm:$0xff]   ;;  %v1476_v63 = vld [vmem:[%s1881_s0 + $0xf8] ss:$20 sps:$4 sm:$0xff]  }
  0x16   :  { %1302 = vmatprep.subr.bf16.mxu1 %v1421_v21  ;;  %v1471_v60 = vld [vmem:[%s1881_s0 + $0xf4] ss:$20 sps:$4 sm:$0xff]   ;;  %v1478_v0 = vld [vmem:[%s1881_s0 + $0x11c] ss:$20 sps:$4 sm:$0xff]   ;;  %v1480_v1 = vld [vmem:[%s1881_s0 + $0x124] ss:$20 sps:$4 sm:$0xff]  }
  0x17   :  { %v1482_v2 = vld [vmem:[%s1881_s0 + $0x118] ss:$20 sps:$4 sm:$0xff]   ;;  %v1483_v3 = vld [vmem:[%s1881_s0 + $0x120] ss:$20 sps:$4 sm:$0xff]   ;;  %v1484_v4 = vld [vmem:[%s1881_s0 + $0x10] ss:$20 sps:$4 sm:$0xff]  }
  0x18   :  { %1239 = vmatpush3.bf16.msra.mxu0 %v1422_v22  ;;  %v1485_v5 = vld [vmem:[%s1881_s0 + $0xb0] ss:$20 sps:$4 sm:$0xff]   ;;  %v1486_v6 = vld [vmem:[%s1881_s0 + $0x38] ss:$20 sps:$4 sm:$0xff]   ;;  %v1488_v8 = vld [vmem:[%s1881_s0 + $0x60] ss:$20 sps:$4 sm:$0xff]  }
  0x19   :  { %1303 = vmatpush3.bf16.msra.mxu1 %v1423_v23  ;;  %1240 = vmatprep.subr.bf16.mxu0 %v1424_v24  ;;  %v1487_v7 = vld [vmem:[%s1881_s0 + $0xd8] ss:$20 sps:$4 sm:$0xff]   ;;  %v1489_v9 = vld [vmem:[%s1881_s0 + $0x100] ss:$20 sps:$4 sm:$0xff]   ;;  %v1490_v10 = vld [vmem:[%s1881_s0 + $0x88] ss:$20 sps:$4 sm:$0xff]  }
  0x1a   :  { %1304 = vmatprep.subr.bf16.mxu1 %v1425_v25  ;;  %v1491_v11 = vld [vmem:[%s1881_s0 + $0x128] ss:$20 sps:$4 sm:$0xff]   ;;  %v1756_v14 = vld [vmem:[%s1882_s2] ss:$0 sm:$0xff] }
  0x1c   :  { %1241 = vmatpush3.bf16.msra.mxu0 %v1426_v26 }
  0x1d   :  { %1305 = vmatpush3.bf16.msra.mxu1 %v1427_v27  ;;  %1242 = vmatprep.subr.bf16.mxu0 %v1428_v28 }
  0x1e   :  { %1306 = vmatprep.subr.bf16.mxu1 %v1429_v29 }
  0x20   :  { %1243 = vmatpush3.bf16.msra.mxu0 %v1430_v30 }
  0x21   :  { %1307 = vmatpush3.bf16.msra.mxu1 %v1431_v31  ;;  %1368 = vmatprep.subr.bf16.mxu0 %v1438_v36 }
  0x22   :  { %1392 = vmatprep.subr.bf16.mxu1 %v1438_v36 }
  0x23   :  { %619 = vmatmul.mubr.bf16.vlgmr.msra.gmra.mrb[0].mxu0 %v1432_v32 }
  0x24   :  { %716 = vmatmul.mubr.bf16.vlgmr.msra.gmra.mrb[0].mxu1 %v1435_v34  ;;  %1369 = vmatpush3.bf16.msra.mxu0 %v1438_v36 }
  0x25   :  { %1396 = vmatpush3.bf16.msra.mxu1 %v1438_v36  ;;  %626 = vmatprep.mubr.bf16.mxu0 %v1439_v37 }
  0x26   :  { %723 = vmatprep.mubr.bf16.mxu1 %v1441_v38  ;;  %1370 = vmatprep.subr.bf16.mxu0 %v1451_v42 }
  0x27   :  { %1393 = vmatprep.subr.bf16.mxu1 %v1451_v42 }
  0x28   :  { %1371 = vmatpush3.bf16.msra.mxu0 %v1451_v42 }
  0x29   :  { %1397 = vmatpush3.bf16.msra.mxu1 %v1451_v42  ;;  %1372 = vmatprep.subr.bf16.mxu0 %v1464_v46 }
  0x2a   :  { %1394 = vmatprep.subr.bf16.mxu1 %v1464_v46 }
  0x2b   :  { %627 = vmatmul.mubr.bf16.gmra.mrb[4].mxu0 %v1443_v39 }
  0x2c   :  { %724 = vmatmul.mubr.bf16.gmra.mrb[4].mxu1 %v1444_v40  ;;  %634 = vmatprep.mubr.bf16.mxu0 %v1445_v41 }
  0x2d   :  { %731 = vmatprep.mubr.bf16.mxu1 %v1447_v43  ;;  %1373 = vmatpush3.bf16.msra.mxu0 %v1464_v46 }
  0x2e   :  { %1398 = vmatpush3.bf16.msra.mxu1 %v1464_v46  ;;  %1374 = vmatprep.subr.bf16.mxu0 %v1477_v49 }
  0x2f   :  { %1395 = vmatprep.subr.bf16.mxu1 %v1477_v49 }
  0x31   :  { %1375 = vmatpush3.bf16.msra.mxu0 %v1477_v49 }
  0x32   :  { %1399 = vmatpush3.bf16.msra.mxu1 %v1477_v49 }
  0x33   :  { %635 = vmatmul.mubr.bf16.gmra.mrb[8].mxu0 %v1449_v44 }
  0x34   :  { %732 = vmatmul.mubr.bf16.gmra.mrb[8].mxu1 %v1450_v45  ;;  %642 = vmatprep.mubr.bf16.mxu0 %v1452_v47 }
  0x35   :  { %739 = vmatprep.mubr.bf16.mxu1 %v1454_v48 }
  0x3b   :  { %643 = vmatmul.mubr.bf16.gmra.mrb[12].mxu0 %v1456_v50 }
  0x3c   :  { %740 = vmatmul.mubr.bf16.gmra.mrb[12].mxu1 %v1457_v51  ;;  %650 = vmatprep.mubr.bf16.mxu0 %v1458_v52 }
  0x3d   :  { %747 = vmatprep.mubr.bf16.mxu1 %v1460_v53 }
  0x43   :  { %651 = vmatmul.mubr.bf16.gmra.mrb[16].mxu0 %v1462_v54 }
  0x44   :  { %748 = vmatmul.mubr.bf16.gmra.mrb[16].mxu1 %v1463_v55  ;;  %658 = vmatprep.mubr.bf16.mxu0 %v1465_v56 }
  0x45   :  { %755 = vmatprep.mubr.bf16.mxu1 %v1467_v57 }
  0x4b   :  { %659 = vmatmul.mubr.bf16.gmra.mrb[20].mxu0 %v1469_v58 }
  0x4c   :  { %756 = vmatmul.mubr.bf16.gmra.mrb[20].mxu1 %v1470_v59  ;;  %666 = vmatprep.mubr.bf16.mxu0 %v1471_v60 }
  0x4d   :  { %763 = vmatprep.mubr.bf16.mxu1 %v1473_v61 }
  0x53   :  { %667 = vmatmul.mubr.bf16.gmra.mrb[24].mxu0 %v1475_v62 }
  0x54   :  { %764 = vmatmul.mubr.bf16.gmra.mrb[24].mxu1 %v1476_v63  ;;  %674 = vmatprep.mubr.bf16.mxu0 %v1478_v0 }
  0x55   :  { %771 = vmatprep.mubr.bf16.mxu1 %v1480_v1 }
  0x5b   :  { %675 = vmatmul.mubr.bf16.gmra.mrb[28].mxu0 %v1482_v2 }
  0x5c   :  { %772 = vmatmul.mubr.bf16.gmra.mrb[28].mxu1 %v1483_v3  ;;  %1376 = vmatprep.mubr.msk.bf16.mxu0 %vm561_vm0, %v1484_v4 }
  0x5d   :  { %1384 = vmatprep.mubr.msk.bf16.mxu1 %vm561_vm0, %v1485_v5 }
  0x63   :  { %1377 = vmatmul.mubr.msk.bf16.vlgmr.msra.gmra.mrb[32].mxu0 %vm561_vm0, %v1486_v6 }
  0x64   :  { %1385 = vmatmul.mubr.msk.bf16.vlgmr.msra.gmra.mrb[32].mxu1 %vm561_vm0, %v1487_v7  ;;  %1380 = vmatprep.mubr.msk.bf16.mxu0 %vm561_vm0, %v1488_v8 }
  0x65   :  { %1388 = vmatprep.mubr.msk.bf16.mxu1 %vm561_vm0, %v1489_v9 }
  0x6b   :  { %1381 = vmatmul.mubr.msk.bf16.gmra.mrb[36].mxu0 %vm561_vm0, %v1490_v10 }
  0x6c   :  { %1389 = vmatmul.mubr.msk.bf16.gmra.mrb[36].mxu1 %vm561_vm0, %v1491_v11 }
  0xf6   :  { %v1244_v12 = vpop.f32.mrb[0].mxu0 }
  0xf7   :  { %v1308_v13 = vpop.f32.mrb[0].mxu1  ;;  %v1245_v15 = vpop.f32.mrb[1].mxu0 }
  0xf8   :  { %v1246_v16 = vadd.f32 %v1245_v15, %v1244_v12  ;;  %v1309_v17 = vpop.f32.mrb[1].mxu1  ;;  %v1247_v18 = vpop.f32.mrb[2].mxu0 }
  0xf9   :  { %v1310_v19 = vadd.f32 %v1309_v17, %v1308_v13  ;;  %v1311_v20 = vpop.f32.mrb[2].mxu1  ;;  %v1248_v21 = vpop.f32.mrb[3].mxu0 }
  0xfa   :  { %v621_v22 = vadd.f32 %v1246_v16, %v1756_v14  ;;  %v1249_v23 = vadd.f32 %v1248_v21, %v1247_v18  ;;  %v1312_v24 = vpop.f32.mrb[3].mxu1 }
  0xfb   :  { %v1313_v25 = vadd.f32 %v1312_v24, %v1311_v20 }
  0xfc   :  { %v624_v26 = vadd.f32 %v1249_v23, %v1756_v14  ;;  %v1760_v27 = vadd.f32 %v1310_v19, %v621_v22 }
  0xfe   :  { %v1250_v28 = vpop.f32.mrb[4].mxu0  ;;  %v1762_v29 = vadd.f32 %v1313_v25, %v624_v26 }
  0xff   :  { %v1314_v30 = vpop.f32.mrb[4].mxu1  ;;  %v1251_v31 = vpop.f32.mrb[5].mxu0 }
 0x100   :  { %v1252_v32 = vadd.f32 %v1251_v31, %v1250_v28  ;;  %v1315_v33 = vpop.f32.mrb[5].mxu1  ;;  %v1253_v34 = vpop.f32.mrb[6].mxu0 }
 0x101   :  { %v1316_v35 = vadd.f32 %v1315_v33, %v1314_v30  ;;  %v1317_v36 = vpop.f32.mrb[6].mxu1  ;;  %v1254_v37 = vpop.f32.mrb[7].mxu0 }
 0x102   :  { %v629_v38 = vadd.f32 %v1252_v32, %v1756_v14  ;;  %v1255_v39 = vadd.f32 %v1254_v37, %v1253_v34  ;;  %v1318_v40 = vpop.f32.mrb[7].mxu1 }
 0x103   :  { %v1319_v41 = vadd.f32 %v1318_v40, %v1317_v36 }
 0x104   :  { %v632_v42 = vadd.f32 %v1255_v39, %v1756_v14  ;;  %v1766_v43 = vadd.f32 %v1316_v35, %v629_v38 }
 0x106   :  { %v1256_v44 = vpop.f32.mrb[8].mxu0  ;;  %v1768_v45 = vadd.f32 %v1319_v41, %v632_v42 }
 0x107   :  { %v1320_v46 = vpop.f32.mrb[8].mxu1  ;;  %v1257_v47 = vpop.f32.mrb[9].mxu0 }
 0x108   :  { %v1258_v48 = vadd.f32 %v1257_v47, %v1256_v44  ;;  %v1321_v49 = vpop.f32.mrb[9].mxu1  ;;  %v1259_v50 = vpop.f32.mrb[10].mxu0 }
 0x109   :  { %v1322_v51 = vadd.f32 %v1321_v49, %v1320_v46  ;;  %v1323_v52 = vpop.f32.mrb[10].mxu1  ;;  %v1260_v53 = vpop.f32.mrb[11].mxu0 }
 0x10a   :  { %v637_v54 = vadd.f32 %v1258_v48, %v1756_v14  ;;  %v1261_v55 = vadd.f32 %v1260_v53, %v1259_v50  ;;  %v1324_v56 = vpop.f32.mrb[11].mxu1 }
 0x10b   :  { %v1325_v57 = vadd.f32 %v1324_v56, %v1323_v52 }
 0x10c   :  { %v640_v58 = vadd.f32 %v1261_v55, %v1756_v14  ;;  %v1772_v59 = vadd.f32 %v1322_v51, %v637_v54 }
 0x10e   :  { %v1262_v60 = vpop.f32.mrb[12].mxu0  ;;  %v1774_v61 = vadd.f32 %v1325_v57, %v640_v58 }
 0x10f   :  { %v1326_v62 = vpop.f32.mrb[12].mxu1  ;;  %v1263_v63 = vpop.f32.mrb[13].mxu0 }
 0x110   :  { %v1264_v0 = vadd.f32 %v1263_v63, %v1262_v60  ;;  %v1327_v1 = vpop.f32.mrb[13].mxu1  ;;  %v1265_v2 = vpop.f32.mrb[14].mxu0 }
 0x111   :  { %v1328_v3 = vadd.f32 %v1327_v1, %v1326_v62  ;;  %v1329_v4 = vpop.f32.mrb[14].mxu1  ;;  %v1266_v5 = vpop.f32.mrb[15].mxu0 }
 0x112   :  { %v645_v6 = vadd.f32 %v1264_v0, %v1756_v14  ;;  %v1267_v7 = vadd.f32 %v1266_v5, %v1265_v2  ;;  %v1330_v8 = vpop.f32.mrb[15].mxu1 }
 0x113   :  { %v1331_v9 = vadd.f32 %v1330_v8, %v1329_v4 }
 0x114   :  { %v648_v10 = vadd.f32 %v1267_v7, %v1756_v14  ;;  %v1778_v11 = vadd.f32 %v1328_v3, %v645_v6 }
 0x116   :  { %v1268_v12 = vpop.f32.mrb[16].mxu0  ;;  %v1780_v13 = vadd.f32 %v1331_v9, %v648_v10 }
 0x117   :  { %v1332_v15 = vpop.f32.mrb[16].mxu1  ;;  %v1269_v16 = vpop.f32.mrb[17].mxu0 }
 0x118   :  { %v1270_v17 = vadd.f32 %v1269_v16, %v1268_v12  ;;  %v1333_v18 = vpop.f32.mrb[17].mxu1  ;;  %v1271_v19 = vpop.f32.mrb[18].mxu0 }
 0x119   :  { %v1334_v20 = vadd.f32 %v1333_v18, %v1332_v15  ;;  %v1335_v21 = vpop.f32.mrb[18].mxu1  ;;  %v1272_v22 = vpop.f32.mrb[19].mxu0 }
 0x11a   :  { %v653_v23 = vadd.f32 %v1270_v17, %v1756_v14  ;;  %v1273_v24 = vadd.f32 %v1272_v22, %v1271_v19  ;;  %v1336_v25 = vpop.f32.mrb[19].mxu1  ;;  %v1214_v19 = vld [vmem:[%s1883_s3 + $0x8] sm:$0xff]  }
 0x11b   :  { %v1337_v26 = vadd.f32 %v1336_v25, %v1335_v21  ;;  %v1143_v21 = vld [vmem:[%s1883_s3] sm:$0xff]   ;;  %v1815_v25 = vld [vmem:[%s1883_s3 + $0x18] sm:$0xff]  }
 0x11c   :  { %v656_v28 = vadd.f32 %v1273_v24, %v1756_v14  ;;  %v1784_v30 = vadd.f32 %v1334_v20, %v653_v23  ;;  %v1218_v20 = vld [vmem:[%s1883_s3 + $0x28] sm:$0xff]   ;;  %v1217_v23 = vld [vmem:[%s1883_s3 + $0x20] sm:$0xff]  }
 0x11e   :  { %v1274_v31 = vpop.f32.mrb[20].mxu0  ;;  %v1786_v32 = vadd.f32 %v1337_v26, %v656_v28  ;;  %v1148_v28 = vunpack.c.l.bf16 %v1214_v19 }
 0x11f   :  { %v1338_v33 = vpop.f32.mrb[20].mxu1  ;;  %v1275_v34 = vpop.f32.mrb[21].mxu0 }
 0x120   :  { %v1276_v35 = vadd.f32 %v1275_v34, %v1274_v31  ;;  %v1339_v36 = vpop.f32.mrb[21].mxu1  ;;  %v1277_v37 = vpop.f32.mrb[22].mxu0  ;;  %v1164_v31 = vunpack.c.l.bf16 %v1218_v20  ;;  %v1820_v34 = vld [vmem:[%s1883_s3 + $0x38] sm:$0xff]  }
 0x121   :  { %v1340_v38 = vadd.f32 %v1339_v36, %v1338_v33  ;;  %v1341_v39 = vpop.f32.mrb[22].mxu1  ;;  %v1278_v40 = vpop.f32.mrb[23].mxu0  ;;  %v1144_v33 = vunpack.c.l.bf16 %v1143_v21  ;;  %v1160_v36 = vunpack.c.l.bf16 %v1217_v23 }
 0x122   :  { %v661_v41 = vadd.f32 %v1276_v35, %v1756_v14  ;;  %v1279_v42 = vadd.f32 %v1278_v40, %v1277_v37  ;;  %v1342_v44 = vpop.f32.mrb[23].mxu1  ;;  %v1825_v35 = vld [vmem:[%s1883_s3 + $0x10] sm:$0xff]   ;;  %v1149_v37 = vunpack.c.h.bf16 %v1214_v19 }
 0x123   :  { %v1343_v46 = vadd.f32 %v1342_v44, %v1341_v39  ;;  %v1830_v39 = vld [vmem:[%s1883_s3 + $0x30] sm:$0xff]  }
 0x124   :  { %v664_v47 = vadd.f32 %v1279_v42, %v1756_v14  ;;  %v758_v48 = vadd.f32 %v1340_v38, %v661_v41  ;;  %v1165_v38 = vunpack.c.h.bf16 %v1218_v20 }
 0x126   :  { %v1280_v49 = vpop.f32.mrb[24].mxu0  ;;  %v1790_v50 = vadd.f32 %v1343_v46, %v664_v47  ;;  %v1145_v46 = vunpack.c.h.bf16 %v1143_v21  ;;  %v1161_v47 = vunpack.c.h.bf16 %v1217_v23 }
 0x127   :  { %v1344_v51 = vpop.f32.mrb[24].mxu1  ;;  %v1281_v52 = vpop.f32.mrb[25].mxu0 }
 0x128   :  { %v1282_v53 = vadd.f32 %v1281_v52, %v1280_v49  ;;  %v1345_v54 = vpop.f32.mrb[25].mxu1  ;;  %v1283_v55 = vpop.f32.mrb[26].mxu0  ;;  %v1156_v49 = vunpack.c.l.bf16 %v1815_v25 }
 0x129   :  { %v1346_v56 = vadd.f32 %v1345_v54, %v1344_v51  ;;  %v1347_v57 = vpop.f32.mrb[26].mxu1  ;;  %v1284_v58 = vpop.f32.mrb[27].mxu0 }
 0x12a   :  { %v669_v60 = vadd.f32 %v1282_v53, %v1756_v14  ;;  %v1285_v62 = vadd.f32 %v1284_v58, %v1283_v55  ;;  %v1348_v63 = vpop.f32.mrb[27].mxu1  ;;  %v1172_v55 = vunpack.c.l.bf16 %v1820_v34 }
 0x12b   :  { %v1349_v0 = vadd.f32 %v1348_v63, %v1347_v57  ;;  %v1168_v63 = vunpack.c.l.bf16 %v1830_v39 }
 0x12c   :  { %v672_v1 = vadd.f32 %v1285_v62, %v1756_v14  ;;  %v1794_v2 = vadd.f32 %v1346_v56, %v669_v60  ;;  %v1152_v56 = vunpack.c.l.bf16 %v1825_v35 }
 0x12e   :  { %v1286_v3 = vpop.f32.mrb[28].mxu0  ;;  %v1796_v4 = vadd.f32 %v1349_v0, %v672_v1 }
 0x12f   :  { %v1350_v5 = vpop.f32.mrb[28].mxu1  ;;  %v1287_v6 = vpop.f32.mrb[29].mxu0 }
 0x130   :  { %v1288_v7 = vadd.f32 %v1287_v6, %v1286_v3  ;;  %v1351_v8 = vpop.f32.mrb[29].mxu1  ;;  %v1289_v9 = vpop.f32.mrb[30].mxu0 }
 0x131   :  { %v1352_v10 = vadd.f32 %v1351_v8, %v1350_v5  ;;  %v1353_v12 = vpop.f32.mrb[30].mxu1  ;;  %v1290_v15 = vpop.f32.mrb[31].mxu0  ;;  %v1157_v8 = vunpack.c.h.bf16 %v1815_v25 }
 0x132   :  { %v677_v16 = vadd.f32 %v1288_v7, %v1756_v14  ;;  %v1291_v17 = vadd.f32 %v1290_v15, %v1289_v9  ;;  %v1354_v18 = vpop.f32.mrb[31].mxu1 }
 0x133   :  { %v1355_v22 = vadd.f32 %v1354_v18, %v1353_v12 }
 0x134   :  { %v680_v24 = vadd.f32 %v1291_v17, %v1756_v14  ;;  %v774_v26 = vadd.f32 %v1352_v10, %v677_v16  ;;  %v1153_v10 = vunpack.c.h.bf16 %v1825_v35 }
 0x136   :  { %v1378_v14 = vpop.f32.mrb[32].mxu0  ;;  %v1832_v40 = vadd.f32 %v1355_v22, %v680_v24 }
 0x137   :  { %v823_v41 = vadd.f32 %v1378_v14, %v1766_v43  ;;  %v1386_v42 = vpop.f32.mrb[32].mxu1  ;;  %v814_v44 = vpop.f32.mrb[33].mxu0 }
 0x138   :  { %v855_v51 = vadd.f32 %v1386_v42, %v758_v48  ;;  %v815_v52 = vadd.f32 %v814_v44, %v1760_v27  ;;  %v846_v53 = vpop.f32.mrb[33].mxu1  ;;  %v1379_v54 = vpop.f32.mrb[34].mxu0 }
 0x139   :  { %v911_v57 = vadd.f32 %v1148_v28, %v823_v41  ;;  %v847_v58 = vadd.f32 %v846_v53, %v1784_v30  ;;  %v826_v43 = vadd.f32 %v1379_v54, %v1768_v45  ;;  %v1387_v60 = vpop.f32.mrb[34].mxu1  ;;  %v817_v62 = vpop.f32.mrb[35].mxu0  ;;  %v1173_v45 = vunpack.c.h.bf16 %v1820_v34 }
 0x13a   :  { %v919_v0 = vadd.f32 %v1164_v31, %v855_v51  ;;  %v909_v1 = vadd.f32 %v1144_v33, %v815_v52  ;;  %v858_v48 = vadd.f32 %v1387_v60, %v1790_v50  ;;  %v818_v27 = vadd.f32 %v817_v62, %v1762_v29  ;;  %v849_v3 = vpop.f32.mrb[35].mxu1 }
 0x13b   :  { %v917_v5 = vadd.f32 %v1160_v36, %v847_v58  ;;  %v912_v6 = vadd.f32 %v1149_v37, %v826_v43  ;;  %v850_v7 = vadd.f32 %v849_v3, %v1786_v32  ;;  %v927_v12 = vmax.f32 %v911_v57, 0.0 }
 0x13c   :  { %v920_v30 = vadd.f32 %v1165_v38, %v858_v48  ;;  %v910_v9 = vadd.f32 %v1145_v46, %v818_v27  ;;  %v1169_v50 = vunpack.c.h.bf16 %v1830_v39  ;;  %v935_v17 = vmax.f32 %v919_v0, 0.0 }
 0x13d   :  { %v928_v15 = vmax.f32 %v912_v6, 0.0  ;;  %v918_v16 = vadd.f32 %v1161_v47, %v850_v7  ;;  %v925_v29 = vmax.f32 %v909_v1, 0.0  ;;  %v933_v21 = vmax.f32 %v917_v5, 0.0 }
 0x13e   :  { %v936_v18 = vmax.f32 %v920_v30, 0.0  ;;  %v926_v19 = vmax.f32 %v910_v9, 0.0  ;;  %v1382_v20 = vpop.f32.mrb[36].mxu0 }
 0x13f   :  { %v1182_v32 = vpack.c.bf16 %v928_v15, %v927_v12  ;;  %v934_v22 = vmax.f32 %v918_v16, 0.0  ;;  %v839_v23 = vadd.f32 %v1382_v20, %v1778_v11  ;;  %v1390_v24 = vpop.f32.mrb[36].mxu1  ;;  %v830_v25 = vpop.f32.mrb[37].mxu0 }
 0x140   :  { %v1202_v28 = vpack.c.bf16 %v936_v18, %v935_v17  ;;  %v1177_v31 = vpack.c.bf16 %v926_v19, %v925_v29  ;;  %v871_v33 = vadd.f32 %v1390_v24, %v774_v26  ;;  %v831_v34 = vadd.f32 %v830_v25, %v1772_v59  ;;  %v862_v35 = vpop.f32.mrb[37].mxu1  ;;  %v1383_v14 = vpop.f32.mrb[38].mxu0 }
 0x141   :  { %1221 = vst [vmem:[%s1884_s4 + $0x8] sm:$0xff] %v1182_v32   ;;  %v1197_v36 = vpack.c.bf16 %v934_v22, %v933_v21  ;;  %v915_v37 = vadd.f32 %v1156_v49, %v839_v23  ;;  %v863_v38 = vadd.f32 %v862_v35, %v1794_v2  ;;  %v842_v39 = vadd.f32 %v1383_v14, %v1780_v13  ;;  %v1391_v11 = vpop.f32.mrb[38].mxu1  ;;  %v833_v41 = vpop.f32.mrb[39].mxu0 }
 0x142   :  { %1225 = vst [vmem:[%s1884_s4 + $0x28] sm:$0xff] %v1202_v28   ;;  %1178 = vst [vmem:[%s1884_s4] sm:$0xff] %v1177_v31   ;;  %v923_v59 = vadd.f32 %v1172_v55, %v871_v33  ;;  %v913_v26 = vadd.f32 %v1152_v56, %v831_v34  ;;  %v874_v42 = vadd.f32 %v1391_v11, %v1832_v40  ;;  %v865_v46 = vpop.f32.mrb[39].mxu1 }
 0x143   :  { %v834_v44 = vadd.f32 %v833_v41, %v1774_v61  ;;  %1224 = vst [vmem:[%s1884_s4 + $0x20] sm:$0xff] %v1197_v36   ;;  %v921_v13 = vadd.f32 %v1168_v63, %v863_v38  ;;  %v916_v2 = vadd.f32 %v1157_v8, %v842_v39  ;;  %v866_v47 = vadd.f32 %v865_v46, %v1796_v4 }
 0x144   :  { %v924_v49 = vadd.f32 %v1173_v45, %v874_v42  ;;  %v931_v52 = vmax.f32 %v915_v37, 0.0  ;;  %v939_v55 = vmax.f32 %v923_v59, 0.0  ;;  %v929_v56 = vmax.f32 %v913_v26, 0.0 }
 0x145   :  { %v914_v51 = vadd.f32 %v1153_v10, %v834_v44  ;;  %v932_v53 = vmax.f32 %v916_v2, 0.0  ;;  %v922_v54 = vadd.f32 %v1169_v50, %v866_v47  ;;  %v937_v58 = vmax.f32 %v921_v13, 0.0 }
 0x146   :  { %v940_v57 = vmax.f32 %v924_v49, 0.0 }
 0x147   :  { %v930_v40 = vmax.f32 %v914_v51, 0.0  ;;  %v1192_v61 = vpack.c.bf16 %v932_v53, %v931_v52  ;;  %v938_v43 = vmax.f32 %v922_v54, 0.0 }
 0x148   :  { %v1212_v60 = vpack.c.bf16 %v940_v57, %v939_v55 }
 0x149   :  { %v1187_v62 = vpack.c.bf16 %v930_v40, %v929_v56  ;;  %1223 = vst [vmem:[%s1884_s4 + $0x18] sm:$0xff] %v1192_v61   ;;  %v1207_v63 = vpack.c.bf16 %v938_v43, %v937_v58 }
 0x14a   :  { %1227 = vst [vmem:[%s1884_s4 + $0x38] sm:$0xff] %v1212_v60  }
 0x14b   :  { %1222 = vst [vmem:[%s1884_s4 + $0x10] sm:$0xff] %v1187_v62   ;;  %1226 = vst [vmem:[%s1884_s4 + $0x30] sm:$0xff] %v1207_v63  }

// kernel: neuron_counter_forward.20
= control target key start
LH: loop header
LB: loop body
LE: loop exit
PB: predicated region body
PF: predicated region fallthrough
CT: control target
= control target key end

     0   :  { %vm558_vm0 = vcmask 523264   ;;  %s1733_s1 = inlined_call_operand.vmem [shape: bf16[576,128], index: 1, kind: input, shape index: {}]   ;;  %s1734_s0 = inlined_call_operand.vmem [shape: bf16[128,576], index: 0, kind: input, shape index: {}]   ;;  %s1735_s2 = inlined_call_operand.vmem [shape: f32[1,128], index: 2, kind: input, shape index: {}]   ;;  %s1736_s3 = inlined_call_operand.vmem [shape: bf16[128,128], index: 3, kind: output, shape index: {}]  }
   0x1   :  { %v1310_v0 = vld [vmem:[%s1733_s1 + $0x40] sm:$0xff]   ;;  %v1314_v4 = vld [vmem:[%s1733_s1 + $0x48] sm:$0xff]   ;;  %v1318_v8 = vld [vmem:[%s1733_s1 + $0x50] sm:$0xff]  }
   0x2   :  { %v1311_v1 = vld [vmem:[%s1733_s1 + $0xc0] sm:$0xff]   ;;  %1138 = vmatprep.subr.bf16.mxu0 %v1310_v0  ;;  %v1315_v5 = vld [vmem:[%s1733_s1 + $0xc8] sm:$0xff]   ;;  %v1319_v9 = vld [vmem:[%s1733_s1 + $0xd0] sm:$0xff]  }
   0x3   :  { %v1312_v2 = vld [vmem:[%s1733_s1] sm:$0xff]   ;;  %1202 = vmatprep.subr.bf16.mxu1 %v1311_v1  ;;  %v1316_v6 = vld [vmem:[%s1733_s1 + $0x8] sm:$0xff]   ;;  %v1320_v10 = vld [vmem:[%s1733_s1 + $0x10] sm:$0xff]  }
   0x4   :  { %v1313_v3 = vld [vmem:[%s1733_s1 + $0x80] sm:$0xff]   ;;  %1139 = vmatpush3.bf16.msra.mxu0 %v1312_v2  ;;  %v1317_v7 = vld [vmem:[%s1733_s1 + $0x88] sm:$0xff]   ;;  %v1321_v11 = vld [vmem:[%s1733_s1 + $0x90] sm:$0xff]  }
   0x5   :  { %1203 = vmatpush3.bf16.msra.mxu1 %v1313_v3  ;;  %1140 = vmatprep.subr.bf16.mxu0 %v1314_v4  ;;  %v1322_v12 = vld [vmem:[%s1733_s1 + $0x58] sm:$0xff]   ;;  %v1326_v16 = vld [vmem:[%s1733_s1 + $0x60] sm:$0xff]   ;;  %v1330_v20 = vld [vmem:[%s1733_s1 + $0x68] sm:$0xff]  }
   0x6   :  { %1204 = vmatprep.subr.bf16.mxu1 %v1315_v5  ;;  %v1323_v13 = vld [vmem:[%s1733_s1 + $0xd8] sm:$0xff]   ;;  %v1327_v17 = vld [vmem:[%s1733_s1 + $0xe0] sm:$0xff]   ;;  %v1331_v21 = vld [vmem:[%s1733_s1 + $0xe8] sm:$0xff]  }
   0x7   :  { %v1324_v14 = vld [vmem:[%s1733_s1 + $0x18] sm:$0xff]   ;;  %v1328_v18 = vld [vmem:[%s1733_s1 + $0x20] sm:$0xff]   ;;  %v1332_v22 = vld [vmem:[%s1733_s1 + $0x28] sm:$0xff]  }
   0x8   :  { %1141 = vmatpush3.bf16.msra.mxu0 %v1316_v6  ;;  %v1325_v15 = vld [vmem:[%s1733_s1 + $0x98] sm:$0xff]   ;;  %v1329_v19 = vld [vmem:[%s1733_s1 + $0xa0] sm:$0xff]   ;;  %v1333_v23 = vld [vmem:[%s1733_s1 + $0xa8] sm:$0xff]  }
   0x9   :  { %1205 = vmatpush3.bf16.msra.mxu1 %v1317_v7  ;;  %1142 = vmatprep.subr.bf16.mxu0 %v1318_v8  ;;  %v1334_v24 = vld [vmem:[%s1733_s1 + $0x70] sm:$0xff]   ;;  %v1338_v28 = vld [vmem:[%s1733_s1 + $0x78] sm:$0xff]   ;;  %v1347_v35 = vld [vmem:[%s1734_s0 + $0xc] ss:$20 sps:$4 sm:$0xff]  }
   0xa   :  { %1206 = vmatprep.subr.bf16.mxu1 %v1319_v9  ;;  %v1335_v25 = vld [vmem:[%s1733_s1 + $0xf0] sm:$0xff]   ;;  %v1339_v29 = vld [vmem:[%s1733_s1 + $0xf8] sm:$0xff]   ;;  %v1348_v36 = vld [vmem:[%s1733_s1 + $0x100] sm:$0xff]   ;;  %712 = vmatprep.mubr.bf16.mxu1 %v1347_v35 }
   0xb   :  { %v1336_v26 = vld [vmem:[%s1733_s1 + $0x30] sm:$0xff]   ;;  %v1340_v30 = vld [vmem:[%s1733_s1 + $0x38] sm:$0xff]   ;;  %v1349_v37 = vld [vmem:[%s1734_s0 + $0x2c] ss:$20 sps:$4 sm:$0xff]  }
   0xc   :  { %1143 = vmatpush3.bf16.msra.mxu0 %v1320_v10  ;;  %v1337_v27 = vld [vmem:[%s1733_s1 + $0xb0] sm:$0xff]   ;;  %v1341_v31 = vld [vmem:[%s1733_s1 + $0xb8] sm:$0xff]   ;;  %v1361_v42 = vld [vmem:[%s1733_s1 + $0x108] sm:$0xff]  }
   0xd   :  { %1207 = vmatpush3.bf16.msra.mxu1 %v1321_v11  ;;  %1144 = vmatprep.subr.bf16.mxu0 %v1322_v12  ;;  %v1342_v32 = vld [vmem:[%s1734_s0] ss:$20 sps:$4 sm:$0xff]   ;;  %v1344_v33 = vld [vmem:[%s1734_s0 + $0x4] ss:$20 sps:$4 sm:$0xff]   ;;  %v1345_v34 = vld [vmem:[%s1734_s0 + $0x8] ss:$20 sps:$4 sm:$0xff]  }
   0xe   :  { %1208 = vmatprep.subr.bf16.mxu1 %v1323_v13  ;;  %615 = vmatprep.mubr.bf16.mxu0 %v1344_v33  ;;  %v1351_v38 = vld [vmem:[%s1734_s0 + $0x34] ss:$20 sps:$4 sm:$0xff]   ;;  %v1354_v40 = vld [vmem:[%s1734_s0 + $0x30] ss:$20 sps:$4 sm:$0xff]   ;;  %v1360_v45 = vld [vmem:[%s1734_s0 + $0x58] ss:$20 sps:$4 sm:$0xff]  }
   0xf   :  { %v1353_v39 = vld [vmem:[%s1734_s0 + $0x28] ss:$20 sps:$4 sm:$0xff]   ;;  %v1359_v44 = vld [vmem:[%s1734_s0 + $0x50] ss:$20 sps:$4 sm:$0xff]   ;;  %v1366_v50 = vld [vmem:[%s1734_s0 + $0x78] ss:$20 sps:$4 sm:$0xff]  }
  0x10   :  { %1145 = vmatpush3.bf16.msra.mxu0 %v1324_v14  ;;  %v1355_v41 = vld [vmem:[%s1734_s0 + $0x54] ss:$20 sps:$4 sm:$0xff]   ;;  %v1357_v43 = vld [vmem:[%s1734_s0 + $0x5c] ss:$20 sps:$4 sm:$0xff]   ;;  %v1364_v48 = vld [vmem:[%s1734_s0 + $0x84] ss:$20 sps:$4 sm:$0xff]  }
  0x11   :  { %1209 = vmatpush3.bf16.msra.mxu1 %v1325_v15  ;;  %1146 = vmatprep.subr.bf16.mxu0 %v1326_v16  ;;  %v1374_v46 = vld [vmem:[%s1733_s1 + $0x110] sm:$0xff]   ;;  %v1387_v49 = vld [vmem:[%s1733_s1 + $0x118] sm:$0xff]   ;;  %v1370_v53 = vld [vmem:[%s1734_s0 + $0xac] ss:$20 sps:$4 sm:$0xff]  }
  0x12   :  { %1210 = vmatprep.subr.bf16.mxu1 %v1327_v17  ;;  %v1362_v47 = vld [vmem:[%s1734_s0 + $0x7c] ss:$20 sps:$4 sm:$0xff]   ;;  %v1367_v51 = vld [vmem:[%s1734_s0 + $0x80] ss:$20 sps:$4 sm:$0xff]   ;;  %v1368_v52 = vld [vmem:[%s1734_s0 + $0xa4] ss:$20 sps:$4 sm:$0xff]  }
  0x13   :  { %v1372_v54 = vld [vmem:[%s1734_s0 + $0xa0] ss:$20 sps:$4 sm:$0xff]   ;;  %v1373_v55 = vld [vmem:[%s1734_s0 + $0xa8] ss:$20 sps:$4 sm:$0xff]   ;;  %v1380_v59 = vld [vmem:[%s1734_s0 + $0xd0] ss:$20 sps:$4 sm:$0xff]  }
  0x14   :  { %1147 = vmatpush3.bf16.msra.mxu0 %v1328_v18  ;;  %v1375_v56 = vld [vmem:[%s1734_s0 + $0xcc] ss:$20 sps:$4 sm:$0xff]   ;;  %v1377_v57 = vld [vmem:[%s1734_s0 + $0xd4] ss:$20 sps:$4 sm:$0xff]   ;;  %v1383_v61 = vld [vmem:[%s1734_s0 + $0xfc] ss:$20 sps:$4 sm:$0xff]  }
  0x15   :  { %1211 = vmatpush3.bf16.msra.mxu1 %v1329_v19  ;;  %1148 = vmatprep.subr.bf16.mxu0 %v1330_v20  ;;  %v1379_v58 = vld [vmem:[%s1734_s0 + $0xc8] ss:$20 sps:$4 sm:$0xff]   ;;  %v1385_v62 = vld [vmem:[%s1734_s0 + $0xf0] ss:$20 sps:$4 sm:$0xff]   ;;  %v1386_v63 = vld [vmem:[%s1734_s0 + $0xf8] ss:$20 sps:$4 sm:$0xff]  }
  0x16   :  { %1212 = vmatprep.subr.bf16.mxu1 %v1331_v21  ;;  %v1381_v60 = vld [vmem:[%s1734_s0 + $0xf4] ss:$20 sps:$4 sm:$0xff]   ;;  %v1388_v0 = vld [vmem:[%s1734_s0 + $0x11c] ss:$20 sps:$4 sm:$0xff]   ;;  %v1390_v1 = vld [vmem:[%s1734_s0 + $0x124] ss:$20 sps:$4 sm:$0xff]  }
  0x17   :  { %v1392_v2 = vld [vmem:[%s1734_s0 + $0x118] ss:$20 sps:$4 sm:$0xff]   ;;  %v1393_v3 = vld [vmem:[%s1734_s0 + $0x120] ss:$20 sps:$4 sm:$0xff]   ;;  %v1394_v4 = vld [vmem:[%s1734_s0 + $0x10] ss:$20 sps:$4 sm:$0xff]  }
  0x18   :  { %1149 = vmatpush3.bf16.msra.mxu0 %v1332_v22  ;;  %v1395_v5 = vld [vmem:[%s1734_s0 + $0xb0] ss:$20 sps:$4 sm:$0xff]   ;;  %v1396_v6 = vld [vmem:[%s1734_s0 + $0x38] ss:$20 sps:$4 sm:$0xff]   ;;  %v1398_v8 = vld [vmem:[%s1734_s0 + $0x60] ss:$20 sps:$4 sm:$0xff]  }
  0x19   :  { %1213 = vmatpush3.bf16.msra.mxu1 %v1333_v23  ;;  %1150 = vmatprep.subr.bf16.mxu0 %v1334_v24  ;;  %v1397_v7 = vld [vmem:[%s1734_s0 + $0xd8] ss:$20 sps:$4 sm:$0xff]   ;;  %v1399_v9 = vld [vmem:[%s1734_s0 + $0x100] ss:$20 sps:$4 sm:$0xff]   ;;  %v1400_v10 = vld [vmem:[%s1734_s0 + $0x88] ss:$20 sps:$4 sm:$0xff]  }
  0x1a   :  { %1214 = vmatprep.subr.bf16.mxu1 %v1335_v25  ;;  %v1401_v11 = vld [vmem:[%s1734_s0 + $0x128] ss:$20 sps:$4 sm:$0xff]   ;;  %v1661_v14 = vld [vmem:[%s1735_s2] ss:$0 sm:$0xff] }
  0x1c   :  { %1151 = vmatpush3.bf16.msra.mxu0 %v1336_v26 }
  0x1d   :  { %1215 = vmatpush3.bf16.msra.mxu1 %v1337_v27  ;;  %1152 = vmatprep.subr.bf16.mxu0 %v1338_v28 }
  0x1e   :  { %1216 = vmatprep.subr.bf16.mxu1 %v1339_v29 }
  0x20   :  { %1153 = vmatpush3.bf16.msra.mxu0 %v1340_v30 }
  0x21   :  { %1217 = vmatpush3.bf16.msra.mxu1 %v1341_v31  ;;  %1278 = vmatprep.subr.bf16.mxu0 %v1348_v36 }
  0x22   :  { %1302 = vmatprep.subr.bf16.mxu1 %v1348_v36 }
  0x23   :  { %616 = vmatmul.mubr.bf16.vlgmr.msra.gmra.mrb[0].mxu0 %v1342_v32 }
  0x24   :  { %713 = vmatmul.mubr.bf16.vlgmr.msra.gmra.mrb[0].mxu1 %v1345_v34  ;;  %1279 = vmatpush3.bf16.msra.mxu0 %v1348_v36 }
  0x25   :  { %1306 = vmatpush3.bf16.msra.mxu1 %v1348_v36  ;;  %623 = vmatprep.mubr.bf16.mxu0 %v1349_v37 }
  0x26   :  { %720 = vmatprep.mubr.bf16.mxu1 %v1351_v38  ;;  %1280 = vmatprep.subr.bf16.mxu0 %v1361_v42 }
  0x27   :  { %1303 = vmatprep.subr.bf16.mxu1 %v1361_v42 }
  0x28   :  { %1281 = vmatpush3.bf16.msra.mxu0 %v1361_v42 }
  0x29   :  { %1307 = vmatpush3.bf16.msra.mxu1 %v1361_v42  ;;  %1282 = vmatprep.subr.bf16.mxu0 %v1374_v46 }
  0x2a   :  { %1304 = vmatprep.subr.bf16.mxu1 %v1374_v46 }
  0x2b   :  { %624 = vmatmul.mubr.bf16.gmra.mrb[4].mxu0 %v1353_v39 }
  0x2c   :  { %721 = vmatmul.mubr.bf16.gmra.mrb[4].mxu1 %v1354_v40  ;;  %631 = vmatprep.mubr.bf16.mxu0 %v1355_v41 }
  0x2d   :  { %728 = vmatprep.mubr.bf16.mxu1 %v1357_v43  ;;  %1283 = vmatpush3.bf16.msra.mxu0 %v1374_v46 }
  0x2e   :  { %1308 = vmatpush3.bf16.msra.mxu1 %v1374_v46  ;;  %1284 = vmatprep.subr.bf16.mxu0 %v1387_v49 }
  0x2f   :  { %1305 = vmatprep.subr.bf16.mxu1 %v1387_v49 }
  0x31   :  { %1285 = vmatpush3.bf16.msra.mxu0 %v1387_v49 }
  0x32   :  { %1309 = vmatpush3.bf16.msra.mxu1 %v1387_v49 }
  0x33   :  { %632 = vmatmul.mubr.bf16.gmra.mrb[8].mxu0 %v1359_v44 }
  0x34   :  { %729 = vmatmul.mubr.bf16.gmra.mrb[8].mxu1 %v1360_v45  ;;  %639 = vmatprep.mubr.bf16.mxu0 %v1362_v47 }
  0x35   :  { %736 = vmatprep.mubr.bf16.mxu1 %v1364_v48 }
  0x3b   :  { %640 = vmatmul.mubr.bf16.gmra.mrb[12].mxu0 %v1366_v50 }
  0x3c   :  { %737 = vmatmul.mubr.bf16.gmra.mrb[12].mxu1 %v1367_v51  ;;  %647 = vmatprep.mubr.bf16.mxu0 %v1368_v52 }
  0x3d   :  { %744 = vmatprep.mubr.bf16.mxu1 %v1370_v53 }
  0x43   :  { %648 = vmatmul.mubr.bf16.gmra.mrb[16].mxu0 %v1372_v54 }
  0x44   :  { %745 = vmatmul.mubr.bf16.gmra.mrb[16].mxu1 %v1373_v55  ;;  %655 = vmatprep.mubr.bf16.mxu0 %v1375_v56 }
  0x45   :  { %752 = vmatprep.mubr.bf16.mxu1 %v1377_v57 }
  0x4b   :  { %656 = vmatmul.mubr.bf16.gmra.mrb[20].mxu0 %v1379_v58 }
  0x4c   :  { %753 = vmatmul.mubr.bf16.gmra.mrb[20].mxu1 %v1380_v59  ;;  %663 = vmatprep.mubr.bf16.mxu0 %v1381_v60 }
  0x4d   :  { %760 = vmatprep.mubr.bf16.mxu1 %v1383_v61 }
  0x53   :  { %664 = vmatmul.mubr.bf16.gmra.mrb[24].mxu0 %v1385_v62 }
  0x54   :  { %761 = vmatmul.mubr.bf16.gmra.mrb[24].mxu1 %v1386_v63  ;;  %671 = vmatprep.mubr.bf16.mxu0 %v1388_v0 }
  0x55   :  { %768 = vmatprep.mubr.bf16.mxu1 %v1390_v1 }
  0x5b   :  { %672 = vmatmul.mubr.bf16.gmra.mrb[28].mxu0 %v1392_v2 }
  0x5c   :  { %769 = vmatmul.mubr.bf16.gmra.mrb[28].mxu1 %v1393_v3  ;;  %1286 = vmatprep.mubr.msk.bf16.mxu0 %vm558_vm0, %v1394_v4 }
  0x5d   :  { %1294 = vmatprep.mubr.msk.bf16.mxu1 %vm558_vm0, %v1395_v5 }
  0x63   :  { %1287 = vmatmul.mubr.msk.bf16.vlgmr.msra.gmra.mrb[32].mxu0 %vm558_vm0, %v1396_v6 }
  0x64   :  { %1295 = vmatmul.mubr.msk.bf16.vlgmr.msra.gmra.mrb[32].mxu1 %vm558_vm0, %v1397_v7  ;;  %1290 = vmatprep.mubr.msk.bf16.mxu0 %vm558_vm0, %v1398_v8 }
  0x65   :  { %1298 = vmatprep.mubr.msk.bf16.mxu1 %vm558_vm0, %v1399_v9 }
  0x6b   :  { %1291 = vmatmul.mubr.msk.bf16.gmra.mrb[36].mxu0 %vm558_vm0, %v1400_v10 }
  0x6c   :  { %1299 = vmatmul.mubr.msk.bf16.gmra.mrb[36].mxu1 %vm558_vm0, %v1401_v11 }
  0xf6   :  { %v1154_v12 = vpop.f32.mrb[0].mxu0 }
  0xf7   :  { %v1218_v13 = vpop.f32.mrb[0].mxu1  ;;  %v1155_v15 = vpop.f32.mrb[1].mxu0 }
  0xf8   :  { %v1156_v16 = vadd.f32 %v1155_v15, %v1154_v12  ;;  %v1219_v17 = vpop.f32.mrb[1].mxu1  ;;  %v1157_v18 = vpop.f32.mrb[2].mxu0 }
  0xf9   :  { %v1220_v19 = vadd.f32 %v1219_v17, %v1218_v13  ;;  %v1221_v20 = vpop.f32.mrb[2].mxu1  ;;  %v1158_v21 = vpop.f32.mrb[3].mxu0 }
  0xfa   :  { %v618_v22 = vadd.f32 %v1156_v16, %v1661_v14  ;;  %v1159_v23 = vadd.f32 %v1158_v21, %v1157_v18  ;;  %v1222_v24 = vpop.f32.mrb[3].mxu1 }
  0xfb   :  { %v1223_v25 = vadd.f32 %v1222_v24, %v1221_v20 }
  0xfc   :  { %v621_v26 = vadd.f32 %v1159_v23, %v1661_v14  ;;  %v1665_v27 = vadd.f32 %v1220_v19, %v618_v22 }
  0xfe   :  { %v1160_v28 = vpop.f32.mrb[4].mxu0  ;;  %v1667_v29 = vadd.f32 %v1223_v25, %v621_v26 }
  0xff   :  { %v1224_v30 = vpop.f32.mrb[4].mxu1  ;;  %v1161_v31 = vpop.f32.mrb[5].mxu0 }
 0x100   :  { %v1162_v32 = vadd.f32 %v1161_v31, %v1160_v28  ;;  %v1225_v33 = vpop.f32.mrb[5].mxu1  ;;  %v1163_v34 = vpop.f32.mrb[6].mxu0 }
 0x101   :  { %v1226_v35 = vadd.f32 %v1225_v33, %v1224_v30  ;;  %v1227_v36 = vpop.f32.mrb[6].mxu1  ;;  %v1164_v37 = vpop.f32.mrb[7].mxu0 }
 0x102   :  { %v626_v38 = vadd.f32 %v1162_v32, %v1661_v14  ;;  %v1165_v39 = vadd.f32 %v1164_v37, %v1163_v34  ;;  %v1228_v40 = vpop.f32.mrb[7].mxu1 }
 0x103   :  { %v1229_v41 = vadd.f32 %v1228_v40, %v1227_v36 }
 0x104   :  { %v629_v42 = vadd.f32 %v1165_v39, %v1661_v14  ;;  %v1671_v43 = vadd.f32 %v1226_v35, %v626_v38 }
 0x106   :  { %v1166_v44 = vpop.f32.mrb[8].mxu0  ;;  %v1673_v45 = vadd.f32 %v1229_v41, %v629_v42 }
 0x107   :  { %v1230_v46 = vpop.f32.mrb[8].mxu1  ;;  %v1167_v47 = vpop.f32.mrb[9].mxu0 }
 0x108   :  { %v1168_v48 = vadd.f32 %v1167_v47, %v1166_v44  ;;  %v1231_v49 = vpop.f32.mrb[9].mxu1  ;;  %v1169_v50 = vpop.f32.mrb[10].mxu0 }
 0x109   :  { %v1232_v51 = vadd.f32 %v1231_v49, %v1230_v46  ;;  %v1233_v52 = vpop.f32.mrb[10].mxu1  ;;  %v1170_v53 = vpop.f32.mrb[11].mxu0 }
 0x10a   :  { %v634_v54 = vadd.f32 %v1168_v48, %v1661_v14  ;;  %v1171_v55 = vadd.f32 %v1170_v53, %v1169_v50  ;;  %v1234_v56 = vpop.f32.mrb[11].mxu1 }
 0x10b   :  { %v1235_v57 = vadd.f32 %v1234_v56, %v1233_v52 }
 0x10c   :  { %v637_v58 = vadd.f32 %v1171_v55, %v1661_v14  ;;  %v1677_v59 = vadd.f32 %v1232_v51, %v634_v54 }
 0x10e   :  { %v1172_v60 = vpop.f32.mrb[12].mxu0  ;;  %v1679_v61 = vadd.f32 %v1235_v57, %v637_v58 }
 0x10f   :  { %v1236_v62 = vpop.f32.mrb[12].mxu1  ;;  %v1173_v63 = vpop.f32.mrb[13].mxu0 }
 0x110   :  { %v1174_v0 = vadd.f32 %v1173_v63, %v1172_v60  ;;  %v1237_v1 = vpop.f32.mrb[13].mxu1  ;;  %v1175_v2 = vpop.f32.mrb[14].mxu0 }
 0x111   :  { %v1238_v3 = vadd.f32 %v1237_v1, %v1236_v62  ;;  %v1239_v4 = vpop.f32.mrb[14].mxu1  ;;  %v1176_v5 = vpop.f32.mrb[15].mxu0 }
 0x112   :  { %v642_v6 = vadd.f32 %v1174_v0, %v1661_v14  ;;  %v1177_v7 = vadd.f32 %v1176_v5, %v1175_v2  ;;  %v1240_v8 = vpop.f32.mrb[15].mxu1 }
 0x113   :  { %v1241_v9 = vadd.f32 %v1240_v8, %v1239_v4 }
 0x114   :  { %v645_v10 = vadd.f32 %v1177_v7, %v1661_v14  ;;  %v1683_v11 = vadd.f32 %v1238_v3, %v642_v6 }
 0x116   :  { %v1178_v12 = vpop.f32.mrb[16].mxu0  ;;  %v1685_v13 = vadd.f32 %v1241_v9, %v645_v10 }
 0x117   :  { %v1242_v15 = vpop.f32.mrb[16].mxu1  ;;  %v1179_v16 = vpop.f32.mrb[17].mxu0 }
 0x118   :  { %v1180_v17 = vadd.f32 %v1179_v16, %v1178_v12  ;;  %v1243_v18 = vpop.f32.mrb[17].mxu1  ;;  %v1181_v19 = vpop.f32.mrb[18].mxu0 }
 0x119   :  { %v1244_v20 = vadd.f32 %v1243_v18, %v1242_v15  ;;  %v1245_v21 = vpop.f32.mrb[18].mxu1  ;;  %v1182_v22 = vpop.f32.mrb[19].mxu0 }
 0x11a   :  { %v650_v23 = vadd.f32 %v1180_v17, %v1661_v14  ;;  %v1183_v24 = vadd.f32 %v1182_v22, %v1181_v19  ;;  %v1246_v25 = vpop.f32.mrb[19].mxu1 }
 0x11b   :  { %v1247_v26 = vadd.f32 %v1246_v25, %v1245_v21 }
 0x11c   :  { %v653_v28 = vadd.f32 %v1183_v24, %v1661_v14  ;;  %v747_v30 = vadd.f32 %v1244_v20, %v650_v23 }
 0x11e   :  { %v1184_v31 = vpop.f32.mrb[20].mxu0  ;;  %v1689_v32 = vadd.f32 %v1247_v26, %v653_v28 }
 0x11f   :  { %v1248_v33 = vpop.f32.mrb[20].mxu1  ;;  %v1185_v34 = vpop.f32.mrb[21].mxu0 }
 0x120   :  { %v1186_v35 = vadd.f32 %v1185_v34, %v1184_v31  ;;  %v1249_v36 = vpop.f32.mrb[21].mxu1  ;;  %v1187_v37 = vpop.f32.mrb[22].mxu0 }
 0x121   :  { %v1250_v38 = vadd.f32 %v1249_v36, %v1248_v33  ;;  %v1251_v39 = vpop.f32.mrb[22].mxu1  ;;  %v1188_v40 = vpop.f32.mrb[23].mxu0 }
 0x122   :  { %v658_v41 = vadd.f32 %v1186_v35, %v1661_v14  ;;  %v1189_v42 = vadd.f32 %v1188_v40, %v1187_v37  ;;  %v1252_v44 = vpop.f32.mrb[23].mxu1 }
 0x123   :  { %v1253_v46 = vadd.f32 %v1252_v44, %v1251_v39 }
 0x124   :  { %v661_v47 = vadd.f32 %v1189_v42, %v1661_v14  ;;  %v755_v48 = vadd.f32 %v1250_v38, %v658_v41 }
 0x126   :  { %v1190_v49 = vpop.f32.mrb[24].mxu0  ;;  %v758_v50 = vadd.f32 %v1253_v46, %v661_v47 }
 0x127   :  { %v1254_v51 = vpop.f32.mrb[24].mxu1  ;;  %v1191_v52 = vpop.f32.mrb[25].mxu0 }
 0x128   :  { %v1192_v53 = vadd.f32 %v1191_v52, %v1190_v49  ;;  %v1255_v54 = vpop.f32.mrb[25].mxu1  ;;  %v1193_v55 = vpop.f32.mrb[26].mxu0 }
 0x129   :  { %v1256_v56 = vadd.f32 %v1255_v54, %v1254_v51  ;;  %v1257_v57 = vpop.f32.mrb[26].mxu1  ;;  %v1194_v58 = vpop.f32.mrb[27].mxu0 }
 0x12a   :  { %v666_v60 = vadd.f32 %v1192_v53, %v1661_v14  ;;  %v1195_v62 = vadd.f32 %v1194_v58, %v1193_v55  ;;  %v1258_v63 = vpop.f32.mrb[27].mxu1 }
 0x12b   :  { %v1259_v0 = vadd.f32 %v1258_v63, %v1257_v57 }
 0x12c   :  { %v669_v1 = vadd.f32 %v1195_v62, %v1661_v14  ;;  %v763_v2 = vadd.f32 %v1256_v56, %v666_v60 }
 0x12e   :  { %v1196_v3 = vpop.f32.mrb[28].mxu0  ;;  %v1695_v4 = vadd.f32 %v1259_v0, %v669_v1 }
 0x12f   :  { %v1260_v5 = vpop.f32.mrb[28].mxu1  ;;  %v1197_v6 = vpop.f32.mrb[29].mxu0 }
 0x130   :  { %v1198_v7 = vadd.f32 %v1197_v6, %v1196_v3  ;;  %v1261_v8 = vpop.f32.mrb[29].mxu1  ;;  %v1199_v9 = vpop.f32.mrb[30].mxu0 }
 0x131   :  { %v1262_v10 = vadd.f32 %v1261_v8, %v1260_v5  ;;  %v1263_v12 = vpop.f32.mrb[30].mxu1  ;;  %v1200_v15 = vpop.f32.mrb[31].mxu0 }
 0x132   :  { %v674_v16 = vadd.f32 %v1198_v7, %v1661_v14  ;;  %v1201_v17 = vadd.f32 %v1200_v15, %v1199_v9  ;;  %v1264_v18 = vpop.f32.mrb[31].mxu1 }
 0x133   :  { %v1265_v19 = vadd.f32 %v1264_v18, %v1263_v12 }
 0x134   :  { %v677_v20 = vadd.f32 %v1201_v17, %v1661_v14  ;;  %v771_v21 = vadd.f32 %v1262_v10, %v674_v16 }
 0x136   :  { %v1288_v22 = vpop.f32.mrb[32].mxu0  ;;  %v774_v23 = vadd.f32 %v1265_v19, %v677_v20 }
 0x137   :  { %v820_v24 = vadd.f32 %v1288_v22, %v1671_v43  ;;  %v1296_v25 = vpop.f32.mrb[32].mxu1  ;;  %v811_v26 = vpop.f32.mrb[33].mxu0 }
 0x138   :  { %v852_v28 = vadd.f32 %v1296_v25, %v755_v48  ;;  %v812_v31 = vadd.f32 %v811_v26, %v1665_v27  ;;  %v843_v33 = vpop.f32.mrb[33].mxu1  ;;  %v1289_v34 = vpop.f32.mrb[34].mxu0 }
 0x139   :  { %v844_v35 = vadd.f32 %v843_v33, %v747_v30  ;;  %v823_v36 = vadd.f32 %v1289_v34, %v1673_v45  ;;  %v1297_v37 = vpop.f32.mrb[34].mxu1  ;;  %v814_v38 = vpop.f32.mrb[35].mxu0  ;;  %v876_v41 = vmax.f32 %v820_v24, 0.0 }
 0x13a   :  { %v855_v39 = vadd.f32 %v1297_v37, %v758_v50  ;;  %v815_v14 = vadd.f32 %v814_v38, %v1667_v29  ;;  %v846_v40 = vpop.f32.mrb[35].mxu1  ;;  %v884_v44 = vmax.f32 %v852_v28, 0.0  ;;  %v874_v46 = vmax.f32 %v812_v31, 0.0 }
 0x13b   :  { %v877_v42 = vmax.f32 %v823_v36, 0.0  ;;  %v847_v43 = vadd.f32 %v846_v40, %v1689_v32  ;;  %v882_v27 = vmax.f32 %v844_v35, 0.0 }
 0x13c   :  { %v885_v47 = vmax.f32 %v855_v39, 0.0  ;;  %v875_v48 = vmax.f32 %v815_v14, 0.0 }
 0x13d   :  { %v1099_v49 = vpack.c.bf16 %v877_v42, %v876_v41  ;;  %v883_v51 = vmax.f32 %v847_v43, 0.0 }
 0x13e   :  { %v1119_v30 = vpack.c.bf16 %v885_v47, %v884_v44  ;;  %v1094_v52 = vpack.c.bf16 %v875_v48, %v874_v46  ;;  %v1292_v45 = vpop.f32.mrb[36].mxu0 }
 0x13f   :  { %1131 = vst [vmem:[%s1736_s3 + $0x8] sm:$0xff] %v1099_v49   ;;  %v1114_v29 = vpack.c.bf16 %v883_v51, %v882_v27  ;;  %v836_v50 = vadd.f32 %v1292_v45, %v1683_v11  ;;  %v1300_v53 = vpop.f32.mrb[36].mxu1  ;;  %v827_v54 = vpop.f32.mrb[37].mxu0 }
 0x140   :  { %1135 = vst [vmem:[%s1736_s3 + $0x28] sm:$0xff] %v1119_v30   ;;  %1095 = vst [vmem:[%s1736_s3] sm:$0xff] %v1094_v52   ;;  %v868_v32 = vadd.f32 %v1300_v53, %v771_v21  ;;  %v828_v55 = vadd.f32 %v827_v54, %v1677_v59  ;;  %v859_v56 = vpop.f32.mrb[37].mxu1  ;;  %v1293_v57 = vpop.f32.mrb[38].mxu0 }
 0x141   :  { %1134 = vst [vmem:[%s1736_s3 + $0x20] sm:$0xff] %v1114_v29   ;;  %v860_v11 = vadd.f32 %v859_v56, %v763_v2  ;;  %v839_v58 = vadd.f32 %v1293_v57, %v1685_v13  ;;  %v1301_v60 = vpop.f32.mrb[38].mxu1  ;;  %v830_v62 = vpop.f32.mrb[39].mxu0  ;;  %v880_v3 = vmax.f32 %v836_v50, 0.0 }
 0x142   :  { %v871_v63 = vadd.f32 %v1301_v60, %v774_v23  ;;  %v831_v0 = vadd.f32 %v830_v62, %v1679_v61  ;;  %v862_v1 = vpop.f32.mrb[39].mxu1  ;;  %v888_v59 = vmax.f32 %v868_v32, 0.0  ;;  %v878_v7 = vmax.f32 %v828_v55, 0.0 }
 0x143   :  { %v881_v5 = vmax.f32 %v839_v58, 0.0  ;;  %v863_v6 = vadd.f32 %v862_v1, %v1695_v4  ;;  %v886_v10 = vmax.f32 %v860_v11, 0.0 }
 0x144   :  { %v889_v8 = vmax.f32 %v871_v63, 0.0  ;;  %v879_v9 = vmax.f32 %v831_v0, 0.0 }
 0x145   :  { %v1109_v12 = vpack.c.bf16 %v881_v5, %v880_v3  ;;  %v887_v15 = vmax.f32 %v863_v6, 0.0 }
 0x146   :  { %v1129_v2 = vpack.c.bf16 %v889_v8, %v888_v59  ;;  %v1104_v16 = vpack.c.bf16 %v879_v9, %v878_v7 }
 0x147   :  { %1133 = vst [vmem:[%s1736_s3 + $0x18] sm:$0xff] %v1109_v12   ;;  %v1124_v13 = vpack.c.bf16 %v887_v15, %v886_v10 }
 0x148   :  { %1137 = vst [vmem:[%s1736_s3 + $0x38] sm:$0xff] %v1129_v2   ;;  %1132 = vst [vmem:[%s1736_s3 + $0x10] sm:$0xff] %v1104_v16  }
 0x149   :  { %1136 = vst [vmem:[%s1736_s3 + $0x30] sm:$0xff] %v1124_v13  }

// kernel: neuron_counter_forward.24
= control target key start
LH: loop header
LB: loop body
LE: loop exit
PB: predicated region body
PF: predicated region fallthrough
CT: control target
= control target key end

     0   :  { %vm521_vm0 = vcmask 523264   ;;  %s1248_s1 = inlined_call_operand.vmem [shape: bf16[576,256], index: 1, kind: input, shape index: {}]   ;;  %s1249_s0 = inlined_call_operand.vmem [shape: bf16[32,576], index: 0, kind: input, shape index: {}]   ;;  %s1250_s2 = inlined_call_operand.vmem [shape: f32[1,256], index: 2, kind: input, shape index: {}]   ;;  %s1251_s3 = inlined_call_operand.vmem [shape: bf16[32,256], index: 3, kind: output, shape index: {}]  }
   0x1   :  { %v844_v0 = vld [vmem:[%s1248_s1 + $0x4] ss:$8 sps:$4 sm:$0xff]   ;;  %v848_v2 = vld [vmem:[%s1248_s1] ss:$8 sps:$4 sm:$0xff]   ;;  %v850_v4 = vld [vmem:[%s1248_s1 + $0x14] ss:$8 sps:$4 sm:$0xff]  }
   0x2   :  { %v846_v1 = vld [vmem:[%s1248_s1 + $0x104] ss:$8 sps:$4 sm:$0xff]   ;;  %528 = vmatprep.subr.bf16.mxu1 %v844_v0  ;;  %v849_v3 = vld [vmem:[%s1248_s1 + $0x100] ss:$8 sps:$4 sm:$0xff]   ;;  %v852_v5 = vld [vmem:[%s1248_s1 + $0x114] ss:$8 sps:$4 sm:$0xff]  }
   0x3   :  { %581 = vmatprep.subr.bf16.mxu0 %v846_v1  ;;  %529 = vmatpush1.bf16.msra.mxu1 %v848_v2  ;;  %v854_v6 = vld [vmem:[%s1248_s1 + $0x10] ss:$8 sps:$4 sm:$0xff]   ;;  %v856_v8 = vld [vmem:[%s1248_s1 + $0x24] ss:$8 sps:$4 sm:$0xff]   ;;  %v860_v10 = vld [vmem:[%s1248_s1 + $0x20] ss:$8 sps:$4 sm:$0xff]  }
   0x4   :  { %582 = vmatpush1.bf16.msra.mxu0 %v849_v3  ;;  %530 = vmatprep.subr.bf16.mxu1 %v850_v4  ;;  %v855_v7 = vld [vmem:[%s1248_s1 + $0x110] ss:$8 sps:$4 sm:$0xff]   ;;  %v858_v9 = vld [vmem:[%s1248_s1 + $0x124] ss:$8 sps:$4 sm:$0xff]   ;;  %v861_v11 = vld [vmem:[%s1248_s1 + $0x120] ss:$8 sps:$4 sm:$0xff]  }
   0x5   :  { %583 = vmatprep.subr.bf16.mxu0 %v852_v5  ;;  %v862_v12 = vld [vmem:[%s1248_s1 + $0x34] ss:$8 sps:$4 sm:$0xff]   ;;  %v866_v14 = vld [vmem:[%s1248_s1 + $0x30] ss:$8 sps:$4 sm:$0xff]   ;;  %v868_v16 = vld [vmem:[%s1248_s1 + $0x44] ss:$8 sps:$4 sm:$0xff]  }
   0x6   :  { %v864_v13 = vld [vmem:[%s1248_s1 + $0x134] ss:$8 sps:$4 sm:$0xff]   ;;  %v867_v15 = vld [vmem:[%s1248_s1 + $0x130] ss:$8 sps:$4 sm:$0xff]   ;;  %v870_v17 = vld [vmem:[%s1248_s1 + $0x144] ss:$8 sps:$4 sm:$0xff]  }
   0x7   :  { %531 = vmatpush1.bf16.msra.mxu1 %v854_v6  ;;  %v872_v18 = vld [vmem:[%s1248_s1 + $0x40] ss:$8 sps:$4 sm:$0xff]   ;;  %v874_v20 = vld [vmem:[%s1248_s1 + $0x54] ss:$8 sps:$4 sm:$0xff]   ;;  %v878_v22 = vld [vmem:[%s1248_s1 + $0x50] ss:$8 sps:$4 sm:$0xff]  }
   0x8   :  { %584 = vmatpush1.bf16.msra.mxu0 %v855_v7  ;;  %532 = vmatprep.subr.bf16.mxu1 %v856_v8  ;;  %v873_v19 = vld [vmem:[%s1248_s1 + $0x140] ss:$8 sps:$4 sm:$0xff]   ;;  %v876_v21 = vld [vmem:[%s1248_s1 + $0x154] ss:$8 sps:$4 sm:$0xff]   ;;  %v879_v23 = vld [vmem:[%s1248_s1 + $0x150] ss:$8 sps:$4 sm:$0xff]  }
   0x9   :  { %585 = vmatprep.subr.bf16.mxu0 %v858_v9  ;;  %v880_v24 = vld [vmem:[%s1248_s1 + $0x64] ss:$8 sps:$4 sm:$0xff]   ;;  %v884_v26 = vld [vmem:[%s1248_s1 + $0x60] ss:$8 sps:$4 sm:$0xff]   ;;  %v886_v28 = vld [vmem:[%s1248_s1 + $0x74] ss:$8 sps:$4 sm:$0xff]  }
   0xa   :  { %v882_v25 = vld [vmem:[%s1248_s1 + $0x164] ss:$8 sps:$4 sm:$0xff]   ;;  %v885_v27 = vld [vmem:[%s1248_s1 + $0x160] ss:$8 sps:$4 sm:$0xff]   ;;  %v888_v29 = vld [vmem:[%s1248_s1 + $0x174] ss:$8 sps:$4 sm:$0xff]  }
   0xb   :  { %533 = vmatpush1.bf16.msra.mxu1 %v860_v10  ;;  %v890_v30 = vld [vmem:[%s1248_s1 + $0x70] ss:$8 sps:$4 sm:$0xff]   ;;  %v892_v32 = vld [vmem:[%s1248_s1 + $0x84] ss:$8 sps:$4 sm:$0xff]   ;;  %v896_v34 = vld [vmem:[%s1248_s1 + $0x80] ss:$8 sps:$4 sm:$0xff]  }
   0xc   :  { %586 = vmatpush1.bf16.msra.mxu0 %v861_v11  ;;  %534 = vmatprep.subr.bf16.mxu1 %v862_v12  ;;  %v891_v31 = vld [vmem:[%s1248_s1 + $0x170] ss:$8 sps:$4 sm:$0xff]   ;;  %v894_v33 = vld [vmem:[%s1248_s1 + $0x184] ss:$8 sps:$4 sm:$0xff]   ;;  %v897_v35 = vld [vmem:[%s1248_s1 + $0x180] ss:$8 sps:$4 sm:$0xff]  }
   0xd   :  { %587 = vmatprep.subr.bf16.mxu0 %v864_v13  ;;  %v898_v36 = vld [vmem:[%s1248_s1 + $0x94] ss:$8 sps:$4 sm:$0xff]   ;;  %v902_v38 = vld [vmem:[%s1248_s1 + $0x90] ss:$8 sps:$4 sm:$0xff]   ;;  %v904_v40 = vld [vmem:[%s1248_s1 + $0xa4] ss:$8 sps:$4 sm:$0xff]  }
   0xe   :  { %v900_v37 = vld [vmem:[%s1248_s1 + $0x194] ss:$8 sps:$4 sm:$0xff]   ;;  %v903_v39 = vld [vmem:[%s1248_s1 + $0x190] ss:$8 sps:$4 sm:$0xff]   ;;  %v906_v41 = vld [vmem:[%s1248_s1 + $0x1a4] ss:$8 sps:$4 sm:$0xff]  }
   0xf   :  { %535 = vmatpush1.bf16.msra.mxu1 %v866_v14  ;;  %v908_v42 = vld [vmem:[%s1248_s1 + $0xa0] ss:$8 sps:$4 sm:$0xff]   ;;  %v910_v44 = vld [vmem:[%s1248_s1 + $0xb4] ss:$8 sps:$4 sm:$0xff]   ;;  %v914_v46 = vld [vmem:[%s1248_s1 + $0xb0] ss:$8 sps:$4 sm:$0xff]  }
  0x10   :  { %588 = vmatpush1.bf16.msra.mxu0 %v867_v15  ;;  %536 = vmatprep.subr.bf16.mxu1 %v868_v16  ;;  %v909_v43 = vld [vmem:[%s1248_s1 + $0x1a0] ss:$8 sps:$4 sm:$0xff]   ;;  %v912_v45 = vld [vmem:[%s1248_s1 + $0x1b4] ss:$8 sps:$4 sm:$0xff]   ;;  %v915_v47 = vld [vmem:[%s1248_s1 + $0x1b0] ss:$8 sps:$4 sm:$0xff]  }
  0x11   :  { %589 = vmatprep.subr.bf16.mxu0 %v870_v17  ;;  %v916_v48 = vld [vmem:[%s1248_s1 + $0xc4] ss:$8 sps:$4 sm:$0xff]   ;;  %v920_v52 = vld [vmem:[%s1248_s1 + $0xc0] ss:$8 sps:$4 sm:$0xff]   ;;  %v922_v54 = vld [vmem:[%s1248_s1 + $0xd4] ss:$8 sps:$4 sm:$0xff]  }
  0x12   :  { %v942_v49 = vld [vmem:[%s1249_s0 + $0x4] ss:$20 sps:$4 sm:$0xff]   ;;  %v945_v51 = vld [vmem:[%s1249_s0 + $0xc] ss:$20 sps:$4 sm:$0xff]   ;;  %v924_v55 = vld [vmem:[%s1248_s1 + $0x1d4] ss:$8 sps:$4 sm:$0xff]  }
  0x13   :  { %537 = vmatpush1.bf16.msra.mxu1 %v872_v18  ;;  %v918_v50 = vld [vmem:[%s1248_s1 + $0x1c4] ss:$8 sps:$4 sm:$0xff]   ;;  %560 = vmatprep.mubr.bf16.mxu1 %v942_v49  ;;  %v921_v53 = vld [vmem:[%s1248_s1 + $0x1c0] ss:$8 sps:$4 sm:$0xff]   ;;  %v926_v56 = vld [vmem:[%s1248_s1 + $0xd0] ss:$8 sps:$4 sm:$0xff]  }
  0x14   :  { %590 = vmatpush1.bf16.msra.mxu0 %v873_v19  ;;  %538 = vmatprep.subr.bf16.mxu1 %v874_v20  ;;  %v927_v57 = vld [vmem:[%s1248_s1 + $0x1d0] ss:$8 sps:$4 sm:$0xff]   ;;  %v928_v58 = vld [vmem:[%s1248_s1 + $0xe4] ss:$8 sps:$4 sm:$0xff]   ;;  %v932_v60 = vld [vmem:[%s1248_s1 + $0xe0] ss:$8 sps:$4 sm:$0xff]   ;;  %v101_v19 = vlaneseq }
  0x15   :  { %591 = vmatprep.subr.bf16.mxu0 %v876_v21  ;;  %613 = vmatprep.mubr.bf16.mxu0 %v945_v51  ;;  %v930_v59 = vld [vmem:[%s1248_s1 + $0x1e4] ss:$8 sps:$4 sm:$0xff]   ;;  %v933_v61 = vld [vmem:[%s1248_s1 + $0x1e0] ss:$8 sps:$4 sm:$0xff]   ;;  %v934_v62 = vld [vmem:[%s1248_s1 + $0xf4] ss:$8 sps:$4 sm:$0xff]  }
  0x16   :  { %v936_v63 = vld [vmem:[%s1248_s1 + $0x1f4] ss:$8 sps:$4 sm:$0xff]   ;;  %v938_v0 = vld [vmem:[%s1248_s1 + $0xf0] ss:$8 sps:$4 sm:$0xff]   ;;  %v948_v2 = vld [vmem:[%s1248_s1 + $0x204] ss:$8 sps:$4 sm:$0xff]  }
  0x17   :  { %539 = vmatpush1.bf16.msra.mxu1 %v878_v22  ;;  %v939_v1 = vld [vmem:[%s1248_s1 + $0x1f0] ss:$8 sps:$4 sm:$0xff]   ;;  %v940_v3 = vld [vmem:[%s1249_s0] ss:$20 sps:$4 sm:$0xff]   ;;  %v943_v4 = vld [vmem:[%s1249_s0 + $0x8] ss:$20 sps:$4 sm:$0xff]  }
  0x18   :  { %592 = vmatpush1.bf16.msra.mxu0 %v879_v23  ;;  %540 = vmatprep.subr.bf16.mxu1 %v880_v24  ;;  %v946_v5 = vld [vmem:[%s1248_s1 + $0x200] ss:$8 sps:$4 sm:$0xff]   ;;  %v951_v6 = vld [vmem:[%s1248_s1 + $0x214] ss:$8 sps:$4 sm:$0xff]   ;;  %v949_v9 = vld [vmem:[%s1248_s1 + $0x210] ss:$8 sps:$4 sm:$0xff]  }
  0x19   :  { %593 = vmatprep.subr.bf16.mxu0 %v882_v25  ;;  %v952_v7 = vld [vmem:[%s1249_s0 + $0x2c] ss:$20 sps:$4 sm:$0xff]   ;;  %v954_v8 = vld [vmem:[%s1249_s0 + $0x34] ss:$20 sps:$4 sm:$0xff]   ;;  %v957_v12 = vld [vmem:[%s1249_s0 + $0x30] ss:$20 sps:$4 sm:$0xff]  }
  0x1a   :  { %v960_v10 = vld [vmem:[%s1248_s1 + $0x224] ss:$8 sps:$4 sm:$0xff]   ;;  %v956_v11 = vld [vmem:[%s1249_s0 + $0x28] ss:$20 sps:$4 sm:$0xff]   ;;  %v961_v15 = vld [vmem:[%s1248_s1 + $0x230] ss:$8 sps:$4 sm:$0xff]  }
  0x1b   :  { %541 = vmatpush1.bf16.msra.mxu1 %v884_v26  ;;  %v958_v13 = vld [vmem:[%s1248_s1 + $0x220] ss:$8 sps:$4 sm:$0xff]   ;;  %v963_v14 = vld [vmem:[%s1248_s1 + $0x234] ss:$8 sps:$4 sm:$0xff]   ;;  %v966_v16 = vmov 0   ;;  %v102_v20 = vshrl.u32 %v101_v19, 7 }
  0x1c   :  { %594 = vmatpush1.bf16.msra.mxu0 %v885_v27  ;;  %542 = vmatprep.subr.bf16.mxu1 %v886_v28  ;;  %v964_v17 = vld [vmem:[%s1249_s0 + $0x10] ss:$20 sps:$4 sm:$0xff]   ;;  %v965_v18 = vld [vmem:[%s1249_s0 + $0x38] ss:$20 sps:$4 sm:$0xff]   ;;  %v99_v26 = vld [vmem:[%s1250_s2] sm:$0x3] }
  0x1d   :  { %595 = vmatprep.subr.bf16.mxu0 %v888_v29  ;;  %v103_v24 = vsub.s32 0, %v102_v20  ;;  %v107_v27 = vsub.s32 1, %v102_v20 }
  0x1f   :  { %543 = vmatpush1.bf16.msra.mxu1 %v890_v30  ;;  %v104_v28 = vrot.slane %v99_v26, %v103_v24  ;;  %v108_v29 = vrot.slane %v99_v26, %v107_v27 }
  0x20   :  { %596 = vmatpush1.bf16.msra.mxu0 %v891_v31  ;;  %544 = vmatprep.subr.bf16.mxu1 %v892_v32 }
  0x21   :  { %597 = vmatprep.subr.bf16.mxu0 %v894_v33 }
  0x23   :  { %545 = vmatpush1.bf16.msra.mxu1 %v896_v34 }
  0x24   :  { %598 = vmatpush1.bf16.msra.mxu0 %v897_v35  ;;  %546 = vmatprep.subr.bf16.mxu1 %v898_v36 }
  0x25   :  { %599 = vmatprep.subr.bf16.mxu0 %v900_v37 }
  0x27   :  { %547 = vmatpush1.bf16.msra.mxu1 %v902_v38 }
  0x28   :  { %600 = vmatpush1.bf16.msra.mxu0 %v903_v39  ;;  %548 = vmatprep.subr.bf16.mxu1 %v904_v40 }
  0x29   :  { %601 = vmatprep.subr.bf16.mxu0 %v906_v41 }
  0x2b   :  { %549 = vmatpush1.bf16.msra.mxu1 %v908_v42 }
  0x2c   :  { %602 = vmatpush1.bf16.msra.mxu0 %v909_v43  ;;  %550 = vmatprep.subr.bf16.mxu1 %v910_v44 }
  0x2d   :  { %603 = vmatprep.subr.bf16.mxu0 %v912_v45 }
  0x2f   :  { %551 = vmatpush1.bf16.msra.mxu1 %v914_v46 }
  0x30   :  { %604 = vmatpush1.bf16.msra.mxu0 %v915_v47  ;;  %552 = vmatprep.subr.bf16.mxu1 %v916_v48 }
  0x31   :  { %605 = vmatprep.subr.bf16.mxu0 %v918_v50 }
  0x33   :  { %553 = vmatpush1.bf16.msra.mxu1 %v920_v52 }
  0x34   :  { %606 = vmatpush1.bf16.msra.mxu0 %v921_v53  ;;  %554 = vmatprep.subr.bf16.mxu1 %v922_v54 }
  0x35   :  { %607 = vmatprep.subr.bf16.mxu0 %v924_v55 }
  0x37   :  { %555 = vmatpush1.bf16.msra.mxu1 %v926_v56 }
  0x38   :  { %608 = vmatpush1.bf16.msra.mxu0 %v927_v57  ;;  %556 = vmatprep.subr.bf16.mxu1 %v928_v58 }
  0x39   :  { %609 = vmatprep.subr.bf16.mxu0 %v930_v59 }
  0x3b   :  { %557 = vmatpush1.bf16.msra.mxu1 %v932_v60 }
  0x3c   :  { %610 = vmatpush1.bf16.msra.mxu0 %v933_v61  ;;  %558 = vmatprep.subr.bf16.mxu1 %v934_v62 }
  0x3d   :  { %611 = vmatprep.subr.bf16.mxu0 %v936_v63 }
  0x3f   :  { %559 = vmatpush1.bf16.msra.mxu1 %v938_v0 }
  0x40   :  { %612 = vmatpush1.bf16.msra.mxu0 %v939_v1  ;;  %811 = vmatprep.subr.bf16.mxu1 %v948_v2 }
  0x41   :  { %634 = vmatprep.subr.bf16.mxu0 %v948_v2 }
  0x42   :  { %561 = vmatmul.mubr.bf16.vlgmr.msra.gmra.mrb[0].mxu1 %v940_v3 }
  0x43   :  { %614 = vmatmul.mubr.bf16.vlgmr.msra.gmra.mrb[0].mxu0 %v943_v4  ;;  %815 = vmatpush1.bf16.msra.mxu1 %v946_v5 }
  0x44   :  { %635 = vmatpush1.bf16.msra.mxu0 %v946_v5  ;;  %812 = vmatprep.subr.bf16.mxu1 %v951_v6 }
  0x45   :  { %636 = vmatprep.subr.bf16.mxu0 %v951_v6  ;;  %570 = vmatprep.mubr.bf16.mxu1 %v952_v7 }
  0x46   :  { %623 = vmatprep.mubr.bf16.mxu0 %v954_v8 }
  0x47   :  { %816 = vmatpush1.bf16.msra.mxu1 %v949_v9 }
  0x48   :  { %637 = vmatpush1.bf16.msra.mxu0 %v949_v9  ;;  %813 = vmatprep.subr.bf16.mxu1 %v960_v10 }
  0x49   :  { %638 = vmatprep.subr.bf16.mxu0 %v960_v10 }
  0x4a   :  { %571 = vmatmul.mubr.bf16.gmra.mrb[4].mxu1 %v956_v11 }
  0x4b   :  { %624 = vmatmul.mubr.bf16.gmra.mrb[4].mxu0 %v957_v12  ;;  %817 = vmatpush1.bf16.msra.mxu1 %v958_v13 }
  0x4c   :  { %639 = vmatpush1.bf16.msra.mxu0 %v958_v13  ;;  %814 = vmatprep.subr.bf16.mxu1 %v963_v14 }
  0x4d   :  { %640 = vmatprep.subr.bf16.mxu0 %v963_v14  ;;  %666 = vmatprep.mubr.bf16.mxu0 %v966_v16 }
  0x4e   :  { %676 = vmatprep.mubr.bf16.mxu1 %v966_v16 }
  0x4f   :  { %818 = vmatpush1.bf16.msra.mxu1 %v961_v15 }
  0x50   :  { %641 = vmatpush1.bf16.msra.mxu0 %v961_v15 }
  0x52   :  { %802 = vmatmul.mubr.msk.bf16.vlgmr.msra.gmra.mrb[8].mxu1 %vm521_vm0, %v965_v18 }
  0x53   :  { %801 = vmatmul.mubr.msk.bf16.vlgmr.msra.gmra.mrb[0].mxu0 %vm521_vm0, %v964_v17 }
 0x115   :  { %v562_v21 = vpop.f32.mrb[0].mxu1 }
 0x116   :  { %v564_v22 = vpop.f32.mrb[1].mxu1  ;;  %v563_v46 = vadd.f32 %v562_v21, %v104_v28 }
 0x117   :  { %v566_v23 = vpop.f32.mrb[2].mxu1  ;;  %v565_v47 = vadd.f32 %v564_v22, %v108_v29 }
 0x118   :  { %v568_v25 = vpop.f32.mrb[3].mxu1  ;;  %v567_v50 = vadd.f32 %v566_v23, %v104_v28 }
 0x119   :  { %v569_v55 = vadd.f32 %v568_v25, %v108_v29 }
 0x11d   :  { %v572_v30 = vpop.f32.mrb[4].mxu1 }
 0x11e   :  { %v625_v31 = vpop.f32.mrb[4].mxu0  ;;  %v573_v32 = vadd.f32 %v572_v30, %v104_v28  ;;  %v574_v33 = vpop.f32.mrb[5].mxu1 }
 0x11f   :  { %v627_v34 = vpop.f32.mrb[5].mxu0  ;;  %v575_v35 = vadd.f32 %v574_v33, %v108_v29  ;;  %v576_v36 = vpop.f32.mrb[6].mxu1 }
 0x120   :  { %v629_v37 = vpop.f32.mrb[6].mxu0  ;;  %v626_v38 = vadd.f32 %v625_v31, %v573_v32  ;;  %v577_v39 = vadd.f32 %v576_v36, %v104_v28  ;;  %v578_v40 = vpop.f32.mrb[7].mxu1 }
 0x121   :  { %v631_v41 = vpop.f32.mrb[7].mxu0  ;;  %v628_v42 = vadd.f32 %v627_v34, %v575_v35  ;;  %v579_v43 = vadd.f32 %v578_v40, %v108_v29 }
 0x122   :  { %v630_v44 = vadd.f32 %v629_v37, %v577_v39 }
 0x123   :  { %v632_v45 = vadd.f32 %v631_v41, %v579_v43 }
 0x125   :  { %v678_v49 = vpop.f32.mrb[8].mxu1 }
 0x126   :  { %v668_v48 = vpop.f32.mrb[0].mxu0  ;;  %v679_v52 = vadd.f32 %v678_v49, %v626_v38  ;;  %v680_v54 = vpop.f32.mrb[9].mxu1 }
 0x127   :  { %v820_v51 = vadd.f32 %v668_v48, %v563_v46  ;;  %v670_v53 = vpop.f32.mrb[1].mxu0  ;;  %v681_v57 = vadd.f32 %v680_v54, %v628_v42  ;;  %v682_v59 = vpop.f32.mrb[10].mxu1 }
 0x128   :  { %v822_v56 = vadd.f32 %v670_v53, %v565_v47  ;;  %v672_v58 = vpop.f32.mrb[2].mxu0  ;;  %v683_v61 = vadd.f32 %v682_v59, %v630_v44  ;;  %v684_v63 = vpop.f32.mrb[11].mxu1 }
 0x129   :  { %v824_v60 = vadd.f32 %v672_v58, %v567_v50  ;;  %v674_v62 = vpop.f32.mrb[3].mxu0  ;;  %v809_v1 = vpack.c.bf16 %v681_v57, %v679_v52  ;;  %v685_v3 = vadd.f32 %v684_v63, %v632_v45 }
 0x12a   :  { %v807_v0 = vpack.c.bf16 %v822_v56, %v820_v51  ;;  %v826_v2 = vadd.f32 %v674_v62, %v569_v55 }
 0x12b   :  { %713 = vst [vmem:[%s1251_s3 + $0x10] sm:$0xff] %v809_v1  ;;  %v810_v5 = vpack.c.bf16 %v685_v3, %v683_v61 }
 0x12c   :  { %711 = vst [vmem:[%s1251_s3] sm:$0xff] %v807_v0  ;;  %v808_v4 = vpack.c.bf16 %v826_v2, %v824_v60 }
 0x12d   :  { %714 = vst [vmem:[%s1251_s3 + $0x18] sm:$0xff] %v810_v5 }
 0x12e   :  { %712 = vst [vmem:[%s1251_s3 + $0x8] sm:$0xff] %v808_v4 }

// kernel: neuron_counter_forward.26
= control target key start
LH: loop header
LB: loop body
LE: loop exit
PB: predicated region body
PF: predicated region fallthrough
CT: control target
= control target key end

     0   :  { %s1632_s1 = inlined_call_operand.vmem [shape: bf16[1152,128], index: 1, kind: input, shape index: {}]   ;;  %s1633_s0 = inlined_call_operand.vmem [shape: bf16[32,1152], index: 0, kind: input, shape index: {}]   ;;  %s1634_s2 = inlined_call_operand.vmem [shape: f32[1,128], index: 2, kind: input, shape index: {}]   ;;  %s1635_s3 = inlined_call_operand.vmem [shape: bf16[32,128], index: 3, kind: output, shape index: {}]  }
   0x1   :  { %v1235_v0 = vld [vmem:[%s1632_s1 + $0x40] sm:$0xff]   ;;  %v1239_v4 = vld [vmem:[%s1632_s1 + $0x48] sm:$0xff]   ;;  %v1243_v8 = vld [vmem:[%s1632_s1 + $0x50] sm:$0xff]  }
   0x2   :  { %v1236_v1 = vld [vmem:[%s1632_s1] sm:$0xff]   ;;  %1093 = vmatprep.subr.bf16.mxu0 %v1235_v0  ;;  %v1240_v5 = vld [vmem:[%s1632_s1 + $0x8] sm:$0xff]   ;;  %v1244_v9 = vld [vmem:[%s1632_s1 + $0x10] sm:$0xff]  }
   0x3   :  { %v1237_v2 = vld [vmem:[%s1632_s1 + $0xc0] sm:$0xff]   ;;  %1094 = vmatpush3.bf16.msra.mxu0 %v1236_v1  ;;  %v1241_v6 = vld [vmem:[%s1632_s1 + $0xc8] sm:$0xff]   ;;  %v1245_v10 = vld [vmem:[%s1632_s1 + $0xd0] sm:$0xff]  }
   0x4   :  { %v1238_v3 = vld [vmem:[%s1632_s1 + $0x80] sm:$0xff]   ;;  %1121 = vmatprep.subr.bf16.mxu1 %v1237_v2  ;;  %1095 = vmatprep.subr.bf16.mxu0 %v1239_v4  ;;  %v1242_v7 = vld [vmem:[%s1632_s1 + $0x88] sm:$0xff]   ;;  %v1246_v11 = vld [vmem:[%s1632_s1 + $0x90] sm:$0xff]  }
   0x5   :  { %1122 = vmatpush3.bf16.msra.mxu1 %v1238_v3  ;;  %v1247_v12 = vld [vmem:[%s1632_s1 + $0x58] sm:$0xff]   ;;  %v1251_v16 = vld [vmem:[%s1632_s1 + $0x60] sm:$0xff]   ;;  %v1255_v20 = vld [vmem:[%s1632_s1 + $0x68] sm:$0xff]  }
   0x6   :  { %1123 = vmatprep.subr.bf16.mxu1 %v1241_v6  ;;  %v1248_v13 = vld [vmem:[%s1632_s1 + $0x18] sm:$0xff]   ;;  %v1252_v17 = vld [vmem:[%s1632_s1 + $0x20] sm:$0xff]   ;;  %v1256_v21 = vld [vmem:[%s1632_s1 + $0x28] sm:$0xff]  }
   0x7   :  { %1096 = vmatpush3.bf16.msra.mxu0 %v1240_v5  ;;  %v1249_v14 = vld [vmem:[%s1632_s1 + $0xd8] sm:$0xff]   ;;  %v1253_v18 = vld [vmem:[%s1632_s1 + $0xe0] sm:$0xff]   ;;  %v1257_v22 = vld [vmem:[%s1632_s1 + $0xe8] sm:$0xff]  }
   0x8   :  { %1097 = vmatprep.subr.bf16.mxu0 %v1243_v8  ;;  %v1250_v15 = vld [vmem:[%s1632_s1 + $0x98] sm:$0xff]   ;;  %v1254_v19 = vld [vmem:[%s1632_s1 + $0xa0] sm:$0xff]   ;;  %v1258_v23 = vld [vmem:[%s1632_s1 + $0xa8] sm:$0xff]  }
   0x9   :  { %1124 = vmatpush3.bf16.msra.mxu1 %v1242_v7  ;;  %v1259_v24 = vld [vmem:[%s1632_s1 + $0x70] sm:$0xff]   ;;  %v1263_v28 = vld [vmem:[%s1632_s1 + $0x78] sm:$0xff]   ;;  %v1266_v31 = vld [vmem:[%s1633_s0] ss:$36 sps:$4 sm:$0xff]  }
   0xa   :  { %1125 = vmatprep.subr.bf16.mxu1 %v1245_v10  ;;  %v1260_v25 = vld [vmem:[%s1632_s1 + $0x30] sm:$0xff]   ;;  %v1264_v29 = vld [vmem:[%s1632_s1 + $0x38] sm:$0xff]   ;;  %v1268_v32 = vld [vmem:[%s1633_s0 + $0x4] ss:$36 sps:$4 sm:$0xff]  }
   0xb   :  { %1098 = vmatpush3.bf16.msra.mxu0 %v1244_v9  ;;  %v1261_v26 = vld [vmem:[%s1632_s1 + $0xf0] sm:$0xff]   ;;  %v1265_v30 = vld [vmem:[%s1632_s1 + $0xf8] sm:$0xff]   ;;  %742 = vmatprep.mubr.bf16.mxu0 %v1268_v32  ;;  %v1270_v34 = vld [vmem:[%s1632_s1 + $0x140] sm:$0xff]  }
   0xc   :  { %1099 = vmatprep.subr.bf16.mxu0 %v1247_v12  ;;  %v1262_v27 = vld [vmem:[%s1632_s1 + $0xb0] sm:$0xff]   ;;  %v1269_v33 = vld [vmem:[%s1632_s1 + $0xb8] sm:$0xff]   ;;  %v1271_v35 = vld [vmem:[%s1633_s0 + $0x8] ss:$36 sps:$4 sm:$0xff]  }
   0xd   :  { %1126 = vmatpush3.bf16.msra.mxu1 %v1246_v11  ;;  %v1273_v36 = vld [vmem:[%s1633_s0 + $0xc] ss:$36 sps:$4 sm:$0xff]   ;;  %v1274_v37 = vld [vmem:[%s1632_s1 + $0x100] sm:$0xff]   ;;  %v1285_v48 = vld [vmem:[%s1632_s1 + $0x158] sm:$0xff]  }
   0xe   :  { %1127 = vmatprep.subr.bf16.mxu1 %v1249_v14  ;;  %791 = vmatprep.mubr.bf16.mxu1 %v1273_v36  ;;  %v1275_v38 = vld [vmem:[%s1632_s1 + $0x1c0] sm:$0xff]   ;;  %v1277_v40 = vld [vmem:[%s1632_s1 + $0x148] sm:$0xff]   ;;  %v1281_v44 = vld [vmem:[%s1632_s1 + $0x150] sm:$0xff]  }
   0xf   :  { %1100 = vmatpush3.bf16.msra.mxu0 %v1248_v13  ;;  %v1276_v39 = vld [vmem:[%s1632_s1 + $0x180] sm:$0xff]   ;;  %v1278_v41 = vld [vmem:[%s1632_s1 + $0x108] sm:$0xff]   ;;  %v1282_v45 = vld [vmem:[%s1632_s1 + $0x110] sm:$0xff]  }
  0x10   :  { %1101 = vmatprep.subr.bf16.mxu0 %v1251_v16  ;;  %v1279_v42 = vld [vmem:[%s1632_s1 + $0x1c8] sm:$0xff]   ;;  %v1283_v46 = vld [vmem:[%s1632_s1 + $0x1d0] sm:$0xff]   ;;  %v1286_v49 = vld [vmem:[%s1632_s1 + $0x118] sm:$0xff]  }
  0x11   :  { %1128 = vmatpush3.bf16.msra.mxu1 %v1250_v15  ;;  %v1280_v43 = vld [vmem:[%s1632_s1 + $0x188] sm:$0xff]   ;;  %v1284_v47 = vld [vmem:[%s1632_s1 + $0x190] sm:$0xff]   ;;  %v1287_v50 = vld [vmem:[%s1632_s1 + $0x1d8] sm:$0xff]  }
  0x12   :  { %1129 = vmatprep.subr.bf16.mxu1 %v1253_v18  ;;  %v1288_v51 = vld [vmem:[%s1632_s1 + $0x198] sm:$0xff]   ;;  %v1289_v52 = vld [vmem:[%s1632_s1 + $0x160] sm:$0xff]   ;;  %v1293_v56 = vld [vmem:[%s1632_s1 + $0x168] sm:$0xff]  }
  0x13   :  { %1102 = vmatpush3.bf16.msra.mxu0 %v1252_v17  ;;  %v1290_v53 = vld [vmem:[%s1632_s1 + $0x120] sm:$0xff]   ;;  %v1294_v57 = vld [vmem:[%s1633_s0 + $0x4c] ss:$36 sps:$4 sm:$0xff]   ;;  %v1299_v61 = vld [vmem:[%s1633_s0 + $0x54] ss:$36 sps:$4 sm:$0xff]  }
  0x14   :  { %1103 = vmatprep.subr.bf16.mxu0 %v1255_v20  ;;  %v1291_v54 = vld [vmem:[%s1632_s1 + $0x1e0] sm:$0xff]   ;;  %v1296_v58 = vld [vmem:[%s1632_s1 + $0x128] sm:$0xff]   ;;  %v1302_v63 = vld [vmem:[%s1633_s0 + $0x50] ss:$36 sps:$4 sm:$0xff]  }
  0x15   :  { %1130 = vmatpush3.bf16.msra.mxu1 %v1254_v19  ;;  %v1292_v55 = vld [vmem:[%s1632_s1 + $0x1a0] sm:$0xff]   ;;  %v1297_v59 = vld [vmem:[%s1633_s0 + $0x48] ss:$36 sps:$4 sm:$0xff]   ;;  %v1303_v0 = vld [vmem:[%s1632_s1 + $0x170] sm:$0xff]  }
  0x16   :  { %1131 = vmatprep.subr.bf16.mxu1 %v1257_v22  ;;  %v1298_v60 = vld [vmem:[%s1632_s1 + $0x1e8] sm:$0xff]   ;;  %v1304_v1 = vld [vmem:[%s1632_s1 + $0x130] sm:$0xff]   ;;  %v1307_v4 = vld [vmem:[%s1632_s1 + $0x178] sm:$0xff]  }
  0x17   :  { %1104 = vmatpush3.bf16.msra.mxu0 %v1256_v21  ;;  %v1301_v62 = vld [vmem:[%s1632_s1 + $0x1a8] sm:$0xff]   ;;  %v1305_v2 = vld [vmem:[%s1632_s1 + $0x1f0] sm:$0xff]   ;;  %v1308_v5 = vld [vmem:[%s1632_s1 + $0x138] sm:$0xff]  }
  0x18   :  { %1105 = vmatprep.subr.bf16.mxu0 %v1259_v24  ;;  %v1306_v3 = vld [vmem:[%s1632_s1 + $0x1b0] sm:$0xff]   ;;  %v1309_v6 = vld [vmem:[%s1632_s1 + $0x1f8] sm:$0xff]   ;;  %v1314_v10 = vld [vmem:[%s1632_s1 + $0x200] sm:$0xff]  }
  0x19   :  { %1132 = vmatpush3.bf16.msra.mxu1 %v1258_v23  ;;  %v1310_v7 = vld [vmem:[%s1633_s0 + $0x10] ss:$36 sps:$4 sm:$0xff]   ;;  %v1313_v9 = vld [vmem:[%s1632_s1 + $0x1b8] sm:$0xff]   ;;  %v1318_v13 = vld [vmem:[%s1632_s1 + $0x208] sm:$0xff]  }
  0x1a   :  { %1133 = vmatprep.subr.bf16.mxu1 %v1261_v26  ;;  %v1312_v8 = vld [vmem:[%s1633_s0 + $0x14] ss:$36 sps:$4 sm:$0xff]   ;;  %v1317_v12 = vld [vmem:[%s1633_s0 + $0x1c] ss:$36 sps:$4 sm:$0xff]   ;;  %v1323_v17 = vld [vmem:[%s1633_s0 + $0x64] ss:$36 sps:$4 sm:$0xff]  }
  0x1b   :  { %1106 = vmatpush3.bf16.msra.mxu0 %v1260_v25  ;;  %v1315_v11 = vld [vmem:[%s1633_s0 + $0x18] ss:$36 sps:$4 sm:$0xff]   ;;  %v1322_v16 = vld [vmem:[%s1632_s1 + $0x210] sm:$0xff]   ;;  %v1325_v18 = vld [vmem:[%s1633_s0 + $0x60] ss:$36 sps:$4 sm:$0xff]  }
  0x1c   :  { %1107 = vmatprep.subr.bf16.mxu0 %v1263_v28  ;;  %v1319_v14 = vld [vmem:[%s1633_s0 + $0x5c] ss:$36 sps:$4 sm:$0xff]   ;;  %v1328_v22 = vld [vmem:[%s1632_s1 + $0x228] sm:$0xff]   ;;  %v1329_v23 = vld [vmem:[%s1632_s1 + $0x230] sm:$0xff]  }
  0x1d   :  { %1134 = vmatpush3.bf16.msra.mxu1 %v1262_v27  ;;  %v1321_v15 = vld [vmem:[%s1633_s0 + $0x58] ss:$36 sps:$4 sm:$0xff]   ;;  %v1327_v20 = vld [vmem:[%s1632_s1 + $0x220] sm:$0xff]   ;;  %v1332_v25 = vld [vmem:[%s1633_s0 + $0x68] ss:$36 sps:$4 sm:$0xff]  }
  0x1e   :  { %1135 = vmatprep.subr.bf16.mxu1 %v1265_v30  ;;  %v1326_v19 = vld [vmem:[%s1632_s1 + $0x218] sm:$0xff]   ;;  %v1331_v21 = vld [vmem:[%s1633_s0 + $0x20] ss:$36 sps:$4 sm:$0xff]  }
  0x1f   :  { %1108 = vmatpush3.bf16.msra.mxu0 %v1264_v29  ;;  %v1330_v24 = vld [vmem:[%s1632_s1 + $0x238] sm:$0xff]   ;;  %v983_v27 = vld [vmem:[%s1634_s2] ss:$0 sm:$0xff] }
  0x20   :  { %1149 = vmatprep.subr.bf16.mxu0 %v1270_v34 }
  0x21   :  { %1136 = vmatpush3.bf16.msra.mxu1 %v1269_v33 }
  0x22   :  { %743 = vmatmul.mubr.bf16.vlgmr.msra.gmra.mrb[0].mxu0 %v1266_v31  ;;  %1177 = vmatprep.subr.bf16.mxu1 %v1275_v38 }
  0x23   :  { %1150 = vmatpush3.bf16.msra.mxu0 %v1274_v37  ;;  %750 = vmatprep.mubr.bf16.mxu0 %v1294_v57 }
  0x24   :  { %792 = vmatmul.mubr.bf16.vlgmr.msra.gmra.mrb[0].mxu1 %v1271_v35  ;;  %1151 = vmatprep.subr.bf16.mxu0 %v1277_v40 }
  0x25   :  { %1178 = vmatpush3.bf16.msra.mxu1 %v1276_v39  ;;  %799 = vmatprep.mubr.bf16.mxu1 %v1299_v61 }
  0x26   :  { %1179 = vmatprep.subr.bf16.mxu1 %v1279_v42 }
  0x27   :  { %1152 = vmatpush3.bf16.msra.mxu0 %v1278_v41 }
  0x28   :  { %1153 = vmatprep.subr.bf16.mxu0 %v1281_v44 }
  0x29   :  { %1180 = vmatpush3.bf16.msra.mxu1 %v1280_v43 }
  0x2a   :  { %1181 = vmatprep.subr.bf16.mxu1 %v1283_v46  ;;  %751 = vmatmul.mubr.bf16.gmra.mrb[4].mxu0 %v1297_v59 }
  0x2b   :  { %1154 = vmatpush3.bf16.msra.mxu0 %v1282_v45  ;;  %840 = vmatprep.mubr.bf16.mxu0 %v1312_v8 }
  0x2c   :  { %1155 = vmatprep.subr.bf16.mxu0 %v1285_v48  ;;  %800 = vmatmul.mubr.bf16.gmra.mrb[4].mxu1 %v1302_v63 }
  0x2d   :  { %1182 = vmatpush3.bf16.msra.mxu1 %v1284_v47  ;;  %889 = vmatprep.mubr.bf16.mxu1 %v1317_v12 }
  0x2e   :  { %1183 = vmatprep.subr.bf16.mxu1 %v1287_v50 }
  0x2f   :  { %1156 = vmatpush3.bf16.msra.mxu0 %v1286_v49 }
  0x30   :  { %1157 = vmatprep.subr.bf16.mxu0 %v1289_v52 }
  0x31   :  { %1184 = vmatpush3.bf16.msra.mxu1 %v1288_v51 }
  0x32   :  { %1185 = vmatprep.subr.bf16.mxu1 %v1291_v54 }
  0x33   :  { %1158 = vmatpush3.bf16.msra.mxu0 %v1290_v53 }
  0x34   :  { %1159 = vmatprep.subr.bf16.mxu0 %v1293_v56 }
  0x35   :  { %1186 = vmatpush3.bf16.msra.mxu1 %v1292_v55 }
  0x36   :  { %1187 = vmatprep.subr.bf16.mxu1 %v1298_v60 }
  0x37   :  { %1160 = vmatpush3.bf16.msra.mxu0 %v1296_v58 }
  0x38   :  { %1161 = vmatprep.subr.bf16.mxu0 %v1303_v0 }
  0x39   :  { %1188 = vmatpush3.bf16.msra.mxu1 %v1301_v62 }
  0x3a   :  { %1189 = vmatprep.subr.bf16.mxu1 %v1305_v2 }
  0x3b   :  { %1162 = vmatpush3.bf16.msra.mxu0 %v1304_v1 }
  0x3c   :  { %1163 = vmatprep.subr.bf16.mxu0 %v1307_v4 }
  0x3d   :  { %1190 = vmatpush3.bf16.msra.mxu1 %v1306_v3 }
  0x3e   :  { %1191 = vmatprep.subr.bf16.mxu1 %v1309_v6 }
  0x3f   :  { %1164 = vmatpush3.bf16.msra.mxu0 %v1308_v5 }
  0x40   :  { %1215 = vmatprep.subr.bf16.mxu0 %v1314_v10 }
  0x41   :  { %1192 = vmatpush3.bf16.msra.mxu1 %v1313_v9 }
  0x42   :  { %841 = vmatmul.mubr.bf16.vlgmr.msra.gmra.mrb[8].mxu0 %v1310_v7 }
  0x43   :  { %1216 = vmatpush3.bf16.msra.mxu0 %v1314_v10  ;;  %848 = vmatprep.mubr.bf16.mxu0 %v1319_v14 }
  0x44   :  { %890 = vmatmul.mubr.bf16.vlgmr.msra.gmra.mrb[8].mxu1 %v1315_v11  ;;  %1217 = vmatprep.subr.bf16.mxu0 %v1318_v13 }
  0x45   :  { %897 = vmatprep.mubr.bf16.mxu1 %v1323_v17 }
  0x47   :  { %1218 = vmatpush3.bf16.msra.mxu0 %v1318_v13 }
  0x48   :  { %1219 = vmatprep.subr.bf16.mxu0 %v1322_v16 }
  0x4a   :  { %849 = vmatmul.mubr.bf16.gmra.mrb[12].mxu0 %v1321_v15 }
  0x4b   :  { %1220 = vmatpush3.bf16.msra.mxu0 %v1322_v16  ;;  %1231 = vmatprep.mubr.bf16.mxu0 %v1331_v21 }
  0x4c   :  { %898 = vmatmul.mubr.bf16.gmra.mrb[12].mxu1 %v1325_v18  ;;  %1221 = vmatprep.subr.bf16.mxu0 %v1326_v19 }
  0x4f   :  { %1222 = vmatpush3.bf16.msra.mxu0 %v1326_v19 }
  0x50   :  { %1223 = vmatprep.subr.bf16.mxu0 %v1327_v20 }
  0x53   :  { %1224 = vmatpush3.bf16.msra.mxu0 %v1327_v20 }
  0x54   :  { %1225 = vmatprep.subr.bf16.mxu0 %v1328_v22 }
  0x57   :  { %1226 = vmatpush3.bf16.msra.mxu0 %v1328_v22 }
  0x58   :  { %1227 = vmatprep.subr.bf16.mxu0 %v1329_v23 }
  0x5b   :  { %1228 = vmatpush3.bf16.msra.mxu0 %v1329_v23 }
  0x5c   :  { %1229 = vmatprep.subr.bf16.mxu0 %v1330_v24 }
  0x5f   :  { %1230 = vmatpush3.bf16.msra.mxu0 %v1330_v24 }
  0x62   :  { %1232 = vmatmul.mubr.bf16.vlgmr.msra.gmra.mrb[16].mxu0 %v1332_v25 }
  0xf5   :  { %v1109_v26 = vpop.f32.mrb[0].mxu0 }
  0xf6   :  { %v1110_v28 = vpop.f32.mrb[1].mxu0 }
  0xf7   :  { %v1111_v29 = vadd.f32 %v1110_v28, %v1109_v26  ;;  %v1112_v30 = vpop.f32.mrb[2].mxu0  ;;  %v1137_v31 = vpop.f32.mrb[0].mxu1 }
  0xf8   :  { %v1113_v32 = vpop.f32.mrb[3].mxu0  ;;  %v1138_v35 = vpop.f32.mrb[1].mxu1 }
  0xf9   :  { %v745_v33 = vadd.f32 %v1111_v29, %v983_v27  ;;  %v1114_v34 = vadd.f32 %v1113_v32, %v1112_v30  ;;  %v1139_v36 = vadd.f32 %v1138_v35, %v1137_v31  ;;  %v1140_v37 = vpop.f32.mrb[2].mxu1 }
  0xfa   :  { %v1141_v39 = vpop.f32.mrb[3].mxu1 }
  0xfb   :  { %v748_v38 = vadd.f32 %v1114_v34, %v983_v27  ;;  %v794_v40 = vadd.f32 %v1139_v36, %v745_v33  ;;  %v1142_v41 = vadd.f32 %v1141_v39, %v1140_v37 }
  0xfd   :  { %v797_v42 = vadd.f32 %v1142_v41, %v748_v38  ;;  %v1115_v43 = vpop.f32.mrb[4].mxu0 }
  0xfe   :  { %v1116_v44 = vpop.f32.mrb[5].mxu0 }
  0xff   :  { %v1117_v45 = vadd.f32 %v1116_v44, %v1115_v43  ;;  %v1118_v46 = vpop.f32.mrb[6].mxu0  ;;  %v1143_v47 = vpop.f32.mrb[4].mxu1 }
 0x100   :  { %v1119_v48 = vpop.f32.mrb[7].mxu0  ;;  %v1144_v51 = vpop.f32.mrb[5].mxu1 }
 0x101   :  { %v753_v49 = vadd.f32 %v1117_v45, %v983_v27  ;;  %v1120_v50 = vadd.f32 %v1119_v48, %v1118_v46  ;;  %v1145_v52 = vadd.f32 %v1144_v51, %v1143_v47  ;;  %v1146_v53 = vpop.f32.mrb[6].mxu1 }
 0x102   :  { %v1147_v55 = vpop.f32.mrb[7].mxu1 }
 0x103   :  { %v756_v54 = vadd.f32 %v1120_v50, %v983_v27  ;;  %v802_v56 = vadd.f32 %v1145_v52, %v753_v49  ;;  %v1148_v57 = vadd.f32 %v1147_v55, %v1146_v53 }
 0x105   :  { %v805_v58 = vadd.f32 %v1148_v57, %v756_v54 }
 0x115   :  { %v1165_v59 = vpop.f32.mrb[8].mxu0 }
 0x116   :  { %v1166_v60 = vpop.f32.mrb[9].mxu0 }
 0x117   :  { %v1167_v61 = vadd.f32 %v1166_v60, %v1165_v59  ;;  %v1168_v62 = vpop.f32.mrb[10].mxu0  ;;  %v1193_v63 = vpop.f32.mrb[8].mxu1 }
 0x118   :  { %v1169_v0 = vpop.f32.mrb[11].mxu0  ;;  %v1194_v3 = vpop.f32.mrb[9].mxu1 }
 0x119   :  { %v843_v1 = vadd.f32 %v1167_v61, %v794_v40  ;;  %v1170_v2 = vadd.f32 %v1169_v0, %v1168_v62  ;;  %v1195_v4 = vadd.f32 %v1194_v3, %v1193_v63  ;;  %v1196_v5 = vpop.f32.mrb[10].mxu1 }
 0x11a   :  { %v1197_v7 = vpop.f32.mrb[11].mxu1 }
 0x11b   :  { %v846_v6 = vadd.f32 %v1170_v2, %v797_v42  ;;  %v1198_v8 = vadd.f32 %v1197_v7, %v1196_v5  ;;  %v892_v9 = vadd.f32 %v1195_v4, %v843_v1 }
 0x11d   :  { %v1171_v10 = vpop.f32.mrb[12].mxu0  ;;  %v895_v12 = vadd.f32 %v1198_v8, %v846_v6 }
 0x11e   :  { %v1172_v11 = vpop.f32.mrb[13].mxu0 }
 0x11f   :  { %v1173_v13 = vadd.f32 %v1172_v11, %v1171_v10  ;;  %v1174_v14 = vpop.f32.mrb[14].mxu0  ;;  %v1199_v15 = vpop.f32.mrb[12].mxu1 }
 0x120   :  { %v1175_v16 = vpop.f32.mrb[15].mxu0  ;;  %v1200_v19 = vpop.f32.mrb[13].mxu1 }
 0x121   :  { %v851_v17 = vadd.f32 %v1173_v13, %v802_v56  ;;  %v1176_v18 = vadd.f32 %v1175_v16, %v1174_v14  ;;  %v1201_v20 = vadd.f32 %v1200_v19, %v1199_v15  ;;  %v1202_v21 = vpop.f32.mrb[14].mxu1 }
 0x122   :  { %v1203_v23 = vpop.f32.mrb[15].mxu1 }
 0x123   :  { %v854_v22 = vadd.f32 %v1176_v18, %v805_v58  ;;  %v1204_v24 = vadd.f32 %v1203_v23, %v1202_v21  ;;  %v900_v25 = vadd.f32 %v1201_v20, %v851_v17 }
 0x125   :  { %v903_v26 = vadd.f32 %v1204_v24, %v854_v22 }
 0x135   :  { %v1233_v27 = vpop.f32.mrb[16].mxu0 }
 0x136   :  { %v949_v28 = vadd.f32 %v1233_v27, %v900_v25  ;;  %v940_v29 = vpop.f32.mrb[17].mxu0 }
 0x137   :  { %v941_v30 = vadd.f32 %v940_v29, %v892_v9  ;;  %v1234_v31 = vpop.f32.mrb[18].mxu0 }
 0x138   :  { %v952_v32 = vadd.f32 %v1234_v31, %v903_v26  ;;  %v943_v33 = vpop.f32.mrb[19].mxu0  ;;  %v957_v35 = vmax.f32 %v949_v28, 0.0 }
 0x139   :  { %v944_v34 = vadd.f32 %v943_v33, %v895_v12  ;;  %v955_v37 = vmax.f32 %v941_v30, 0.0 }
 0x13a   :  { %v958_v36 = vmax.f32 %v952_v32, 0.0 }
 0x13b   :  { %v956_v38 = vmax.f32 %v944_v34, 0.0 }
 0x13c   :  { %v1090_v39 = vpack.c.bf16 %v958_v36, %v957_v35 }
 0x13d   :  { %v1085_v40 = vpack.c.bf16 %v956_v38, %v955_v37 }
 0x13e   :  { %1092 = vst [vmem:[%s1635_s3 + $0x8] sm:$0xff] %v1090_v39  }
 0x13f   :  { %1086 = vst [vmem:[%s1635_s3] sm:$0xff] %v1085_v40  }

// kernel: neuron_counter_forward.25
= control target key start
LH: loop header
LB: loop body
LE: loop exit
PB: predicated region body
PF: predicated region fallthrough
CT: control target
= control target key end

     0   :  { %s1667_s1 = inlined_call_operand.vmem [shape: bf16[1152,128], index: 1, kind: input, shape index: {}]   ;;  %s1668_s0 = inlined_call_operand.vmem [shape: bf16[32,1152], index: 0, kind: input, shape index: {}]   ;;  %s1669_s2 = inlined_call_operand.vmem [shape: f32[1,128], index: 2, kind: input, shape index: {}]   ;;  %s1670_s3 = inlined_call_operand.vmem [shape: bf16[32,128], index: 3, kind: input, shape index: {}]   ;;  %s1671_s4 = inlined_call_operand.vmem [shape: bf16[32,128], index: 4, kind: output, shape index: {}]  }
   0x1   :  { %v1259_v0 = vld [vmem:[%s1667_s1 + $0x40] sm:$0xff]   ;;  %v1263_v4 = vld [vmem:[%s1667_s1 + $0x48] sm:$0xff]   ;;  %v1267_v8 = vld [vmem:[%s1667_s1 + $0x50] sm:$0xff]  }
   0x2   :  { %v1260_v1 = vld [vmem:[%s1667_s1] sm:$0xff]   ;;  %1117 = vmatprep.subr.bf16.mxu0 %v1259_v0  ;;  %v1264_v5 = vld [vmem:[%s1667_s1 + $0x8] sm:$0xff]   ;;  %v1268_v9 = vld [vmem:[%s1667_s1 + $0x10] sm:$0xff]  }
   0x3   :  { %v1261_v2 = vld [vmem:[%s1667_s1 + $0xc0] sm:$0xff]   ;;  %1118 = vmatpush3.bf16.msra.mxu0 %v1260_v1  ;;  %v1265_v6 = vld [vmem:[%s1667_s1 + $0xc8] sm:$0xff]   ;;  %v1269_v10 = vld [vmem:[%s1667_s1 + $0xd0] sm:$0xff]  }
   0x4   :  { %v1262_v3 = vld [vmem:[%s1667_s1 + $0x80] sm:$0xff]   ;;  %1145 = vmatprep.subr.bf16.mxu1 %v1261_v2  ;;  %1119 = vmatprep.subr.bf16.mxu0 %v1263_v4  ;;  %v1266_v7 = vld [vmem:[%s1667_s1 + $0x88] sm:$0xff]   ;;  %v1270_v11 = vld [vmem:[%s1667_s1 + $0x90] sm:$0xff]  }
   0x5   :  { %1146 = vmatpush3.bf16.msra.mxu1 %v1262_v3  ;;  %v1271_v12 = vld [vmem:[%s1667_s1 + $0x58] sm:$0xff]   ;;  %v1275_v16 = vld [vmem:[%s1667_s1 + $0x60] sm:$0xff]   ;;  %v1279_v20 = vld [vmem:[%s1667_s1 + $0x68] sm:$0xff]  }
   0x6   :  { %1147 = vmatprep.subr.bf16.mxu1 %v1265_v6  ;;  %v1272_v13 = vld [vmem:[%s1667_s1 + $0x18] sm:$0xff]   ;;  %v1276_v17 = vld [vmem:[%s1667_s1 + $0x20] sm:$0xff]   ;;  %v1280_v21 = vld [vmem:[%s1667_s1 + $0x28] sm:$0xff]  }
   0x7   :  { %1120 = vmatpush3.bf16.msra.mxu0 %v1264_v5  ;;  %v1273_v14 = vld [vmem:[%s1667_s1 + $0xd8] sm:$0xff]   ;;  %v1277_v18 = vld [vmem:[%s1667_s1 + $0xe0] sm:$0xff]   ;;  %v1281_v22 = vld [vmem:[%s1667_s1 + $0xe8] sm:$0xff]  }
   0x8   :  { %1121 = vmatprep.subr.bf16.mxu0 %v1267_v8  ;;  %v1274_v15 = vld [vmem:[%s1667_s1 + $0x98] sm:$0xff]   ;;  %v1278_v19 = vld [vmem:[%s1667_s1 + $0xa0] sm:$0xff]   ;;  %v1282_v23 = vld [vmem:[%s1667_s1 + $0xa8] sm:$0xff]  }
   0x9   :  { %1148 = vmatpush3.bf16.msra.mxu1 %v1266_v7  ;;  %v1283_v24 = vld [vmem:[%s1667_s1 + $0x70] sm:$0xff]   ;;  %v1287_v28 = vld [vmem:[%s1667_s1 + $0x78] sm:$0xff]   ;;  %v1290_v31 = vld [vmem:[%s1668_s0] ss:$36 sps:$4 sm:$0xff]  }
   0xa   :  { %1149 = vmatprep.subr.bf16.mxu1 %v1269_v10  ;;  %v1284_v25 = vld [vmem:[%s1667_s1 + $0x30] sm:$0xff]   ;;  %v1288_v29 = vld [vmem:[%s1667_s1 + $0x38] sm:$0xff]   ;;  %v1292_v32 = vld [vmem:[%s1668_s0 + $0x4] ss:$36 sps:$4 sm:$0xff]  }
   0xb   :  { %1122 = vmatpush3.bf16.msra.mxu0 %v1268_v9  ;;  %v1285_v26 = vld [vmem:[%s1667_s1 + $0xf0] sm:$0xff]   ;;  %v1289_v30 = vld [vmem:[%s1667_s1 + $0xf8] sm:$0xff]   ;;  %745 = vmatprep.mubr.bf16.mxu0 %v1292_v32  ;;  %v1294_v34 = vld [vmem:[%s1667_s1 + $0x140] sm:$0xff]  }
   0xc   :  { %1123 = vmatprep.subr.bf16.mxu0 %v1271_v12  ;;  %v1286_v27 = vld [vmem:[%s1667_s1 + $0xb0] sm:$0xff]   ;;  %v1293_v33 = vld [vmem:[%s1667_s1 + $0xb8] sm:$0xff]   ;;  %v1295_v35 = vld [vmem:[%s1668_s0 + $0x8] ss:$36 sps:$4 sm:$0xff]  }
   0xd   :  { %1150 = vmatpush3.bf16.msra.mxu1 %v1270_v11  ;;  %v1297_v36 = vld [vmem:[%s1668_s0 + $0xc] ss:$36 sps:$4 sm:$0xff]   ;;  %v1298_v37 = vld [vmem:[%s1667_s1 + $0x100] sm:$0xff]   ;;  %v1309_v48 = vld [vmem:[%s1667_s1 + $0x158] sm:$0xff]  }
   0xe   :  { %1151 = vmatprep.subr.bf16.mxu1 %v1273_v14  ;;  %794 = vmatprep.mubr.bf16.mxu1 %v1297_v36  ;;  %v1299_v38 = vld [vmem:[%s1667_s1 + $0x1c0] sm:$0xff]   ;;  %v1301_v40 = vld [vmem:[%s1667_s1 + $0x148] sm:$0xff]   ;;  %v1305_v44 = vld [vmem:[%s1667_s1 + $0x150] sm:$0xff]  }
   0xf   :  { %1124 = vmatpush3.bf16.msra.mxu0 %v1272_v13  ;;  %v1300_v39 = vld [vmem:[%s1667_s1 + $0x180] sm:$0xff]   ;;  %v1302_v41 = vld [vmem:[%s1667_s1 + $0x108] sm:$0xff]   ;;  %v1306_v45 = vld [vmem:[%s1667_s1 + $0x110] sm:$0xff]  }
  0x10   :  { %1125 = vmatprep.subr.bf16.mxu0 %v1275_v16  ;;  %v1303_v42 = vld [vmem:[%s1667_s1 + $0x1c8] sm:$0xff]   ;;  %v1307_v46 = vld [vmem:[%s1667_s1 + $0x1d0] sm:$0xff]   ;;  %v1310_v49 = vld [vmem:[%s1667_s1 + $0x118] sm:$0xff]  }
  0x11   :  { %1152 = vmatpush3.bf16.msra.mxu1 %v1274_v15  ;;  %v1304_v43 = vld [vmem:[%s1667_s1 + $0x188] sm:$0xff]   ;;  %v1308_v47 = vld [vmem:[%s1667_s1 + $0x190] sm:$0xff]   ;;  %v1311_v50 = vld [vmem:[%s1667_s1 + $0x1d8] sm:$0xff]  }
  0x12   :  { %1153 = vmatprep.subr.bf16.mxu1 %v1277_v18  ;;  %v1312_v51 = vld [vmem:[%s1667_s1 + $0x198] sm:$0xff]   ;;  %v1313_v52 = vld [vmem:[%s1667_s1 + $0x160] sm:$0xff]   ;;  %v1317_v56 = vld [vmem:[%s1667_s1 + $0x168] sm:$0xff]  }
  0x13   :  { %1126 = vmatpush3.bf16.msra.mxu0 %v1276_v17  ;;  %v1314_v53 = vld [vmem:[%s1667_s1 + $0x120] sm:$0xff]   ;;  %v1318_v57 = vld [vmem:[%s1668_s0 + $0x4c] ss:$36 sps:$4 sm:$0xff]   ;;  %v1323_v61 = vld [vmem:[%s1668_s0 + $0x54] ss:$36 sps:$4 sm:$0xff]  }
  0x14   :  { %1127 = vmatprep.subr.bf16.mxu0 %v1279_v20  ;;  %v1315_v54 = vld [vmem:[%s1667_s1 + $0x1e0] sm:$0xff]   ;;  %v1320_v58 = vld [vmem:[%s1667_s1 + $0x128] sm:$0xff]   ;;  %v1326_v63 = vld [vmem:[%s1668_s0 + $0x50] ss:$36 sps:$4 sm:$0xff]  }
  0x15   :  { %1154 = vmatpush3.bf16.msra.mxu1 %v1278_v19  ;;  %v1316_v55 = vld [vmem:[%s1667_s1 + $0x1a0] sm:$0xff]   ;;  %v1321_v59 = vld [vmem:[%s1668_s0 + $0x48] ss:$36 sps:$4 sm:$0xff]   ;;  %v1327_v0 = vld [vmem:[%s1667_s1 + $0x170] sm:$0xff]  }
  0x16   :  { %1155 = vmatprep.subr.bf16.mxu1 %v1281_v22  ;;  %v1322_v60 = vld [vmem:[%s1667_s1 + $0x1e8] sm:$0xff]   ;;  %v1328_v1 = vld [vmem:[%s1667_s1 + $0x130] sm:$0xff]   ;;  %v1331_v4 = vld [vmem:[%s1667_s1 + $0x178] sm:$0xff]  }
  0x17   :  { %1128 = vmatpush3.bf16.msra.mxu0 %v1280_v21  ;;  %v1325_v62 = vld [vmem:[%s1667_s1 + $0x1a8] sm:$0xff]   ;;  %v1329_v2 = vld [vmem:[%s1667_s1 + $0x1f0] sm:$0xff]   ;;  %v1332_v5 = vld [vmem:[%s1667_s1 + $0x138] sm:$0xff]  }
  0x18   :  { %1129 = vmatprep.subr.bf16.mxu0 %v1283_v24  ;;  %v1330_v3 = vld [vmem:[%s1667_s1 + $0x1b0] sm:$0xff]   ;;  %v1333_v6 = vld [vmem:[%s1667_s1 + $0x1f8] sm:$0xff]   ;;  %v1338_v10 = vld [vmem:[%s1667_s1 + $0x200] sm:$0xff]  }
  0x19   :  { %1156 = vmatpush3.bf16.msra.mxu1 %v1282_v23  ;;  %v1334_v7 = vld [vmem:[%s1668_s0 + $0x10] ss:$36 sps:$4 sm:$0xff]   ;;  %v1337_v9 = vld [vmem:[%s1667_s1 + $0x1b8] sm:$0xff]   ;;  %v1342_v13 = vld [vmem:[%s1667_s1 + $0x208] sm:$0xff]  }
  0x1a   :  { %1157 = vmatprep.subr.bf16.mxu1 %v1285_v26  ;;  %v1336_v8 = vld [vmem:[%s1668_s0 + $0x14] ss:$36 sps:$4 sm:$0xff]   ;;  %v1341_v12 = vld [vmem:[%s1668_s0 + $0x1c] ss:$36 sps:$4 sm:$0xff]   ;;  %v1347_v17 = vld [vmem:[%s1668_s0 + $0x64] ss:$36 sps:$4 sm:$0xff]  }
  0x1b   :  { %1130 = vmatpush3.bf16.msra.mxu0 %v1284_v25  ;;  %v1339_v11 = vld [vmem:[%s1668_s0 + $0x18] ss:$36 sps:$4 sm:$0xff]   ;;  %v1346_v16 = vld [vmem:[%s1667_s1 + $0x210] sm:$0xff]   ;;  %v1349_v18 = vld [vmem:[%s1668_s0 + $0x60] ss:$36 sps:$4 sm:$0xff]  }
  0x1c   :  { %1131 = vmatprep.subr.bf16.mxu0 %v1287_v28  ;;  %v1343_v14 = vld [vmem:[%s1668_s0 + $0x5c] ss:$36 sps:$4 sm:$0xff]   ;;  %v1352_v22 = vld [vmem:[%s1667_s1 + $0x228] sm:$0xff]   ;;  %v1353_v23 = vld [vmem:[%s1667_s1 + $0x230] sm:$0xff]  }
  0x1d   :  { %1158 = vmatpush3.bf16.msra.mxu1 %v1286_v27  ;;  %v1345_v15 = vld [vmem:[%s1668_s0 + $0x58] ss:$36 sps:$4 sm:$0xff]   ;;  %v1351_v20 = vld [vmem:[%s1667_s1 + $0x220] sm:$0xff]   ;;  %v1356_v25 = vld [vmem:[%s1668_s0 + $0x68] ss:$36 sps:$4 sm:$0xff]  }
  0x1e   :  { %1159 = vmatprep.subr.bf16.mxu1 %v1289_v30  ;;  %v1350_v19 = vld [vmem:[%s1667_s1 + $0x218] sm:$0xff]   ;;  %v1355_v21 = vld [vmem:[%s1668_s0 + $0x20] ss:$36 sps:$4 sm:$0xff]  }
  0x1f   :  { %1132 = vmatpush3.bf16.msra.mxu0 %v1288_v29  ;;  %v1354_v24 = vld [vmem:[%s1667_s1 + $0x238] sm:$0xff]   ;;  %v998_v27 = vld [vmem:[%s1669_s2] ss:$0 sm:$0xff] }
  0x20   :  { %1173 = vmatprep.subr.bf16.mxu0 %v1294_v34 }
  0x21   :  { %1160 = vmatpush3.bf16.msra.mxu1 %v1293_v33 }
  0x22   :  { %746 = vmatmul.mubr.bf16.vlgmr.msra.gmra.mrb[0].mxu0 %v1290_v31  ;;  %1201 = vmatprep.subr.bf16.mxu1 %v1299_v38 }
  0x23   :  { %1174 = vmatpush3.bf16.msra.mxu0 %v1298_v37  ;;  %753 = vmatprep.mubr.bf16.mxu0 %v1318_v57 }
  0x24   :  { %795 = vmatmul.mubr.bf16.vlgmr.msra.gmra.mrb[0].mxu1 %v1295_v35  ;;  %1175 = vmatprep.subr.bf16.mxu0 %v1301_v40 }
  0x25   :  { %1202 = vmatpush3.bf16.msra.mxu1 %v1300_v39  ;;  %802 = vmatprep.mubr.bf16.mxu1 %v1323_v61 }
  0x26   :  { %1203 = vmatprep.subr.bf16.mxu1 %v1303_v42 }
  0x27   :  { %1176 = vmatpush3.bf16.msra.mxu0 %v1302_v41 }
  0x28   :  { %1177 = vmatprep.subr.bf16.mxu0 %v1305_v44 }
  0x29   :  { %1204 = vmatpush3.bf16.msra.mxu1 %v1304_v43 }
  0x2a   :  { %1205 = vmatprep.subr.bf16.mxu1 %v1307_v46  ;;  %754 = vmatmul.mubr.bf16.gmra.mrb[4].mxu0 %v1321_v59 }
  0x2b   :  { %1178 = vmatpush3.bf16.msra.mxu0 %v1306_v45  ;;  %843 = vmatprep.mubr.bf16.mxu0 %v1336_v8 }
  0x2c   :  { %1179 = vmatprep.subr.bf16.mxu0 %v1309_v48  ;;  %803 = vmatmul.mubr.bf16.gmra.mrb[4].mxu1 %v1326_v63 }
  0x2d   :  { %1206 = vmatpush3.bf16.msra.mxu1 %v1308_v47  ;;  %892 = vmatprep.mubr.bf16.mxu1 %v1341_v12 }
  0x2e   :  { %1207 = vmatprep.subr.bf16.mxu1 %v1311_v50 }
  0x2f   :  { %1180 = vmatpush3.bf16.msra.mxu0 %v1310_v49 }
  0x30   :  { %1181 = vmatprep.subr.bf16.mxu0 %v1313_v52 }
  0x31   :  { %1208 = vmatpush3.bf16.msra.mxu1 %v1312_v51 }
  0x32   :  { %1209 = vmatprep.subr.bf16.mxu1 %v1315_v54 }
  0x33   :  { %1182 = vmatpush3.bf16.msra.mxu0 %v1314_v53 }
  0x34   :  { %1183 = vmatprep.subr.bf16.mxu0 %v1317_v56 }
  0x35   :  { %1210 = vmatpush3.bf16.msra.mxu1 %v1316_v55 }
  0x36   :  { %1211 = vmatprep.subr.bf16.mxu1 %v1322_v60 }
  0x37   :  { %1184 = vmatpush3.bf16.msra.mxu0 %v1320_v58 }
  0x38   :  { %1185 = vmatprep.subr.bf16.mxu0 %v1327_v0 }
  0x39   :  { %1212 = vmatpush3.bf16.msra.mxu1 %v1325_v62 }
  0x3a   :  { %1213 = vmatprep.subr.bf16.mxu1 %v1329_v2 }
  0x3b   :  { %1186 = vmatpush3.bf16.msra.mxu0 %v1328_v1 }
  0x3c   :  { %1187 = vmatprep.subr.bf16.mxu0 %v1331_v4 }
  0x3d   :  { %1214 = vmatpush3.bf16.msra.mxu1 %v1330_v3 }
  0x3e   :  { %1215 = vmatprep.subr.bf16.mxu1 %v1333_v6 }
  0x3f   :  { %1188 = vmatpush3.bf16.msra.mxu0 %v1332_v5 }
  0x40   :  { %1239 = vmatprep.subr.bf16.mxu0 %v1338_v10 }
  0x41   :  { %1216 = vmatpush3.bf16.msra.mxu1 %v1337_v9 }
  0x42   :  { %844 = vmatmul.mubr.bf16.vlgmr.msra.gmra.mrb[8].mxu0 %v1334_v7 }
  0x43   :  { %1240 = vmatpush3.bf16.msra.mxu0 %v1338_v10  ;;  %851 = vmatprep.mubr.bf16.mxu0 %v1343_v14 }
  0x44   :  { %893 = vmatmul.mubr.bf16.vlgmr.msra.gmra.mrb[8].mxu1 %v1339_v11  ;;  %1241 = vmatprep.subr.bf16.mxu0 %v1342_v13 }
  0x45   :  { %900 = vmatprep.mubr.bf16.mxu1 %v1347_v17 }
  0x47   :  { %1242 = vmatpush3.bf16.msra.mxu0 %v1342_v13 }
  0x48   :  { %1243 = vmatprep.subr.bf16.mxu0 %v1346_v16 }
  0x4a   :  { %852 = vmatmul.mubr.bf16.gmra.mrb[12].mxu0 %v1345_v15 }
  0x4b   :  { %1244 = vmatpush3.bf16.msra.mxu0 %v1346_v16  ;;  %1255 = vmatprep.mubr.bf16.mxu0 %v1355_v21 }
  0x4c   :  { %901 = vmatmul.mubr.bf16.gmra.mrb[12].mxu1 %v1349_v18  ;;  %1245 = vmatprep.subr.bf16.mxu0 %v1350_v19 }
  0x4f   :  { %1246 = vmatpush3.bf16.msra.mxu0 %v1350_v19 }
  0x50   :  { %1247 = vmatprep.subr.bf16.mxu0 %v1351_v20 }
  0x53   :  { %1248 = vmatpush3.bf16.msra.mxu0 %v1351_v20 }
  0x54   :  { %1249 = vmatprep.subr.bf16.mxu0 %v1352_v22 }
  0x57   :  { %1250 = vmatpush3.bf16.msra.mxu0 %v1352_v22 }
  0x58   :  { %1251 = vmatprep.subr.bf16.mxu0 %v1353_v23 }
  0x5b   :  { %1252 = vmatpush3.bf16.msra.mxu0 %v1353_v23 }
  0x5c   :  { %1253 = vmatprep.subr.bf16.mxu0 %v1354_v24 }
  0x5f   :  { %1254 = vmatpush3.bf16.msra.mxu0 %v1354_v24 }
  0x62   :  { %1256 = vmatmul.mubr.bf16.vlgmr.msra.gmra.mrb[16].mxu0 %v1356_v25 }
  0xf5   :  { %v1133_v26 = vpop.f32.mrb[0].mxu0 }
  0xf6   :  { %v1134_v28 = vpop.f32.mrb[1].mxu0 }
  0xf7   :  { %v1135_v29 = vadd.f32 %v1134_v28, %v1133_v26  ;;  %v1136_v30 = vpop.f32.mrb[2].mxu0  ;;  %v1161_v31 = vpop.f32.mrb[0].mxu1  ;;  %v1098_v28 = vld [vmem:[%s1670_s3] sm:$0xff]  }
  0xf8   :  { %v1137_v32 = vpop.f32.mrb[3].mxu0  ;;  %v1162_v35 = vpop.f32.mrb[1].mxu1 }
  0xf9   :  { %v748_v33 = vadd.f32 %v1135_v29, %v998_v27  ;;  %v1138_v34 = vadd.f32 %v1137_v32, %v1136_v30  ;;  %v1163_v36 = vadd.f32 %v1162_v35, %v1161_v31  ;;  %v1164_v37 = vpop.f32.mrb[2].mxu1  ;;  %v1099_v31 = vunpack.c.l.bf16 %v1098_v28 }
  0xfa   :  { %v1165_v39 = vpop.f32.mrb[3].mxu1 }
  0xfb   :  { %v751_v38 = vadd.f32 %v1138_v34, %v998_v27  ;;  %v797_v40 = vadd.f32 %v1163_v36, %v748_v33  ;;  %v1166_v41 = vadd.f32 %v1165_v39, %v1164_v37  ;;  %v1100_v37 = vunpack.c.h.bf16 %v1098_v28 }
  0xfd   :  { %v800_v42 = vadd.f32 %v1166_v41, %v751_v38  ;;  %v1139_v43 = vpop.f32.mrb[4].mxu0 }
  0xfe   :  { %v1140_v44 = vpop.f32.mrb[5].mxu0 }
  0xff   :  { %v1141_v45 = vadd.f32 %v1140_v44, %v1139_v43  ;;  %v1142_v46 = vpop.f32.mrb[6].mxu0  ;;  %v1167_v47 = vpop.f32.mrb[4].mxu1 }
 0x100   :  { %v1143_v48 = vpop.f32.mrb[7].mxu0  ;;  %v1168_v51 = vpop.f32.mrb[5].mxu1 }
 0x101   :  { %v756_v49 = vadd.f32 %v1141_v45, %v998_v27  ;;  %v1144_v50 = vadd.f32 %v1143_v48, %v1142_v46  ;;  %v1169_v52 = vadd.f32 %v1168_v51, %v1167_v47  ;;  %v1170_v53 = vpop.f32.mrb[6].mxu1 }
 0x102   :  { %v1171_v55 = vpop.f32.mrb[7].mxu1 }
 0x103   :  { %v759_v54 = vadd.f32 %v1144_v50, %v998_v27  ;;  %v805_v56 = vadd.f32 %v1169_v52, %v756_v49  ;;  %v1172_v57 = vadd.f32 %v1171_v55, %v1170_v53  ;;  %v1115_v27 = vld [vmem:[%s1670_s3 + $0x8] sm:$0xff]  }
 0x104   :  { %v1103_v29 = vunpack.c.l.bf16 %v1115_v27  ;;  %v1104_v34 = vunpack.c.h.bf16 %v1115_v27 }
 0x105   :  { %v808_v58 = vadd.f32 %v1172_v57, %v759_v54 }
 0x115   :  { %v1189_v59 = vpop.f32.mrb[8].mxu0 }
 0x116   :  { %v1190_v60 = vpop.f32.mrb[9].mxu0 }
 0x117   :  { %v1191_v61 = vadd.f32 %v1190_v60, %v1189_v59  ;;  %v1192_v62 = vpop.f32.mrb[10].mxu0  ;;  %v1217_v63 = vpop.f32.mrb[8].mxu1 }
 0x118   :  { %v1193_v0 = vpop.f32.mrb[11].mxu0  ;;  %v1218_v3 = vpop.f32.mrb[9].mxu1 }
 0x119   :  { %v846_v1 = vadd.f32 %v1191_v61, %v797_v40  ;;  %v1194_v2 = vadd.f32 %v1193_v0, %v1192_v62  ;;  %v1219_v4 = vadd.f32 %v1218_v3, %v1217_v63  ;;  %v1220_v5 = vpop.f32.mrb[10].mxu1 }
 0x11a   :  { %v1221_v7 = vpop.f32.mrb[11].mxu1 }
 0x11b   :  { %v849_v6 = vadd.f32 %v1194_v2, %v800_v42  ;;  %v1222_v8 = vadd.f32 %v1221_v7, %v1220_v5  ;;  %v895_v9 = vadd.f32 %v1219_v4, %v846_v1 }
 0x11d   :  { %v1195_v10 = vpop.f32.mrb[12].mxu0  ;;  %v898_v12 = vadd.f32 %v1222_v8, %v849_v6 }
 0x11e   :  { %v1196_v11 = vpop.f32.mrb[13].mxu0 }
 0x11f   :  { %v1197_v13 = vadd.f32 %v1196_v11, %v1195_v10  ;;  %v1198_v14 = vpop.f32.mrb[14].mxu0  ;;  %v1223_v15 = vpop.f32.mrb[12].mxu1 }
 0x120   :  { %v1199_v16 = vpop.f32.mrb[15].mxu0  ;;  %v1224_v19 = vpop.f32.mrb[13].mxu1 }
 0x121   :  { %v854_v17 = vadd.f32 %v1197_v13, %v805_v56  ;;  %v1200_v18 = vadd.f32 %v1199_v16, %v1198_v14  ;;  %v1225_v20 = vadd.f32 %v1224_v19, %v1223_v15  ;;  %v1226_v21 = vpop.f32.mrb[14].mxu1 }
 0x122   :  { %v1227_v23 = vpop.f32.mrb[15].mxu1 }
 0x123   :  { %v857_v22 = vadd.f32 %v1200_v18, %v808_v58  ;;  %v1228_v24 = vadd.f32 %v1227_v23, %v1226_v21  ;;  %v903_v25 = vadd.f32 %v1225_v20, %v854_v17 }
 0x125   :  { %v906_v26 = vadd.f32 %v1228_v24, %v857_v22 }
 0x135   :  { %v1257_v30 = vpop.f32.mrb[16].mxu0 }
 0x136   :  { %v952_v32 = vadd.f32 %v1257_v30, %v903_v25  ;;  %v943_v33 = vpop.f32.mrb[17].mxu0 }
 0x137   :  { %v944_v35 = vadd.f32 %v943_v33, %v895_v9  ;;  %v1258_v36 = vpop.f32.mrb[18].mxu0 }
 0x138   :  { %v968_v38 = vadd.f32 %v1103_v29, %v952_v32  ;;  %v955_v39 = vadd.f32 %v1258_v36, %v906_v26  ;;  %v946_v40 = vpop.f32.mrb[19].mxu0 }
 0x139   :  { %v966_v41 = vadd.f32 %v1099_v31, %v944_v35  ;;  %v947_v42 = vadd.f32 %v946_v40, %v898_v12 }
 0x13a   :  { %v969_v43 = vadd.f32 %v1104_v34, %v955_v39  ;;  %v972_v45 = vmax.f32 %v968_v38, 0.0 }
 0x13b   :  { %v967_v44 = vadd.f32 %v1100_v37, %v947_v42  ;;  %v970_v47 = vmax.f32 %v966_v41, 0.0 }
 0x13c   :  { %v973_v46 = vmax.f32 %v969_v43, 0.0 }
 0x13d   :  { %v971_v48 = vmax.f32 %v967_v44, 0.0 }
 0x13e   :  { %v1113_v49 = vpack.c.bf16 %v973_v46, %v972_v45 }
 0x13f   :  { %v1108_v50 = vpack.c.bf16 %v971_v48, %v970_v47 }
 0x140   :  { %1116 = vst [vmem:[%s1671_s4 + $0x8] sm:$0xff] %v1113_v49  }
 0x141   :  { %1109 = vst [vmem:[%s1671_s4] sm:$0xff] %v1108_v50  }

// kernel: neuron_counter_forward.28
= control target key start
LH: loop header
LB: loop body
LE: loop exit
PB: predicated region body
PF: predicated region fallthrough
CT: control target
= control target key end

     0   :  { %s3940_s1 = inlined_call_operand.vmem [shape: bf16[1152,512], index: 1, kind: input, shape index: {}]   ;;  %s3941_s0 = inlined_call_operand.vmem [shape: bf16[8,1152], index: 0, kind: input, shape index: {}]   ;;  %s3942_s2 = inlined_call_operand.vmem [shape: f32[1,512], index: 2, kind: input, shape index: {}]   ;;  %s3943_s3 = inlined_call_operand.vmem [shape: bf16[8,512], index: 3, kind: output, shape index: {}]  }
   0x1   :  { %v2572_v0 = vld [vmem:[%s3940_s1 + $0x4] ss:$16 sps:$4 sm:$0xff]   ;;  %v2574_v1 = vld [vmem:[%s3940_s1 + $0xc] ss:$16 sps:$4 sm:$0xff]   ;;  %v2576_v2 = vld [vmem:[%s3940_s1] ss:$16 sps:$4 sm:$0xff]  }
   0x2   :  { %1802 = vmatprep.subr.bf16.mxu0 %v2572_v0  ;;  %v2577_v3 = vld [vmem:[%s3940_s1 + $0x8] ss:$16 sps:$4 sm:$0xff]   ;;  %2007 = vmatprep.subr.bf16.mxu1 %v2574_v1  ;;  %v2578_v4 = vld [vmem:[%s3940_s1 + $0x24] ss:$16 sps:$4 sm:$0xff]   ;;  %v2580_v5 = vld [vmem:[%s3940_s1 + $0x2c] ss:$16 sps:$4 sm:$0xff]  }
   0x3   :  { %1803 = vmatpush1.bf16.msra.mxu0 %v2576_v2  ;;  %2008 = vmatpush1.bf16.msra.mxu1 %v2577_v3  ;;  %v2582_v6 = vld [vmem:[%s3940_s1 + $0x20] ss:$16 sps:$4 sm:$0xff]   ;;  %v2583_v7 = vld [vmem:[%s3940_s1 + $0x28] ss:$16 sps:$4 sm:$0xff]   ;;  %v2584_v8 = vld [vmem:[%s3940_s1 + $0x44] ss:$16 sps:$4 sm:$0xff]  }
   0x4   :  { %1804 = vmatprep.subr.bf16.mxu0 %v2578_v4  ;;  %2009 = vmatprep.subr.bf16.mxu1 %v2580_v5  ;;  %v2586_v9 = vld [vmem:[%s3940_s1 + $0x4c] ss:$16 sps:$4 sm:$0xff]   ;;  %v2588_v10 = vld [vmem:[%s3940_s1 + $0x40] ss:$16 sps:$4 sm:$0xff]   ;;  %v2589_v11 = vld [vmem:[%s3940_s1 + $0x48] ss:$16 sps:$4 sm:$0xff]  }
   0x5   :  { %v2590_v12 = vld [vmem:[%s3940_s1 + $0x64] ss:$16 sps:$4 sm:$0xff]   ;;  %v2592_v13 = vld [vmem:[%s3940_s1 + $0x6c] ss:$16 sps:$4 sm:$0xff]   ;;  %v2594_v14 = vld [vmem:[%s3940_s1 + $0x60] ss:$16 sps:$4 sm:$0xff]  }
   0x6   :  { %v2595_v15 = vld [vmem:[%s3940_s1 + $0x68] ss:$16 sps:$4 sm:$0xff]   ;;  %v2596_v16 = vld [vmem:[%s3940_s1 + $0x84] ss:$16 sps:$4 sm:$0xff]   ;;  %v2598_v17 = vld [vmem:[%s3940_s1 + $0x8c] ss:$16 sps:$4 sm:$0xff]  }
   0x7   :  { %1805 = vmatpush1.bf16.msra.mxu0 %v2582_v6  ;;  %2010 = vmatpush1.bf16.msra.mxu1 %v2583_v7  ;;  %v2600_v18 = vld [vmem:[%s3940_s1 + $0x80] ss:$16 sps:$4 sm:$0xff]   ;;  %v2601_v19 = vld [vmem:[%s3940_s1 + $0x88] ss:$16 sps:$4 sm:$0xff]   ;;  %v2602_v20 = vld [vmem:[%s3940_s1 + $0xa4] ss:$16 sps:$4 sm:$0xff]  }
   0x8   :  { %1806 = vmatprep.subr.bf16.mxu0 %v2584_v8  ;;  %2011 = vmatprep.subr.bf16.mxu1 %v2586_v9  ;;  %v2604_v21 = vld [vmem:[%s3940_s1 + $0xac] ss:$16 sps:$4 sm:$0xff]   ;;  %v2606_v22 = vld [vmem:[%s3940_s1 + $0xa0] ss:$16 sps:$4 sm:$0xff]   ;;  %v2607_v23 = vld [vmem:[%s3940_s1 + $0xa8] ss:$16 sps:$4 sm:$0xff]  }
   0x9   :  { %v2608_v24 = vld [vmem:[%s3940_s1 + $0xc4] ss:$16 sps:$4 sm:$0xff]   ;;  %v2610_v25 = vld [vmem:[%s3940_s1 + $0xcc] ss:$16 sps:$4 sm:$0xff]   ;;  %v2612_v26 = vld [vmem:[%s3940_s1 + $0xc0] ss:$16 sps:$4 sm:$0xff]  }
   0xa   :  { %v2613_v27 = vld [vmem:[%s3940_s1 + $0xc8] ss:$16 sps:$4 sm:$0xff]   ;;  %v2614_v28 = vld [vmem:[%s3940_s1 + $0xe4] ss:$16 sps:$4 sm:$0xff]   ;;  %v2616_v29 = vld [vmem:[%s3940_s1 + $0xec] ss:$16 sps:$4 sm:$0xff]  }
   0xb   :  { %1807 = vmatpush1.bf16.msra.mxu0 %v2588_v10  ;;  %2012 = vmatpush1.bf16.msra.mxu1 %v2589_v11  ;;  %v2618_v30 = vld [vmem:[%s3940_s1 + $0xe0] ss:$16 sps:$4 sm:$0xff]   ;;  %v2619_v31 = vld [vmem:[%s3940_s1 + $0xe8] ss:$16 sps:$4 sm:$0xff]   ;;  %v2620_v32 = vld [vmem:[%s3940_s1 + $0x104] ss:$16 sps:$4 sm:$0xff]  }
   0xc   :  { %1808 = vmatprep.subr.bf16.mxu0 %v2590_v12  ;;  %2013 = vmatprep.subr.bf16.mxu1 %v2592_v13  ;;  %v2622_v33 = vld [vmem:[%s3940_s1 + $0x10c] ss:$16 sps:$4 sm:$0xff]   ;;  %v2624_v34 = vld [vmem:[%s3940_s1 + $0x100] ss:$16 sps:$4 sm:$0xff]   ;;  %v2625_v35 = vld [vmem:[%s3940_s1 + $0x108] ss:$16 sps:$4 sm:$0xff]  }
   0xd   :  { %v2626_v36 = vld [vmem:[%s3940_s1 + $0x124] ss:$16 sps:$4 sm:$0xff]   ;;  %v2628_v37 = vld [vmem:[%s3940_s1 + $0x12c] ss:$16 sps:$4 sm:$0xff]   ;;  %v2630_v38 = vld [vmem:[%s3940_s1 + $0x120] ss:$16 sps:$4 sm:$0xff]  }
   0xe   :  { %v2631_v39 = vld [vmem:[%s3940_s1 + $0x128] ss:$16 sps:$4 sm:$0xff]   ;;  %v2632_v40 = vld [vmem:[%s3940_s1 + $0x144] ss:$16 sps:$4 sm:$0xff]   ;;  %v2634_v41 = vld [vmem:[%s3940_s1 + $0x14c] ss:$16 sps:$4 sm:$0xff]  }
   0xf   :  { %1809 = vmatpush1.bf16.msra.mxu0 %v2594_v14  ;;  %2014 = vmatpush1.bf16.msra.mxu1 %v2595_v15  ;;  %v2636_v42 = vld [vmem:[%s3940_s1 + $0x140] ss:$16 sps:$4 sm:$0xff]   ;;  %v2637_v43 = vld [vmem:[%s3940_s1 + $0x148] ss:$16 sps:$4 sm:$0xff]   ;;  %v2638_v44 = vld [vmem:[%s3940_s1 + $0x164] ss:$16 sps:$4 sm:$0xff]  }
  0x10   :  { %1810 = vmatprep.subr.bf16.mxu0 %v2596_v16  ;;  %2015 = vmatprep.subr.bf16.mxu1 %v2598_v17  ;;  %v2640_v45 = vld [vmem:[%s3940_s1 + $0x16c] ss:$16 sps:$4 sm:$0xff]   ;;  %v15_v46 = vld [vmem:[%s3941_s0] sm:$0xff]  ;;  %v2643_v49 = vld [vmem:[%s3940_s1 + $0x168] ss:$16 sps:$4 sm:$0xff]  }
  0x11   :  { %v2642_v47 = vld [vmem:[%s3940_s1 + $0x160] ss:$16 sps:$4 sm:$0xff]   ;;  %v2235_v48 = vcombine.high %v15_v46, %v15_v46  ;;  %v2644_v50 = vld [vmem:[%s3940_s1 + $0x184] ss:$16 sps:$4 sm:$0xff]   ;;  %v2646_v51 = vld [vmem:[%s3940_s1 + $0x18c] ss:$16 sps:$4 sm:$0xff]   ;;  %v2234_v4 = vcombine.low %v15_v46, %v15_v46 }
  0x12   :  { %v2648_v52 = vld [vmem:[%s3940_s1 + $0x180] ss:$16 sps:$4 sm:$0xff]   ;;  %v2649_v53 = vld [vmem:[%s3940_s1 + $0x188] ss:$16 sps:$4 sm:$0xff]   ;;  %v2650_v54 = vld [vmem:[%s3940_s1 + $0x1a4] ss:$16 sps:$4 sm:$0xff]  }
  0x13   :  { %1811 = vmatpush1.bf16.msra.mxu0 %v2600_v18  ;;  %2016 = vmatpush1.bf16.msra.mxu1 %v2601_v19  ;;  %v2652_v55 = vld [vmem:[%s3940_s1 + $0x1ac] ss:$16 sps:$4 sm:$0xff]   ;;  %v2654_v56 = vld [vmem:[%s3940_s1 + $0x1a0] ss:$16 sps:$4 sm:$0xff]   ;;  %v2655_v57 = vld [vmem:[%s3940_s1 + $0x1a8] ss:$16 sps:$4 sm:$0xff]  }
  0x14   :  { %1812 = vmatprep.subr.bf16.mxu0 %v2602_v20  ;;  %2017 = vmatprep.subr.bf16.mxu1 %v2604_v21  ;;  %v2656_v58 = vld [vmem:[%s3940_s1 + $0x1c4] ss:$16 sps:$4 sm:$0xff]   ;;  %v2658_v59 = vld [vmem:[%s3940_s1 + $0x1cc] ss:$16 sps:$4 sm:$0xff]   ;;  %v2660_v60 = vld [vmem:[%s3940_s1 + $0x1c0] ss:$16 sps:$4 sm:$0xff]  }
  0x15   :  { %1834 = vmatprep.mubr.bf16.mxu0 %v2235_v48  ;;  %2039 = vmatprep.mubr.bf16.mxu1 %v2235_v48  ;;  %v2661_v61 = vld [vmem:[%s3940_s1 + $0x1c8] ss:$16 sps:$4 sm:$0xff]   ;;  %v2662_v62 = vld [vmem:[%s3940_s1 + $0x1e4] ss:$16 sps:$4 sm:$0xff]   ;;  %v2664_v63 = vld [vmem:[%s3940_s1 + $0x1ec] ss:$16 sps:$4 sm:$0xff]  }
  0x16   :  { %v2666_v0 = vld [vmem:[%s3940_s1 + $0x1e0] ss:$16 sps:$4 sm:$0xff]   ;;  %v2667_v1 = vld [vmem:[%s3940_s1 + $0x1e8] ss:$16 sps:$4 sm:$0xff]   ;;  %v2672_v2 = vld [vmem:[%s3940_s1 + $0x204] ss:$16 sps:$4 sm:$0xff]  }
  0x17   :  { %1813 = vmatpush1.bf16.msra.mxu0 %v2606_v22  ;;  %2018 = vmatpush1.bf16.msra.mxu1 %v2607_v23  ;;  %v2675_v3 = vld [vmem:[%s3940_s1 + $0x20c] ss:$16 sps:$4 sm:$0xff]   ;;  %v2670_v5 = vld [vmem:[%s3940_s1 + $0x200] ss:$16 sps:$4 sm:$0xff]   ;;  %v2673_v6 = vld [vmem:[%s3940_s1 + $0x208] ss:$16 sps:$4 sm:$0xff]  }
  0x18   :  { %1814 = vmatprep.subr.bf16.mxu0 %v2608_v24  ;;  %2019 = vmatprep.subr.bf16.mxu1 %v2610_v25  ;;  %v2678_v7 = vld [vmem:[%s3940_s1 + $0x224] ss:$16 sps:$4 sm:$0xff]   ;;  %v2681_v8 = vld [vmem:[%s3940_s1 + $0x22c] ss:$16 sps:$4 sm:$0xff]   ;;  %v2676_v9 = vld [vmem:[%s3940_s1 + $0x220] ss:$16 sps:$4 sm:$0xff]  }
  0x19   :  { %v2679_v10 = vld [vmem:[%s3940_s1 + $0x228] ss:$16 sps:$4 sm:$0xff]   ;;  %v2684_v11 = vld [vmem:[%s3940_s1 + $0x244] ss:$16 sps:$4 sm:$0xff]   ;;  %v2687_v12 = vld [vmem:[%s3940_s1 + $0x24c] ss:$16 sps:$4 sm:$0xff]  }
  0x1a   :  { %v2682_v13 = vld [vmem:[%s3940_s1 + $0x240] ss:$16 sps:$4 sm:$0xff]   ;;  %v2685_v14 = vld [vmem:[%s3940_s1 + $0x248] ss:$16 sps:$4 sm:$0xff]   ;;  %v2690_v15 = vld [vmem:[%s3940_s1 + $0x264] ss:$16 sps:$4 sm:$0xff]  }
  0x1b   :  { %1815 = vmatpush1.bf16.msra.mxu0 %v2612_v26  ;;  %2020 = vmatpush1.bf16.msra.mxu1 %v2613_v27  ;;  %v2693_v16 = vld [vmem:[%s3940_s1 + $0x26c] ss:$16 sps:$4 sm:$0xff]   ;;  %v2688_v17 = vld [vmem:[%s3940_s1 + $0x260] ss:$16 sps:$4 sm:$0xff]   ;;  %v2691_v18 = vld [vmem:[%s3940_s1 + $0x268] ss:$16 sps:$4 sm:$0xff]  }
  0x1c   :  { %1816 = vmatprep.subr.bf16.mxu0 %v2614_v28  ;;  %2021 = vmatprep.subr.bf16.mxu1 %v2616_v29  ;;  %v2696_v19 = vld [vmem:[%s3940_s1 + $0x284] ss:$16 sps:$4 sm:$0xff]   ;;  %v2699_v20 = vld [vmem:[%s3940_s1 + $0x28c] ss:$16 sps:$4 sm:$0xff]   ;;  %v2694_v21 = vld [vmem:[%s3940_s1 + $0x280] ss:$16 sps:$4 sm:$0xff]  }
  0x1d   :  { %v2697_v22 = vld [vmem:[%s3940_s1 + $0x288] ss:$16 sps:$4 sm:$0xff]   ;;  %v2702_v23 = vld [vmem:[%s3940_s1 + $0x2a4] ss:$16 sps:$4 sm:$0xff]   ;;  %v2705_v24 = vld [vmem:[%s3940_s1 + $0x2ac] ss:$16 sps:$4 sm:$0xff]  }
  0x1e   :  { %v2700_v25 = vld [vmem:[%s3940_s1 + $0x2a0] ss:$16 sps:$4 sm:$0xff]   ;;  %v2703_v26 = vld [vmem:[%s3940_s1 + $0x2a8] ss:$16 sps:$4 sm:$0xff]   ;;  %v2708_v27 = vld [vmem:[%s3940_s1 + $0x2c4] ss:$16 sps:$4 sm:$0xff]  }
  0x1f   :  { %1817 = vmatpush1.bf16.msra.mxu0 %v2618_v30  ;;  %2022 = vmatpush1.bf16.msra.mxu1 %v2619_v31  ;;  %v2711_v28 = vld [vmem:[%s3940_s1 + $0x2cc] ss:$16 sps:$4 sm:$0xff]   ;;  %v2706_v31 = vld [vmem:[%s3940_s1 + $0x2c0] ss:$16 sps:$4 sm:$0xff]   ;;  %v2733_v48 = vld [vmem:[%s3940_s1 + $0x348] ss:$16 sps:$4 sm:$0xff]  }
  0x20   :  { %1818 = vmatprep.subr.bf16.mxu0 %v2620_v32  ;;  %2023 = vmatprep.subr.bf16.mxu1 %v2622_v33  ;;  %v3310_v29 = vld [vmem:[%s3941_s0 + $0x8] sm:$0xff]  ;;  %v2714_v33 = vld [vmem:[%s3940_s1 + $0x2e4] ss:$16 sps:$4 sm:$0xff]  }
  0x21   :  { %v2237_v30 = vcombine.high %v3310_v29, %v3310_v29  ;;  %v2709_v32 = vld [vmem:[%s3940_s1 + $0x2c8] ss:$16 sps:$4 sm:$0xff]   ;;  %v2735_v46 = vld [vmem:[%s3940_s1 + $0x34c] ss:$16 sps:$4 sm:$0xff]  }
  0x23   :  { %1819 = vmatpush1.bf16.msra.mxu0 %v2624_v34  ;;  %2024 = vmatpush1.bf16.msra.mxu1 %v2625_v35  ;;  %v2717_v34 = vld [vmem:[%s3940_s1 + $0x2ec] ss:$16 sps:$4 sm:$0xff]   ;;  %v2712_v35 = vld [vmem:[%s3940_s1 + $0x2e0] ss:$16 sps:$4 sm:$0xff]  }
  0x24   :  { %1820 = vmatprep.subr.bf16.mxu0 %v2626_v36  ;;  %2025 = vmatprep.subr.bf16.mxu1 %v2628_v37  ;;  %v2715_v36 = vld [vmem:[%s3940_s1 + $0x2e8] ss:$16 sps:$4 sm:$0xff]   ;;  %v2720_v37 = vld [vmem:[%s3940_s1 + $0x304] ss:$16 sps:$4 sm:$0xff]  }
  0x27   :  { %1821 = vmatpush1.bf16.msra.mxu0 %v2630_v38  ;;  %2026 = vmatpush1.bf16.msra.mxu1 %v2631_v39  ;;  %v2723_v38 = vld [vmem:[%s3940_s1 + $0x30c] ss:$16 sps:$4 sm:$0xff]   ;;  %v2718_v39 = vld [vmem:[%s3940_s1 + $0x300] ss:$16 sps:$4 sm:$0xff]  }
  0x28   :  { %1822 = vmatprep.subr.bf16.mxu0 %v2632_v40  ;;  %2027 = vmatprep.subr.bf16.mxu1 %v2634_v41  ;;  %v2721_v40 = vld [vmem:[%s3940_s1 + $0x308] ss:$16 sps:$4 sm:$0xff]   ;;  %v2726_v41 = vld [vmem:[%s3940_s1 + $0x324] ss:$16 sps:$4 sm:$0xff]  }
  0x2b   :  { %1823 = vmatpush1.bf16.msra.mxu0 %v2636_v42  ;;  %2028 = vmatpush1.bf16.msra.mxu1 %v2637_v43  ;;  %v2729_v42 = vld [vmem:[%s3940_s1 + $0x32c] ss:$16 sps:$4 sm:$0xff]   ;;  %v2724_v43 = vld [vmem:[%s3940_s1 + $0x320] ss:$16 sps:$4 sm:$0xff]  }
  0x2c   :  { %1824 = vmatprep.subr.bf16.mxu0 %v2638_v44  ;;  %2029 = vmatprep.subr.bf16.mxu1 %v2640_v45  ;;  %v2727_v44 = vld [vmem:[%s3940_s1 + $0x328] ss:$16 sps:$4 sm:$0xff]   ;;  %v2732_v45 = vld [vmem:[%s3940_s1 + $0x344] ss:$16 sps:$4 sm:$0xff]  }
  0x2f   :  { %1825 = vmatpush1.bf16.msra.mxu0 %v2642_v47  ;;  %2030 = vmatpush1.bf16.msra.mxu1 %v2643_v49  ;;  %v2730_v47 = vld [vmem:[%s3940_s1 + $0x340] ss:$16 sps:$4 sm:$0xff]   ;;  %v2738_v49 = vld [vmem:[%s3940_s1 + $0x364] ss:$16 sps:$4 sm:$0xff]  }
  0x30   :  { %1826 = vmatprep.subr.bf16.mxu0 %v2644_v50  ;;  %2031 = vmatprep.subr.bf16.mxu1 %v2646_v51  ;;  %v2741_v50 = vld [vmem:[%s3940_s1 + $0x36c] ss:$16 sps:$4 sm:$0xff]   ;;  %v2736_v51 = vld [vmem:[%s3940_s1 + $0x360] ss:$16 sps:$4 sm:$0xff]  }
  0x33   :  { %1827 = vmatpush1.bf16.msra.mxu0 %v2648_v52  ;;  %2032 = vmatpush1.bf16.msra.mxu1 %v2649_v53  ;;  %v2739_v52 = vld [vmem:[%s3940_s1 + $0x368] ss:$16 sps:$4 sm:$0xff]   ;;  %v2744_v53 = vld [vmem:[%s3940_s1 + $0x384] ss:$16 sps:$4 sm:$0xff]  }
  0x34   :  { %1828 = vmatprep.subr.bf16.mxu0 %v2650_v54  ;;  %2033 = vmatprep.subr.bf16.mxu1 %v2652_v55  ;;  %v2747_v54 = vld [vmem:[%s3940_s1 + $0x38c] ss:$16 sps:$4 sm:$0xff]   ;;  %v2742_v55 = vld [vmem:[%s3940_s1 + $0x380] ss:$16 sps:$4 sm:$0xff]  }
  0x37   :  { %1829 = vmatpush1.bf16.msra.mxu0 %v2654_v56  ;;  %2034 = vmatpush1.bf16.msra.mxu1 %v2655_v57  ;;  %v2745_v56 = vld [vmem:[%s3940_s1 + $0x388] ss:$16 sps:$4 sm:$0xff]   ;;  %v2750_v57 = vld [vmem:[%s3940_s1 + $0x3a4] ss:$16 sps:$4 sm:$0xff]  }
  0x38   :  { %1830 = vmatprep.subr.bf16.mxu0 %v2656_v58  ;;  %2035 = vmatprep.subr.bf16.mxu1 %v2658_v59  ;;  %v2753_v58 = vld [vmem:[%s3940_s1 + $0x3ac] ss:$16 sps:$4 sm:$0xff]   ;;  %v2748_v59 = vld [vmem:[%s3940_s1 + $0x3a0] ss:$16 sps:$4 sm:$0xff]  }
  0x3b   :  { %1831 = vmatpush1.bf16.msra.mxu0 %v2660_v60  ;;  %2036 = vmatpush1.bf16.msra.mxu1 %v2661_v61  ;;  %v2751_v60 = vld [vmem:[%s3940_s1 + $0x3a8] ss:$16 sps:$4 sm:$0xff]   ;;  %v2756_v61 = vld [vmem:[%s3940_s1 + $0x3c4] ss:$16 sps:$4 sm:$0xff]  }
  0x3c   :  { %1832 = vmatprep.subr.bf16.mxu0 %v2662_v62  ;;  %2037 = vmatprep.subr.bf16.mxu1 %v2664_v63  ;;  %v2759_v62 = vld [vmem:[%s3940_s1 + $0x3cc] ss:$16 sps:$4 sm:$0xff]   ;;  %v2754_v63 = vld [vmem:[%s3940_s1 + $0x3c0] ss:$16 sps:$4 sm:$0xff]  }
  0x3f   :  { %1833 = vmatpush1.bf16.msra.mxu0 %v2666_v0  ;;  %2038 = vmatpush1.bf16.msra.mxu1 %v2667_v1  ;;  %v2757_v0 = vld [vmem:[%s3940_s1 + $0x3c8] ss:$16 sps:$4 sm:$0xff]   ;;  %v2762_v1 = vld [vmem:[%s3940_s1 + $0x3e4] ss:$16 sps:$4 sm:$0xff]  }
  0x40   :  { %1843 = vmatprep.subr.bf16.mxu0 %v2672_v2  ;;  %2048 = vmatprep.subr.bf16.mxu1 %v2675_v3  ;;  %v2765_v2 = vld [vmem:[%s3940_s1 + $0x3ec] ss:$16 sps:$4 sm:$0xff]   ;;  %v2760_v3 = vld [vmem:[%s3940_s1 + $0x3e0] ss:$16 sps:$4 sm:$0xff]  }
  0x42   :  { %1835 = vmatmul.mubr.bf16.vlgmr.msra.gmra.mrb[0].mxu0 %v2234_v4  ;;  %2040 = vmatmul.mubr.bf16.vlgmr.msra.gmra.mrb[0].mxu1 %v2234_v4  ;;  %v2763_v4 = vld [vmem:[%s3940_s1 + $0x3e8] ss:$16 sps:$4 sm:$0xff]  }
  0x43   :  { %1844 = vmatpush1.bf16.msra.mxu0 %v2670_v5  ;;  %2049 = vmatpush1.bf16.msra.mxu1 %v2673_v6  ;;  %v2770_v5 = vld [vmem:[%s3940_s1 + $0x404] ss:$16 sps:$4 sm:$0xff]   ;;  %v2773_v6 = vld [vmem:[%s3940_s1 + $0x40c] ss:$16 sps:$4 sm:$0xff]  }
  0x44   :  { %1845 = vmatprep.subr.bf16.mxu0 %v2678_v7  ;;  %2050 = vmatprep.subr.bf16.mxu1 %v2681_v8  ;;  %v2236_v7 = vcombine.low %v3310_v29, %v3310_v29  ;;  %v2768_v8 = vld [vmem:[%s3940_s1 + $0x400] ss:$16 sps:$4 sm:$0xff]   ;;  %v2803_v29 = vld [vmem:[%s3940_s1 + $0x4ac] ss:$16 sps:$4 sm:$0xff]  }
  0x45   :  { %1875 = vmatprep.mubr.bf16.mxu0 %v2237_v30  ;;  %2080 = vmatprep.mubr.bf16.mxu1 %v2237_v30  ;;  %v2798_v30 = vld [vmem:[%s3940_s1 + $0x4a0] ss:$16 sps:$4 sm:$0xff]  }
  0x47   :  { %1846 = vmatpush1.bf16.msra.mxu0 %v2676_v9  ;;  %2051 = vmatpush1.bf16.msra.mxu1 %v2679_v10  ;;  %v2771_v9 = vld [vmem:[%s3940_s1 + $0x408] ss:$16 sps:$4 sm:$0xff]   ;;  %v2776_v10 = vld [vmem:[%s3940_s1 + $0x424] ss:$16 sps:$4 sm:$0xff]  }
  0x48   :  { %1847 = vmatprep.subr.bf16.mxu0 %v2684_v11  ;;  %2052 = vmatprep.subr.bf16.mxu1 %v2687_v12  ;;  %v3448_v11 = vld [vmem:[%s3941_s0 + $0x10] sm:$0xff]  ;;  %v2779_v12 = vld [vmem:[%s3940_s1 + $0x42c] ss:$16 sps:$4 sm:$0xff]  }
  0x4b   :  { %1848 = vmatpush1.bf16.msra.mxu0 %v2682_v13  ;;  %2053 = vmatpush1.bf16.msra.mxu1 %v2685_v14  ;;  %v2239_v13 = vcombine.high %v3448_v11, %v3448_v11  ;;  %v2774_v14 = vld [vmem:[%s3940_s1 + $0x420] ss:$16 sps:$4 sm:$0xff]  }
  0x4c   :  { %1849 = vmatprep.subr.bf16.mxu0 %v2690_v15  ;;  %2054 = vmatprep.subr.bf16.mxu1 %v2693_v16  ;;  %v2777_v15 = vld [vmem:[%s3940_s1 + $0x428] ss:$16 sps:$4 sm:$0xff]   ;;  %v2782_v16 = vld [vmem:[%s3940_s1 + $0x444] ss:$16 sps:$4 sm:$0xff]  }
  0x4f   :  { %1850 = vmatpush1.bf16.msra.mxu0 %v2688_v17  ;;  %2055 = vmatpush1.bf16.msra.mxu1 %v2691_v18  ;;  %v2785_v17 = vld [vmem:[%s3940_s1 + $0x44c] ss:$16 sps:$4 sm:$0xff]   ;;  %v2780_v18 = vld [vmem:[%s3940_s1 + $0x440] ss:$16 sps:$4 sm:$0xff]  }
  0x50   :  { %1851 = vmatprep.subr.bf16.mxu0 %v2696_v19  ;;  %2056 = vmatprep.subr.bf16.mxu1 %v2699_v20  ;;  %v2783_v19 = vld [vmem:[%s3940_s1 + $0x448] ss:$16 sps:$4 sm:$0xff]   ;;  %v2788_v20 = vld [vmem:[%s3940_s1 + $0x464] ss:$16 sps:$4 sm:$0xff]  }
  0x53   :  { %1852 = vmatpush1.bf16.msra.mxu0 %v2694_v21  ;;  %2057 = vmatpush1.bf16.msra.mxu1 %v2697_v22  ;;  %v2791_v21 = vld [vmem:[%s3940_s1 + $0x46c] ss:$16 sps:$4 sm:$0xff]   ;;  %v2786_v22 = vld [vmem:[%s3940_s1 + $0x460] ss:$16 sps:$4 sm:$0xff]  }
  0x54   :  { %1853 = vmatprep.subr.bf16.mxu0 %v2702_v23  ;;  %2058 = vmatprep.subr.bf16.mxu1 %v2705_v24  ;;  %v2789_v23 = vld [vmem:[%s3940_s1 + $0x468] ss:$16 sps:$4 sm:$0xff]   ;;  %v2794_v24 = vld [vmem:[%s3940_s1 + $0x484] ss:$16 sps:$4 sm:$0xff]  }
  0x57   :  { %1854 = vmatpush1.bf16.msra.mxu0 %v2700_v25  ;;  %2059 = vmatpush1.bf16.msra.mxu1 %v2703_v26  ;;  %v2797_v25 = vld [vmem:[%s3940_s1 + $0x48c] ss:$16 sps:$4 sm:$0xff]   ;;  %v2792_v26 = vld [vmem:[%s3940_s1 + $0x480] ss:$16 sps:$4 sm:$0xff]  }
  0x58   :  { %1855 = vmatprep.subr.bf16.mxu0 %v2708_v27  ;;  %2060 = vmatprep.subr.bf16.mxu1 %v2711_v28  ;;  %v2795_v27 = vld [vmem:[%s3940_s1 + $0x488] ss:$16 sps:$4 sm:$0xff]   ;;  %v2800_v28 = vld [vmem:[%s3940_s1 + $0x4a4] ss:$16 sps:$4 sm:$0xff]  }
  0x5b   :  { %1856 = vmatpush1.bf16.msra.mxu0 %v2706_v31  ;;  %2061 = vmatpush1.bf16.msra.mxu1 %v2709_v32  ;;  %v2801_v31 = vld [vmem:[%s3940_s1 + $0x4a8] ss:$16 sps:$4 sm:$0xff]   ;;  %v2806_v32 = vld [vmem:[%s3940_s1 + $0x4c4] ss:$16 sps:$4 sm:$0xff]  }
  0x5c   :  { %1857 = vmatprep.subr.bf16.mxu0 %v2714_v33  ;;  %2062 = vmatprep.subr.bf16.mxu1 %v2717_v34  ;;  %v2809_v33 = vld [vmem:[%s3940_s1 + $0x4cc] ss:$16 sps:$4 sm:$0xff]   ;;  %v2804_v34 = vld [vmem:[%s3940_s1 + $0x4c0] ss:$16 sps:$4 sm:$0xff]  }
  0x5f   :  { %1858 = vmatpush1.bf16.msra.mxu0 %v2712_v35  ;;  %2063 = vmatpush1.bf16.msra.mxu1 %v2715_v36  ;;  %v2807_v35 = vld [vmem:[%s3940_s1 + $0x4c8] ss:$16 sps:$4 sm:$0xff]   ;;  %v2812_v36 = vld [vmem:[%s3940_s1 + $0x4e4] ss:$16 sps:$4 sm:$0xff]  }
  0x60   :  { %1859 = vmatprep.subr.bf16.mxu0 %v2720_v37  ;;  %2064 = vmatprep.subr.bf16.mxu1 %v2723_v38  ;;  %v2815_v37 = vld [vmem:[%s3940_s1 + $0x4ec] ss:$16 sps:$4 sm:$0xff]   ;;  %v2810_v38 = vld [vmem:[%s3940_s1 + $0x4e0] ss:$16 sps:$4 sm:$0xff]  }
  0x63   :  { %1860 = vmatpush1.bf16.msra.mxu0 %v2718_v39  ;;  %2065 = vmatpush1.bf16.msra.mxu1 %v2721_v40  ;;  %v2813_v39 = vld [vmem:[%s3940_s1 + $0x4e8] ss:$16 sps:$4 sm:$0xff]   ;;  %v2818_v40 = vld [vmem:[%s3940_s1 + $0x504] ss:$16 sps:$4 sm:$0xff]  }
  0x64   :  { %1861 = vmatprep.subr.bf16.mxu0 %v2726_v41  ;;  %2066 = vmatprep.subr.bf16.mxu1 %v2729_v42  ;;  %v2821_v41 = vld [vmem:[%s3940_s1 + $0x50c] ss:$16 sps:$4 sm:$0xff]   ;;  %v2816_v42 = vld [vmem:[%s3940_s1 + $0x500] ss:$16 sps:$4 sm:$0xff]  }
  0x67   :  { %1862 = vmatpush1.bf16.msra.mxu0 %v2724_v43  ;;  %2067 = vmatpush1.bf16.msra.mxu1 %v2727_v44  ;;  %v2819_v43 = vld [vmem:[%s3940_s1 + $0x508] ss:$16 sps:$4 sm:$0xff]   ;;  %v2824_v44 = vld [vmem:[%s3940_s1 + $0x524] ss:$16 sps:$4 sm:$0xff]  }
  0x68   :  { %1863 = vmatprep.subr.bf16.mxu0 %v2732_v45  ;;  %2068 = vmatprep.subr.bf16.mxu1 %v2735_v46  ;;  %v2827_v45 = vld [vmem:[%s3940_s1 + $0x52c] ss:$16 sps:$4 sm:$0xff]   ;;  %v2822_v46 = vld [vmem:[%s3940_s1 + $0x520] ss:$16 sps:$4 sm:$0xff]  }
  0x6b   :  { %1864 = vmatpush1.bf16.msra.mxu0 %v2730_v47  ;;  %2069 = vmatpush1.bf16.msra.mxu1 %v2733_v48  ;;  %v2825_v47 = vld [vmem:[%s3940_s1 + $0x528] ss:$16 sps:$4 sm:$0xff]   ;;  %v2830_v48 = vld [vmem:[%s3940_s1 + $0x544] ss:$16 sps:$4 sm:$0xff]  }
  0x6c   :  { %1865 = vmatprep.subr.bf16.mxu0 %v2738_v49  ;;  %2070 = vmatprep.subr.bf16.mxu1 %v2741_v50  ;;  %v2833_v49 = vld [vmem:[%s3940_s1 + $0x54c] ss:$16 sps:$4 sm:$0xff]   ;;  %v2828_v50 = vld [vmem:[%s3940_s1 + $0x540] ss:$16 sps:$4 sm:$0xff]  }
  0x6f   :  { %1866 = vmatpush1.bf16.msra.mxu0 %v2736_v51  ;;  %2071 = vmatpush1.bf16.msra.mxu1 %v2739_v52  ;;  %v2831_v51 = vld [vmem:[%s3940_s1 + $0x548] ss:$16 sps:$4 sm:$0xff]   ;;  %v2836_v52 = vld [vmem:[%s3940_s1 + $0x564] ss:$16 sps:$4 sm:$0xff]  }
  0x70   :  { %1867 = vmatprep.subr.bf16.mxu0 %v2744_v53  ;;  %2072 = vmatprep.subr.bf16.mxu1 %v2747_v54  ;;  %v2839_v53 = vld [vmem:[%s3940_s1 + $0x56c] ss:$16 sps:$4 sm:$0xff]   ;;  %v2834_v54 = vld [vmem:[%s3940_s1 + $0x560] ss:$16 sps:$4 sm:$0xff]  }
  0x73   :  { %1868 = vmatpush1.bf16.msra.mxu0 %v2742_v55  ;;  %2073 = vmatpush1.bf16.msra.mxu1 %v2745_v56  ;;  %v2837_v55 = vld [vmem:[%s3940_s1 + $0x568] ss:$16 sps:$4 sm:$0xff]   ;;  %v2842_v56 = vld [vmem:[%s3940_s1 + $0x584] ss:$16 sps:$4 sm:$0xff]  }
  0x74   :  { %1869 = vmatprep.subr.bf16.mxu0 %v2750_v57  ;;  %2074 = vmatprep.subr.bf16.mxu1 %v2753_v58  ;;  %v2845_v57 = vld [vmem:[%s3940_s1 + $0x58c] ss:$16 sps:$4 sm:$0xff]   ;;  %v2840_v58 = vld [vmem:[%s3940_s1 + $0x580] ss:$16 sps:$4 sm:$0xff]  }
  0x77   :  { %1870 = vmatpush1.bf16.msra.mxu0 %v2748_v59  ;;  %2075 = vmatpush1.bf16.msra.mxu1 %v2751_v60  ;;  %v2843_v59 = vld [vmem:[%s3940_s1 + $0x588] ss:$16 sps:$4 sm:$0xff]   ;;  %v2848_v60 = vld [vmem:[%s3940_s1 + $0x5a4] ss:$16 sps:$4 sm:$0xff]  }
  0x78   :  { %1871 = vmatprep.subr.bf16.mxu0 %v2756_v61  ;;  %2076 = vmatprep.subr.bf16.mxu1 %v2759_v62  ;;  %v2851_v61 = vld [vmem:[%s3940_s1 + $0x5ac] ss:$16 sps:$4 sm:$0xff]   ;;  %v2846_v62 = vld [vmem:[%s3940_s1 + $0x5a0] ss:$16 sps:$4 sm:$0xff]  }
  0x7b   :  { %1872 = vmatpush1.bf16.msra.mxu0 %v2754_v63  ;;  %2077 = vmatpush1.bf16.msra.mxu1 %v2757_v0  ;;  %v2849_v63 = vld [vmem:[%s3940_s1 + $0x5a8] ss:$16 sps:$4 sm:$0xff]   ;;  %v2854_v0 = vld [vmem:[%s3940_s1 + $0x5c4] ss:$16 sps:$4 sm:$0xff]  }
  0x7c   :  { %1873 = vmatprep.subr.bf16.mxu0 %v2762_v1  ;;  %2078 = vmatprep.subr.bf16.mxu1 %v2765_v2  ;;  %v2857_v1 = vld [vmem:[%s3940_s1 + $0x5cc] ss:$16 sps:$4 sm:$0xff]   ;;  %v2852_v2 = vld [vmem:[%s3940_s1 + $0x5c0] ss:$16 sps:$4 sm:$0xff]  }
  0x7f   :  { %1874 = vmatpush1.bf16.msra.mxu0 %v2760_v3  ;;  %2079 = vmatpush1.bf16.msra.mxu1 %v2763_v4  ;;  %v2855_v3 = vld [vmem:[%s3940_s1 + $0x5c8] ss:$16 sps:$4 sm:$0xff]   ;;  %v2860_v4 = vld [vmem:[%s3940_s1 + $0x5e4] ss:$16 sps:$4 sm:$0xff]  }
  0x80   :  { %1884 = vmatprep.subr.bf16.mxu0 %v2770_v5  ;;  %2089 = vmatprep.subr.bf16.mxu1 %v2773_v6  ;;  %v2863_v5 = vld [vmem:[%s3940_s1 + $0x5ec] ss:$16 sps:$4 sm:$0xff]   ;;  %v2858_v6 = vld [vmem:[%s3940_s1 + $0x5e0] ss:$16 sps:$4 sm:$0xff]  }
  0x82   :  { %1876 = vmatmul.mubr.bf16.vlgmr.msra.gmra.mrb[0].mxu0 %v2236_v7  ;;  %2081 = vmatmul.mubr.bf16.vlgmr.msra.gmra.mrb[0].mxu1 %v2236_v7  ;;  %v2861_v7 = vld [vmem:[%s3940_s1 + $0x5e8] ss:$16 sps:$4 sm:$0xff]  }
  0x83   :  { %1885 = vmatpush1.bf16.msra.mxu0 %v2768_v8  ;;  %2090 = vmatpush1.bf16.msra.mxu1 %v2771_v9  ;;  %v2868_v8 = vld [vmem:[%s3940_s1 + $0x604] ss:$16 sps:$4 sm:$0xff]   ;;  %v2871_v9 = vld [vmem:[%s3940_s1 + $0x60c] ss:$16 sps:$4 sm:$0xff]  }
  0x84   :  { %1886 = vmatprep.subr.bf16.mxu0 %v2776_v10  ;;  %2091 = vmatprep.subr.bf16.mxu1 %v2779_v12  ;;  %v2238_v10 = vcombine.low %v3448_v11, %v3448_v11  ;;  %v2866_v12 = vld [vmem:[%s3940_s1 + $0x600] ss:$16 sps:$4 sm:$0xff]   ;;  %v2874_v11 = vld [vmem:[%s3940_s1 + $0x624] ss:$16 sps:$4 sm:$0xff]  }
  0x85   :  { %1916 = vmatprep.mubr.bf16.mxu0 %v2239_v13  ;;  %2121 = vmatprep.mubr.bf16.mxu1 %v2239_v13  ;;  %v3643_v13 = vld [vmem:[%s3941_s0 + $0x18] sm:$0xff] }
  0x87   :  { %1887 = vmatpush1.bf16.msra.mxu0 %v2774_v14  ;;  %2092 = vmatpush1.bf16.msra.mxu1 %v2777_v15  ;;  %v2869_v14 = vld [vmem:[%s3940_s1 + $0x608] ss:$16 sps:$4 sm:$0xff]   ;;  %v2877_v15 = vld [vmem:[%s3940_s1 + $0x62c] ss:$16 sps:$4 sm:$0xff]  }
  0x88   :  { %1888 = vmatprep.subr.bf16.mxu0 %v2782_v16  ;;  %2093 = vmatprep.subr.bf16.mxu1 %v2785_v17  ;;  %v2241_v16 = vcombine.high %v3643_v13, %v3643_v13  ;;  %v2872_v17 = vld [vmem:[%s3940_s1 + $0x620] ss:$16 sps:$4 sm:$0xff]  }
  0x8b   :  { %1889 = vmatpush1.bf16.msra.mxu0 %v2780_v18  ;;  %2094 = vmatpush1.bf16.msra.mxu1 %v2783_v19  ;;  %v2875_v18 = vld [vmem:[%s3940_s1 + $0x628] ss:$16 sps:$4 sm:$0xff]   ;;  %v2880_v19 = vld [vmem:[%s3940_s1 + $0x644] ss:$16 sps:$4 sm:$0xff]  }
  0x8c   :  { %1890 = vmatprep.subr.bf16.mxu0 %v2788_v20  ;;  %2095 = vmatprep.subr.bf16.mxu1 %v2791_v21  ;;  %v2883_v20 = vld [vmem:[%s3940_s1 + $0x64c] ss:$16 sps:$4 sm:$0xff]   ;;  %v2878_v21 = vld [vmem:[%s3940_s1 + $0x640] ss:$16 sps:$4 sm:$0xff]  }
  0x8f   :  { %1891 = vmatpush1.bf16.msra.mxu0 %v2786_v22  ;;  %2096 = vmatpush1.bf16.msra.mxu1 %v2789_v23  ;;  %v2881_v22 = vld [vmem:[%s3940_s1 + $0x648] ss:$16 sps:$4 sm:$0xff]   ;;  %v2886_v23 = vld [vmem:[%s3940_s1 + $0x664] ss:$16 sps:$4 sm:$0xff]  }
  0x90   :  { %1892 = vmatprep.subr.bf16.mxu0 %v2794_v24  ;;  %2097 = vmatprep.subr.bf16.mxu1 %v2797_v25  ;;  %v2889_v24 = vld [vmem:[%s3940_s1 + $0x66c] ss:$16 sps:$4 sm:$0xff]   ;;  %v2884_v25 = vld [vmem:[%s3940_s1 + $0x660] ss:$16 sps:$4 sm:$0xff]  }
  0x93   :  { %1893 = vmatpush1.bf16.msra.mxu0 %v2792_v26  ;;  %2098 = vmatpush1.bf16.msra.mxu1 %v2795_v27  ;;  %v2887_v26 = vld [vmem:[%s3940_s1 + $0x668] ss:$16 sps:$4 sm:$0xff]   ;;  %v2892_v27 = vld [vmem:[%s3940_s1 + $0x684] ss:$16 sps:$4 sm:$0xff]  }
  0x94   :  { %1894 = vmatprep.subr.bf16.mxu0 %v2800_v28  ;;  %2099 = vmatprep.subr.bf16.mxu1 %v2803_v29  ;;  %v2895_v28 = vld [vmem:[%s3940_s1 + $0x68c] ss:$16 sps:$4 sm:$0xff]   ;;  %v2890_v29 = vld [vmem:[%s3940_s1 + $0x680] ss:$16 sps:$4 sm:$0xff]  }
  0x97   :  { %1895 = vmatpush1.bf16.msra.mxu0 %v2798_v30  ;;  %2100 = vmatpush1.bf16.msra.mxu1 %v2801_v31  ;;  %v2893_v30 = vld [vmem:[%s3940_s1 + $0x688] ss:$16 sps:$4 sm:$0xff]   ;;  %v2898_v31 = vld [vmem:[%s3940_s1 + $0x6a4] ss:$16 sps:$4 sm:$0xff]  }
  0x98   :  { %1896 = vmatprep.subr.bf16.mxu0 %v2806_v32  ;;  %2101 = vmatprep.subr.bf16.mxu1 %v2809_v33  ;;  %v2901_v32 = vld [vmem:[%s3940_s1 + $0x6ac] ss:$16 sps:$4 sm:$0xff]   ;;  %v2896_v33 = vld [vmem:[%s3940_s1 + $0x6a0] ss:$16 sps:$4 sm:$0xff]  }
  0x9b   :  { %1897 = vmatpush1.bf16.msra.mxu0 %v2804_v34  ;;  %2102 = vmatpush1.bf16.msra.mxu1 %v2807_v35  ;;  %v2899_v34 = vld [vmem:[%s3940_s1 + $0x6a8] ss:$16 sps:$4 sm:$0xff]   ;;  %v2904_v35 = vld [vmem:[%s3940_s1 + $0x6c4] ss:$16 sps:$4 sm:$0xff]  }
  0x9c   :  { %1898 = vmatprep.subr.bf16.mxu0 %v2812_v36  ;;  %2103 = vmatprep.subr.bf16.mxu1 %v2815_v37  ;;  %v2907_v36 = vld [vmem:[%s3940_s1 + $0x6cc] ss:$16 sps:$4 sm:$0xff]   ;;  %v2902_v37 = vld [vmem:[%s3940_s1 + $0x6c0] ss:$16 sps:$4 sm:$0xff]  }
  0x9f   :  { %1899 = vmatpush1.bf16.msra.mxu0 %v2810_v38  ;;  %2104 = vmatpush1.bf16.msra.mxu1 %v2813_v39  ;;  %v2905_v38 = vld [vmem:[%s3940_s1 + $0x6c8] ss:$16 sps:$4 sm:$0xff]   ;;  %v2910_v39 = vld [vmem:[%s3940_s1 + $0x6e4] ss:$16 sps:$4 sm:$0xff]  }
  0xa0   :  { %1900 = vmatprep.subr.bf16.mxu0 %v2818_v40  ;;  %2105 = vmatprep.subr.bf16.mxu1 %v2821_v41  ;;  %v2913_v40 = vld [vmem:[%s3940_s1 + $0x6ec] ss:$16 sps:$4 sm:$0xff]   ;;  %v2908_v41 = vld [vmem:[%s3940_s1 + $0x6e0] ss:$16 sps:$4 sm:$0xff]  }
  0xa3   :  { %1901 = vmatpush1.bf16.msra.mxu0 %v2816_v42  ;;  %2106 = vmatpush1.bf16.msra.mxu1 %v2819_v43  ;;  %v2911_v42 = vld [vmem:[%s3940_s1 + $0x6e8] ss:$16 sps:$4 sm:$0xff]   ;;  %v2916_v43 = vld [vmem:[%s3940_s1 + $0x704] ss:$16 sps:$4 sm:$0xff]  }
  0xa4   :  { %1902 = vmatprep.subr.bf16.mxu0 %v2824_v44  ;;  %2107 = vmatprep.subr.bf16.mxu1 %v2827_v45  ;;  %v2919_v44 = vld [vmem:[%s3940_s1 + $0x70c] ss:$16 sps:$4 sm:$0xff]   ;;  %v2914_v45 = vld [vmem:[%s3940_s1 + $0x700] ss:$16 sps:$4 sm:$0xff]  }
  0xa7   :  { %1903 = vmatpush1.bf16.msra.mxu0 %v2822_v46  ;;  %2108 = vmatpush1.bf16.msra.mxu1 %v2825_v47  ;;  %v2917_v46 = vld [vmem:[%s3940_s1 + $0x708] ss:$16 sps:$4 sm:$0xff]   ;;  %v2922_v47 = vld [vmem:[%s3940_s1 + $0x724] ss:$16 sps:$4 sm:$0xff]  }
  0xa8   :  { %1904 = vmatprep.subr.bf16.mxu0 %v2830_v48  ;;  %2109 = vmatprep.subr.bf16.mxu1 %v2833_v49  ;;  %v2925_v48 = vld [vmem:[%s3940_s1 + $0x72c] ss:$16 sps:$4 sm:$0xff]   ;;  %v2920_v49 = vld [vmem:[%s3940_s1 + $0x720] ss:$16 sps:$4 sm:$0xff]  }
  0xab   :  { %1905 = vmatpush1.bf16.msra.mxu0 %v2828_v50  ;;  %2110 = vmatpush1.bf16.msra.mxu1 %v2831_v51  ;;  %v2923_v50 = vld [vmem:[%s3940_s1 + $0x728] ss:$16 sps:$4 sm:$0xff]   ;;  %v2928_v51 = vld [vmem:[%s3940_s1 + $0x744] ss:$16 sps:$4 sm:$0xff]  }
  0xac   :  { %1906 = vmatprep.subr.bf16.mxu0 %v2836_v52  ;;  %2111 = vmatprep.subr.bf16.mxu1 %v2839_v53  ;;  %v2931_v52 = vld [vmem:[%s3940_s1 + $0x74c] ss:$16 sps:$4 sm:$0xff]   ;;  %v2926_v53 = vld [vmem:[%s3940_s1 + $0x740] ss:$16 sps:$4 sm:$0xff]  }
  0xaf   :  { %1907 = vmatpush1.bf16.msra.mxu0 %v2834_v54  ;;  %2112 = vmatpush1.bf16.msra.mxu1 %v2837_v55  ;;  %v2929_v54 = vld [vmem:[%s3940_s1 + $0x748] ss:$16 sps:$4 sm:$0xff]   ;;  %v2934_v55 = vld [vmem:[%s3940_s1 + $0x764] ss:$16 sps:$4 sm:$0xff]  }
  0xb0   :  { %1908 = vmatprep.subr.bf16.mxu0 %v2842_v56  ;;  %2113 = vmatprep.subr.bf16.mxu1 %v2845_v57  ;;  %v2937_v56 = vld [vmem:[%s3940_s1 + $0x76c] ss:$16 sps:$4 sm:$0xff]   ;;  %v2932_v57 = vld [vmem:[%s3940_s1 + $0x760] ss:$16 sps:$4 sm:$0xff]  }
  0xb3   :  { %1909 = vmatpush1.bf16.msra.mxu0 %v2840_v58  ;;  %2114 = vmatpush1.bf16.msra.mxu1 %v2843_v59  ;;  %v2935_v58 = vld [vmem:[%s3940_s1 + $0x768] ss:$16 sps:$4 sm:$0xff]   ;;  %v2940_v59 = vld [vmem:[%s3940_s1 + $0x784] ss:$16 sps:$4 sm:$0xff]  }
  0xb4   :  { %1910 = vmatprep.subr.bf16.mxu0 %v2848_v60  ;;  %2115 = vmatprep.subr.bf16.mxu1 %v2851_v61  ;;  %v2943_v60 = vld [vmem:[%s3940_s1 + $0x78c] ss:$16 sps:$4 sm:$0xff]   ;;  %v2938_v61 = vld [vmem:[%s3940_s1 + $0x780] ss:$16 sps:$4 sm:$0xff]  }
  0xb7   :  { %1911 = vmatpush1.bf16.msra.mxu0 %v2846_v62  ;;  %2116 = vmatpush1.bf16.msra.mxu1 %v2849_v63  ;;  %v2941_v62 = vld [vmem:[%s3940_s1 + $0x788] ss:$16 sps:$4 sm:$0xff]   ;;  %v2946_v63 = vld [vmem:[%s3940_s1 + $0x7a4] ss:$16 sps:$4 sm:$0xff]  }
  0xb8   :  { %1912 = vmatprep.subr.bf16.mxu0 %v2854_v0  ;;  %2117 = vmatprep.subr.bf16.mxu1 %v2857_v1  ;;  %v2949_v0 = vld [vmem:[%s3940_s1 + $0x7ac] ss:$16 sps:$4 sm:$0xff]   ;;  %v2944_v1 = vld [vmem:[%s3940_s1 + $0x7a0] ss:$16 sps:$4 sm:$0xff]  }
  0xbb   :  { %1913 = vmatpush1.bf16.msra.mxu0 %v2852_v2  ;;  %2118 = vmatpush1.bf16.msra.mxu1 %v2855_v3  ;;  %v2947_v2 = vld [vmem:[%s3940_s1 + $0x7a8] ss:$16 sps:$4 sm:$0xff]   ;;  %v2952_v3 = vld [vmem:[%s3940_s1 + $0x7c4] ss:$16 sps:$4 sm:$0xff]  }
  0xbc   :  { %1914 = vmatprep.subr.bf16.mxu0 %v2860_v4  ;;  %2119 = vmatprep.subr.bf16.mxu1 %v2863_v5  ;;  %v2955_v4 = vld [vmem:[%s3940_s1 + $0x7cc] ss:$16 sps:$4 sm:$0xff]   ;;  %v2950_v5 = vld [vmem:[%s3940_s1 + $0x7c0] ss:$16 sps:$4 sm:$0xff]  }
  0xbf   :  { %1915 = vmatpush1.bf16.msra.mxu0 %v2858_v6  ;;  %2120 = vmatpush1.bf16.msra.mxu1 %v2861_v7  ;;  %v2953_v6 = vld [vmem:[%s3940_s1 + $0x7c8] ss:$16 sps:$4 sm:$0xff]   ;;  %v2958_v7 = vld [vmem:[%s3940_s1 + $0x7e4] ss:$16 sps:$4 sm:$0xff]  }
  0xc0   :  { %1925 = vmatprep.subr.bf16.mxu0 %v2868_v8  ;;  %2130 = vmatprep.subr.bf16.mxu1 %v2871_v9  ;;  %v2961_v8 = vld [vmem:[%s3940_s1 + $0x7ec] ss:$16 sps:$4 sm:$0xff]   ;;  %v2956_v9 = vld [vmem:[%s3940_s1 + $0x7e0] ss:$16 sps:$4 sm:$0xff]  }
  0xc2   :  { %1917 = vmatmul.mubr.bf16.vlgmr.msra.gmra.mrb[0].mxu0 %v2238_v10  ;;  %2122 = vmatmul.mubr.bf16.vlgmr.msra.gmra.mrb[0].mxu1 %v2238_v10  ;;  %v2959_v10 = vld [vmem:[%s3940_s1 + $0x7e8] ss:$16 sps:$4 sm:$0xff]  }
  0xc3   :  { %1926 = vmatpush1.bf16.msra.mxu0 %v2866_v12  ;;  %2131 = vmatpush1.bf16.msra.mxu1 %v2869_v14  ;;  %v2966_v12 = vld [vmem:[%s3940_s1 + $0x804] ss:$16 sps:$4 sm:$0xff]   ;;  %v2969_v14 = vld [vmem:[%s3940_s1 + $0x80c] ss:$16 sps:$4 sm:$0xff]  }
  0xc4   :  { %1927 = vmatprep.subr.bf16.mxu0 %v2874_v11  ;;  %2132 = vmatprep.subr.bf16.mxu1 %v2877_v15  ;;  %v2240_v11 = vcombine.low %v3643_v13, %v3643_v13  ;;  %v2964_v15 = vld [vmem:[%s3940_s1 + $0x800] ss:$16 sps:$4 sm:$0xff]   ;;  %v2975_v13 = vld [vmem:[%s3940_s1 + $0x82c] ss:$16 sps:$4 sm:$0xff]  }
  0xc5   :  { %1957 = vmatprep.mubr.bf16.mxu0 %v2241_v16  ;;  %2162 = vmatprep.mubr.bf16.mxu1 %v2241_v16  ;;  %v2967_v16 = vld [vmem:[%s3940_s1 + $0x808] ss:$16 sps:$4 sm:$0xff]  }
  0xc7   :  { %1928 = vmatpush1.bf16.msra.mxu0 %v2872_v17  ;;  %2133 = vmatpush1.bf16.msra.mxu1 %v2875_v18  ;;  %v2972_v17 = vld [vmem:[%s3940_s1 + $0x824] ss:$16 sps:$4 sm:$0xff]   ;;  %v2970_v18 = vld [vmem:[%s3940_s1 + $0x820] ss:$16 sps:$4 sm:$0xff]  }
  0xc8   :  { %1929 = vmatprep.subr.bf16.mxu0 %v2880_v19  ;;  %2134 = vmatprep.subr.bf16.mxu1 %v2883_v20  ;;  %v2973_v19 = vld [vmem:[%s3940_s1 + $0x828] ss:$16 sps:$4 sm:$0xff]   ;;  %v2978_v20 = vld [vmem:[%s3940_s1 + $0x844] ss:$16 sps:$4 sm:$0xff]  }
  0xcb   :  { %1930 = vmatpush1.bf16.msra.mxu0 %v2878_v21  ;;  %2135 = vmatpush1.bf16.msra.mxu1 %v2881_v22  ;;  %v2981_v21 = vld [vmem:[%s3940_s1 + $0x84c] ss:$16 sps:$4 sm:$0xff]   ;;  %v3013_v22 = vmov 0  }
  0xcc   :  { %1931 = vmatprep.subr.bf16.mxu0 %v2886_v23  ;;  %2136 = vmatprep.subr.bf16.mxu1 %v2889_v24  ;;  %v2976_v23 = vld [vmem:[%s3940_s1 + $0x840] ss:$16 sps:$4 sm:$0xff]   ;;  %v2979_v24 = vld [vmem:[%s3940_s1 + $0x848] ss:$16 sps:$4 sm:$0xff]  }
  0xcf   :  { %1932 = vmatpush1.bf16.msra.mxu0 %v2884_v25  ;;  %2137 = vmatpush1.bf16.msra.mxu1 %v2887_v26  ;;  %v2984_v25 = vld [vmem:[%s3940_s1 + $0x864] ss:$16 sps:$4 sm:$0xff]   ;;  %v2987_v26 = vld [vmem:[%s3940_s1 + $0x86c] ss:$16 sps:$4 sm:$0xff]  }
  0xd0   :  { %1933 = vmatprep.subr.bf16.mxu0 %v2892_v27  ;;  %2138 = vmatprep.subr.bf16.mxu1 %v2895_v28  ;;  %v2982_v27 = vld [vmem:[%s3940_s1 + $0x860] ss:$16 sps:$4 sm:$0xff]   ;;  %v2985_v28 = vld [vmem:[%s3940_s1 + $0x868] ss:$16 sps:$4 sm:$0xff]  }
  0xd3   :  { %1934 = vmatpush1.bf16.msra.mxu0 %v2890_v29  ;;  %2139 = vmatpush1.bf16.msra.mxu1 %v2893_v30  ;;  %v2990_v29 = vld [vmem:[%s3940_s1 + $0x884] ss:$16 sps:$4 sm:$0xff]   ;;  %v2993_v30 = vld [vmem:[%s3940_s1 + $0x88c] ss:$16 sps:$4 sm:$0xff]  }
  0xd4   :  { %1935 = vmatprep.subr.bf16.mxu0 %v2898_v31  ;;  %2140 = vmatprep.subr.bf16.mxu1 %v2901_v32  ;;  %v2988_v31 = vld [vmem:[%s3940_s1 + $0x880] ss:$16 sps:$4 sm:$0xff]   ;;  %v2991_v32 = vld [vmem:[%s3940_s1 + $0x888] ss:$16 sps:$4 sm:$0xff]  }
  0xd7   :  { %1936 = vmatpush1.bf16.msra.mxu0 %v2896_v33  ;;  %2141 = vmatpush1.bf16.msra.mxu1 %v2899_v34  ;;  %v2996_v33 = vld [vmem:[%s3940_s1 + $0x8a4] ss:$16 sps:$4 sm:$0xff]   ;;  %v2999_v34 = vld [vmem:[%s3940_s1 + $0x8ac] ss:$16 sps:$4 sm:$0xff]  }
  0xd8   :  { %1937 = vmatprep.subr.bf16.mxu0 %v2904_v35  ;;  %2142 = vmatprep.subr.bf16.mxu1 %v2907_v36  ;;  %v2994_v35 = vld [vmem:[%s3940_s1 + $0x8a0] ss:$16 sps:$4 sm:$0xff]   ;;  %v2997_v36 = vld [vmem:[%s3940_s1 + $0x8a8] ss:$16 sps:$4 sm:$0xff]  }
  0xdb   :  { %1938 = vmatpush1.bf16.msra.mxu0 %v2902_v37  ;;  %2143 = vmatpush1.bf16.msra.mxu1 %v2905_v38  ;;  %v3002_v37 = vld [vmem:[%s3940_s1 + $0x8c4] ss:$16 sps:$4 sm:$0xff]   ;;  %v3005_v38 = vld [vmem:[%s3940_s1 + $0x8cc] ss:$16 sps:$4 sm:$0xff]  }
  0xdc   :  { %1939 = vmatprep.subr.bf16.mxu0 %v2910_v39  ;;  %2144 = vmatprep.subr.bf16.mxu1 %v2913_v40  ;;  %v3000_v39 = vld [vmem:[%s3940_s1 + $0x8c0] ss:$16 sps:$4 sm:$0xff]   ;;  %v3003_v40 = vld [vmem:[%s3940_s1 + $0x8c8] ss:$16 sps:$4 sm:$0xff]  }
  0xdf   :  { %1940 = vmatpush1.bf16.msra.mxu0 %v2908_v41  ;;  %2145 = vmatpush1.bf16.msra.mxu1 %v2911_v42  ;;  %v3008_v41 = vld [vmem:[%s3940_s1 + $0x8e4] ss:$16 sps:$4 sm:$0xff]   ;;  %v3011_v42 = vld [vmem:[%s3940_s1 + $0x8ec] ss:$16 sps:$4 sm:$0xff]  }
  0xe0   :  { %1941 = vmatprep.subr.bf16.mxu0 %v2916_v43  ;;  %2146 = vmatprep.subr.bf16.mxu1 %v2919_v44  ;;  %v3006_v43 = vld [vmem:[%s3940_s1 + $0x8e0] ss:$16 sps:$4 sm:$0xff]   ;;  %v3009_v44 = vld [vmem:[%s3940_s1 + $0x8e8] ss:$16 sps:$4 sm:$0xff]  }
  0xe3   :  { %1942 = vmatpush1.bf16.msra.mxu0 %v2914_v45  ;;  %2147 = vmatpush1.bf16.msra.mxu1 %v2917_v46  ;;  %v3012_v45 = vld [vmem:[%s3941_s0 + $0x20] ss:$0 sps:$4 sm:$0xff]   ;;  %v310_v46 = vlaneseq }
  0xe4   :  { %1943 = vmatprep.subr.bf16.mxu0 %v2922_v47  ;;  %2148 = vmatprep.subr.bf16.mxu1 %v2925_v48 }
  0xe5   :  { %v311_v47 = vshrl.u32 %v310_v46, 7 }
  0xe7   :  { %1944 = vmatpush1.bf16.msra.mxu0 %v2920_v49  ;;  %2149 = vmatpush1.bf16.msra.mxu1 %v2923_v50  ;;  %v312_v48 = vsub.s32 0, %v311_v47  ;;  %v320_v49 = vsub.s32 2, %v311_v47  ;;  %v308_v50 = vld [vmem:[%s3942_s2] sm:$0xf] }
  0xe8   :  { %1945 = vmatprep.subr.bf16.mxu0 %v2928_v51  ;;  %2150 = vmatprep.subr.bf16.mxu1 %v2931_v52  ;;  %v316_v51 = vsub.s32 1, %v311_v47  ;;  %v324_v52 = vsub.s32 3, %v311_v47 }
  0xeb   :  { %1946 = vmatpush1.bf16.msra.mxu0 %v2926_v53  ;;  %2151 = vmatpush1.bf16.msra.mxu1 %v2929_v54  ;;  %v313_v53 = vrot.slane %v308_v50, %v312_v48  ;;  %v321_v54 = vrot.slane %v308_v50, %v320_v49 }
  0xec   :  { %1947 = vmatprep.subr.bf16.mxu0 %v2934_v55  ;;  %2152 = vmatprep.subr.bf16.mxu1 %v2937_v56  ;;  %v317_v55 = vrot.slane %v308_v50, %v316_v51  ;;  %v325_v56 = vrot.slane %v308_v50, %v324_v52 }
  0xef   :  { %1948 = vmatpush1.bf16.msra.mxu0 %v2932_v57  ;;  %2153 = vmatpush1.bf16.msra.mxu1 %v2935_v58 }
  0xf0   :  { %1949 = vmatprep.subr.bf16.mxu0 %v2940_v59  ;;  %2154 = vmatprep.subr.bf16.mxu1 %v2943_v60 }
  0xf3   :  { %1950 = vmatpush1.bf16.msra.mxu0 %v2938_v61  ;;  %2155 = vmatpush1.bf16.msra.mxu1 %v2941_v62 }
  0xf4   :  { %1951 = vmatprep.subr.bf16.mxu0 %v2946_v63  ;;  %2156 = vmatprep.subr.bf16.mxu1 %v2949_v0 }
  0xf7   :  { %1952 = vmatpush1.bf16.msra.mxu0 %v2944_v1  ;;  %2157 = vmatpush1.bf16.msra.mxu1 %v2947_v2 }
  0xf8   :  { %1953 = vmatprep.subr.bf16.mxu0 %v2952_v3  ;;  %2158 = vmatprep.subr.bf16.mxu1 %v2955_v4 }
  0xfb   :  { %1954 = vmatpush1.bf16.msra.mxu0 %v2950_v5  ;;  %2159 = vmatpush1.bf16.msra.mxu1 %v2953_v6 }
  0xfc   :  { %1955 = vmatprep.subr.bf16.mxu0 %v2958_v7  ;;  %2160 = vmatprep.subr.bf16.mxu1 %v2961_v8 }
  0xff   :  { %1956 = vmatpush1.bf16.msra.mxu0 %v2956_v9  ;;  %2161 = vmatpush1.bf16.msra.mxu1 %v2959_v10 }
 0x100   :  { %1966 = vmatprep.subr.bf16.mxu0 %v2966_v12  ;;  %2171 = vmatprep.subr.bf16.mxu1 %v2969_v14 }
 0x102   :  { %1958 = vmatmul.mubr.bf16.vlgmr.msra.gmra.mrb[0].mxu0 %v2240_v11  ;;  %2163 = vmatmul.mubr.bf16.vlgmr.msra.gmra.mrb[0].mxu1 %v2240_v11 }
 0x103   :  { %1967 = vmatpush1.bf16.msra.mxu0 %v2964_v15  ;;  %2172 = vmatpush1.bf16.msra.mxu1 %v2967_v16 }
 0x104   :  { %1968 = vmatprep.subr.bf16.mxu0 %v2972_v17  ;;  %2173 = vmatprep.subr.bf16.mxu1 %v2975_v13 }
 0x105   :  { %1998 = vmatprep.mubr.bf16.mxu0 %v3013_v22  ;;  %2203 = vmatprep.mubr.bf16.mxu1 %v3013_v22 }
 0x107   :  { %1969 = vmatpush1.bf16.msra.mxu0 %v2970_v18  ;;  %2174 = vmatpush1.bf16.msra.mxu1 %v2973_v19 }
 0x108   :  { %1970 = vmatprep.subr.bf16.mxu0 %v2978_v20  ;;  %2175 = vmatprep.subr.bf16.mxu1 %v2981_v21 }
 0x10b   :  { %1971 = vmatpush1.bf16.msra.mxu0 %v2976_v23  ;;  %2176 = vmatpush1.bf16.msra.mxu1 %v2979_v24 }
 0x10c   :  { %1972 = vmatprep.subr.bf16.mxu0 %v2984_v25  ;;  %2177 = vmatprep.subr.bf16.mxu1 %v2987_v26 }
 0x10f   :  { %1973 = vmatpush1.bf16.msra.mxu0 %v2982_v27  ;;  %2178 = vmatpush1.bf16.msra.mxu1 %v2985_v28 }
 0x110   :  { %1974 = vmatprep.subr.bf16.mxu0 %v2990_v29  ;;  %2179 = vmatprep.subr.bf16.mxu1 %v2993_v30 }
 0x113   :  { %1975 = vmatpush1.bf16.msra.mxu0 %v2988_v31  ;;  %2180 = vmatpush1.bf16.msra.mxu1 %v2991_v32 }
 0x114   :  { %1976 = vmatprep.subr.bf16.mxu0 %v2996_v33  ;;  %2181 = vmatprep.subr.bf16.mxu1 %v2999_v34 }
 0x117   :  { %1977 = vmatpush1.bf16.msra.mxu0 %v2994_v35  ;;  %2182 = vmatpush1.bf16.msra.mxu1 %v2997_v36 }
 0x118   :  { %1978 = vmatprep.subr.bf16.mxu0 %v3002_v37  ;;  %2183 = vmatprep.subr.bf16.mxu1 %v3005_v38 }
 0x11b   :  { %1979 = vmatpush1.bf16.msra.mxu0 %v3000_v39  ;;  %2184 = vmatpush1.bf16.msra.mxu1 %v3003_v40 }
 0x11c   :  { %1980 = vmatprep.subr.bf16.mxu0 %v3008_v41  ;;  %2185 = vmatprep.subr.bf16.mxu1 %v3011_v42 }
 0x11f   :  { %1981 = vmatpush1.bf16.msra.mxu0 %v3006_v43  ;;  %2186 = vmatpush1.bf16.msra.mxu1 %v3009_v44 }
 0x122   :  { %1999 = vmatmul.mubr.bf16.vlgmr.msra.gmra.mrb[0].mxu0 %v3012_v45  ;;  %2204 = vmatmul.mubr.bf16.vlgmr.msra.gmra.mrb[0].mxu1 %v3012_v45 }
 0x1f5   :  { %v2000_v57 = vpop.f32.mrb[0].mxu0  ;;  %v2205_v58 = vpop.f32.mrb[0].mxu1 }
 0x1f6   :  { %v2535_v59 = vadd.f32 %v2000_v57, %v313_v53  ;;  %v2537_v60 = vadd.f32 %v2205_v58, %v321_v54  ;;  %v2002_v61 = vpop.f32.mrb[1].mxu0  ;;  %v2207_v62 = vpop.f32.mrb[1].mxu1 }
 0x1f7   :  { %v2536_v63 = vadd.f32 %v2002_v61, %v317_v55  ;;  %v2538_v0 = vadd.f32 %v2207_v62, %v325_v56  ;;  %v2004_v1 = vpop.f32.mrb[2].mxu0  ;;  %v2209_v2 = vpop.f32.mrb[2].mxu1 }
 0x1f8   :  { %v2005_v3 = vpop.f32.mrb[3].mxu0  ;;  %v2210_v4 = vpop.f32.mrb[3].mxu1 }
 0x1f9   :  { %v2533_v5 = vpack.c.bf16 %v2536_v63, %v2535_v59  ;;  %v2534_v6 = vpack.c.bf16 %v2538_v0, %v2537_v60 }
 0x1fb   :  { %2228 = vst [vmem:[%s3943_s3] sm:$0xff] %v2533_v5  ;;  %2229 = vst [vmem:[%s3943_s3 + $0x8] sm:$0xff] %v2534_v6 }

// kernel: neuron_counter_forward.29
= control target key start
LH: loop header
LB: loop body
LE: loop exit
PB: predicated region body
PF: predicated region fallthrough
CT: control target
= control target key end

     0   :  { %s3943_s1 = inlined_call_operand.vmem [shape: bf16[2304,256], index: 1, kind: input, shape index: {}]   ;;  %s3944_s0 = inlined_call_operand.vmem [shape: bf16[8,2304], index: 0, kind: input, shape index: {}]   ;;  %s3945_s2 = inlined_call_operand.vmem [shape: f32[1,256], index: 2, kind: input, shape index: {}]   ;;  %s3946_s3 = inlined_call_operand.vmem [shape: bf16[8,256], index: 3, kind: input, shape index: {}]   ;;  %s3947_s4 = inlined_call_operand.vmem [shape: bf16[8,256], index: 4, kind: output, shape index: {}]  }
   0x1   :  { %v2526_v0 = vld [vmem:[%s3943_s1 + $0x4] ss:$8 sps:$4 sm:$0xff]   ;;  %v2528_v1 = vld [vmem:[%s3943_s1] ss:$8 sps:$4 sm:$0xff]   ;;  %v2532_v4 = vld [vmem:[%s3943_s1 + $0x14] ss:$8 sps:$4 sm:$0xff]  }
   0x2   :  { %1829 = vmatprep.subr.bf16.mxu0 %v2526_v0  ;;  %v2529_v2 = vld [vmem:[%s3943_s1 + $0x104] ss:$8 sps:$4 sm:$0xff]   ;;  %v2531_v3 = vld [vmem:[%s3943_s1 + $0x100] ss:$8 sps:$4 sm:$0xff]   ;;  %v2534_v5 = vld [vmem:[%s3943_s1 + $0x10] ss:$8 sps:$4 sm:$0xff]  }
   0x3   :  { %1830 = vmatpush1.bf16.msra.mxu0 %v2528_v1  ;;  %1870 = vmatprep.subr.bf16.mxu1 %v2529_v2  ;;  %v2535_v6 = vld [vmem:[%s3943_s1 + $0x114] ss:$8 sps:$4 sm:$0xff]   ;;  %v2537_v7 = vld [vmem:[%s3943_s1 + $0x110] ss:$8 sps:$4 sm:$0xff]   ;;  %v2538_v8 = vld [vmem:[%s3943_s1 + $0x24] ss:$8 sps:$4 sm:$0xff]  }
   0x4   :  { %1871 = vmatpush1.bf16.msra.mxu1 %v2531_v3  ;;  %1831 = vmatprep.subr.bf16.mxu0 %v2532_v4  ;;  %v2540_v9 = vld [vmem:[%s3943_s1 + $0x20] ss:$8 sps:$4 sm:$0xff]   ;;  %v2541_v10 = vld [vmem:[%s3943_s1 + $0x124] ss:$8 sps:$4 sm:$0xff]   ;;  %v2544_v11 = vld [vmem:[%s3943_s1 + $0x34] ss:$8 sps:$4 sm:$0xff]  }
   0x5   :  { %1872 = vmatprep.subr.bf16.mxu1 %v2535_v6  ;;  %v2543_v12 = vld [vmem:[%s3943_s1 + $0x120] ss:$8 sps:$4 sm:$0xff]   ;;  %v2547_v13 = vld [vmem:[%s3943_s1 + $0x134] ss:$8 sps:$4 sm:$0xff]   ;;  %v2546_v14 = vld [vmem:[%s3943_s1 + $0x30] ss:$8 sps:$4 sm:$0xff]  }
   0x6   :  { %v2550_v15 = vld [vmem:[%s3943_s1 + $0x44] ss:$8 sps:$4 sm:$0xff]   ;;  %v2549_v16 = vld [vmem:[%s3943_s1 + $0x130] ss:$8 sps:$4 sm:$0xff]   ;;  %v2552_v18 = vld [vmem:[%s3943_s1 + $0x40] ss:$8 sps:$4 sm:$0xff]  }
   0x7   :  { %1832 = vmatpush1.bf16.msra.mxu0 %v2534_v5  ;;  %v2553_v17 = vld [vmem:[%s3943_s1 + $0x144] ss:$8 sps:$4 sm:$0xff]   ;;  %v2556_v19 = vld [vmem:[%s3943_s1 + $0x54] ss:$8 sps:$4 sm:$0xff]   ;;  %v2555_v20 = vld [vmem:[%s3943_s1 + $0x140] ss:$8 sps:$4 sm:$0xff]  }
   0x8   :  { %1833 = vmatprep.subr.bf16.mxu0 %v2538_v8  ;;  %1873 = vmatpush1.bf16.msra.mxu1 %v2537_v7  ;;  %v2559_v21 = vld [vmem:[%s3943_s1 + $0x154] ss:$8 sps:$4 sm:$0xff]   ;;  %v2558_v22 = vld [vmem:[%s3943_s1 + $0x50] ss:$8 sps:$4 sm:$0xff]   ;;  %v2562_v23 = vld [vmem:[%s3943_s1 + $0x64] ss:$8 sps:$4 sm:$0xff]  }
   0x9   :  { %1874 = vmatprep.subr.bf16.mxu1 %v2541_v10  ;;  %v2561_v24 = vld [vmem:[%s3943_s1 + $0x150] ss:$8 sps:$4 sm:$0xff]   ;;  %v2565_v25 = vld [vmem:[%s3943_s1 + $0x164] ss:$8 sps:$4 sm:$0xff]   ;;  %v2564_v26 = vld [vmem:[%s3943_s1 + $0x60] ss:$8 sps:$4 sm:$0xff]  }
   0xa   :  { %v2568_v27 = vld [vmem:[%s3943_s1 + $0x74] ss:$8 sps:$4 sm:$0xff]   ;;  %v2567_v28 = vld [vmem:[%s3943_s1 + $0x160] ss:$8 sps:$4 sm:$0xff]   ;;  %v2570_v30 = vld [vmem:[%s3943_s1 + $0x70] ss:$8 sps:$4 sm:$0xff]  }
   0xb   :  { %1834 = vmatpush1.bf16.msra.mxu0 %v2540_v9  ;;  %v2571_v29 = vld [vmem:[%s3943_s1 + $0x174] ss:$8 sps:$4 sm:$0xff]   ;;  %v2574_v31 = vld [vmem:[%s3943_s1 + $0x84] ss:$8 sps:$4 sm:$0xff]   ;;  %v2573_v32 = vld [vmem:[%s3943_s1 + $0x170] ss:$8 sps:$4 sm:$0xff]  }
   0xc   :  { %1835 = vmatprep.subr.bf16.mxu0 %v2544_v11  ;;  %1875 = vmatpush1.bf16.msra.mxu1 %v2543_v12  ;;  %v2577_v33 = vld [vmem:[%s3943_s1 + $0x184] ss:$8 sps:$4 sm:$0xff]   ;;  %v2576_v34 = vld [vmem:[%s3943_s1 + $0x80] ss:$8 sps:$4 sm:$0xff]   ;;  %v2580_v35 = vld [vmem:[%s3943_s1 + $0x94] ss:$8 sps:$4 sm:$0xff]  }
   0xd   :  { %1876 = vmatprep.subr.bf16.mxu1 %v2547_v13  ;;  %v2579_v36 = vld [vmem:[%s3943_s1 + $0x180] ss:$8 sps:$4 sm:$0xff]   ;;  %v2583_v37 = vld [vmem:[%s3943_s1 + $0x194] ss:$8 sps:$4 sm:$0xff]   ;;  %v2582_v38 = vld [vmem:[%s3943_s1 + $0x90] ss:$8 sps:$4 sm:$0xff]  }
   0xe   :  { %v2586_v39 = vld [vmem:[%s3943_s1 + $0xa4] ss:$8 sps:$4 sm:$0xff]   ;;  %v2585_v40 = vld [vmem:[%s3943_s1 + $0x190] ss:$8 sps:$4 sm:$0xff]   ;;  %v2588_v42 = vld [vmem:[%s3943_s1 + $0xa0] ss:$8 sps:$4 sm:$0xff]  }
   0xf   :  { %1836 = vmatpush1.bf16.msra.mxu0 %v2546_v14  ;;  %v2589_v41 = vld [vmem:[%s3943_s1 + $0x1a4] ss:$8 sps:$4 sm:$0xff]   ;;  %v2592_v43 = vld [vmem:[%s3943_s1 + $0xb4] ss:$8 sps:$4 sm:$0xff]   ;;  %v2591_v44 = vld [vmem:[%s3943_s1 + $0x1a0] ss:$8 sps:$4 sm:$0xff]  }
  0x10   :  { %1837 = vmatprep.subr.bf16.mxu0 %v2550_v15  ;;  %1877 = vmatpush1.bf16.msra.mxu1 %v2549_v16  ;;  %v2595_v45 = vld [vmem:[%s3943_s1 + $0x1b4] ss:$8 sps:$4 sm:$0xff]   ;;  %v17_v46 = vld [vmem:[%s3944_s0] sm:$0xff]  ;;  %v2594_v47 = vld [vmem:[%s3943_s1 + $0xb0] ss:$8 sps:$4 sm:$0xff]  }
  0x11   :  { %1878 = vmatprep.subr.bf16.mxu1 %v2553_v17  ;;  %v2219_v48 = vcombine.high %v17_v46, %v17_v46  ;;  %v2598_v49 = vld [vmem:[%s3943_s1 + $0xc4] ss:$8 sps:$4 sm:$0xff]   ;;  %v2597_v51 = vld [vmem:[%s3943_s1 + $0x1b0] ss:$8 sps:$4 sm:$0xff]   ;;  %v2600_v54 = vld [vmem:[%s3943_s1 + $0xc0] ss:$8 sps:$4 sm:$0xff]   ;;  %v2218_v5 = vcombine.low %v17_v46, %v17_v46 }
  0x12   :  { %v18_v50 = vld [vmem:[%s3944_s0 + $0x8] sm:$0xff]  ;;  %v2604_v55 = vld [vmem:[%s3943_s1 + $0xd4] ss:$8 sps:$4 sm:$0xff]   ;;  %v2606_v58 = vld [vmem:[%s3943_s1 + $0xd0] ss:$8 sps:$4 sm:$0xff]  }
  0x13   :  { %1838 = vmatpush1.bf16.msra.mxu0 %v2552_v18  ;;  %1861 = vmatprep.mubr.bf16.mxu0 %v2219_v48  ;;  %v2221_v52 = vcombine.high %v18_v50, %v18_v50  ;;  %v2601_v53 = vld [vmem:[%s3943_s1 + $0x1c4] ss:$8 sps:$4 sm:$0xff]   ;;  %v2603_v56 = vld [vmem:[%s3943_s1 + $0x1c0] ss:$8 sps:$4 sm:$0xff]   ;;  %v2607_v57 = vld [vmem:[%s3943_s1 + $0x1d4] ss:$8 sps:$4 sm:$0xff]   ;;  %v2220_v8 = vcombine.low %v18_v50, %v18_v50 }
  0x14   :  { %1839 = vmatprep.subr.bf16.mxu0 %v2556_v19  ;;  %1879 = vmatpush1.bf16.msra.mxu1 %v2555_v20  ;;  %v2610_v59 = vld [vmem:[%s3943_s1 + $0xe4] ss:$8 sps:$4 sm:$0xff]   ;;  %v2609_v60 = vld [vmem:[%s3943_s1 + $0x1d0] ss:$8 sps:$4 sm:$0xff]   ;;  %v2612_v62 = vld [vmem:[%s3943_s1 + $0xe0] ss:$8 sps:$4 sm:$0xff]  }
  0x15   :  { %1880 = vmatprep.subr.bf16.mxu1 %v2559_v21  ;;  %1902 = vmatprep.mubr.bf16.mxu1 %v2221_v52  ;;  %v2613_v61 = vld [vmem:[%s3943_s1 + $0x1e4] ss:$8 sps:$4 sm:$0xff]   ;;  %v2616_v63 = vld [vmem:[%s3943_s1 + $0xf4] ss:$8 sps:$4 sm:$0xff]   ;;  %v2615_v0 = vld [vmem:[%s3943_s1 + $0x1e0] ss:$8 sps:$4 sm:$0xff]  }
  0x16   :  { %v2619_v1 = vld [vmem:[%s3943_s1 + $0x1f4] ss:$8 sps:$4 sm:$0xff]   ;;  %v2618_v2 = vld [vmem:[%s3943_s1 + $0xf0] ss:$8 sps:$4 sm:$0xff]   ;;  %v2626_v3 = vld [vmem:[%s3943_s1 + $0x204] ss:$8 sps:$4 sm:$0xff]  }
  0x17   :  { %1840 = vmatpush1.bf16.msra.mxu0 %v2558_v22  ;;  %v2623_v4 = vld [vmem:[%s3943_s1 + $0x1f0] ss:$8 sps:$4 sm:$0xff]   ;;  %v2631_v6 = vld [vmem:[%s3943_s1 + $0x304] ss:$8 sps:$4 sm:$0xff]   ;;  %v2624_v7 = vld [vmem:[%s3943_s1 + $0x200] ss:$8 sps:$4 sm:$0xff]  }
  0x18   :  { %1841 = vmatprep.subr.bf16.mxu0 %v2562_v23  ;;  %1881 = vmatpush1.bf16.msra.mxu1 %v2561_v24  ;;  %v2634_v9 = vld [vmem:[%s3943_s1 + $0x214] ss:$8 sps:$4 sm:$0xff]   ;;  %v2629_v10 = vld [vmem:[%s3943_s1 + $0x300] ss:$8 sps:$4 sm:$0xff]   ;;  %v2632_v12 = vld [vmem:[%s3943_s1 + $0x210] ss:$8 sps:$4 sm:$0xff]  }
  0x19   :  { %1882 = vmatprep.subr.bf16.mxu1 %v2565_v25  ;;  %v2637_v11 = vld [vmem:[%s3943_s1 + $0x314] ss:$8 sps:$4 sm:$0xff]   ;;  %v2640_v13 = vld [vmem:[%s3943_s1 + $0x224] ss:$8 sps:$4 sm:$0xff]   ;;  %v2635_v14 = vld [vmem:[%s3943_s1 + $0x310] ss:$8 sps:$4 sm:$0xff]  }
  0x1a   :  { %v2643_v15 = vld [vmem:[%s3943_s1 + $0x324] ss:$8 sps:$4 sm:$0xff]   ;;  %v2638_v16 = vld [vmem:[%s3943_s1 + $0x220] ss:$8 sps:$4 sm:$0xff]   ;;  %v2646_v17 = vld [vmem:[%s3943_s1 + $0x234] ss:$8 sps:$4 sm:$0xff]  }
  0x1b   :  { %1842 = vmatpush1.bf16.msra.mxu0 %v2564_v26  ;;  %v2641_v18 = vld [vmem:[%s3943_s1 + $0x320] ss:$8 sps:$4 sm:$0xff]   ;;  %v2649_v19 = vld [vmem:[%s3943_s1 + $0x334] ss:$8 sps:$4 sm:$0xff]   ;;  %v2644_v20 = vld [vmem:[%s3943_s1 + $0x230] ss:$8 sps:$4 sm:$0xff]  }
  0x1c   :  { %1843 = vmatprep.subr.bf16.mxu0 %v2568_v27  ;;  %1883 = vmatpush1.bf16.msra.mxu1 %v2567_v28  ;;  %v2652_v21 = vld [vmem:[%s3943_s1 + $0x244] ss:$8 sps:$4 sm:$0xff]   ;;  %v2647_v22 = vld [vmem:[%s3943_s1 + $0x330] ss:$8 sps:$4 sm:$0xff]   ;;  %v2650_v24 = vld [vmem:[%s3943_s1 + $0x240] ss:$8 sps:$4 sm:$0xff]  }
  0x1d   :  { %1884 = vmatprep.subr.bf16.mxu1 %v2571_v29  ;;  %v2655_v23 = vld [vmem:[%s3943_s1 + $0x344] ss:$8 sps:$4 sm:$0xff]   ;;  %v2658_v25 = vld [vmem:[%s3943_s1 + $0x254] ss:$8 sps:$4 sm:$0xff]   ;;  %v2653_v26 = vld [vmem:[%s3943_s1 + $0x340] ss:$8 sps:$4 sm:$0xff]  }
  0x1e   :  { %v2661_v27 = vld [vmem:[%s3943_s1 + $0x354] ss:$8 sps:$4 sm:$0xff]   ;;  %v2656_v28 = vld [vmem:[%s3943_s1 + $0x250] ss:$8 sps:$4 sm:$0xff]   ;;  %v2664_v29 = vld [vmem:[%s3943_s1 + $0x264] ss:$8 sps:$4 sm:$0xff]  }
  0x1f   :  { %1844 = vmatpush1.bf16.msra.mxu0 %v2570_v30  ;;  %v2659_v30 = vld [vmem:[%s3943_s1 + $0x350] ss:$8 sps:$4 sm:$0xff]   ;;  %v2677_v46 = vld [vmem:[%s3943_s1 + $0x380] ss:$8 sps:$4 sm:$0xff]  }
  0x20   :  { %1845 = vmatprep.subr.bf16.mxu0 %v2574_v31  ;;  %1885 = vmatpush1.bf16.msra.mxu1 %v2573_v32  ;;  %v2667_v31 = vld [vmem:[%s3943_s1 + $0x364] ss:$8 sps:$4 sm:$0xff]   ;;  %v3280_v32 = vld [vmem:[%s3944_s0 + $0x10] sm:$0xff]  ;;  %v2686_v52 = vld [vmem:[%s3943_s1 + $0x2a0] ss:$8 sps:$4 sm:$0xff]  }
  0x21   :  { %1886 = vmatprep.subr.bf16.mxu1 %v2577_v33  ;;  %v2662_v33 = vld [vmem:[%s3943_s1 + $0x260] ss:$8 sps:$4 sm:$0xff]   ;;  %v2680_v48 = vld [vmem:[%s3943_s1 + $0x290] ss:$8 sps:$4 sm:$0xff]  }
  0x22   :  { %v2683_v50 = vld [vmem:[%s3943_s1 + $0x390] ss:$8 sps:$4 sm:$0xff]  }
  0x23   :  { %1846 = vmatpush1.bf16.msra.mxu0 %v2576_v34  ;;  %v2223_v34 = vcombine.high %v3280_v32, %v3280_v32 }
  0x24   :  { %1847 = vmatprep.subr.bf16.mxu0 %v2580_v35  ;;  %1887 = vmatpush1.bf16.msra.mxu1 %v2579_v36  ;;  %v3290_v35 = vld [vmem:[%s3944_s0 + $0x18] sm:$0xff] }
  0x25   :  { %1888 = vmatprep.subr.bf16.mxu1 %v2583_v37  ;;  %v2670_v36 = vld [vmem:[%s3943_s1 + $0x274] ss:$8 sps:$4 sm:$0xff]   ;;  %v2225_v37 = vcombine.high %v3290_v35, %v3290_v35 }
  0x27   :  { %1848 = vmatpush1.bf16.msra.mxu0 %v2582_v38  ;;  %v2665_v38 = vld [vmem:[%s3943_s1 + $0x360] ss:$8 sps:$4 sm:$0xff]  }
  0x28   :  { %1849 = vmatprep.subr.bf16.mxu0 %v2586_v39  ;;  %1889 = vmatpush1.bf16.msra.mxu1 %v2585_v40  ;;  %v2673_v39 = vld [vmem:[%s3943_s1 + $0x374] ss:$8 sps:$4 sm:$0xff]   ;;  %v2668_v40 = vld [vmem:[%s3943_s1 + $0x270] ss:$8 sps:$4 sm:$0xff]  }
  0x29   :  { %1890 = vmatprep.subr.bf16.mxu1 %v2589_v41  ;;  %v2676_v41 = vld [vmem:[%s3943_s1 + $0x284] ss:$8 sps:$4 sm:$0xff]  }
  0x2b   :  { %1850 = vmatpush1.bf16.msra.mxu0 %v2588_v42  ;;  %v2671_v42 = vld [vmem:[%s3943_s1 + $0x370] ss:$8 sps:$4 sm:$0xff]  }
  0x2c   :  { %1851 = vmatprep.subr.bf16.mxu0 %v2592_v43  ;;  %1891 = vmatpush1.bf16.msra.mxu1 %v2591_v44  ;;  %v2679_v43 = vld [vmem:[%s3943_s1 + $0x384] ss:$8 sps:$4 sm:$0xff]   ;;  %v2674_v44 = vld [vmem:[%s3943_s1 + $0x280] ss:$8 sps:$4 sm:$0xff]  }
  0x2d   :  { %1892 = vmatprep.subr.bf16.mxu1 %v2595_v45  ;;  %v2682_v45 = vld [vmem:[%s3943_s1 + $0x294] ss:$8 sps:$4 sm:$0xff]  }
  0x2f   :  { %1852 = vmatpush1.bf16.msra.mxu0 %v2594_v47  ;;  %v2685_v47 = vld [vmem:[%s3943_s1 + $0x394] ss:$8 sps:$4 sm:$0xff]  }
  0x30   :  { %1853 = vmatprep.subr.bf16.mxu0 %v2598_v49  ;;  %1893 = vmatpush1.bf16.msra.mxu1 %v2597_v51  ;;  %v2688_v49 = vld [vmem:[%s3943_s1 + $0x2a4] ss:$8 sps:$4 sm:$0xff]  }
  0x31   :  { %1894 = vmatprep.subr.bf16.mxu1 %v2601_v53  ;;  %v2691_v51 = vld [vmem:[%s3943_s1 + $0x3a4] ss:$8 sps:$4 sm:$0xff]   ;;  %v2694_v53 = vld [vmem:[%s3943_s1 + $0x2b4] ss:$8 sps:$4 sm:$0xff]  }
  0x33   :  { %1854 = vmatpush1.bf16.msra.mxu0 %v2600_v54  ;;  %v2689_v54 = vld [vmem:[%s3943_s1 + $0x3a0] ss:$8 sps:$4 sm:$0xff]  }
  0x34   :  { %1855 = vmatprep.subr.bf16.mxu0 %v2604_v55  ;;  %1895 = vmatpush1.bf16.msra.mxu1 %v2603_v56  ;;  %v2697_v55 = vld [vmem:[%s3943_s1 + $0x3b4] ss:$8 sps:$4 sm:$0xff]   ;;  %v2692_v56 = vld [vmem:[%s3943_s1 + $0x2b0] ss:$8 sps:$4 sm:$0xff]  }
  0x35   :  { %1896 = vmatprep.subr.bf16.mxu1 %v2607_v57  ;;  %v2700_v57 = vld [vmem:[%s3943_s1 + $0x2c4] ss:$8 sps:$4 sm:$0xff]  }
  0x37   :  { %1856 = vmatpush1.bf16.msra.mxu0 %v2606_v58  ;;  %v2695_v58 = vld [vmem:[%s3943_s1 + $0x3b0] ss:$8 sps:$4 sm:$0xff]  }
  0x38   :  { %1857 = vmatprep.subr.bf16.mxu0 %v2610_v59  ;;  %1897 = vmatpush1.bf16.msra.mxu1 %v2609_v60  ;;  %v2703_v59 = vld [vmem:[%s3943_s1 + $0x3c4] ss:$8 sps:$4 sm:$0xff]   ;;  %v2698_v60 = vld [vmem:[%s3943_s1 + $0x2c0] ss:$8 sps:$4 sm:$0xff]  }
  0x39   :  { %1898 = vmatprep.subr.bf16.mxu1 %v2613_v61  ;;  %v2706_v61 = vld [vmem:[%s3943_s1 + $0x2d4] ss:$8 sps:$4 sm:$0xff]  }
  0x3b   :  { %1858 = vmatpush1.bf16.msra.mxu0 %v2612_v62  ;;  %v2701_v62 = vld [vmem:[%s3943_s1 + $0x3c0] ss:$8 sps:$4 sm:$0xff]  }
  0x3c   :  { %1859 = vmatprep.subr.bf16.mxu0 %v2616_v63  ;;  %1899 = vmatpush1.bf16.msra.mxu1 %v2615_v0  ;;  %v2709_v63 = vld [vmem:[%s3943_s1 + $0x3d4] ss:$8 sps:$4 sm:$0xff]   ;;  %v2704_v0 = vld [vmem:[%s3943_s1 + $0x2d0] ss:$8 sps:$4 sm:$0xff]  }
  0x3d   :  { %1900 = vmatprep.subr.bf16.mxu1 %v2619_v1  ;;  %v2712_v1 = vld [vmem:[%s3943_s1 + $0x2e4] ss:$8 sps:$4 sm:$0xff]  }
  0x3f   :  { %1860 = vmatpush1.bf16.msra.mxu0 %v2618_v2  ;;  %v2707_v2 = vld [vmem:[%s3943_s1 + $0x3d0] ss:$8 sps:$4 sm:$0xff]  }
  0x40   :  { %1911 = vmatprep.subr.bf16.mxu0 %v2626_v3  ;;  %1901 = vmatpush1.bf16.msra.mxu1 %v2623_v4  ;;  %v2715_v3 = vld [vmem:[%s3943_s1 + $0x3e4] ss:$8 sps:$4 sm:$0xff]   ;;  %v2710_v4 = vld [vmem:[%s3943_s1 + $0x2e0] ss:$8 sps:$4 sm:$0xff]  }
  0x41   :  { %1952 = vmatprep.subr.bf16.mxu1 %v2631_v6  ;;  %v2713_v6 = vld [vmem:[%s3943_s1 + $0x3e0] ss:$8 sps:$4 sm:$0xff]  }
  0x42   :  { %1862 = vmatmul.mubr.bf16.vlgmr.msra.gmra.mrb[0].mxu0 %v2218_v5  ;;  %v2718_v5 = vld [vmem:[%s3943_s1 + $0x2f4] ss:$8 sps:$4 sm:$0xff]  }
  0x43   :  { %1912 = vmatpush1.bf16.msra.mxu0 %v2624_v7  ;;  %1903 = vmatmul.mubr.bf16.vlgmr.msra.gmra.mrb[0].mxu1 %v2220_v8  ;;  %v2721_v7 = vld [vmem:[%s3943_s1 + $0x3f4] ss:$8 sps:$4 sm:$0xff]   ;;  %v2716_v8 = vld [vmem:[%s3943_s1 + $0x2f0] ss:$8 sps:$4 sm:$0xff]  }
  0x44   :  { %1913 = vmatprep.subr.bf16.mxu0 %v2634_v9  ;;  %1953 = vmatpush1.bf16.msra.mxu1 %v2629_v10  ;;  %v2726_v9 = vld [vmem:[%s3943_s1 + $0x404] ss:$8 sps:$4 sm:$0xff]   ;;  %v2719_v10 = vld [vmem:[%s3943_s1 + $0x3f0] ss:$8 sps:$4 sm:$0xff]  }
  0x45   :  { %1954 = vmatprep.subr.bf16.mxu1 %v2637_v11  ;;  %1943 = vmatprep.mubr.bf16.mxu0 %v2223_v34  ;;  %v2222_v11 = vcombine.low %v3280_v32, %v3280_v32  ;;  %v2747_v32 = vld [vmem:[%s3943_s1 + $0x530] ss:$8 sps:$4 sm:$0xff]   ;;  %v2750_v34 = vld [vmem:[%s3943_s1 + $0x440] ss:$8 sps:$4 sm:$0xff]  }
  0x46   :  { %1984 = vmatprep.mubr.bf16.mxu1 %v2225_v37  ;;  %v2761_v37 = vld [vmem:[%s3943_s1 + $0x554] ss:$8 sps:$4 sm:$0xff]  }
  0x47   :  { %1914 = vmatpush1.bf16.msra.mxu0 %v2632_v12  ;;  %v2731_v12 = vld [vmem:[%s3943_s1 + $0x504] ss:$8 sps:$4 sm:$0xff]  }
  0x48   :  { %1915 = vmatprep.subr.bf16.mxu0 %v2640_v13  ;;  %1955 = vmatpush1.bf16.msra.mxu1 %v2635_v14  ;;  %v2724_v13 = vld [vmem:[%s3943_s1 + $0x400] ss:$8 sps:$4 sm:$0xff]   ;;  %v2224_v14 = vcombine.low %v3290_v35, %v3290_v35  ;;  %v2758_v35 = vld [vmem:[%s3943_s1 + $0x454] ss:$8 sps:$4 sm:$0xff]  }
  0x49   :  { %1956 = vmatprep.subr.bf16.mxu1 %v2643_v15  ;;  %v2734_v15 = vld [vmem:[%s3943_s1 + $0x414] ss:$8 sps:$4 sm:$0xff]  }
  0x4b   :  { %1916 = vmatpush1.bf16.msra.mxu0 %v2638_v16  ;;  %v2729_v16 = vld [vmem:[%s3943_s1 + $0x500] ss:$8 sps:$4 sm:$0xff]  }
  0x4c   :  { %1917 = vmatprep.subr.bf16.mxu0 %v2646_v17  ;;  %1957 = vmatpush1.bf16.msra.mxu1 %v2641_v18  ;;  %v3427_v17 = vld [vmem:[%s3944_s0 + $0x20] sm:$0xff]  ;;  %v2732_v18 = vld [vmem:[%s3943_s1 + $0x410] ss:$8 sps:$4 sm:$0xff]  }
  0x4d   :  { %1958 = vmatprep.subr.bf16.mxu1 %v2649_v19  ;;  %v2737_v19 = vld [vmem:[%s3943_s1 + $0x514] ss:$8 sps:$4 sm:$0xff]  }
  0x4f   :  { %1918 = vmatpush1.bf16.msra.mxu0 %v2644_v20  ;;  %v2227_v20 = vcombine.high %v3427_v17, %v3427_v17 }
  0x50   :  { %1919 = vmatprep.subr.bf16.mxu0 %v2652_v21  ;;  %1959 = vmatpush1.bf16.msra.mxu1 %v2647_v22  ;;  %v3440_v21 = vld [vmem:[%s3944_s0 + $0x28] sm:$0xff] }
  0x51   :  { %1960 = vmatprep.subr.bf16.mxu1 %v2655_v23  ;;  %v2740_v22 = vld [vmem:[%s3943_s1 + $0x424] ss:$8 sps:$4 sm:$0xff]   ;;  %v2229_v23 = vcombine.high %v3440_v21, %v3440_v21 }
  0x53   :  { %1920 = vmatpush1.bf16.msra.mxu0 %v2650_v24  ;;  %v2735_v24 = vld [vmem:[%s3943_s1 + $0x510] ss:$8 sps:$4 sm:$0xff]  }
  0x54   :  { %1921 = vmatprep.subr.bf16.mxu0 %v2658_v25  ;;  %1961 = vmatpush1.bf16.msra.mxu1 %v2653_v26  ;;  %v2743_v25 = vld [vmem:[%s3943_s1 + $0x524] ss:$8 sps:$4 sm:$0xff]   ;;  %v2738_v26 = vld [vmem:[%s3943_s1 + $0x420] ss:$8 sps:$4 sm:$0xff]  }
  0x55   :  { %1962 = vmatprep.subr.bf16.mxu1 %v2661_v27  ;;  %v2746_v27 = vld [vmem:[%s3943_s1 + $0x434] ss:$8 sps:$4 sm:$0xff]  }
  0x57   :  { %1922 = vmatpush1.bf16.msra.mxu0 %v2656_v28  ;;  %v2741_v28 = vld [vmem:[%s3943_s1 + $0x520] ss:$8 sps:$4 sm:$0xff]  }
  0x58   :  { %1923 = vmatprep.subr.bf16.mxu0 %v2664_v29  ;;  %1963 = vmatpush1.bf16.msra.mxu1 %v2659_v30  ;;  %v2749_v29 = vld [vmem:[%s3943_s1 + $0x534] ss:$8 sps:$4 sm:$0xff]   ;;  %v2744_v30 = vld [vmem:[%s3943_s1 + $0x430] ss:$8 sps:$4 sm:$0xff]  }
  0x59   :  { %1964 = vmatprep.subr.bf16.mxu1 %v2667_v31  ;;  %v2752_v31 = vld [vmem:[%s3943_s1 + $0x444] ss:$8 sps:$4 sm:$0xff]  }
  0x5b   :  { %1924 = vmatpush1.bf16.msra.mxu0 %v2662_v33  ;;  %v2755_v33 = vld [vmem:[%s3943_s1 + $0x544] ss:$8 sps:$4 sm:$0xff]  }
  0x5c   :  { %1925 = vmatprep.subr.bf16.mxu0 %v2670_v36  ;;  %1965 = vmatpush1.bf16.msra.mxu1 %v2665_v38  ;;  %v2753_v36 = vld [vmem:[%s3943_s1 + $0x540] ss:$8 sps:$4 sm:$0xff]   ;;  %v2756_v38 = vld [vmem:[%s3943_s1 + $0x450] ss:$8 sps:$4 sm:$0xff]  }
  0x5d   :  { %1966 = vmatprep.subr.bf16.mxu1 %v2673_v39  ;;  %v2764_v39 = vld [vmem:[%s3943_s1 + $0x464] ss:$8 sps:$4 sm:$0xff]  }
  0x5f   :  { %1926 = vmatpush1.bf16.msra.mxu0 %v2668_v40  ;;  %v2759_v40 = vld [vmem:[%s3943_s1 + $0x550] ss:$8 sps:$4 sm:$0xff]  }
  0x60   :  { %1927 = vmatprep.subr.bf16.mxu0 %v2676_v41  ;;  %1967 = vmatpush1.bf16.msra.mxu1 %v2671_v42  ;;  %v2767_v41 = vld [vmem:[%s3943_s1 + $0x564] ss:$8 sps:$4 sm:$0xff]   ;;  %v2762_v42 = vld [vmem:[%s3943_s1 + $0x460] ss:$8 sps:$4 sm:$0xff]  }
  0x61   :  { %1968 = vmatprep.subr.bf16.mxu1 %v2679_v43  ;;  %v2770_v43 = vld [vmem:[%s3943_s1 + $0x474] ss:$8 sps:$4 sm:$0xff]  }
  0x63   :  { %1928 = vmatpush1.bf16.msra.mxu0 %v2674_v44  ;;  %v2765_v44 = vld [vmem:[%s3943_s1 + $0x560] ss:$8 sps:$4 sm:$0xff]  }
  0x64   :  { %1929 = vmatprep.subr.bf16.mxu0 %v2682_v45  ;;  %1969 = vmatpush1.bf16.msra.mxu1 %v2677_v46  ;;  %v2773_v45 = vld [vmem:[%s3943_s1 + $0x574] ss:$8 sps:$4 sm:$0xff]   ;;  %v2768_v46 = vld [vmem:[%s3943_s1 + $0x470] ss:$8 sps:$4 sm:$0xff]  }
  0x65   :  { %1970 = vmatprep.subr.bf16.mxu1 %v2685_v47  ;;  %v2776_v47 = vld [vmem:[%s3943_s1 + $0x484] ss:$8 sps:$4 sm:$0xff]  }
  0x67   :  { %1930 = vmatpush1.bf16.msra.mxu0 %v2680_v48  ;;  %v2771_v48 = vld [vmem:[%s3943_s1 + $0x570] ss:$8 sps:$4 sm:$0xff]  }
  0x68   :  { %1931 = vmatprep.subr.bf16.mxu0 %v2688_v49  ;;  %1971 = vmatpush1.bf16.msra.mxu1 %v2683_v50  ;;  %v2779_v49 = vld [vmem:[%s3943_s1 + $0x584] ss:$8 sps:$4 sm:$0xff]   ;;  %v2774_v50 = vld [vmem:[%s3943_s1 + $0x480] ss:$8 sps:$4 sm:$0xff]  }
  0x69   :  { %1972 = vmatprep.subr.bf16.mxu1 %v2691_v51  ;;  %v2782_v51 = vld [vmem:[%s3943_s1 + $0x494] ss:$8 sps:$4 sm:$0xff]  }
  0x6b   :  { %1932 = vmatpush1.bf16.msra.mxu0 %v2686_v52  ;;  %v2777_v52 = vld [vmem:[%s3943_s1 + $0x580] ss:$8 sps:$4 sm:$0xff]  }
  0x6c   :  { %1933 = vmatprep.subr.bf16.mxu0 %v2694_v53  ;;  %1973 = vmatpush1.bf16.msra.mxu1 %v2689_v54  ;;  %v2785_v53 = vld [vmem:[%s3943_s1 + $0x594] ss:$8 sps:$4 sm:$0xff]   ;;  %v2780_v54 = vld [vmem:[%s3943_s1 + $0x490] ss:$8 sps:$4 sm:$0xff]  }
  0x6d   :  { %1974 = vmatprep.subr.bf16.mxu1 %v2697_v55  ;;  %v2788_v55 = vld [vmem:[%s3943_s1 + $0x4a4] ss:$8 sps:$4 sm:$0xff]  }
  0x6f   :  { %1934 = vmatpush1.bf16.msra.mxu0 %v2692_v56  ;;  %v2783_v56 = vld [vmem:[%s3943_s1 + $0x590] ss:$8 sps:$4 sm:$0xff]  }
  0x70   :  { %1935 = vmatprep.subr.bf16.mxu0 %v2700_v57  ;;  %1975 = vmatpush1.bf16.msra.mxu1 %v2695_v58  ;;  %v2791_v57 = vld [vmem:[%s3943_s1 + $0x5a4] ss:$8 sps:$4 sm:$0xff]   ;;  %v2786_v58 = vld [vmem:[%s3943_s1 + $0x4a0] ss:$8 sps:$4 sm:$0xff]  }
  0x71   :  { %1976 = vmatprep.subr.bf16.mxu1 %v2703_v59  ;;  %v2794_v59 = vld [vmem:[%s3943_s1 + $0x4b4] ss:$8 sps:$4 sm:$0xff]  }
  0x73   :  { %1936 = vmatpush1.bf16.msra.mxu0 %v2698_v60  ;;  %v2789_v60 = vld [vmem:[%s3943_s1 + $0x5a0] ss:$8 sps:$4 sm:$0xff]  }
  0x74   :  { %1937 = vmatprep.subr.bf16.mxu0 %v2706_v61  ;;  %1977 = vmatpush1.bf16.msra.mxu1 %v2701_v62  ;;  %v2797_v61 = vld [vmem:[%s3943_s1 + $0x5b4] ss:$8 sps:$4 sm:$0xff]   ;;  %v2792_v62 = vld [vmem:[%s3943_s1 + $0x4b0] ss:$8 sps:$4 sm:$0xff]  }
  0x75   :  { %1978 = vmatprep.subr.bf16.mxu1 %v2709_v63  ;;  %v2800_v63 = vld [vmem:[%s3943_s1 + $0x4c4] ss:$8 sps:$4 sm:$0xff]  }
  0x77   :  { %1938 = vmatpush1.bf16.msra.mxu0 %v2704_v0  ;;  %v2795_v0 = vld [vmem:[%s3943_s1 + $0x5b0] ss:$8 sps:$4 sm:$0xff]  }
  0x78   :  { %1939 = vmatprep.subr.bf16.mxu0 %v2712_v1  ;;  %1979 = vmatpush1.bf16.msra.mxu1 %v2707_v2  ;;  %v2803_v1 = vld [vmem:[%s3943_s1 + $0x5c4] ss:$8 sps:$4 sm:$0xff]   ;;  %v2798_v2 = vld [vmem:[%s3943_s1 + $0x4c0] ss:$8 sps:$4 sm:$0xff]  }
  0x79   :  { %1980 = vmatprep.subr.bf16.mxu1 %v2715_v3  ;;  %v2806_v3 = vld [vmem:[%s3943_s1 + $0x4d4] ss:$8 sps:$4 sm:$0xff]  }
  0x7b   :  { %1940 = vmatpush1.bf16.msra.mxu0 %v2710_v4  ;;  %v2801_v4 = vld [vmem:[%s3943_s1 + $0x5c0] ss:$8 sps:$4 sm:$0xff]  }
  0x7c   :  { %1941 = vmatprep.subr.bf16.mxu0 %v2718_v5  ;;  %1981 = vmatpush1.bf16.msra.mxu1 %v2713_v6  ;;  %v2809_v5 = vld [vmem:[%s3943_s1 + $0x5d4] ss:$8 sps:$4 sm:$0xff]   ;;  %v2804_v6 = vld [vmem:[%s3943_s1 + $0x4d0] ss:$8 sps:$4 sm:$0xff]  }
  0x7d   :  { %1982 = vmatprep.subr.bf16.mxu1 %v2721_v7  ;;  %v2812_v7 = vld [vmem:[%s3943_s1 + $0x4e4] ss:$8 sps:$4 sm:$0xff]  }
  0x7f   :  { %1942 = vmatpush1.bf16.msra.mxu0 %v2716_v8  ;;  %v2807_v8 = vld [vmem:[%s3943_s1 + $0x5d0] ss:$8 sps:$4 sm:$0xff]  }
  0x80   :  { %1993 = vmatprep.subr.bf16.mxu0 %v2726_v9  ;;  %1983 = vmatpush1.bf16.msra.mxu1 %v2719_v10  ;;  %v2815_v9 = vld [vmem:[%s3943_s1 + $0x5e4] ss:$8 sps:$4 sm:$0xff]   ;;  %v2810_v10 = vld [vmem:[%s3943_s1 + $0x4e0] ss:$8 sps:$4 sm:$0xff]  }
  0x81   :  { %2034 = vmatprep.subr.bf16.mxu1 %v2731_v12  ;;  %v2813_v12 = vld [vmem:[%s3943_s1 + $0x5e0] ss:$8 sps:$4 sm:$0xff]  }
  0x82   :  { %1944 = vmatmul.mubr.bf16.vlgmr.msra.gmra.mrb[4].mxu0 %v2222_v11  ;;  %v2818_v11 = vld [vmem:[%s3943_s1 + $0x4f4] ss:$8 sps:$4 sm:$0xff]  }
  0x83   :  { %1994 = vmatpush1.bf16.msra.mxu0 %v2724_v13  ;;  %1985 = vmatmul.mubr.bf16.vlgmr.msra.gmra.mrb[4].mxu1 %v2224_v14  ;;  %v2816_v13 = vld [vmem:[%s3943_s1 + $0x4f0] ss:$8 sps:$4 sm:$0xff]   ;;  %v2821_v14 = vld [vmem:[%s3943_s1 + $0x5f4] ss:$8 sps:$4 sm:$0xff]  }
  0x84   :  { %1995 = vmatprep.subr.bf16.mxu0 %v2734_v15  ;;  %2035 = vmatpush1.bf16.msra.mxu1 %v2729_v16  ;;  %v2826_v15 = vld [vmem:[%s3943_s1 + $0x604] ss:$8 sps:$4 sm:$0xff]   ;;  %v3618_v16 = vld [vmem:[%s3944_s0 + $0x30] sm:$0xff] }
  0x85   :  { %2025 = vmatprep.mubr.bf16.mxu0 %v2227_v20  ;;  %2036 = vmatprep.subr.bf16.mxu1 %v2737_v19  ;;  %v2226_v19 = vcombine.low %v3427_v17, %v3427_v17  ;;  %v2831_v20 = vld [vmem:[%s3943_s1 + $0x704] ss:$8 sps:$4 sm:$0xff]   ;;  %v2228_v17 = vcombine.low %v3440_v21, %v3440_v21  ;;  %v2832_v21 = vld [vmem:[%s3943_s1 + $0x610] ss:$8 sps:$4 sm:$0xff]  }
  0x86   :  { %2066 = vmatprep.mubr.bf16.mxu1 %v2229_v23  ;;  %v2824_v23 = vld [vmem:[%s3943_s1 + $0x600] ss:$8 sps:$4 sm:$0xff]  }
  0x87   :  { %1996 = vmatpush1.bf16.msra.mxu0 %v2732_v18  ;;  %v2819_v18 = vld [vmem:[%s3943_s1 + $0x5f0] ss:$8 sps:$4 sm:$0xff]  }
  0x88   :  { %1997 = vmatprep.subr.bf16.mxu0 %v2740_v22  ;;  %2037 = vmatpush1.bf16.msra.mxu1 %v2735_v24  ;;  %v3631_v22 = vld [vmem:[%s3944_s0 + $0x38] sm:$0xff]  ;;  %v2231_v24 = vcombine.high %v3618_v16, %v3618_v16 }
  0x89   :  { %2038 = vmatprep.subr.bf16.mxu1 %v2743_v25  ;;  %v2834_v25 = vld [vmem:[%s3943_s1 + $0x614] ss:$8 sps:$4 sm:$0xff]  }
  0x8b   :  { %1998 = vmatpush1.bf16.msra.mxu0 %v2738_v26  ;;  %v2829_v26 = vld [vmem:[%s3943_s1 + $0x700] ss:$8 sps:$4 sm:$0xff]  }
  0x8c   :  { %1999 = vmatprep.subr.bf16.mxu0 %v2746_v27  ;;  %2039 = vmatpush1.bf16.msra.mxu1 %v2741_v28  ;;  %v2233_v27 = vcombine.high %v3631_v22, %v3631_v22  ;;  %v2837_v28 = vld [vmem:[%s3943_s1 + $0x714] ss:$8 sps:$4 sm:$0xff]  }
  0x8d   :  { %2040 = vmatprep.subr.bf16.mxu1 %v2749_v29  ;;  %v2840_v29 = vld [vmem:[%s3943_s1 + $0x624] ss:$8 sps:$4 sm:$0xff]  }
  0x8f   :  { %2000 = vmatpush1.bf16.msra.mxu0 %v2744_v30  ;;  %v2835_v30 = vld [vmem:[%s3943_s1 + $0x710] ss:$8 sps:$4 sm:$0xff]  }
  0x90   :  { %2001 = vmatprep.subr.bf16.mxu0 %v2752_v31  ;;  %2041 = vmatpush1.bf16.msra.mxu1 %v2747_v32  ;;  %v2843_v31 = vld [vmem:[%s3943_s1 + $0x724] ss:$8 sps:$4 sm:$0xff]   ;;  %v2838_v32 = vld [vmem:[%s3943_s1 + $0x620] ss:$8 sps:$4 sm:$0xff]  }
  0x91   :  { %2042 = vmatprep.subr.bf16.mxu1 %v2755_v33  ;;  %v2846_v33 = vld [vmem:[%s3943_s1 + $0x634] ss:$8 sps:$4 sm:$0xff]  }
  0x93   :  { %2002 = vmatpush1.bf16.msra.mxu0 %v2750_v34  ;;  %v2841_v34 = vld [vmem:[%s3943_s1 + $0x720] ss:$8 sps:$4 sm:$0xff]  }
  0x94   :  { %2003 = vmatprep.subr.bf16.mxu0 %v2758_v35  ;;  %2043 = vmatpush1.bf16.msra.mxu1 %v2753_v36  ;;  %v2849_v35 = vld [vmem:[%s3943_s1 + $0x734] ss:$8 sps:$4 sm:$0xff]   ;;  %v2844_v36 = vld [vmem:[%s3943_s1 + $0x630] ss:$8 sps:$4 sm:$0xff]  }
  0x95   :  { %2044 = vmatprep.subr.bf16.mxu1 %v2761_v37  ;;  %v2852_v37 = vld [vmem:[%s3943_s1 + $0x644] ss:$8 sps:$4 sm:$0xff]  }
  0x97   :  { %2004 = vmatpush1.bf16.msra.mxu0 %v2756_v38  ;;  %v2847_v38 = vld [vmem:[%s3943_s1 + $0x730] ss:$8 sps:$4 sm:$0xff]  }
  0x98   :  { %2005 = vmatprep.subr.bf16.mxu0 %v2764_v39  ;;  %2045 = vmatpush1.bf16.msra.mxu1 %v2759_v40  ;;  %v2855_v39 = vld [vmem:[%s3943_s1 + $0x744] ss:$8 sps:$4 sm:$0xff]   ;;  %v2850_v40 = vld [vmem:[%s3943_s1 + $0x640] ss:$8 sps:$4 sm:$0xff]  }
  0x99   :  { %2046 = vmatprep.subr.bf16.mxu1 %v2767_v41  ;;  %v2858_v41 = vld [vmem:[%s3943_s1 + $0x654] ss:$8 sps:$4 sm:$0xff]  }
  0x9b   :  { %2006 = vmatpush1.bf16.msra.mxu0 %v2762_v42  ;;  %v2853_v42 = vld [vmem:[%s3943_s1 + $0x740] ss:$8 sps:$4 sm:$0xff]  }
  0x9c   :  { %2007 = vmatprep.subr.bf16.mxu0 %v2770_v43  ;;  %2047 = vmatpush1.bf16.msra.mxu1 %v2765_v44  ;;  %v2861_v43 = vld [vmem:[%s3943_s1 + $0x754] ss:$8 sps:$4 sm:$0xff]   ;;  %v2856_v44 = vld [vmem:[%s3943_s1 + $0x650] ss:$8 sps:$4 sm:$0xff]  }
  0x9d   :  { %2048 = vmatprep.subr.bf16.mxu1 %v2773_v45  ;;  %v2864_v45 = vld [vmem:[%s3943_s1 + $0x664] ss:$8 sps:$4 sm:$0xff]  }
  0x9f   :  { %2008 = vmatpush1.bf16.msra.mxu0 %v2768_v46  ;;  %v2859_v46 = vld [vmem:[%s3943_s1 + $0x750] ss:$8 sps:$4 sm:$0xff]  }
  0xa0   :  { %2009 = vmatprep.subr.bf16.mxu0 %v2776_v47  ;;  %2049 = vmatpush1.bf16.msra.mxu1 %v2771_v48  ;;  %v2867_v47 = vld [vmem:[%s3943_s1 + $0x764] ss:$8 sps:$4 sm:$0xff]   ;;  %v2862_v48 = vld [vmem:[%s3943_s1 + $0x660] ss:$8 sps:$4 sm:$0xff]  }
  0xa1   :  { %2050 = vmatprep.subr.bf16.mxu1 %v2779_v49  ;;  %v2870_v49 = vld [vmem:[%s3943_s1 + $0x674] ss:$8 sps:$4 sm:$0xff]  }
  0xa3   :  { %2010 = vmatpush1.bf16.msra.mxu0 %v2774_v50  ;;  %v2865_v50 = vld [vmem:[%s3943_s1 + $0x760] ss:$8 sps:$4 sm:$0xff]  }
  0xa4   :  { %2011 = vmatprep.subr.bf16.mxu0 %v2782_v51  ;;  %2051 = vmatpush1.bf16.msra.mxu1 %v2777_v52  ;;  %v2873_v51 = vld [vmem:[%s3943_s1 + $0x774] ss:$8 sps:$4 sm:$0xff]   ;;  %v2868_v52 = vld [vmem:[%s3943_s1 + $0x670] ss:$8 sps:$4 sm:$0xff]  }
  0xa5   :  { %2052 = vmatprep.subr.bf16.mxu1 %v2785_v53  ;;  %v2876_v53 = vld [vmem:[%s3943_s1 + $0x684] ss:$8 sps:$4 sm:$0xff]  }
  0xa7   :  { %2012 = vmatpush1.bf16.msra.mxu0 %v2780_v54  ;;  %v2871_v54 = vld [vmem:[%s3943_s1 + $0x770] ss:$8 sps:$4 sm:$0xff]  }
  0xa8   :  { %2013 = vmatprep.subr.bf16.mxu0 %v2788_v55  ;;  %2053 = vmatpush1.bf16.msra.mxu1 %v2783_v56  ;;  %v2879_v55 = vld [vmem:[%s3943_s1 + $0x784] ss:$8 sps:$4 sm:$0xff]   ;;  %v2874_v56 = vld [vmem:[%s3943_s1 + $0x680] ss:$8 sps:$4 sm:$0xff]  }
  0xa9   :  { %2054 = vmatprep.subr.bf16.mxu1 %v2791_v57  ;;  %v2882_v57 = vld [vmem:[%s3943_s1 + $0x694] ss:$8 sps:$4 sm:$0xff]  }
  0xab   :  { %2014 = vmatpush1.bf16.msra.mxu0 %v2786_v58  ;;  %v2877_v58 = vld [vmem:[%s3943_s1 + $0x780] ss:$8 sps:$4 sm:$0xff]  }
  0xac   :  { %2015 = vmatprep.subr.bf16.mxu0 %v2794_v59  ;;  %2055 = vmatpush1.bf16.msra.mxu1 %v2789_v60  ;;  %v2885_v59 = vld [vmem:[%s3943_s1 + $0x794] ss:$8 sps:$4 sm:$0xff]   ;;  %v2880_v60 = vld [vmem:[%s3943_s1 + $0x690] ss:$8 sps:$4 sm:$0xff]  }
  0xad   :  { %2056 = vmatprep.subr.bf16.mxu1 %v2797_v61  ;;  %v2888_v61 = vld [vmem:[%s3943_s1 + $0x6a4] ss:$8 sps:$4 sm:$0xff]  }
  0xaf   :  { %2016 = vmatpush1.bf16.msra.mxu0 %v2792_v62  ;;  %v2883_v62 = vld [vmem:[%s3943_s1 + $0x790] ss:$8 sps:$4 sm:$0xff]  }
  0xb0   :  { %2017 = vmatprep.subr.bf16.mxu0 %v2800_v63  ;;  %2057 = vmatpush1.bf16.msra.mxu1 %v2795_v0  ;;  %v2891_v63 = vld [vmem:[%s3943_s1 + $0x7a4] ss:$8 sps:$4 sm:$0xff]   ;;  %v2886_v0 = vld [vmem:[%s3943_s1 + $0x6a0] ss:$8 sps:$4 sm:$0xff]  }
  0xb1   :  { %2058 = vmatprep.subr.bf16.mxu1 %v2803_v1  ;;  %v2894_v1 = vld [vmem:[%s3943_s1 + $0x6b4] ss:$8 sps:$4 sm:$0xff]  }
  0xb3   :  { %2018 = vmatpush1.bf16.msra.mxu0 %v2798_v2  ;;  %v2889_v2 = vld [vmem:[%s3943_s1 + $0x7a0] ss:$8 sps:$4 sm:$0xff]  }
  0xb4   :  { %2019 = vmatprep.subr.bf16.mxu0 %v2806_v3  ;;  %2059 = vmatpush1.bf16.msra.mxu1 %v2801_v4  ;;  %v2897_v3 = vld [vmem:[%s3943_s1 + $0x7b4] ss:$8 sps:$4 sm:$0xff]   ;;  %v2892_v4 = vld [vmem:[%s3943_s1 + $0x6b0] ss:$8 sps:$4 sm:$0xff]  }
  0xb5   :  { %2060 = vmatprep.subr.bf16.mxu1 %v2809_v5  ;;  %v2900_v5 = vld [vmem:[%s3943_s1 + $0x6c4] ss:$8 sps:$4 sm:$0xff]  }
  0xb7   :  { %2020 = vmatpush1.bf16.msra.mxu0 %v2804_v6  ;;  %v2895_v6 = vld [vmem:[%s3943_s1 + $0x7b0] ss:$8 sps:$4 sm:$0xff]  }
  0xb8   :  { %2021 = vmatprep.subr.bf16.mxu0 %v2812_v7  ;;  %2061 = vmatpush1.bf16.msra.mxu1 %v2807_v8  ;;  %v2903_v7 = vld [vmem:[%s3943_s1 + $0x7c4] ss:$8 sps:$4 sm:$0xff]   ;;  %v2898_v8 = vld [vmem:[%s3943_s1 + $0x6c0] ss:$8 sps:$4 sm:$0xff]  }
  0xb9   :  { %2062 = vmatprep.subr.bf16.mxu1 %v2815_v9  ;;  %v2906_v9 = vld [vmem:[%s3943_s1 + $0x6d4] ss:$8 sps:$4 sm:$0xff]  }
  0xbb   :  { %2022 = vmatpush1.bf16.msra.mxu0 %v2810_v10  ;;  %v2901_v10 = vld [vmem:[%s3943_s1 + $0x7c0] ss:$8 sps:$4 sm:$0xff]  }
  0xbc   :  { %2023 = vmatprep.subr.bf16.mxu0 %v2818_v11  ;;  %2063 = vmatpush1.bf16.msra.mxu1 %v2813_v12  ;;  %v2909_v11 = vld [vmem:[%s3943_s1 + $0x7d4] ss:$8 sps:$4 sm:$0xff]   ;;  %v2904_v12 = vld [vmem:[%s3943_s1 + $0x6d0] ss:$8 sps:$4 sm:$0xff]  }
  0xbd   :  { %2064 = vmatprep.subr.bf16.mxu1 %v2821_v14  ;;  %v2907_v14 = vld [vmem:[%s3943_s1 + $0x7d0] ss:$8 sps:$4 sm:$0xff]  }
  0xbf   :  { %2024 = vmatpush1.bf16.msra.mxu0 %v2816_v13  ;;  %v2912_v13 = vld [vmem:[%s3943_s1 + $0x6e4] ss:$8 sps:$4 sm:$0xff]  }
  0xc0   :  { %2075 = vmatprep.subr.bf16.mxu0 %v2826_v15  ;;  %2065 = vmatpush1.bf16.msra.mxu1 %v2819_v18  ;;  %v2915_v15 = vld [vmem:[%s3943_s1 + $0x7e4] ss:$8 sps:$4 sm:$0xff]   ;;  %v2910_v18 = vld [vmem:[%s3943_s1 + $0x6e0] ss:$8 sps:$4 sm:$0xff]  }
  0xc1   :  { %2116 = vmatprep.subr.bf16.mxu1 %v2831_v20  ;;  %v2913_v20 = vld [vmem:[%s3943_s1 + $0x7e0] ss:$8 sps:$4 sm:$0xff]  }
  0xc2   :  { %2026 = vmatmul.mubr.bf16.vlgmr.msra.gmra.mrb[8].mxu0 %v2226_v19  ;;  %v2918_v19 = vld [vmem:[%s3943_s1 + $0x6f4] ss:$8 sps:$4 sm:$0xff]  }
  0xc3   :  { %2076 = vmatpush1.bf16.msra.mxu0 %v2824_v23  ;;  %2107 = vmatprep.mubr.bf16.mxu0 %v2231_v24  ;;  %v2921_v23 = vld [vmem:[%s3943_s1 + $0x7f4] ss:$8 sps:$4 sm:$0xff]   ;;  %v2916_v24 = vld [vmem:[%s3943_s1 + $0x6f0] ss:$8 sps:$4 sm:$0xff]  }
  0xc4   :  { %2067 = vmatmul.mubr.bf16.vlgmr.msra.gmra.mrb[8].mxu1 %v2228_v17  ;;  %2077 = vmatprep.subr.bf16.mxu0 %v2834_v25  ;;  %v2926_v17 = vld [vmem:[%s3943_s1 + $0x804] ss:$8 sps:$4 sm:$0xff]  }
  0xc5   :  { %2117 = vmatpush1.bf16.msra.mxu1 %v2829_v26  ;;  %2148 = vmatprep.mubr.bf16.mxu1 %v2233_v27  ;;  %v3828_v25 = vld [vmem:[%s3944_s0 + $0x40] sm:$0xff]  ;;  %v2919_v26 = vld [vmem:[%s3943_s1 + $0x7f0] ss:$8 sps:$4 sm:$0xff]   ;;  %v2230_v27 = vcombine.low %v3618_v16, %v3618_v16 }
  0xc6   :  { %2118 = vmatprep.subr.bf16.mxu1 %v2837_v28  ;;  %v2924_v28 = vld [vmem:[%s3943_s1 + $0x800] ss:$8 sps:$4 sm:$0xff]   ;;  %v2929_v16 = vld [vmem:[%s3943_s1 + $0x810] ss:$8 sps:$4 sm:$0xff]  }
  0xc7   :  { %2078 = vmatpush1.bf16.msra.mxu0 %v2832_v21  ;;  %v2235_v21 = vcombine.high %v3828_v25, %v3828_v25 }
  0xc8   :  { %2079 = vmatprep.subr.bf16.mxu0 %v2840_v29  ;;  %v2232_v29 = vcombine.low %v3631_v22, %v3631_v22  ;;  %v2932_v22 = vld [vmem:[%s3943_s1 + $0x820] ss:$8 sps:$4 sm:$0xff]  }
  0xc9   :  { %2119 = vmatpush1.bf16.msra.mxu1 %v2835_v30  ;;  %v2931_v30 = vld [vmem:[%s3943_s1 + $0x814] ss:$8 sps:$4 sm:$0xff]  }
  0xca   :  { %2120 = vmatprep.subr.bf16.mxu1 %v2843_v31  ;;  %v2934_v31 = vld [vmem:[%s3943_s1 + $0x824] ss:$8 sps:$4 sm:$0xff]  }
  0xcb   :  { %2080 = vmatpush1.bf16.msra.mxu0 %v2838_v32  ;;  %v316_v32 = vlaneseq }
  0xcc   :  { %2081 = vmatprep.subr.bf16.mxu0 %v2846_v33  ;;  %v2937_v33 = vld [vmem:[%s3943_s1 + $0x834] ss:$8 sps:$4 sm:$0xff]  }
  0xcd   :  { %2121 = vmatpush1.bf16.msra.mxu1 %v2841_v34  ;;  %v317_v34 = vshrl.u32 %v316_v32, 7 }
  0xce   :  { %2122 = vmatprep.subr.bf16.mxu1 %v2849_v35  ;;  %v2935_v35 = vld [vmem:[%s3943_s1 + $0x830] ss:$8 sps:$4 sm:$0xff]  }
  0xcf   :  { %2082 = vmatpush1.bf16.msra.mxu0 %v2844_v36  ;;  %v2940_v36 = vld [vmem:[%s3943_s1 + $0x844] ss:$8 sps:$4 sm:$0xff]  }
  0xd0   :  { %2083 = vmatprep.subr.bf16.mxu0 %v2852_v37  ;;  %v318_v37 = vsub.s32 0, %v317_v34 }
  0xd1   :  { %2123 = vmatpush1.bf16.msra.mxu1 %v2847_v38  ;;  %v2938_v38 = vld [vmem:[%s3943_s1 + $0x840] ss:$8 sps:$4 sm:$0xff]  }
  0xd2   :  { %2124 = vmatprep.subr.bf16.mxu1 %v2855_v39  ;;  %v314_v39 = vld [vmem:[%s3945_s2] sm:$0x3] }
  0xd3   :  { %2084 = vmatpush1.bf16.msra.mxu0 %v2850_v40  ;;  %v322_v40 = vsub.s32 1, %v317_v34 }
  0xd4   :  { %2085 = vmatprep.subr.bf16.mxu0 %v2858_v41  ;;  %v2943_v41 = vld [vmem:[%s3943_s1 + $0x854] ss:$8 sps:$4 sm:$0xff]  }
  0xd5   :  { %2125 = vmatpush1.bf16.msra.mxu1 %v2853_v42  ;;  %v319_v42 = vrot.slane %v314_v39, %v318_v37 }
  0xd6   :  { %2126 = vmatprep.subr.bf16.mxu1 %v2861_v43  ;;  %v323_v43 = vrot.slane %v314_v39, %v322_v40 }
  0xd7   :  { %2086 = vmatpush1.bf16.msra.mxu0 %v2856_v44  ;;  %v2941_v44 = vld [vmem:[%s3943_s1 + $0x850] ss:$8 sps:$4 sm:$0xff]  }
  0xd8   :  { %2087 = vmatprep.subr.bf16.mxu0 %v2864_v45  ;;  %v2946_v45 = vld [vmem:[%s3943_s1 + $0x864] ss:$8 sps:$4 sm:$0xff]  }
  0xd9   :  { %2127 = vmatpush1.bf16.msra.mxu1 %v2859_v46 }
  0xda   :  { %2128 = vmatprep.subr.bf16.mxu1 %v2867_v47 }
  0xdb   :  { %2088 = vmatpush1.bf16.msra.mxu0 %v2862_v48 }
  0xdc   :  { %2089 = vmatprep.subr.bf16.mxu0 %v2870_v49 }
  0xdd   :  { %2129 = vmatpush1.bf16.msra.mxu1 %v2865_v50 }
  0xde   :  { %2130 = vmatprep.subr.bf16.mxu1 %v2873_v51 }
  0xdf   :  { %2090 = vmatpush1.bf16.msra.mxu0 %v2868_v52  ;;  %v2944_v52 = vld [vmem:[%s3943_s1 + $0x860] ss:$8 sps:$4 sm:$0xff]  }
  0xe0   :  { %2091 = vmatprep.subr.bf16.mxu0 %v2876_v53 }
  0xe1   :  { %2131 = vmatpush1.bf16.msra.mxu1 %v2871_v54 }
  0xe2   :  { %2132 = vmatprep.subr.bf16.mxu1 %v2879_v55 }
  0xe3   :  { %2092 = vmatpush1.bf16.msra.mxu0 %v2874_v56  ;;  %v2949_v56 = vld [vmem:[%s3943_s1 + $0x874] ss:$8 sps:$4 sm:$0xff]  }
  0xe4   :  { %2093 = vmatprep.subr.bf16.mxu0 %v2882_v57 }
  0xe5   :  { %2133 = vmatpush1.bf16.msra.mxu1 %v2877_v58 }
  0xe6   :  { %2134 = vmatprep.subr.bf16.mxu1 %v2885_v59 }
  0xe7   :  { %2094 = vmatpush1.bf16.msra.mxu0 %v2880_v60  ;;  %v2947_v60 = vld [vmem:[%s3943_s1 + $0x870] ss:$8 sps:$4 sm:$0xff]  }
  0xe8   :  { %2095 = vmatprep.subr.bf16.mxu0 %v2888_v61  ;;  %v2952_v61 = vld [vmem:[%s3943_s1 + $0x884] ss:$8 sps:$4 sm:$0xff]  }
  0xe9   :  { %2135 = vmatpush1.bf16.msra.mxu1 %v2883_v62  ;;  %v2950_v62 = vld [vmem:[%s3943_s1 + $0x880] ss:$8 sps:$4 sm:$0xff]  }
  0xea   :  { %2136 = vmatprep.subr.bf16.mxu1 %v2891_v63  ;;  %v2955_v63 = vld [vmem:[%s3943_s1 + $0x894] ss:$8 sps:$4 sm:$0xff]  }
  0xeb   :  { %2096 = vmatpush1.bf16.msra.mxu0 %v2886_v0  ;;  %v2953_v0 = vld [vmem:[%s3943_s1 + $0x890] ss:$8 sps:$4 sm:$0xff]  }
  0xec   :  { %2097 = vmatprep.subr.bf16.mxu0 %v2894_v1  ;;  %v2958_v1 = vld [vmem:[%s3943_s1 + $0x8a4] ss:$8 sps:$4 sm:$0xff]  }
  0xed   :  { %2137 = vmatpush1.bf16.msra.mxu1 %v2889_v2  ;;  %v2956_v2 = vld [vmem:[%s3943_s1 + $0x8a0] ss:$8 sps:$4 sm:$0xff]  }
  0xee   :  { %2138 = vmatprep.subr.bf16.mxu1 %v2897_v3  ;;  %v2961_v3 = vld [vmem:[%s3943_s1 + $0x8b4] ss:$8 sps:$4 sm:$0xff]  }
  0xef   :  { %2098 = vmatpush1.bf16.msra.mxu0 %v2892_v4  ;;  %v2959_v4 = vld [vmem:[%s3943_s1 + $0x8b0] ss:$8 sps:$4 sm:$0xff]  }
  0xf0   :  { %2099 = vmatprep.subr.bf16.mxu0 %v2900_v5  ;;  %v2964_v5 = vld [vmem:[%s3943_s1 + $0x8c4] ss:$8 sps:$4 sm:$0xff]  }
  0xf1   :  { %2139 = vmatpush1.bf16.msra.mxu1 %v2895_v6  ;;  %v2962_v6 = vld [vmem:[%s3943_s1 + $0x8c0] ss:$8 sps:$4 sm:$0xff]  }
  0xf2   :  { %2140 = vmatprep.subr.bf16.mxu1 %v2903_v7  ;;  %v2967_v7 = vld [vmem:[%s3943_s1 + $0x8d4] ss:$8 sps:$4 sm:$0xff]  }
  0xf3   :  { %2100 = vmatpush1.bf16.msra.mxu0 %v2898_v8  ;;  %v2965_v8 = vld [vmem:[%s3943_s1 + $0x8d0] ss:$8 sps:$4 sm:$0xff]  }
  0xf4   :  { %2101 = vmatprep.subr.bf16.mxu0 %v2906_v9  ;;  %v2970_v9 = vld [vmem:[%s3943_s1 + $0x8e4] ss:$8 sps:$4 sm:$0xff]  }
  0xf5   :  { %2141 = vmatpush1.bf16.msra.mxu1 %v2901_v10  ;;  %v2968_v10 = vld [vmem:[%s3943_s1 + $0x8e0] ss:$8 sps:$4 sm:$0xff]  }
  0xf6   :  { %2142 = vmatprep.subr.bf16.mxu1 %v2909_v11  ;;  %v2973_v11 = vld [vmem:[%s3943_s1 + $0x8f4] ss:$8 sps:$4 sm:$0xff]  }
  0xf7   :  { %2102 = vmatpush1.bf16.msra.mxu0 %v2904_v12  ;;  %v2971_v12 = vld [vmem:[%s3943_s1 + $0x8f0] ss:$8 sps:$4 sm:$0xff]  }
  0xf8   :  { %2103 = vmatprep.subr.bf16.mxu0 %v2912_v13  ;;  %v2234_v13 = vcombine.low %v3828_v25, %v3828_v25 }
  0xf9   :  { %2143 = vmatpush1.bf16.msra.mxu1 %v2907_v14 }
  0xfa   :  { %2144 = vmatprep.subr.bf16.mxu1 %v2915_v15 }
  0xfb   :  { %2104 = vmatpush1.bf16.msra.mxu0 %v2910_v18 }
  0xfc   :  { %2105 = vmatprep.subr.bf16.mxu0 %v2918_v19 }
  0xfd   :  { %2145 = vmatpush1.bf16.msra.mxu1 %v2913_v20 }
  0xfe   :  { %2146 = vmatprep.subr.bf16.mxu1 %v2921_v23 }
  0xff   :  { %2106 = vmatpush1.bf16.msra.mxu0 %v2916_v24 }
 0x100   :  { %2157 = vmatprep.subr.bf16.mxu0 %v2926_v17 }
 0x101   :  { %2147 = vmatpush1.bf16.msra.mxu1 %v2919_v26 }
 0x102   :  { %2108 = vmatmul.mubr.bf16.vlgmr.msra.gmra.mrb[12].mxu0 %v2230_v27 }
 0x103   :  { %2158 = vmatpush1.bf16.msra.mxu0 %v2924_v28  ;;  %2189 = vmatprep.mubr.bf16.mxu0 %v2235_v21 }
 0x104   :  { %2149 = vmatmul.mubr.bf16.vlgmr.msra.gmra.mrb[12].mxu1 %v2232_v29  ;;  %2159 = vmatprep.subr.bf16.mxu0 %v2931_v30 }
 0x107   :  { %2160 = vmatpush1.bf16.msra.mxu0 %v2929_v16 }
 0x108   :  { %2161 = vmatprep.subr.bf16.mxu0 %v2934_v31 }
 0x10b   :  { %2162 = vmatpush1.bf16.msra.mxu0 %v2932_v22 }
 0x10c   :  { %2163 = vmatprep.subr.bf16.mxu0 %v2937_v33 }
 0x10f   :  { %2164 = vmatpush1.bf16.msra.mxu0 %v2935_v35 }
 0x110   :  { %2165 = vmatprep.subr.bf16.mxu0 %v2940_v36 }
 0x113   :  { %2166 = vmatpush1.bf16.msra.mxu0 %v2938_v38 }
 0x114   :  { %2167 = vmatprep.subr.bf16.mxu0 %v2943_v41 }
 0x115   :  { %v1863_v46 = vpop.f32.mrb[0].mxu0 }
 0x116   :  { %v1864_v47 = vadd.f32 %v1863_v46, %v319_v42  ;;  %v1865_v48 = vpop.f32.mrb[1].mxu0  ;;  %v1904_v51 = vpop.f32.mrb[0].mxu1 }
 0x117   :  { %v1866_v49 = vadd.f32 %v1865_v48, %v323_v43  ;;  %v1867_v50 = vpop.f32.mrb[2].mxu0  ;;  %2168 = vmatpush1.bf16.msra.mxu0 %v2941_v44  ;;  %v1906_v55 = vpop.f32.mrb[1].mxu1 }
 0x118   :  { %v1905_v53 = vadd.f32 %v1904_v51, %v1864_v47  ;;  %v1868_v54 = vpop.f32.mrb[3].mxu0  ;;  %2169 = vmatprep.subr.bf16.mxu0 %v2946_v45  ;;  %v1908_v58 = vpop.f32.mrb[2].mxu1  ;;  %v2198_v50 = vld [vmem:[%s3946_s3] sm:$0xff] }
 0x119   :  { %v1907_v57 = vadd.f32 %v1906_v55, %v1866_v49  ;;  %v1909_v59 = vpop.f32.mrb[3].mxu1  ;;  %v2199_v51 = vunpack.c.l.bf16 %v2198_v50 }
 0x11b   :  { %2170 = vmatpush1.bf16.msra.mxu0 %v2944_v52 }
 0x11c   :  { %2171 = vmatprep.subr.bf16.mxu0 %v2949_v56 }
 0x11f   :  { %2172 = vmatpush1.bf16.msra.mxu0 %v2947_v60 }
 0x120   :  { %2173 = vmatprep.subr.bf16.mxu0 %v2952_v61 }
 0x123   :  { %2174 = vmatpush1.bf16.msra.mxu0 %v2950_v62 }
 0x124   :  { %2175 = vmatprep.subr.bf16.mxu0 %v2955_v63 }
 0x127   :  { %2176 = vmatpush1.bf16.msra.mxu0 %v2953_v0 }
 0x128   :  { %2177 = vmatprep.subr.bf16.mxu0 %v2958_v1 }
 0x12b   :  { %2178 = vmatpush1.bf16.msra.mxu0 %v2956_v2 }
 0x12c   :  { %2179 = vmatprep.subr.bf16.mxu0 %v2961_v3 }
 0x12f   :  { %2180 = vmatpush1.bf16.msra.mxu0 %v2959_v4 }
 0x130   :  { %2181 = vmatprep.subr.bf16.mxu0 %v2964_v5 }
 0x133   :  { %2182 = vmatpush1.bf16.msra.mxu0 %v2962_v6 }
 0x134   :  { %2183 = vmatprep.subr.bf16.mxu0 %v2967_v7 }
 0x137   :  { %2184 = vmatpush1.bf16.msra.mxu0 %v2965_v8 }
 0x138   :  { %2185 = vmatprep.subr.bf16.mxu0 %v2970_v9 }
 0x13b   :  { %2186 = vmatpush1.bf16.msra.mxu0 %v2968_v10 }
 0x13c   :  { %2187 = vmatprep.subr.bf16.mxu0 %v2973_v11 }
 0x13f   :  { %2188 = vmatpush1.bf16.msra.mxu0 %v2971_v12 }
 0x142   :  { %2190 = vmatmul.mubr.bf16.vlgmr.msra.gmra.mrb[16].mxu0 %v2234_v13 }
 0x155   :  { %v1945_v14 = vpop.f32.mrb[4].mxu0 }
 0x156   :  { %v1946_v15 = vadd.f32 %v1945_v14, %v1905_v53  ;;  %v1947_v18 = vpop.f32.mrb[5].mxu0  ;;  %v1986_v23 = vpop.f32.mrb[4].mxu1  ;;  %v2200_v53 = vunpack.c.h.bf16 %v2198_v50 }
 0x157   :  { %v1948_v19 = vadd.f32 %v1947_v18, %v1907_v57  ;;  %v1949_v20 = vpop.f32.mrb[6].mxu0  ;;  %v1988_v26 = vpop.f32.mrb[5].mxu1 }
 0x158   :  { %v1987_v24 = vadd.f32 %v1986_v23, %v1946_v15  ;;  %v1950_v17 = vpop.f32.mrb[7].mxu0  ;;  %v1990_v28 = vpop.f32.mrb[6].mxu1 }
 0x159   :  { %v1989_v27 = vadd.f32 %v1988_v26, %v1948_v19  ;;  %v1991_v21 = vpop.f32.mrb[7].mxu1 }
 0x195   :  { %v2027_v29 = vpop.f32.mrb[8].mxu0 }
 0x196   :  { %v2028_v30 = vadd.f32 %v2027_v29, %v1987_v24  ;;  %v2029_v16 = vpop.f32.mrb[9].mxu0 }
 0x197   :  { %v2030_v31 = vadd.f32 %v2029_v16, %v1989_v27  ;;  %v2031_v32 = vpop.f32.mrb[10].mxu0  ;;  %v2068_v25 = vpop.f32.mrb[8].mxu1 }
 0x198   :  { %v2069_v22 = vadd.f32 %v2068_v25, %v2028_v30  ;;  %v2032_v33 = vpop.f32.mrb[11].mxu0  ;;  %v2070_v34 = vpop.f32.mrb[9].mxu1 }
 0x199   :  { %v2071_v35 = vadd.f32 %v2070_v34, %v2030_v31  ;;  %v2072_v36 = vpop.f32.mrb[10].mxu1 }
 0x19a   :  { %v2073_v37 = vpop.f32.mrb[11].mxu1 }
 0x1d5   :  { %v2109_v38 = vpop.f32.mrb[12].mxu0 }
 0x1d6   :  { %v2110_v39 = vadd.f32 %v2109_v38, %v2069_v22  ;;  %v2111_v40 = vpop.f32.mrb[13].mxu0 }
 0x1d7   :  { %v2112_v41 = vadd.f32 %v2111_v40, %v2071_v35  ;;  %v2113_v42 = vpop.f32.mrb[14].mxu0  ;;  %v2150_v43 = vpop.f32.mrb[12].mxu1 }
 0x1d8   :  { %v2151_v44 = vadd.f32 %v2150_v43, %v2110_v39  ;;  %v2114_v45 = vpop.f32.mrb[15].mxu0  ;;  %v2152_v46 = vpop.f32.mrb[13].mxu1 }
 0x1d9   :  { %v2153_v47 = vadd.f32 %v2152_v46, %v2112_v41  ;;  %v2154_v48 = vpop.f32.mrb[14].mxu1 }
 0x1da   :  { %v2155_v49 = vpop.f32.mrb[15].mxu1 }
 0x215   :  { %v2191_v52 = vpop.f32.mrb[16].mxu0 }
 0x216   :  { %v2192_v54 = vadd.f32 %v2191_v52, %v2151_v44  ;;  %v2193_v55 = vpop.f32.mrb[17].mxu0 }
 0x217   :  { %v2194_v56 = vadd.f32 %v2193_v55, %v2153_v47  ;;  %v2195_v57 = vpop.f32.mrb[18].mxu0 }
 0x218   :  { %v2201_v58 = vadd.f32 %v2199_v51, %v2192_v54  ;;  %v2196_v59 = vpop.f32.mrb[19].mxu0 }
 0x219   :  { %v2202_v60 = vadd.f32 %v2200_v53, %v2194_v56 }
 0x21a   :  { %v2203_v61 = vmax.f32 %v2201_v58, 0.0 }
 0x21b   :  { %v2204_v62 = vmax.f32 %v2202_v60, 0.0 }
 0x21d   :  { %v2525_v63 = vpack.c.bf16 %v2204_v62, %v2203_v61 }
 0x21f   :  { %2213 = vst [vmem:[%s3947_s4] sm:$0xff] %v2525_v63 }

// kernel: tile.23
= control target key start
LH: loop header
LB: loop body
LE: loop exit
PB: predicated region body
PF: predicated region fallthrough
CT: control target
= control target key end

     0   :  { %s22_s0 = inlined_call_operand.vmem [shape: f32[128], index: 0, kind: input, shape index: {}]   ;;  %s23_s1 = inlined_call_operand.vmem [shape: f32[4,128], index: 1, kind: output, shape index: {}]  }
   0x1   :  { %v4_v0 = vld [vmem:[%s22_s0] ss:$0 sm:$0xff] }
   0x2   :  { %5 = vst [vmem:[%s23_s1] sm:$0xf] %v4_v0 }

// kernel: neuron_counter_forward.32
= control target key start
LH: loop header
LB: loop body
LE: loop exit
PB: predicated region body
PF: predicated region fallthrough
CT: control target
= control target key end

     0   :  { %s928_s1 = inlined_call_operand.vmem [shape: bf16[256,512], index: 1, kind: input, shape index: {}]   ;;  %s929_s0 = inlined_call_operand.vmem [shape: bf16[8,256], index: 0, kind: input, shape index: {}]   ;;  %s930_s2 = inlined_call_operand.vmem [shape: f32[1,512], index: 2, kind: input, shape index: {}]   ;;  %s931_s3 = inlined_call_operand.vmem [shape: bf16[8,512], index: 3, kind: output, shape index: {}]  }
   0x1   :  { %v606_v0 = vld [vmem:[%s928_s1 + $0x4] ss:$16 sps:$4 sm:$0xff]   ;;  %v608_v1 = vld [vmem:[%s928_s1 + $0xc] ss:$16 sps:$4 sm:$0xff]   ;;  %v610_v2 = vld [vmem:[%s928_s1] ss:$16 sps:$4 sm:$0xff]  }
   0x2   :  { %428 = vmatprep.subr.bf16.mxu0 %v606_v0  ;;  %v611_v3 = vld [vmem:[%s928_s1 + $0x8] ss:$16 sps:$4 sm:$0xff]   ;;  %469 = vmatprep.subr.bf16.mxu1 %v608_v1  ;;  %v612_v4 = vld [vmem:[%s928_s1 + $0x24] ss:$16 sps:$4 sm:$0xff]   ;;  %v614_v5 = vld [vmem:[%s928_s1 + $0x2c] ss:$16 sps:$4 sm:$0xff]  }
   0x3   :  { %429 = vmatpush1.bf16.msra.mxu0 %v610_v2  ;;  %470 = vmatpush1.bf16.msra.mxu1 %v611_v3  ;;  %v616_v6 = vld [vmem:[%s928_s1 + $0x20] ss:$16 sps:$4 sm:$0xff]   ;;  %v617_v7 = vld [vmem:[%s928_s1 + $0x28] ss:$16 sps:$4 sm:$0xff]   ;;  %v618_v8 = vld [vmem:[%s928_s1 + $0x44] ss:$16 sps:$4 sm:$0xff]   ;;  %v81_v3 = vlaneseq }
   0x4   :  { %430 = vmatprep.subr.bf16.mxu0 %v612_v4  ;;  %471 = vmatprep.subr.bf16.mxu1 %v614_v5  ;;  %v620_v9 = vld [vmem:[%s928_s1 + $0x4c] ss:$16 sps:$4 sm:$0xff]   ;;  %v622_v10 = vld [vmem:[%s928_s1 + $0x40] ss:$16 sps:$4 sm:$0xff]   ;;  %v623_v11 = vld [vmem:[%s928_s1 + $0x48] ss:$16 sps:$4 sm:$0xff]  }
   0x5   :  { %v624_v12 = vld [vmem:[%s928_s1 + $0x64] ss:$16 sps:$4 sm:$0xff]   ;;  %v626_v13 = vld [vmem:[%s928_s1 + $0x6c] ss:$16 sps:$4 sm:$0xff]   ;;  %v628_v14 = vld [vmem:[%s928_s1 + $0x60] ss:$16 sps:$4 sm:$0xff]  }
   0x6   :  { %v629_v15 = vld [vmem:[%s928_s1 + $0x68] ss:$16 sps:$4 sm:$0xff]   ;;  %v630_v16 = vld [vmem:[%s928_s1 + $0x84] ss:$16 sps:$4 sm:$0xff]   ;;  %v632_v17 = vld [vmem:[%s928_s1 + $0x8c] ss:$16 sps:$4 sm:$0xff]  }
   0x7   :  { %431 = vmatpush1.bf16.msra.mxu0 %v616_v6  ;;  %472 = vmatpush1.bf16.msra.mxu1 %v617_v7  ;;  %v634_v18 = vld [vmem:[%s928_s1 + $0x80] ss:$16 sps:$4 sm:$0xff]   ;;  %v635_v19 = vld [vmem:[%s928_s1 + $0x88] ss:$16 sps:$4 sm:$0xff]   ;;  %v636_v20 = vld [vmem:[%s928_s1 + $0xa4] ss:$16 sps:$4 sm:$0xff]  }
   0x8   :  { %432 = vmatprep.subr.bf16.mxu0 %v618_v8  ;;  %473 = vmatprep.subr.bf16.mxu1 %v620_v9  ;;  %v638_v21 = vld [vmem:[%s928_s1 + $0xac] ss:$16 sps:$4 sm:$0xff]   ;;  %v640_v22 = vld [vmem:[%s928_s1 + $0xa0] ss:$16 sps:$4 sm:$0xff]   ;;  %v641_v23 = vld [vmem:[%s928_s1 + $0xa8] ss:$16 sps:$4 sm:$0xff]  }
   0x9   :  { %v642_v24 = vld [vmem:[%s928_s1 + $0xc4] ss:$16 sps:$4 sm:$0xff]   ;;  %v644_v25 = vld [vmem:[%s928_s1 + $0xcc] ss:$16 sps:$4 sm:$0xff]   ;;  %v646_v26 = vld [vmem:[%s928_s1 + $0xc0] ss:$16 sps:$4 sm:$0xff]  }
   0xa   :  { %v647_v27 = vld [vmem:[%s928_s1 + $0xc8] ss:$16 sps:$4 sm:$0xff]   ;;  %v648_v28 = vld [vmem:[%s928_s1 + $0xe4] ss:$16 sps:$4 sm:$0xff]   ;;  %v650_v29 = vld [vmem:[%s928_s1 + $0xec] ss:$16 sps:$4 sm:$0xff]  }
   0xb   :  { %433 = vmatpush1.bf16.msra.mxu0 %v622_v10  ;;  %474 = vmatpush1.bf16.msra.mxu1 %v623_v11  ;;  %v652_v30 = vld [vmem:[%s928_s1 + $0xe0] ss:$16 sps:$4 sm:$0xff]   ;;  %v653_v31 = vld [vmem:[%s928_s1 + $0xe8] ss:$16 sps:$4 sm:$0xff]   ;;  %v654_v32 = vld [vmem:[%s928_s1 + $0x104] ss:$16 sps:$4 sm:$0xff]  }
   0xc   :  { %434 = vmatprep.subr.bf16.mxu0 %v624_v12  ;;  %475 = vmatprep.subr.bf16.mxu1 %v626_v13  ;;  %v656_v33 = vld [vmem:[%s928_s1 + $0x10c] ss:$16 sps:$4 sm:$0xff]   ;;  %v658_v34 = vld [vmem:[%s928_s1 + $0x100] ss:$16 sps:$4 sm:$0xff]   ;;  %v659_v35 = vld [vmem:[%s928_s1 + $0x108] ss:$16 sps:$4 sm:$0xff]  }
   0xd   :  { %v660_v36 = vld [vmem:[%s928_s1 + $0x124] ss:$16 sps:$4 sm:$0xff]   ;;  %v662_v37 = vld [vmem:[%s928_s1 + $0x12c] ss:$16 sps:$4 sm:$0xff]   ;;  %v664_v38 = vld [vmem:[%s928_s1 + $0x120] ss:$16 sps:$4 sm:$0xff]  }
   0xe   :  { %v665_v39 = vld [vmem:[%s928_s1 + $0x128] ss:$16 sps:$4 sm:$0xff]   ;;  %v666_v40 = vld [vmem:[%s928_s1 + $0x144] ss:$16 sps:$4 sm:$0xff]   ;;  %v668_v41 = vld [vmem:[%s928_s1 + $0x14c] ss:$16 sps:$4 sm:$0xff]  }
   0xf   :  { %435 = vmatpush1.bf16.msra.mxu0 %v628_v14  ;;  %476 = vmatpush1.bf16.msra.mxu1 %v629_v15  ;;  %v670_v42 = vld [vmem:[%s928_s1 + $0x140] ss:$16 sps:$4 sm:$0xff]   ;;  %v671_v43 = vld [vmem:[%s928_s1 + $0x148] ss:$16 sps:$4 sm:$0xff]   ;;  %v672_v44 = vld [vmem:[%s928_s1 + $0x164] ss:$16 sps:$4 sm:$0xff]  }
  0x10   :  { %436 = vmatprep.subr.bf16.mxu0 %v630_v16  ;;  %477 = vmatprep.subr.bf16.mxu1 %v632_v17  ;;  %v674_v45 = vld [vmem:[%s928_s1 + $0x16c] ss:$16 sps:$4 sm:$0xff]   ;;  %v14_v46 = vld [vmem:[%s929_s0] sm:$0xff]  ;;  %v677_v49 = vld [vmem:[%s928_s1 + $0x168] ss:$16 sps:$4 sm:$0xff]   ;;  %v82_v4 = vshrl.u32 %v81_v3, 7 }
  0x11   :  { %v537_v47 = vcombine.high %v14_v46, %v14_v46  ;;  %v676_v48 = vld [vmem:[%s928_s1 + $0x160] ss:$16 sps:$4 sm:$0xff]   ;;  %v678_v50 = vld [vmem:[%s928_s1 + $0x184] ss:$16 sps:$4 sm:$0xff]   ;;  %v680_v51 = vld [vmem:[%s928_s1 + $0x18c] ss:$16 sps:$4 sm:$0xff]   ;;  %v536_v2 = vcombine.low %v14_v46, %v14_v46 }
  0x12   :  { %v682_v52 = vld [vmem:[%s928_s1 + $0x180] ss:$16 sps:$4 sm:$0xff]   ;;  %v683_v53 = vld [vmem:[%s928_s1 + $0x188] ss:$16 sps:$4 sm:$0xff]   ;;  %v684_v54 = vld [vmem:[%s928_s1 + $0x1a4] ss:$16 sps:$4 sm:$0xff]  }
  0x13   :  { %437 = vmatpush1.bf16.msra.mxu0 %v634_v18  ;;  %478 = vmatpush1.bf16.msra.mxu1 %v635_v19  ;;  %v686_v55 = vld [vmem:[%s928_s1 + $0x1ac] ss:$16 sps:$4 sm:$0xff]   ;;  %v688_v56 = vld [vmem:[%s928_s1 + $0x1a0] ss:$16 sps:$4 sm:$0xff]   ;;  %v689_v57 = vld [vmem:[%s928_s1 + $0x1a8] ss:$16 sps:$4 sm:$0xff]  }
  0x14   :  { %438 = vmatprep.subr.bf16.mxu0 %v636_v20  ;;  %479 = vmatprep.subr.bf16.mxu1 %v638_v21  ;;  %v690_v58 = vld [vmem:[%s928_s1 + $0x1c4] ss:$16 sps:$4 sm:$0xff]   ;;  %v692_v59 = vld [vmem:[%s928_s1 + $0x1cc] ss:$16 sps:$4 sm:$0xff]   ;;  %v694_v60 = vld [vmem:[%s928_s1 + $0x1c0] ss:$16 sps:$4 sm:$0xff]  }
  0x15   :  { %460 = vmatprep.mubr.bf16.mxu0 %v537_v47  ;;  %501 = vmatprep.mubr.bf16.mxu1 %v537_v47  ;;  %v695_v61 = vld [vmem:[%s928_s1 + $0x1c8] ss:$16 sps:$4 sm:$0xff]   ;;  %v696_v62 = vld [vmem:[%s928_s1 + $0x1e4] ss:$16 sps:$4 sm:$0xff]   ;;  %v698_v63 = vld [vmem:[%s928_s1 + $0x1ec] ss:$16 sps:$4 sm:$0xff]  }
  0x16   :  { %v700_v0 = vld [vmem:[%s928_s1 + $0x1e0] ss:$16 sps:$4 sm:$0xff]   ;;  %v701_v1 = vld [vmem:[%s928_s1 + $0x1e8] ss:$16 sps:$4 sm:$0xff]   ;;  %v83_v5 = vsub.s32 0, %v82_v4  ;;  %v91_v6 = vsub.s32 2, %v82_v4 }
  0x17   :  { %439 = vmatpush1.bf16.msra.mxu0 %v640_v22  ;;  %480 = vmatpush1.bf16.msra.mxu1 %v641_v23  ;;  %v79_v7 = vld [vmem:[%s930_s2] sm:$0xf]  ;;  %v87_v8 = vsub.s32 1, %v82_v4  ;;  %v95_v9 = vsub.s32 3, %v82_v4 }
  0x18   :  { %440 = vmatprep.subr.bf16.mxu0 %v642_v24  ;;  %481 = vmatprep.subr.bf16.mxu1 %v644_v25  ;;  %v84_v10 = vrot.slane %v79_v7, %v83_v5  ;;  %v92_v11 = vrot.slane %v79_v7, %v91_v6 }
  0x19   :  { %v88_v12 = vrot.slane %v79_v7, %v87_v8  ;;  %v96_v13 = vrot.slane %v79_v7, %v95_v9 }
  0x1b   :  { %441 = vmatpush1.bf16.msra.mxu0 %v646_v26  ;;  %482 = vmatpush1.bf16.msra.mxu1 %v647_v27 }
  0x1c   :  { %442 = vmatprep.subr.bf16.mxu0 %v648_v28  ;;  %483 = vmatprep.subr.bf16.mxu1 %v650_v29 }
  0x1f   :  { %443 = vmatpush1.bf16.msra.mxu0 %v652_v30  ;;  %484 = vmatpush1.bf16.msra.mxu1 %v653_v31 }
  0x20   :  { %444 = vmatprep.subr.bf16.mxu0 %v654_v32  ;;  %485 = vmatprep.subr.bf16.mxu1 %v656_v33 }
  0x23   :  { %445 = vmatpush1.bf16.msra.mxu0 %v658_v34  ;;  %486 = vmatpush1.bf16.msra.mxu1 %v659_v35 }
  0x24   :  { %446 = vmatprep.subr.bf16.mxu0 %v660_v36  ;;  %487 = vmatprep.subr.bf16.mxu1 %v662_v37 }
  0x27   :  { %447 = vmatpush1.bf16.msra.mxu0 %v664_v38  ;;  %488 = vmatpush1.bf16.msra.mxu1 %v665_v39 }
  0x28   :  { %448 = vmatprep.subr.bf16.mxu0 %v666_v40  ;;  %489 = vmatprep.subr.bf16.mxu1 %v668_v41 }
  0x2b   :  { %449 = vmatpush1.bf16.msra.mxu0 %v670_v42  ;;  %490 = vmatpush1.bf16.msra.mxu1 %v671_v43 }
  0x2c   :  { %450 = vmatprep.subr.bf16.mxu0 %v672_v44  ;;  %491 = vmatprep.subr.bf16.mxu1 %v674_v45 }
  0x2f   :  { %451 = vmatpush1.bf16.msra.mxu0 %v676_v48  ;;  %492 = vmatpush1.bf16.msra.mxu1 %v677_v49 }
  0x30   :  { %452 = vmatprep.subr.bf16.mxu0 %v678_v50  ;;  %493 = vmatprep.subr.bf16.mxu1 %v680_v51 }
  0x33   :  { %453 = vmatpush1.bf16.msra.mxu0 %v682_v52  ;;  %494 = vmatpush1.bf16.msra.mxu1 %v683_v53 }
  0x34   :  { %454 = vmatprep.subr.bf16.mxu0 %v684_v54  ;;  %495 = vmatprep.subr.bf16.mxu1 %v686_v55 }
  0x37   :  { %455 = vmatpush1.bf16.msra.mxu0 %v688_v56  ;;  %496 = vmatpush1.bf16.msra.mxu1 %v689_v57 }
  0x38   :  { %456 = vmatprep.subr.bf16.mxu0 %v690_v58  ;;  %497 = vmatprep.subr.bf16.mxu1 %v692_v59 }
  0x3b   :  { %457 = vmatpush1.bf16.msra.mxu0 %v694_v60  ;;  %498 = vmatpush1.bf16.msra.mxu1 %v695_v61 }
  0x3c   :  { %458 = vmatprep.subr.bf16.mxu0 %v696_v62  ;;  %499 = vmatprep.subr.bf16.mxu1 %v698_v63 }
  0x3f   :  { %459 = vmatpush1.bf16.msra.mxu0 %v700_v0  ;;  %500 = vmatpush1.bf16.msra.mxu1 %v701_v1 }
  0x42   :  { %461 = vmatmul.mubr.bf16.vlgmr.msra.gmra.mrb[0].mxu0 %v536_v2  ;;  %502 = vmatmul.mubr.bf16.vlgmr.msra.gmra.mrb[0].mxu1 %v536_v2 }
 0x115   :  { %v462_v14 = vpop.f32.mrb[0].mxu0  ;;  %v503_v15 = vpop.f32.mrb[0].mxu1 }
 0x116   :  { %v463_v16 = vadd.f32 %v462_v14, %v84_v10  ;;  %v504_v17 = vadd.f32 %v503_v15, %v92_v11  ;;  %v464_v18 = vpop.f32.mrb[1].mxu0  ;;  %v505_v19 = vpop.f32.mrb[1].mxu1 }
 0x117   :  { %v465_v20 = vadd.f32 %v464_v18, %v88_v12  ;;  %v506_v21 = vadd.f32 %v505_v19, %v96_v13  ;;  %v466_v22 = vpop.f32.mrb[2].mxu0  ;;  %v507_v23 = vpop.f32.mrb[2].mxu1 }
 0x118   :  { %v510_v24 = vmax.f32 %v463_v16, 0.0  ;;  %v512_v25 = vmax.f32 %v504_v17, 0.0  ;;  %v467_v26 = vpop.f32.mrb[3].mxu0  ;;  %v508_v27 = vpop.f32.mrb[3].mxu1 }
 0x119   :  { %v511_v28 = vmax.f32 %v465_v20, 0.0  ;;  %v513_v29 = vmax.f32 %v506_v21, 0.0 }
 0x11b   :  { %v604_v30 = vpack.c.bf16 %v511_v28, %v510_v24  ;;  %v605_v31 = vpack.c.bf16 %v513_v29, %v512_v25 }
 0x11d   :  { %530 = vst [vmem:[%s931_s3] sm:$0xff] %v604_v30  ;;  %531 = vst [vmem:[%s931_s3 + $0x8] sm:$0xff] %v605_v31 }

// kernel: tile.28
= control target key start
LH: loop header
LB: loop body
LE: loop exit
PB: predicated region body
PF: predicated region fallthrough
CT: control target
= control target key end

     0   :  { %s22_s0 = inlined_call_operand.vmem [shape: f32[64], index: 0, kind: input, shape index: {}]   ;;  %s23_s1 = inlined_call_operand.vmem [shape: f32[4,64], index: 1, kind: output, shape index: {}]  }
   0x1   :  { %v4_v0 = vld [vmem:[%s22_s0] ss:$0 sm:$0xff] }
   0x2   :  { %5 = vst [vmem:[%s23_s1] sm:$0xf] %v4_v0 }

// kernel: tile.29
= control target key start
LH: loop header
LB: loop body
LE: loop exit
PB: predicated region body
PF: predicated region fallthrough
CT: control target
= control target key end

     0   :  { %s6_s8 = smov 3  ;;  %vm8_vm0 = vcmask 523264   ;;  %s30_s9 = smov 64   ;;  %vm15_vm1 = vcmask 1048064   ;;  %s50_s0 = inlined_call_operand.vmem [shape: f32[4,64], index: 0, kind: input, shape index: {}]   ;;  %s51_s1 = inlined_call_operand.vmem [shape: f32[1,256], index: 1, kind: output, shape index: {}]  }
   0x1   :  { %v4_v0 = vld [vmem:[%s50_s0] sm:$0xf]  ;;  %s11_s0 = smov 3 }
   0x2   :  { %5 = vst [vmem:[#allocation1] sm:$0xf] %v4_v0 }
   0x9   :  { %v12_v1 = vld [vmem:[#allocation1 + $0x1] ss:$2 sm:%s11_s0]   ;;  %v7_v2 = vld [vmem:[#allocation1] ss:$2 sm:%s6_s8]  }
   0xa   :  { %13 = vrot.lane.b32.xlu0 %v12_v1, %s30_s9  ;;  %9 = vst.msk [vmem:[#allocation0] ss:$8 sm:$0x3] %vm8_vm0, %v7_v2  }
  0x7c   :  { %v14_v3 = vpop.permute.xlu0 %13  }
  0x7d   :  { %16 = vst.msk [vmem:[#allocation0] ss:$8 sm:$0x3] %vm15_vm1, %v14_v3  }
  0x84   :  { %v20_v4 = vld [vmem:[#allocation0] sm:$0x1]  ;;  %v24_v5 = vld [vmem:[#allocation0 + $0x8] sm:$0x1] }
  0x85   :  { %22 = vst [vmem:[%s51_s1] sm:$0x1] %v20_v4  ;;  %28 = vst [vmem:[%s51_s1 + $0x1] sm:$0x1] %v24_v5 }

// kernel: neuron_counter_forward.30
= control target key start
LH: loop header
LB: loop body
LE: loop exit
PB: predicated region body
PF: predicated region fallthrough
CT: control target
= control target key end

     0   :  { %s3959_s1 = inlined_call_operand.vmem [shape: bf16[2304,256], index: 1, kind: input, shape index: {}]   ;;  %s3960_s0 = inlined_call_operand.vmem [shape: bf16[8,2304], index: 0, kind: input, shape index: {}]   ;;  %s3961_s2 = inlined_call_operand.vmem [shape: f32[1,256], index: 2, kind: input, shape index: {}]   ;;  %s3962_s3 = inlined_call_operand.vmem [shape: bf16[8,256], index: 3, kind: output, shape index: {}]  }
   0x1   :  { %v2550_v0 = vld [vmem:[%s3959_s1 + $0x4] ss:$8 sps:$4 sm:$0xff]   ;;  %v2554_v2 = vld [vmem:[%s3959_s1] ss:$8 sps:$4 sm:$0xff]   ;;  %v2556_v4 = vld [vmem:[%s3959_s1 + $0x14] ss:$8 sps:$4 sm:$0xff]  }
   0x2   :  { %v2552_v1 = vld [vmem:[%s3959_s1 + $0x404] ss:$8 sps:$4 sm:$0xff]   ;;  %1826 = vmatprep.subr.bf16.mxu1 %v2550_v0  ;;  %v2555_v3 = vld [vmem:[%s3959_s1 + $0x400] ss:$8 sps:$4 sm:$0xff]   ;;  %v2558_v5 = vld [vmem:[%s3959_s1 + $0x414] ss:$8 sps:$4 sm:$0xff]  }
   0x3   :  { %1990 = vmatprep.subr.bf16.mxu0 %v2552_v1  ;;  %1827 = vmatpush1.bf16.msra.mxu1 %v2554_v2  ;;  %v2560_v6 = vld [vmem:[%s3959_s1 + $0x10] ss:$8 sps:$4 sm:$0xff]   ;;  %v2562_v8 = vld [vmem:[%s3959_s1 + $0x24] ss:$8 sps:$4 sm:$0xff]   ;;  %v2566_v10 = vld [vmem:[%s3959_s1 + $0x20] ss:$8 sps:$4 sm:$0xff]  }
   0x4   :  { %1991 = vmatpush1.bf16.msra.mxu0 %v2555_v3  ;;  %1828 = vmatprep.subr.bf16.mxu1 %v2556_v4  ;;  %v2561_v7 = vld [vmem:[%s3959_s1 + $0x410] ss:$8 sps:$4 sm:$0xff]   ;;  %v2564_v9 = vld [vmem:[%s3959_s1 + $0x424] ss:$8 sps:$4 sm:$0xff]   ;;  %v2567_v11 = vld [vmem:[%s3959_s1 + $0x420] ss:$8 sps:$4 sm:$0xff]  }
   0x5   :  { %1992 = vmatprep.subr.bf16.mxu0 %v2558_v5  ;;  %v2568_v12 = vld [vmem:[%s3959_s1 + $0x34] ss:$8 sps:$4 sm:$0xff]   ;;  %v2572_v14 = vld [vmem:[%s3959_s1 + $0x30] ss:$8 sps:$4 sm:$0xff]   ;;  %v2574_v16 = vld [vmem:[%s3959_s1 + $0x44] ss:$8 sps:$4 sm:$0xff]  }
   0x6   :  { %v2570_v13 = vld [vmem:[%s3959_s1 + $0x434] ss:$8 sps:$4 sm:$0xff]   ;;  %v2573_v15 = vld [vmem:[%s3959_s1 + $0x430] ss:$8 sps:$4 sm:$0xff]   ;;  %v2576_v17 = vld [vmem:[%s3959_s1 + $0x444] ss:$8 sps:$4 sm:$0xff]  }
   0x7   :  { %1829 = vmatpush1.bf16.msra.mxu1 %v2560_v6  ;;  %v2578_v18 = vld [vmem:[%s3959_s1 + $0x40] ss:$8 sps:$4 sm:$0xff]   ;;  %v2580_v20 = vld [vmem:[%s3959_s1 + $0x54] ss:$8 sps:$4 sm:$0xff]   ;;  %v2584_v22 = vld [vmem:[%s3959_s1 + $0x50] ss:$8 sps:$4 sm:$0xff]  }
   0x8   :  { %1993 = vmatpush1.bf16.msra.mxu0 %v2561_v7  ;;  %1830 = vmatprep.subr.bf16.mxu1 %v2562_v8  ;;  %v2579_v19 = vld [vmem:[%s3959_s1 + $0x440] ss:$8 sps:$4 sm:$0xff]   ;;  %v2582_v21 = vld [vmem:[%s3959_s1 + $0x454] ss:$8 sps:$4 sm:$0xff]   ;;  %v2585_v23 = vld [vmem:[%s3959_s1 + $0x450] ss:$8 sps:$4 sm:$0xff]  }
   0x9   :  { %1994 = vmatprep.subr.bf16.mxu0 %v2564_v9  ;;  %v2586_v24 = vld [vmem:[%s3959_s1 + $0x64] ss:$8 sps:$4 sm:$0xff]   ;;  %v2590_v26 = vld [vmem:[%s3959_s1 + $0x60] ss:$8 sps:$4 sm:$0xff]   ;;  %v2592_v28 = vld [vmem:[%s3959_s1 + $0x74] ss:$8 sps:$4 sm:$0xff]  }
   0xa   :  { %v2588_v25 = vld [vmem:[%s3959_s1 + $0x464] ss:$8 sps:$4 sm:$0xff]   ;;  %v2591_v27 = vld [vmem:[%s3959_s1 + $0x460] ss:$8 sps:$4 sm:$0xff]   ;;  %v2594_v29 = vld [vmem:[%s3959_s1 + $0x474] ss:$8 sps:$4 sm:$0xff]  }
   0xb   :  { %1831 = vmatpush1.bf16.msra.mxu1 %v2566_v10  ;;  %v2596_v30 = vld [vmem:[%s3959_s1 + $0x70] ss:$8 sps:$4 sm:$0xff]   ;;  %v2598_v32 = vld [vmem:[%s3959_s1 + $0x84] ss:$8 sps:$4 sm:$0xff]   ;;  %v2602_v34 = vld [vmem:[%s3959_s1 + $0x80] ss:$8 sps:$4 sm:$0xff]  }
   0xc   :  { %1995 = vmatpush1.bf16.msra.mxu0 %v2567_v11  ;;  %1832 = vmatprep.subr.bf16.mxu1 %v2568_v12  ;;  %v2597_v31 = vld [vmem:[%s3959_s1 + $0x470] ss:$8 sps:$4 sm:$0xff]   ;;  %v2600_v33 = vld [vmem:[%s3959_s1 + $0x484] ss:$8 sps:$4 sm:$0xff]   ;;  %v2603_v35 = vld [vmem:[%s3959_s1 + $0x480] ss:$8 sps:$4 sm:$0xff]  }
   0xd   :  { %1996 = vmatprep.subr.bf16.mxu0 %v2570_v13  ;;  %v2604_v36 = vld [vmem:[%s3959_s1 + $0x94] ss:$8 sps:$4 sm:$0xff]   ;;  %v2608_v38 = vld [vmem:[%s3959_s1 + $0x90] ss:$8 sps:$4 sm:$0xff]   ;;  %v2610_v40 = vld [vmem:[%s3959_s1 + $0xa4] ss:$8 sps:$4 sm:$0xff]  }
   0xe   :  { %v2606_v37 = vld [vmem:[%s3959_s1 + $0x494] ss:$8 sps:$4 sm:$0xff]   ;;  %v2609_v39 = vld [vmem:[%s3959_s1 + $0x490] ss:$8 sps:$4 sm:$0xff]   ;;  %v2612_v41 = vld [vmem:[%s3959_s1 + $0x4a4] ss:$8 sps:$4 sm:$0xff]  }
   0xf   :  { %1833 = vmatpush1.bf16.msra.mxu1 %v2572_v14  ;;  %v2614_v42 = vld [vmem:[%s3959_s1 + $0xa0] ss:$8 sps:$4 sm:$0xff]   ;;  %v2616_v44 = vld [vmem:[%s3959_s1 + $0xb4] ss:$8 sps:$4 sm:$0xff]   ;;  %v2620_v47 = vld [vmem:[%s3959_s1 + $0xb0] ss:$8 sps:$4 sm:$0xff]  }
  0x10   :  { %1997 = vmatpush1.bf16.msra.mxu0 %v2573_v15  ;;  %1834 = vmatprep.subr.bf16.mxu1 %v2574_v16  ;;  %v2615_v43 = vld [vmem:[%s3959_s1 + $0x4a0] ss:$8 sps:$4 sm:$0xff]   ;;  %v2618_v45 = vld [vmem:[%s3959_s1 + $0x4b4] ss:$8 sps:$4 sm:$0xff]   ;;  %v2621_v49 = vld [vmem:[%s3959_s1 + $0x4b0] ss:$8 sps:$4 sm:$0xff]  }
  0x11   :  { %1998 = vmatprep.subr.bf16.mxu0 %v2576_v17  ;;  %v14_v46 = vld [vmem:[%s3960_s0] sm:$0xff]  ;;  %v2628_v56 = vld [vmem:[%s3959_s1 + $0xd4] ss:$8 sps:$4 sm:$0xff]   ;;  %v2632_v58 = vld [vmem:[%s3959_s1 + $0xd0] ss:$8 sps:$4 sm:$0xff]  }
  0x12   :  { %v2211_v48 = vcombine.high %v14_v46, %v14_v46  ;;  %v18_v50 = vld [vmem:[%s3960_s0 + $0x20] sm:$0xff]  ;;  %v2630_v57 = vld [vmem:[%s3959_s1 + $0x4d4] ss:$8 sps:$4 sm:$0xff]   ;;  %v2633_v59 = vld [vmem:[%s3959_s1 + $0x4d0] ss:$8 sps:$4 sm:$0xff]   ;;  %v2210_v6 = vcombine.low %v14_v46, %v14_v46 }
  0x13   :  { %1835 = vmatpush1.bf16.msra.mxu1 %v2578_v18  ;;  %v2622_v51 = vld [vmem:[%s3959_s1 + $0xc4] ss:$8 sps:$4 sm:$0xff]   ;;  %v2219_v53 = vcombine.high %v18_v50, %v18_v50  ;;  %v2626_v54 = vld [vmem:[%s3959_s1 + $0xc0] ss:$8 sps:$4 sm:$0xff]   ;;  %v2640_v0 = vld [vmem:[%s3959_s1 + $0xf4] ss:$8 sps:$4 sm:$0xff]   ;;  %v2218_v7 = vcombine.low %v18_v50, %v18_v50 }
  0x14   :  { %1999 = vmatpush1.bf16.msra.mxu0 %v2579_v19  ;;  %1836 = vmatprep.subr.bf16.mxu1 %v2580_v20  ;;  %v2624_v52 = vld [vmem:[%s3959_s1 + $0x4c4] ss:$8 sps:$4 sm:$0xff]   ;;  %v2627_v55 = vld [vmem:[%s3959_s1 + $0x4c0] ss:$8 sps:$4 sm:$0xff]   ;;  %v2642_v1 = vld [vmem:[%s3959_s1 + $0x4f4] ss:$8 sps:$4 sm:$0xff]  }
  0x15   :  { %2000 = vmatprep.subr.bf16.mxu0 %v2582_v21  ;;  %1858 = vmatprep.mubr.bf16.mxu1 %v2211_v48  ;;  %v2634_v60 = vld [vmem:[%s3959_s1 + $0xe4] ss:$8 sps:$4 sm:$0xff]   ;;  %v2638_v62 = vld [vmem:[%s3959_s1 + $0xe0] ss:$8 sps:$4 sm:$0xff]   ;;  %v2644_v2 = vld [vmem:[%s3959_s1 + $0xf0] ss:$8 sps:$4 sm:$0xff]  }
  0x16   :  { %2022 = vmatprep.mubr.bf16.mxu0 %v2219_v53  ;;  %v2636_v61 = vld [vmem:[%s3959_s1 + $0x4e4] ss:$8 sps:$4 sm:$0xff]   ;;  %v2639_v63 = vld [vmem:[%s3959_s1 + $0x4e0] ss:$8 sps:$4 sm:$0xff]   ;;  %v2645_v3 = vld [vmem:[%s3959_s1 + $0x4f0] ss:$8 sps:$4 sm:$0xff]  }
  0x17   :  { %1837 = vmatpush1.bf16.msra.mxu1 %v2584_v22  ;;  %v2650_v4 = vld [vmem:[%s3959_s1 + $0x104] ss:$8 sps:$4 sm:$0xff]   ;;  %v2648_v8 = vld [vmem:[%s3959_s1 + $0x100] ss:$8 sps:$4 sm:$0xff]   ;;  %v2658_v10 = vld [vmem:[%s3959_s1 + $0x114] ss:$8 sps:$4 sm:$0xff]  }
  0x18   :  { %2001 = vmatpush1.bf16.msra.mxu0 %v2585_v23  ;;  %1838 = vmatprep.subr.bf16.mxu1 %v2586_v24  ;;  %v2655_v5 = vld [vmem:[%s3959_s1 + $0x504] ss:$8 sps:$4 sm:$0xff]   ;;  %v2653_v9 = vld [vmem:[%s3959_s1 + $0x500] ss:$8 sps:$4 sm:$0xff]   ;;  %v2661_v11 = vld [vmem:[%s3959_s1 + $0x514] ss:$8 sps:$4 sm:$0xff]  }
  0x19   :  { %2002 = vmatprep.subr.bf16.mxu0 %v2588_v25  ;;  %v2656_v12 = vld [vmem:[%s3959_s1 + $0x110] ss:$8 sps:$4 sm:$0xff]   ;;  %v2664_v14 = vld [vmem:[%s3959_s1 + $0x124] ss:$8 sps:$4 sm:$0xff]   ;;  %v2662_v16 = vld [vmem:[%s3959_s1 + $0x120] ss:$8 sps:$4 sm:$0xff]  }
  0x1a   :  { %v2659_v13 = vld [vmem:[%s3959_s1 + $0x510] ss:$8 sps:$4 sm:$0xff]   ;;  %v2667_v15 = vld [vmem:[%s3959_s1 + $0x524] ss:$8 sps:$4 sm:$0xff]   ;;  %v2665_v17 = vld [vmem:[%s3959_s1 + $0x520] ss:$8 sps:$4 sm:$0xff]  }
  0x1b   :  { %1839 = vmatpush1.bf16.msra.mxu1 %v2590_v26  ;;  %v2670_v18 = vld [vmem:[%s3959_s1 + $0x134] ss:$8 sps:$4 sm:$0xff]   ;;  %v2668_v20 = vld [vmem:[%s3959_s1 + $0x130] ss:$8 sps:$4 sm:$0xff]   ;;  %v2676_v22 = vld [vmem:[%s3959_s1 + $0x144] ss:$8 sps:$4 sm:$0xff]  }
  0x1c   :  { %2003 = vmatpush1.bf16.msra.mxu0 %v2591_v27  ;;  %1840 = vmatprep.subr.bf16.mxu1 %v2592_v28  ;;  %v2673_v19 = vld [vmem:[%s3959_s1 + $0x534] ss:$8 sps:$4 sm:$0xff]   ;;  %v2671_v21 = vld [vmem:[%s3959_s1 + $0x530] ss:$8 sps:$4 sm:$0xff]   ;;  %v2679_v23 = vld [vmem:[%s3959_s1 + $0x544] ss:$8 sps:$4 sm:$0xff]  }
  0x1d   :  { %2004 = vmatprep.subr.bf16.mxu0 %v2594_v29  ;;  %v2674_v24 = vld [vmem:[%s3959_s1 + $0x140] ss:$8 sps:$4 sm:$0xff]   ;;  %v2682_v26 = vld [vmem:[%s3959_s1 + $0x154] ss:$8 sps:$4 sm:$0xff]   ;;  %v2680_v28 = vld [vmem:[%s3959_s1 + $0x150] ss:$8 sps:$4 sm:$0xff]  }
  0x1e   :  { %v2677_v25 = vld [vmem:[%s3959_s1 + $0x540] ss:$8 sps:$4 sm:$0xff]   ;;  %v2685_v27 = vld [vmem:[%s3959_s1 + $0x554] ss:$8 sps:$4 sm:$0xff]   ;;  %v2683_v29 = vld [vmem:[%s3959_s1 + $0x550] ss:$8 sps:$4 sm:$0xff]  }
  0x1f   :  { %1841 = vmatpush1.bf16.msra.mxu1 %v2596_v30  ;;  %v2688_v30 = vld [vmem:[%s3959_s1 + $0x164] ss:$8 sps:$4 sm:$0xff]   ;;  %v2706_v46 = vld [vmem:[%s3959_s1 + $0x194] ss:$8 sps:$4 sm:$0xff]   ;;  %v2704_v48 = vld [vmem:[%s3959_s1 + $0x190] ss:$8 sps:$4 sm:$0xff]  }
  0x20   :  { %2005 = vmatpush1.bf16.msra.mxu0 %v2597_v31  ;;  %1842 = vmatprep.subr.bf16.mxu1 %v2598_v32  ;;  %v2691_v31 = vld [vmem:[%s3959_s1 + $0x564] ss:$8 sps:$4 sm:$0xff]   ;;  %v2713_v53 = vld [vmem:[%s3959_s1 + $0x5a0] ss:$8 sps:$4 sm:$0xff]  }
  0x21   :  { %2006 = vmatprep.subr.bf16.mxu0 %v2600_v33  ;;  %v3299_v32 = vld [vmem:[%s3960_s0 + $0x8] sm:$0xff] }
  0x22   :  { %v2686_v33 = vld [vmem:[%s3959_s1 + $0x160] ss:$8 sps:$4 sm:$0xff]   ;;  %v2712_v50 = vld [vmem:[%s3959_s1 + $0x1a4] ss:$8 sps:$4 sm:$0xff]  }
  0x23   :  { %1843 = vmatpush1.bf16.msra.mxu1 %v2602_v34  ;;  %v2689_v34 = vld [vmem:[%s3959_s1 + $0x560] ss:$8 sps:$4 sm:$0xff]  }
  0x24   :  { %2007 = vmatpush1.bf16.msra.mxu0 %v2603_v35  ;;  %1844 = vmatprep.subr.bf16.mxu1 %v2604_v36  ;;  %v2213_v35 = vcombine.high %v3299_v32, %v3299_v32  ;;  %v3312_v36 = vld [vmem:[%s3960_s0 + $0x28] sm:$0xff] }
  0x25   :  { %2008 = vmatprep.subr.bf16.mxu0 %v2606_v37  ;;  %v2694_v37 = vld [vmem:[%s3959_s1 + $0x174] ss:$8 sps:$4 sm:$0xff]  }
  0x27   :  { %1845 = vmatpush1.bf16.msra.mxu1 %v2608_v38  ;;  %v2221_v38 = vcombine.high %v3312_v36, %v3312_v36 }
  0x28   :  { %2009 = vmatpush1.bf16.msra.mxu0 %v2609_v39  ;;  %1846 = vmatprep.subr.bf16.mxu1 %v2610_v40  ;;  %v2697_v39 = vld [vmem:[%s3959_s1 + $0x574] ss:$8 sps:$4 sm:$0xff]   ;;  %v2692_v40 = vld [vmem:[%s3959_s1 + $0x170] ss:$8 sps:$4 sm:$0xff]  }
  0x29   :  { %2010 = vmatprep.subr.bf16.mxu0 %v2612_v41  ;;  %v2695_v41 = vld [vmem:[%s3959_s1 + $0x570] ss:$8 sps:$4 sm:$0xff]  }
  0x2b   :  { %1847 = vmatpush1.bf16.msra.mxu1 %v2614_v42  ;;  %v2700_v42 = vld [vmem:[%s3959_s1 + $0x184] ss:$8 sps:$4 sm:$0xff]  }
  0x2c   :  { %2011 = vmatpush1.bf16.msra.mxu0 %v2615_v43  ;;  %1848 = vmatprep.subr.bf16.mxu1 %v2616_v44  ;;  %v2703_v43 = vld [vmem:[%s3959_s1 + $0x584] ss:$8 sps:$4 sm:$0xff]   ;;  %v2698_v44 = vld [vmem:[%s3959_s1 + $0x180] ss:$8 sps:$4 sm:$0xff]  }
  0x2d   :  { %2012 = vmatprep.subr.bf16.mxu0 %v2618_v45  ;;  %v2701_v45 = vld [vmem:[%s3959_s1 + $0x580] ss:$8 sps:$4 sm:$0xff]  }
  0x2f   :  { %1849 = vmatpush1.bf16.msra.mxu1 %v2620_v47  ;;  %v2709_v47 = vld [vmem:[%s3959_s1 + $0x594] ss:$8 sps:$4 sm:$0xff]  }
  0x30   :  { %2013 = vmatpush1.bf16.msra.mxu0 %v2621_v49  ;;  %1850 = vmatprep.subr.bf16.mxu1 %v2622_v51  ;;  %v2707_v49 = vld [vmem:[%s3959_s1 + $0x590] ss:$8 sps:$4 sm:$0xff]   ;;  %v2715_v51 = vld [vmem:[%s3959_s1 + $0x5a4] ss:$8 sps:$4 sm:$0xff]  }
  0x31   :  { %2014 = vmatprep.subr.bf16.mxu0 %v2624_v52  ;;  %v2710_v52 = vld [vmem:[%s3959_s1 + $0x1a0] ss:$8 sps:$4 sm:$0xff]  }
  0x33   :  { %1851 = vmatpush1.bf16.msra.mxu1 %v2626_v54  ;;  %v2718_v54 = vld [vmem:[%s3959_s1 + $0x1b4] ss:$8 sps:$4 sm:$0xff]  }
  0x34   :  { %2015 = vmatpush1.bf16.msra.mxu0 %v2627_v55  ;;  %1852 = vmatprep.subr.bf16.mxu1 %v2628_v56  ;;  %v2721_v55 = vld [vmem:[%s3959_s1 + $0x5b4] ss:$8 sps:$4 sm:$0xff]   ;;  %v2716_v56 = vld [vmem:[%s3959_s1 + $0x1b0] ss:$8 sps:$4 sm:$0xff]  }
  0x35   :  { %2016 = vmatprep.subr.bf16.mxu0 %v2630_v57  ;;  %v2719_v57 = vld [vmem:[%s3959_s1 + $0x5b0] ss:$8 sps:$4 sm:$0xff]  }
  0x37   :  { %1853 = vmatpush1.bf16.msra.mxu1 %v2632_v58  ;;  %v2724_v58 = vld [vmem:[%s3959_s1 + $0x1c4] ss:$8 sps:$4 sm:$0xff]  }
  0x38   :  { %2017 = vmatpush1.bf16.msra.mxu0 %v2633_v59  ;;  %1854 = vmatprep.subr.bf16.mxu1 %v2634_v60  ;;  %v2727_v59 = vld [vmem:[%s3959_s1 + $0x5c4] ss:$8 sps:$4 sm:$0xff]   ;;  %v2722_v60 = vld [vmem:[%s3959_s1 + $0x1c0] ss:$8 sps:$4 sm:$0xff]  }
  0x39   :  { %2018 = vmatprep.subr.bf16.mxu0 %v2636_v61  ;;  %v2725_v61 = vld [vmem:[%s3959_s1 + $0x5c0] ss:$8 sps:$4 sm:$0xff]  }
  0x3b   :  { %1855 = vmatpush1.bf16.msra.mxu1 %v2638_v62  ;;  %v2730_v62 = vld [vmem:[%s3959_s1 + $0x1d4] ss:$8 sps:$4 sm:$0xff]  }
  0x3c   :  { %2019 = vmatpush1.bf16.msra.mxu0 %v2639_v63  ;;  %1856 = vmatprep.subr.bf16.mxu1 %v2640_v0  ;;  %v2733_v63 = vld [vmem:[%s3959_s1 + $0x5d4] ss:$8 sps:$4 sm:$0xff]   ;;  %v2728_v0 = vld [vmem:[%s3959_s1 + $0x1d0] ss:$8 sps:$4 sm:$0xff]  }
  0x3d   :  { %2020 = vmatprep.subr.bf16.mxu0 %v2642_v1  ;;  %v2731_v1 = vld [vmem:[%s3959_s1 + $0x5d0] ss:$8 sps:$4 sm:$0xff]  }
  0x3f   :  { %1857 = vmatpush1.bf16.msra.mxu1 %v2644_v2  ;;  %v2736_v2 = vld [vmem:[%s3959_s1 + $0x1e4] ss:$8 sps:$4 sm:$0xff]  }
  0x40   :  { %2021 = vmatpush1.bf16.msra.mxu0 %v2645_v3  ;;  %1867 = vmatprep.subr.bf16.mxu1 %v2650_v4  ;;  %v2739_v3 = vld [vmem:[%s3959_s1 + $0x5e4] ss:$8 sps:$4 sm:$0xff]   ;;  %v2734_v4 = vld [vmem:[%s3959_s1 + $0x1e0] ss:$8 sps:$4 sm:$0xff]  }
  0x41   :  { %2031 = vmatprep.subr.bf16.mxu0 %v2655_v5  ;;  %v2737_v5 = vld [vmem:[%s3959_s1 + $0x5e0] ss:$8 sps:$4 sm:$0xff]  }
  0x42   :  { %1859 = vmatmul.mubr.bf16.vlgmr.msra.gmra.mrb[0].mxu1 %v2210_v6  ;;  %v2742_v6 = vld [vmem:[%s3959_s1 + $0x1f4] ss:$8 sps:$4 sm:$0xff]  }
  0x43   :  { %2023 = vmatmul.mubr.bf16.vlgmr.msra.gmra.mrb[0].mxu0 %v2218_v7  ;;  %1868 = vmatpush1.bf16.msra.mxu1 %v2648_v8  ;;  %v2745_v7 = vld [vmem:[%s3959_s1 + $0x5f4] ss:$8 sps:$4 sm:$0xff]   ;;  %v2740_v8 = vld [vmem:[%s3959_s1 + $0x1f0] ss:$8 sps:$4 sm:$0xff]  }
  0x44   :  { %2032 = vmatpush1.bf16.msra.mxu0 %v2653_v9  ;;  %1869 = vmatprep.subr.bf16.mxu1 %v2658_v10  ;;  %v2743_v9 = vld [vmem:[%s3959_s1 + $0x5f0] ss:$8 sps:$4 sm:$0xff]   ;;  %v2750_v10 = vld [vmem:[%s3959_s1 + $0x204] ss:$8 sps:$4 sm:$0xff]  }
  0x45   :  { %2033 = vmatprep.subr.bf16.mxu0 %v2661_v11  ;;  %1899 = vmatprep.mubr.bf16.mxu1 %v2213_v35  ;;  %v2755_v11 = vld [vmem:[%s3959_s1 + $0x604] ss:$8 sps:$4 sm:$0xff]   ;;  %v2777_v35 = vld [vmem:[%s3959_s1 + $0x640] ss:$8 sps:$4 sm:$0xff]  }
  0x46   :  { %2063 = vmatprep.mubr.bf16.mxu0 %v2221_v38  ;;  %v2780_v38 = vld [vmem:[%s3959_s1 + $0x250] ss:$8 sps:$4 sm:$0xff]  }
  0x47   :  { %1870 = vmatpush1.bf16.msra.mxu1 %v2656_v12  ;;  %v2212_v12 = vcombine.low %v3299_v32, %v3299_v32  ;;  %v2776_v32 = vld [vmem:[%s3959_s1 + $0x244] ss:$8 sps:$4 sm:$0xff]  }
  0x48   :  { %2034 = vmatpush1.bf16.msra.mxu0 %v2659_v13  ;;  %1871 = vmatprep.subr.bf16.mxu1 %v2664_v14  ;;  %v2748_v13 = vld [vmem:[%s3959_s1 + $0x200] ss:$8 sps:$4 sm:$0xff]   ;;  %v2220_v14 = vcombine.low %v3312_v36, %v3312_v36  ;;  %v2782_v36 = vld [vmem:[%s3959_s1 + $0x254] ss:$8 sps:$4 sm:$0xff]  }
  0x49   :  { %2035 = vmatprep.subr.bf16.mxu0 %v2667_v15  ;;  %v2753_v15 = vld [vmem:[%s3959_s1 + $0x600] ss:$8 sps:$4 sm:$0xff]  }
  0x4b   :  { %1872 = vmatpush1.bf16.msra.mxu1 %v2662_v16  ;;  %v2758_v16 = vld [vmem:[%s3959_s1 + $0x214] ss:$8 sps:$4 sm:$0xff]  }
  0x4c   :  { %2036 = vmatpush1.bf16.msra.mxu0 %v2665_v17  ;;  %1873 = vmatprep.subr.bf16.mxu1 %v2670_v18  ;;  %v2761_v17 = vld [vmem:[%s3959_s1 + $0x614] ss:$8 sps:$4 sm:$0xff]  }
  0x4d   :  { %2037 = vmatprep.subr.bf16.mxu0 %v2673_v19  ;;  %v3449_v18 = vld [vmem:[%s3960_s0 + $0x10] sm:$0xff] }
  0x4e   :  { %v2215_v19 = vcombine.high %v3449_v18, %v3449_v18 }
  0x4f   :  { %1874 = vmatpush1.bf16.msra.mxu1 %v2668_v20  ;;  %v3456_v20 = vld [vmem:[%s3960_s0 + $0x30] sm:$0xff] }
  0x50   :  { %2038 = vmatpush1.bf16.msra.mxu0 %v2671_v21  ;;  %1875 = vmatprep.subr.bf16.mxu1 %v2676_v22  ;;  %v2756_v21 = vld [vmem:[%s3959_s1 + $0x210] ss:$8 sps:$4 sm:$0xff]  }
  0x51   :  { %2039 = vmatprep.subr.bf16.mxu0 %v2679_v23  ;;  %v2759_v22 = vld [vmem:[%s3959_s1 + $0x610] ss:$8 sps:$4 sm:$0xff]   ;;  %v2223_v23 = vcombine.high %v3456_v20, %v3456_v20 }
  0x53   :  { %1876 = vmatpush1.bf16.msra.mxu1 %v2674_v24  ;;  %v2764_v24 = vld [vmem:[%s3959_s1 + $0x224] ss:$8 sps:$4 sm:$0xff]  }
  0x54   :  { %2040 = vmatpush1.bf16.msra.mxu0 %v2677_v25  ;;  %1877 = vmatprep.subr.bf16.mxu1 %v2682_v26  ;;  %v2767_v25 = vld [vmem:[%s3959_s1 + $0x624] ss:$8 sps:$4 sm:$0xff]   ;;  %v2762_v26 = vld [vmem:[%s3959_s1 + $0x220] ss:$8 sps:$4 sm:$0xff]  }
  0x55   :  { %2041 = vmatprep.subr.bf16.mxu0 %v2685_v27  ;;  %v2765_v27 = vld [vmem:[%s3959_s1 + $0x620] ss:$8 sps:$4 sm:$0xff]  }
  0x57   :  { %1878 = vmatpush1.bf16.msra.mxu1 %v2680_v28  ;;  %v2770_v28 = vld [vmem:[%s3959_s1 + $0x234] ss:$8 sps:$4 sm:$0xff]  }
  0x58   :  { %2042 = vmatpush1.bf16.msra.mxu0 %v2683_v29  ;;  %1879 = vmatprep.subr.bf16.mxu1 %v2688_v30  ;;  %v2773_v29 = vld [vmem:[%s3959_s1 + $0x634] ss:$8 sps:$4 sm:$0xff]   ;;  %v2768_v30 = vld [vmem:[%s3959_s1 + $0x230] ss:$8 sps:$4 sm:$0xff]  }
  0x59   :  { %2043 = vmatprep.subr.bf16.mxu0 %v2691_v31  ;;  %v2771_v31 = vld [vmem:[%s3959_s1 + $0x630] ss:$8 sps:$4 sm:$0xff]  }
  0x5b   :  { %1880 = vmatpush1.bf16.msra.mxu1 %v2686_v33  ;;  %v2779_v33 = vld [vmem:[%s3959_s1 + $0x644] ss:$8 sps:$4 sm:$0xff]  }
  0x5c   :  { %2044 = vmatpush1.bf16.msra.mxu0 %v2689_v34  ;;  %1881 = vmatprep.subr.bf16.mxu1 %v2694_v37  ;;  %v2774_v34 = vld [vmem:[%s3959_s1 + $0x240] ss:$8 sps:$4 sm:$0xff]   ;;  %v2785_v37 = vld [vmem:[%s3959_s1 + $0x654] ss:$8 sps:$4 sm:$0xff]  }
  0x5d   :  { %2045 = vmatprep.subr.bf16.mxu0 %v2697_v39  ;;  %v2783_v39 = vld [vmem:[%s3959_s1 + $0x650] ss:$8 sps:$4 sm:$0xff]  }
  0x5f   :  { %1882 = vmatpush1.bf16.msra.mxu1 %v2692_v40  ;;  %v2788_v40 = vld [vmem:[%s3959_s1 + $0x264] ss:$8 sps:$4 sm:$0xff]  }
  0x60   :  { %2046 = vmatpush1.bf16.msra.mxu0 %v2695_v41  ;;  %1883 = vmatprep.subr.bf16.mxu1 %v2700_v42  ;;  %v2791_v41 = vld [vmem:[%s3959_s1 + $0x664] ss:$8 sps:$4 sm:$0xff]   ;;  %v2786_v42 = vld [vmem:[%s3959_s1 + $0x260] ss:$8 sps:$4 sm:$0xff]  }
  0x61   :  { %2047 = vmatprep.subr.bf16.mxu0 %v2703_v43  ;;  %v2789_v43 = vld [vmem:[%s3959_s1 + $0x660] ss:$8 sps:$4 sm:$0xff]  }
  0x63   :  { %1884 = vmatpush1.bf16.msra.mxu1 %v2698_v44  ;;  %v2794_v44 = vld [vmem:[%s3959_s1 + $0x274] ss:$8 sps:$4 sm:$0xff]  }
  0x64   :  { %2048 = vmatpush1.bf16.msra.mxu0 %v2701_v45  ;;  %1885 = vmatprep.subr.bf16.mxu1 %v2706_v46  ;;  %v2797_v45 = vld [vmem:[%s3959_s1 + $0x674] ss:$8 sps:$4 sm:$0xff]   ;;  %v2792_v46 = vld [vmem:[%s3959_s1 + $0x270] ss:$8 sps:$4 sm:$0xff]  }
  0x65   :  { %2049 = vmatprep.subr.bf16.mxu0 %v2709_v47  ;;  %v2795_v47 = vld [vmem:[%s3959_s1 + $0x670] ss:$8 sps:$4 sm:$0xff]  }
  0x67   :  { %1886 = vmatpush1.bf16.msra.mxu1 %v2704_v48  ;;  %v2800_v48 = vld [vmem:[%s3959_s1 + $0x284] ss:$8 sps:$4 sm:$0xff]  }
  0x68   :  { %2050 = vmatpush1.bf16.msra.mxu0 %v2707_v49  ;;  %1887 = vmatprep.subr.bf16.mxu1 %v2712_v50  ;;  %v2803_v49 = vld [vmem:[%s3959_s1 + $0x684] ss:$8 sps:$4 sm:$0xff]   ;;  %v2798_v50 = vld [vmem:[%s3959_s1 + $0x280] ss:$8 sps:$4 sm:$0xff]  }
  0x69   :  { %2051 = vmatprep.subr.bf16.mxu0 %v2715_v51  ;;  %v2801_v51 = vld [vmem:[%s3959_s1 + $0x680] ss:$8 sps:$4 sm:$0xff]  }
  0x6b   :  { %1888 = vmatpush1.bf16.msra.mxu1 %v2710_v52  ;;  %v2806_v52 = vld [vmem:[%s3959_s1 + $0x294] ss:$8 sps:$4 sm:$0xff]  }
  0x6c   :  { %2052 = vmatpush1.bf16.msra.mxu0 %v2713_v53  ;;  %1889 = vmatprep.subr.bf16.mxu1 %v2718_v54  ;;  %v2809_v53 = vld [vmem:[%s3959_s1 + $0x694] ss:$8 sps:$4 sm:$0xff]   ;;  %v2804_v54 = vld [vmem:[%s3959_s1 + $0x290] ss:$8 sps:$4 sm:$0xff]  }
  0x6d   :  { %2053 = vmatprep.subr.bf16.mxu0 %v2721_v55  ;;  %v2807_v55 = vld [vmem:[%s3959_s1 + $0x690] ss:$8 sps:$4 sm:$0xff]  }
  0x6f   :  { %1890 = vmatpush1.bf16.msra.mxu1 %v2716_v56  ;;  %v2812_v56 = vld [vmem:[%s3959_s1 + $0x2a4] ss:$8 sps:$4 sm:$0xff]  }
  0x70   :  { %2054 = vmatpush1.bf16.msra.mxu0 %v2719_v57  ;;  %1891 = vmatprep.subr.bf16.mxu1 %v2724_v58  ;;  %v2815_v57 = vld [vmem:[%s3959_s1 + $0x6a4] ss:$8 sps:$4 sm:$0xff]   ;;  %v2810_v58 = vld [vmem:[%s3959_s1 + $0x2a0] ss:$8 sps:$4 sm:$0xff]  }
  0x71   :  { %2055 = vmatprep.subr.bf16.mxu0 %v2727_v59  ;;  %v2813_v59 = vld [vmem:[%s3959_s1 + $0x6a0] ss:$8 sps:$4 sm:$0xff]  }
  0x73   :  { %1892 = vmatpush1.bf16.msra.mxu1 %v2722_v60  ;;  %v2818_v60 = vld [vmem:[%s3959_s1 + $0x2b4] ss:$8 sps:$4 sm:$0xff]  }
  0x74   :  { %2056 = vmatpush1.bf16.msra.mxu0 %v2725_v61  ;;  %1893 = vmatprep.subr.bf16.mxu1 %v2730_v62  ;;  %v2821_v61 = vld [vmem:[%s3959_s1 + $0x6b4] ss:$8 sps:$4 sm:$0xff]   ;;  %v2816_v62 = vld [vmem:[%s3959_s1 + $0x2b0] ss:$8 sps:$4 sm:$0xff]  }
  0x75   :  { %2057 = vmatprep.subr.bf16.mxu0 %v2733_v63  ;;  %v2819_v63 = vld [vmem:[%s3959_s1 + $0x6b0] ss:$8 sps:$4 sm:$0xff]  }
  0x77   :  { %1894 = vmatpush1.bf16.msra.mxu1 %v2728_v0  ;;  %v2824_v0 = vld [vmem:[%s3959_s1 + $0x2c4] ss:$8 sps:$4 sm:$0xff]  }
  0x78   :  { %2058 = vmatpush1.bf16.msra.mxu0 %v2731_v1  ;;  %1895 = vmatprep.subr.bf16.mxu1 %v2736_v2  ;;  %v2827_v1 = vld [vmem:[%s3959_s1 + $0x6c4] ss:$8 sps:$4 sm:$0xff]   ;;  %v2822_v2 = vld [vmem:[%s3959_s1 + $0x2c0] ss:$8 sps:$4 sm:$0xff]  }
  0x79   :  { %2059 = vmatprep.subr.bf16.mxu0 %v2739_v3  ;;  %v2825_v3 = vld [vmem:[%s3959_s1 + $0x6c0] ss:$8 sps:$4 sm:$0xff]  }
  0x7b   :  { %1896 = vmatpush1.bf16.msra.mxu1 %v2734_v4  ;;  %v2830_v4 = vld [vmem:[%s3959_s1 + $0x2d4] ss:$8 sps:$4 sm:$0xff]  }
  0x7c   :  { %2060 = vmatpush1.bf16.msra.mxu0 %v2737_v5  ;;  %1897 = vmatprep.subr.bf16.mxu1 %v2742_v6  ;;  %v2833_v5 = vld [vmem:[%s3959_s1 + $0x6d4] ss:$8 sps:$4 sm:$0xff]   ;;  %v2828_v6 = vld [vmem:[%s3959_s1 + $0x2d0] ss:$8 sps:$4 sm:$0xff]  }
  0x7d   :  { %2061 = vmatprep.subr.bf16.mxu0 %v2745_v7  ;;  %v2831_v7 = vld [vmem:[%s3959_s1 + $0x6d0] ss:$8 sps:$4 sm:$0xff]  }
  0x7f   :  { %1898 = vmatpush1.bf16.msra.mxu1 %v2740_v8  ;;  %v2836_v8 = vld [vmem:[%s3959_s1 + $0x2e4] ss:$8 sps:$4 sm:$0xff]  }
  0x80   :  { %2062 = vmatpush1.bf16.msra.mxu0 %v2743_v9  ;;  %1908 = vmatprep.subr.bf16.mxu1 %v2750_v10  ;;  %v2839_v9 = vld [vmem:[%s3959_s1 + $0x6e4] ss:$8 sps:$4 sm:$0xff]   ;;  %v2834_v10 = vld [vmem:[%s3959_s1 + $0x2e0] ss:$8 sps:$4 sm:$0xff]  }
  0x81   :  { %2072 = vmatprep.subr.bf16.mxu0 %v2755_v11  ;;  %v2837_v11 = vld [vmem:[%s3959_s1 + $0x6e0] ss:$8 sps:$4 sm:$0xff]  }
  0x82   :  { %1900 = vmatmul.mubr.bf16.vlgmr.msra.gmra.mrb[0].mxu1 %v2212_v12  ;;  %v2842_v12 = vld [vmem:[%s3959_s1 + $0x2f4] ss:$8 sps:$4 sm:$0xff]  }
  0x83   :  { %2064 = vmatmul.mubr.bf16.vlgmr.msra.gmra.mrb[0].mxu0 %v2220_v14  ;;  %1909 = vmatpush1.bf16.msra.mxu1 %v2748_v13  ;;  %v2845_v13 = vld [vmem:[%s3959_s1 + $0x6f4] ss:$8 sps:$4 sm:$0xff]   ;;  %v2840_v14 = vld [vmem:[%s3959_s1 + $0x2f0] ss:$8 sps:$4 sm:$0xff]  }
  0x84   :  { %2073 = vmatpush1.bf16.msra.mxu0 %v2753_v15  ;;  %1910 = vmatprep.subr.bf16.mxu1 %v2758_v16  ;;  %v2843_v15 = vld [vmem:[%s3959_s1 + $0x6f0] ss:$8 sps:$4 sm:$0xff]   ;;  %v2850_v16 = vld [vmem:[%s3959_s1 + $0x304] ss:$8 sps:$4 sm:$0xff]  }
  0x85   :  { %2074 = vmatprep.subr.bf16.mxu0 %v2761_v17  ;;  %1940 = vmatprep.mubr.bf16.mxu1 %v2215_v19  ;;  %v2855_v17 = vld [vmem:[%s3959_s1 + $0x704] ss:$8 sps:$4 sm:$0xff]   ;;  %v2848_v19 = vld [vmem:[%s3959_s1 + $0x300] ss:$8 sps:$4 sm:$0xff]  }
  0x86   :  { %2104 = vmatprep.mubr.bf16.mxu0 %v2223_v23  ;;  %v2222_v23 = vcombine.low %v3456_v20, %v3456_v20 }
  0x87   :  { %1911 = vmatpush1.bf16.msra.mxu1 %v2756_v21  ;;  %v2853_v21 = vld [vmem:[%s3959_s1 + $0x700] ss:$8 sps:$4 sm:$0xff]  }
  0x88   :  { %2075 = vmatpush1.bf16.msra.mxu0 %v2759_v22  ;;  %1912 = vmatprep.subr.bf16.mxu1 %v2764_v24  ;;  %v2214_v22 = vcombine.low %v3449_v18, %v3449_v18  ;;  %v3653_v24 = vld [vmem:[%s3960_s0 + $0x18] sm:$0xff] }
  0x89   :  { %2076 = vmatprep.subr.bf16.mxu0 %v2767_v25  ;;  %v3658_v25 = vld [vmem:[%s3960_s0 + $0x38] sm:$0xff]  ;;  %v2217_v20 = vcombine.high %v3653_v24, %v3653_v24 }
  0x8a   :  { %v2861_v18 = vld [vmem:[%s3959_s1 + $0x714] ss:$8 sps:$4 sm:$0xff]  }
  0x8b   :  { %1913 = vmatpush1.bf16.msra.mxu1 %v2762_v26  ;;  %v2858_v26 = vld [vmem:[%s3959_s1 + $0x314] ss:$8 sps:$4 sm:$0xff]  }
  0x8c   :  { %2077 = vmatpush1.bf16.msra.mxu0 %v2765_v27  ;;  %1914 = vmatprep.subr.bf16.mxu1 %v2770_v28  ;;  %v2225_v27 = vcombine.high %v3658_v25, %v3658_v25  ;;  %v2856_v28 = vld [vmem:[%s3959_s1 + $0x310] ss:$8 sps:$4 sm:$0xff]  }
  0x8d   :  { %2078 = vmatprep.subr.bf16.mxu0 %v2773_v29  ;;  %v2859_v29 = vld [vmem:[%s3959_s1 + $0x710] ss:$8 sps:$4 sm:$0xff]  }
  0x8f   :  { %1915 = vmatpush1.bf16.msra.mxu1 %v2768_v30  ;;  %v2864_v30 = vld [vmem:[%s3959_s1 + $0x324] ss:$8 sps:$4 sm:$0xff]  }
  0x90   :  { %2079 = vmatpush1.bf16.msra.mxu0 %v2771_v31  ;;  %1916 = vmatprep.subr.bf16.mxu1 %v2776_v32  ;;  %v2867_v31 = vld [vmem:[%s3959_s1 + $0x724] ss:$8 sps:$4 sm:$0xff]   ;;  %v2862_v32 = vld [vmem:[%s3959_s1 + $0x320] ss:$8 sps:$4 sm:$0xff]  }
  0x91   :  { %2080 = vmatprep.subr.bf16.mxu0 %v2779_v33  ;;  %v2865_v33 = vld [vmem:[%s3959_s1 + $0x720] ss:$8 sps:$4 sm:$0xff]  }
  0x93   :  { %1917 = vmatpush1.bf16.msra.mxu1 %v2774_v34  ;;  %v2870_v34 = vld [vmem:[%s3959_s1 + $0x334] ss:$8 sps:$4 sm:$0xff]  }
  0x94   :  { %2081 = vmatpush1.bf16.msra.mxu0 %v2777_v35  ;;  %1918 = vmatprep.subr.bf16.mxu1 %v2782_v36  ;;  %v2873_v35 = vld [vmem:[%s3959_s1 + $0x734] ss:$8 sps:$4 sm:$0xff]   ;;  %v2868_v36 = vld [vmem:[%s3959_s1 + $0x330] ss:$8 sps:$4 sm:$0xff]  }
  0x95   :  { %2082 = vmatprep.subr.bf16.mxu0 %v2785_v37  ;;  %v2871_v37 = vld [vmem:[%s3959_s1 + $0x730] ss:$8 sps:$4 sm:$0xff]  }
  0x97   :  { %1919 = vmatpush1.bf16.msra.mxu1 %v2780_v38  ;;  %v2876_v38 = vld [vmem:[%s3959_s1 + $0x344] ss:$8 sps:$4 sm:$0xff]  }
  0x98   :  { %2083 = vmatpush1.bf16.msra.mxu0 %v2783_v39  ;;  %1920 = vmatprep.subr.bf16.mxu1 %v2788_v40  ;;  %v2879_v39 = vld [vmem:[%s3959_s1 + $0x744] ss:$8 sps:$4 sm:$0xff]   ;;  %v2874_v40 = vld [vmem:[%s3959_s1 + $0x340] ss:$8 sps:$4 sm:$0xff]  }
  0x99   :  { %2084 = vmatprep.subr.bf16.mxu0 %v2791_v41  ;;  %v2877_v41 = vld [vmem:[%s3959_s1 + $0x740] ss:$8 sps:$4 sm:$0xff]  }
  0x9b   :  { %1921 = vmatpush1.bf16.msra.mxu1 %v2786_v42  ;;  %v2882_v42 = vld [vmem:[%s3959_s1 + $0x354] ss:$8 sps:$4 sm:$0xff]  }
  0x9c   :  { %2085 = vmatpush1.bf16.msra.mxu0 %v2789_v43  ;;  %1922 = vmatprep.subr.bf16.mxu1 %v2794_v44  ;;  %v2885_v43 = vld [vmem:[%s3959_s1 + $0x754] ss:$8 sps:$4 sm:$0xff]   ;;  %v2880_v44 = vld [vmem:[%s3959_s1 + $0x350] ss:$8 sps:$4 sm:$0xff]  }
  0x9d   :  { %2086 = vmatprep.subr.bf16.mxu0 %v2797_v45  ;;  %v2883_v45 = vld [vmem:[%s3959_s1 + $0x750] ss:$8 sps:$4 sm:$0xff]  }
  0x9f   :  { %1923 = vmatpush1.bf16.msra.mxu1 %v2792_v46  ;;  %v2888_v46 = vld [vmem:[%s3959_s1 + $0x364] ss:$8 sps:$4 sm:$0xff]  }
  0xa0   :  { %2087 = vmatpush1.bf16.msra.mxu0 %v2795_v47  ;;  %1924 = vmatprep.subr.bf16.mxu1 %v2800_v48  ;;  %v2891_v47 = vld [vmem:[%s3959_s1 + $0x764] ss:$8 sps:$4 sm:$0xff]   ;;  %v2886_v48 = vld [vmem:[%s3959_s1 + $0x360] ss:$8 sps:$4 sm:$0xff]  }
  0xa1   :  { %2088 = vmatprep.subr.bf16.mxu0 %v2803_v49  ;;  %v2889_v49 = vld [vmem:[%s3959_s1 + $0x760] ss:$8 sps:$4 sm:$0xff]  }
  0xa3   :  { %1925 = vmatpush1.bf16.msra.mxu1 %v2798_v50  ;;  %v2894_v50 = vld [vmem:[%s3959_s1 + $0x374] ss:$8 sps:$4 sm:$0xff]  }
  0xa4   :  { %2089 = vmatpush1.bf16.msra.mxu0 %v2801_v51  ;;  %1926 = vmatprep.subr.bf16.mxu1 %v2806_v52  ;;  %v2897_v51 = vld [vmem:[%s3959_s1 + $0x774] ss:$8 sps:$4 sm:$0xff]   ;;  %v2892_v52 = vld [vmem:[%s3959_s1 + $0x370] ss:$8 sps:$4 sm:$0xff]  }
  0xa5   :  { %2090 = vmatprep.subr.bf16.mxu0 %v2809_v53  ;;  %v2895_v53 = vld [vmem:[%s3959_s1 + $0x770] ss:$8 sps:$4 sm:$0xff]  }
  0xa7   :  { %1927 = vmatpush1.bf16.msra.mxu1 %v2804_v54  ;;  %v2900_v54 = vld [vmem:[%s3959_s1 + $0x384] ss:$8 sps:$4 sm:$0xff]  }
  0xa8   :  { %2091 = vmatpush1.bf16.msra.mxu0 %v2807_v55  ;;  %1928 = vmatprep.subr.bf16.mxu1 %v2812_v56  ;;  %v2903_v55 = vld [vmem:[%s3959_s1 + $0x784] ss:$8 sps:$4 sm:$0xff]   ;;  %v2898_v56 = vld [vmem:[%s3959_s1 + $0x380] ss:$8 sps:$4 sm:$0xff]  }
  0xa9   :  { %2092 = vmatprep.subr.bf16.mxu0 %v2815_v57  ;;  %v2901_v57 = vld [vmem:[%s3959_s1 + $0x780] ss:$8 sps:$4 sm:$0xff]  }
  0xab   :  { %1929 = vmatpush1.bf16.msra.mxu1 %v2810_v58  ;;  %v2906_v58 = vld [vmem:[%s3959_s1 + $0x394] ss:$8 sps:$4 sm:$0xff]  }
  0xac   :  { %2093 = vmatpush1.bf16.msra.mxu0 %v2813_v59  ;;  %1930 = vmatprep.subr.bf16.mxu1 %v2818_v60  ;;  %v2909_v59 = vld [vmem:[%s3959_s1 + $0x794] ss:$8 sps:$4 sm:$0xff]   ;;  %v2904_v60 = vld [vmem:[%s3959_s1 + $0x390] ss:$8 sps:$4 sm:$0xff]  }
  0xad   :  { %2094 = vmatprep.subr.bf16.mxu0 %v2821_v61  ;;  %v2907_v61 = vld [vmem:[%s3959_s1 + $0x790] ss:$8 sps:$4 sm:$0xff]  }
  0xaf   :  { %1931 = vmatpush1.bf16.msra.mxu1 %v2816_v62  ;;  %v2912_v62 = vld [vmem:[%s3959_s1 + $0x3a4] ss:$8 sps:$4 sm:$0xff]  }
  0xb0   :  { %2095 = vmatpush1.bf16.msra.mxu0 %v2819_v63  ;;  %1932 = vmatprep.subr.bf16.mxu1 %v2824_v0  ;;  %v2915_v63 = vld [vmem:[%s3959_s1 + $0x7a4] ss:$8 sps:$4 sm:$0xff]   ;;  %v2910_v0 = vld [vmem:[%s3959_s1 + $0x3a0] ss:$8 sps:$4 sm:$0xff]  }
  0xb1   :  { %2096 = vmatprep.subr.bf16.mxu0 %v2827_v1  ;;  %v2913_v1 = vld [vmem:[%s3959_s1 + $0x7a0] ss:$8 sps:$4 sm:$0xff]  }
  0xb3   :  { %1933 = vmatpush1.bf16.msra.mxu1 %v2822_v2  ;;  %v2918_v2 = vld [vmem:[%s3959_s1 + $0x3b4] ss:$8 sps:$4 sm:$0xff]  }
  0xb4   :  { %2097 = vmatpush1.bf16.msra.mxu0 %v2825_v3  ;;  %1934 = vmatprep.subr.bf16.mxu1 %v2830_v4  ;;  %v2921_v3 = vld [vmem:[%s3959_s1 + $0x7b4] ss:$8 sps:$4 sm:$0xff]   ;;  %v2916_v4 = vld [vmem:[%s3959_s1 + $0x3b0] ss:$8 sps:$4 sm:$0xff]  }
  0xb5   :  { %2098 = vmatprep.subr.bf16.mxu0 %v2833_v5  ;;  %v2919_v5 = vld [vmem:[%s3959_s1 + $0x7b0] ss:$8 sps:$4 sm:$0xff]  }
  0xb7   :  { %1935 = vmatpush1.bf16.msra.mxu1 %v2828_v6  ;;  %v2924_v6 = vld [vmem:[%s3959_s1 + $0x3c4] ss:$8 sps:$4 sm:$0xff]  }
  0xb8   :  { %2099 = vmatpush1.bf16.msra.mxu0 %v2831_v7  ;;  %1936 = vmatprep.subr.bf16.mxu1 %v2836_v8  ;;  %v2927_v7 = vld [vmem:[%s3959_s1 + $0x7c4] ss:$8 sps:$4 sm:$0xff]   ;;  %v2922_v8 = vld [vmem:[%s3959_s1 + $0x3c0] ss:$8 sps:$4 sm:$0xff]  }
  0xb9   :  { %2100 = vmatprep.subr.bf16.mxu0 %v2839_v9  ;;  %v2925_v9 = vld [vmem:[%s3959_s1 + $0x7c0] ss:$8 sps:$4 sm:$0xff]  }
  0xbb   :  { %1937 = vmatpush1.bf16.msra.mxu1 %v2834_v10  ;;  %v2930_v10 = vld [vmem:[%s3959_s1 + $0x3d4] ss:$8 sps:$4 sm:$0xff]  }
  0xbc   :  { %2101 = vmatpush1.bf16.msra.mxu0 %v2837_v11  ;;  %1938 = vmatprep.subr.bf16.mxu1 %v2842_v12  ;;  %v2933_v11 = vld [vmem:[%s3959_s1 + $0x7d4] ss:$8 sps:$4 sm:$0xff]   ;;  %v2928_v12 = vld [vmem:[%s3959_s1 + $0x3d0] ss:$8 sps:$4 sm:$0xff]  }
  0xbd   :  { %2102 = vmatprep.subr.bf16.mxu0 %v2845_v13  ;;  %v2931_v13 = vld [vmem:[%s3959_s1 + $0x7d0] ss:$8 sps:$4 sm:$0xff]  }
  0xbf   :  { %1939 = vmatpush1.bf16.msra.mxu1 %v2840_v14  ;;  %v2936_v14 = vld [vmem:[%s3959_s1 + $0x3e4] ss:$8 sps:$4 sm:$0xff]  }
  0xc0   :  { %2103 = vmatpush1.bf16.msra.mxu0 %v2843_v15  ;;  %1949 = vmatprep.subr.bf16.mxu1 %v2850_v16  ;;  %v2939_v15 = vld [vmem:[%s3959_s1 + $0x7e4] ss:$8 sps:$4 sm:$0xff]   ;;  %v2934_v16 = vld [vmem:[%s3959_s1 + $0x3e0] ss:$8 sps:$4 sm:$0xff]  }
  0xc1   :  { %2113 = vmatprep.subr.bf16.mxu0 %v2855_v17  ;;  %v2937_v17 = vld [vmem:[%s3959_s1 + $0x7e0] ss:$8 sps:$4 sm:$0xff]  }
  0xc2   :  { %1941 = vmatmul.mubr.bf16.vlgmr.msra.gmra.mrb[0].mxu1 %v2214_v22  ;;  %v2940_v22 = vld [vmem:[%s3959_s1 + $0x3f0] ss:$8 sps:$4 sm:$0xff]  }
  0xc3   :  { %2105 = vmatmul.mubr.bf16.vlgmr.msra.gmra.mrb[0].mxu0 %v2222_v23  ;;  %1950 = vmatpush1.bf16.msra.mxu1 %v2848_v19  ;;  %v2942_v19 = vld [vmem:[%s3959_s1 + $0x3f4] ss:$8 sps:$4 sm:$0xff]   ;;  %v2943_v23 = vld [vmem:[%s3959_s1 + $0x7f0] ss:$8 sps:$4 sm:$0xff]  }
  0xc4   :  { %2114 = vmatpush1.bf16.msra.mxu0 %v2853_v21  ;;  %1951 = vmatprep.subr.bf16.mxu1 %v2858_v26  ;;  %v2945_v21 = vld [vmem:[%s3959_s1 + $0x7f4] ss:$8 sps:$4 sm:$0xff]   ;;  %v2952_v26 = vld [vmem:[%s3959_s1 + $0x804] ss:$8 sps:$4 sm:$0xff]  }
  0xc5   :  { %2115 = vmatprep.subr.bf16.mxu0 %v2861_v18  ;;  %1981 = vmatprep.mubr.bf16.mxu1 %v2217_v20  ;;  %v3850_v18 = vld [vmem:[%s3960_s0 + $0x40] sm:$0xff]  ;;  %v2216_v20 = vcombine.low %v3653_v24, %v3653_v24  ;;  %v2953_v24 = vld [vmem:[%s3959_s1 + $0x810] ss:$8 sps:$4 sm:$0xff]  }
  0xc6   :  { %2145 = vmatprep.mubr.bf16.mxu0 %v2225_v27  ;;  %v2224_v27 = vcombine.low %v3658_v25, %v3658_v25  ;;  %v2958_v25 = vld [vmem:[%s3959_s1 + $0x824] ss:$8 sps:$4 sm:$0xff]  }
  0xc7   :  { %1952 = vmatpush1.bf16.msra.mxu1 %v2856_v28  ;;  %v2950_v28 = vld [vmem:[%s3959_s1 + $0x800] ss:$8 sps:$4 sm:$0xff]  }
  0xc8   :  { %2116 = vmatpush1.bf16.msra.mxu0 %v2859_v29  ;;  %1953 = vmatprep.subr.bf16.mxu1 %v2864_v30  ;;  %v2227_v29 = vcombine.high %v3850_v18, %v3850_v18  ;;  %v2955_v30 = vld [vmem:[%s3959_s1 + $0x814] ss:$8 sps:$4 sm:$0xff]  }
  0xc9   :  { %2117 = vmatprep.subr.bf16.mxu0 %v2867_v31  ;;  %v2956_v31 = vld [vmem:[%s3959_s1 + $0x820] ss:$8 sps:$4 sm:$0xff]  }
  0xcb   :  { %1954 = vmatpush1.bf16.msra.mxu1 %v2862_v32  ;;  %v2961_v32 = vld [vmem:[%s3959_s1 + $0x834] ss:$8 sps:$4 sm:$0xff]  }
  0xcc   :  { %2118 = vmatpush1.bf16.msra.mxu0 %v2865_v33  ;;  %1955 = vmatprep.subr.bf16.mxu1 %v2870_v34  ;;  %v2959_v33 = vld [vmem:[%s3959_s1 + $0x830] ss:$8 sps:$4 sm:$0xff]   ;;  %v2964_v34 = vld [vmem:[%s3959_s1 + $0x844] ss:$8 sps:$4 sm:$0xff]  }
  0xcd   :  { %2119 = vmatprep.subr.bf16.mxu0 %v2873_v35  ;;  %v2962_v35 = vld [vmem:[%s3959_s1 + $0x840] ss:$8 sps:$4 sm:$0xff]  }
  0xcf   :  { %1956 = vmatpush1.bf16.msra.mxu1 %v2868_v36  ;;  %v2967_v36 = vld [vmem:[%s3959_s1 + $0x854] ss:$8 sps:$4 sm:$0xff]  }
  0xd0   :  { %2120 = vmatpush1.bf16.msra.mxu0 %v2871_v37  ;;  %1957 = vmatprep.subr.bf16.mxu1 %v2876_v38  ;;  %v2965_v37 = vld [vmem:[%s3959_s1 + $0x850] ss:$8 sps:$4 sm:$0xff]   ;;  %v2970_v38 = vld [vmem:[%s3959_s1 + $0x864] ss:$8 sps:$4 sm:$0xff]  }
  0xd1   :  { %2121 = vmatprep.subr.bf16.mxu0 %v2879_v39  ;;  %v2968_v39 = vld [vmem:[%s3959_s1 + $0x860] ss:$8 sps:$4 sm:$0xff]  }
  0xd3   :  { %1958 = vmatpush1.bf16.msra.mxu1 %v2874_v40  ;;  %v2973_v40 = vld [vmem:[%s3959_s1 + $0x874] ss:$8 sps:$4 sm:$0xff]  }
  0xd4   :  { %2122 = vmatpush1.bf16.msra.mxu0 %v2877_v41  ;;  %1959 = vmatprep.subr.bf16.mxu1 %v2882_v42  ;;  %v2971_v41 = vld [vmem:[%s3959_s1 + $0x870] ss:$8 sps:$4 sm:$0xff]   ;;  %v2976_v42 = vld [vmem:[%s3959_s1 + $0x884] ss:$8 sps:$4 sm:$0xff]  }
  0xd5   :  { %2123 = vmatprep.subr.bf16.mxu0 %v2885_v43  ;;  %v2974_v43 = vld [vmem:[%s3959_s1 + $0x880] ss:$8 sps:$4 sm:$0xff]  }
  0xd7   :  { %1960 = vmatpush1.bf16.msra.mxu1 %v2880_v44  ;;  %v2979_v44 = vld [vmem:[%s3959_s1 + $0x894] ss:$8 sps:$4 sm:$0xff]  }
  0xd8   :  { %2124 = vmatpush1.bf16.msra.mxu0 %v2883_v45  ;;  %1961 = vmatprep.subr.bf16.mxu1 %v2888_v46  ;;  %v2977_v45 = vld [vmem:[%s3959_s1 + $0x890] ss:$8 sps:$4 sm:$0xff]   ;;  %v2982_v46 = vld [vmem:[%s3959_s1 + $0x8a4] ss:$8 sps:$4 sm:$0xff]  }
  0xd9   :  { %2125 = vmatprep.subr.bf16.mxu0 %v2891_v47  ;;  %v2980_v47 = vld [vmem:[%s3959_s1 + $0x8a0] ss:$8 sps:$4 sm:$0xff]  }
  0xdb   :  { %1962 = vmatpush1.bf16.msra.mxu1 %v2886_v48  ;;  %v2985_v48 = vld [vmem:[%s3959_s1 + $0x8b4] ss:$8 sps:$4 sm:$0xff]  }
  0xdc   :  { %2126 = vmatpush1.bf16.msra.mxu0 %v2889_v49  ;;  %1963 = vmatprep.subr.bf16.mxu1 %v2894_v50  ;;  %v2983_v49 = vld [vmem:[%s3959_s1 + $0x8b0] ss:$8 sps:$4 sm:$0xff]   ;;  %v2988_v50 = vld [vmem:[%s3959_s1 + $0x8c4] ss:$8 sps:$4 sm:$0xff]  }
  0xdd   :  { %2127 = vmatprep.subr.bf16.mxu0 %v2897_v51  ;;  %v2986_v51 = vld [vmem:[%s3959_s1 + $0x8c0] ss:$8 sps:$4 sm:$0xff]  }
  0xdf   :  { %1964 = vmatpush1.bf16.msra.mxu1 %v2892_v52  ;;  %v2991_v52 = vld [vmem:[%s3959_s1 + $0x8d4] ss:$8 sps:$4 sm:$0xff]  }
  0xe0   :  { %2128 = vmatpush1.bf16.msra.mxu0 %v2895_v53  ;;  %1965 = vmatprep.subr.bf16.mxu1 %v2900_v54  ;;  %v2989_v53 = vld [vmem:[%s3959_s1 + $0x8d0] ss:$8 sps:$4 sm:$0xff]   ;;  %v2994_v54 = vld [vmem:[%s3959_s1 + $0x8e4] ss:$8 sps:$4 sm:$0xff]  }
  0xe1   :  { %2129 = vmatprep.subr.bf16.mxu0 %v2903_v55  ;;  %v2992_v55 = vld [vmem:[%s3959_s1 + $0x8e0] ss:$8 sps:$4 sm:$0xff]  }
  0xe3   :  { %1966 = vmatpush1.bf16.msra.mxu1 %v2898_v56  ;;  %v2997_v56 = vld [vmem:[%s3959_s1 + $0x8f4] ss:$8 sps:$4 sm:$0xff]  }
  0xe4   :  { %2130 = vmatpush1.bf16.msra.mxu0 %v2901_v57  ;;  %1967 = vmatprep.subr.bf16.mxu1 %v2906_v58  ;;  %v2995_v57 = vld [vmem:[%s3959_s1 + $0x8f0] ss:$8 sps:$4 sm:$0xff]   ;;  %v2226_v58 = vcombine.low %v3850_v18, %v3850_v18 }
  0xe5   :  { %2131 = vmatprep.subr.bf16.mxu0 %v2909_v59 }
  0xe7   :  { %1968 = vmatpush1.bf16.msra.mxu1 %v2904_v60 }
  0xe8   :  { %2132 = vmatpush1.bf16.msra.mxu0 %v2907_v61  ;;  %1969 = vmatprep.subr.bf16.mxu1 %v2912_v62 }
  0xe9   :  { %2133 = vmatprep.subr.bf16.mxu0 %v2915_v63  ;;  %v313_v63 = vlaneseq }
  0xeb   :  { %1970 = vmatpush1.bf16.msra.mxu1 %v2910_v0  ;;  %v314_v0 = vshrl.u32 %v313_v63, 7 }
  0xec   :  { %2134 = vmatpush1.bf16.msra.mxu0 %v2913_v1  ;;  %1971 = vmatprep.subr.bf16.mxu1 %v2918_v2  ;;  %v311_v2 = vld [vmem:[%s3961_s2] sm:$0x3] }
  0xed   :  { %2135 = vmatprep.subr.bf16.mxu0 %v2921_v3  ;;  %v315_v1 = vsub.s32 0, %v314_v0  ;;  %v319_v3 = vsub.s32 1, %v314_v0 }
  0xef   :  { %1972 = vmatpush1.bf16.msra.mxu1 %v2916_v4  ;;  %v316_v4 = vrot.slane %v311_v2, %v315_v1 }
  0xf0   :  { %2136 = vmatpush1.bf16.msra.mxu0 %v2919_v5  ;;  %1973 = vmatprep.subr.bf16.mxu1 %v2924_v6  ;;  %v320_v5 = vrot.slane %v311_v2, %v319_v3 }
  0xf1   :  { %2137 = vmatprep.subr.bf16.mxu0 %v2927_v7 }
  0xf3   :  { %1974 = vmatpush1.bf16.msra.mxu1 %v2922_v8 }
  0xf4   :  { %2138 = vmatpush1.bf16.msra.mxu0 %v2925_v9  ;;  %1975 = vmatprep.subr.bf16.mxu1 %v2930_v10 }
  0xf5   :  { %2139 = vmatprep.subr.bf16.mxu0 %v2933_v11 }
  0xf7   :  { %1976 = vmatpush1.bf16.msra.mxu1 %v2928_v12 }
  0xf8   :  { %2140 = vmatpush1.bf16.msra.mxu0 %v2931_v13  ;;  %1977 = vmatprep.subr.bf16.mxu1 %v2936_v14 }
  0xf9   :  { %2141 = vmatprep.subr.bf16.mxu0 %v2939_v15 }
  0xfb   :  { %1978 = vmatpush1.bf16.msra.mxu1 %v2934_v16 }
  0xfc   :  { %2142 = vmatpush1.bf16.msra.mxu0 %v2937_v17  ;;  %1979 = vmatprep.subr.bf16.mxu1 %v2942_v19 }
  0xfd   :  { %2143 = vmatprep.subr.bf16.mxu0 %v2945_v21 }
  0xff   :  { %1980 = vmatpush1.bf16.msra.mxu1 %v2940_v22 }
 0x100   :  { %2144 = vmatpush1.bf16.msra.mxu0 %v2943_v23 }
 0x101   :  { %2154 = vmatprep.subr.bf16.mxu0 %v2952_v26 }
 0x102   :  { %1982 = vmatmul.mubr.bf16.vlgmr.msra.gmra.mrb[0].mxu1 %v2216_v20 }
 0x103   :  { %2146 = vmatmul.mubr.bf16.vlgmr.msra.gmra.mrb[0].mxu0 %v2224_v27 }
 0x104   :  { %2155 = vmatpush1.bf16.msra.mxu0 %v2950_v28  ;;  %2186 = vmatprep.mubr.bf16.mxu0 %v2227_v29 }
 0x105   :  { %2156 = vmatprep.subr.bf16.mxu0 %v2955_v30 }
 0x108   :  { %2157 = vmatpush1.bf16.msra.mxu0 %v2953_v24 }
 0x109   :  { %2158 = vmatprep.subr.bf16.mxu0 %v2958_v25 }
 0x10c   :  { %2159 = vmatpush1.bf16.msra.mxu0 %v2956_v31 }
 0x10d   :  { %2160 = vmatprep.subr.bf16.mxu0 %v2961_v32 }
 0x110   :  { %2161 = vmatpush1.bf16.msra.mxu0 %v2959_v33 }
 0x111   :  { %2162 = vmatprep.subr.bf16.mxu0 %v2964_v34 }
 0x114   :  { %2163 = vmatpush1.bf16.msra.mxu0 %v2962_v35 }
 0x115   :  { %2164 = vmatprep.subr.bf16.mxu0 %v2967_v36 }
 0x118   :  { %2165 = vmatpush1.bf16.msra.mxu0 %v2965_v37 }
 0x119   :  { %2166 = vmatprep.subr.bf16.mxu0 %v2970_v38 }
 0x11c   :  { %2167 = vmatpush1.bf16.msra.mxu0 %v2968_v39 }
 0x11d   :  { %2168 = vmatprep.subr.bf16.mxu0 %v2973_v40 }
 0x120   :  { %2169 = vmatpush1.bf16.msra.mxu0 %v2971_v41 }
 0x121   :  { %2170 = vmatprep.subr.bf16.mxu0 %v2976_v42 }
 0x124   :  { %2171 = vmatpush1.bf16.msra.mxu0 %v2974_v43 }
 0x125   :  { %2172 = vmatprep.subr.bf16.mxu0 %v2979_v44 }
 0x128   :  { %2173 = vmatpush1.bf16.msra.mxu0 %v2977_v45 }
 0x129   :  { %2174 = vmatprep.subr.bf16.mxu0 %v2982_v46 }
 0x12c   :  { %2175 = vmatpush1.bf16.msra.mxu0 %v2980_v47 }
 0x12d   :  { %2176 = vmatprep.subr.bf16.mxu0 %v2985_v48 }
 0x130   :  { %2177 = vmatpush1.bf16.msra.mxu0 %v2983_v49 }
 0x131   :  { %2178 = vmatprep.subr.bf16.mxu0 %v2988_v50 }
 0x134   :  { %2179 = vmatpush1.bf16.msra.mxu0 %v2986_v51 }
 0x135   :  { %2180 = vmatprep.subr.bf16.mxu0 %v2991_v52 }
 0x138   :  { %2181 = vmatpush1.bf16.msra.mxu0 %v2989_v53 }
 0x139   :  { %2182 = vmatprep.subr.bf16.mxu0 %v2994_v54 }
 0x13c   :  { %2183 = vmatpush1.bf16.msra.mxu0 %v2992_v55 }
 0x13d   :  { %2184 = vmatprep.subr.bf16.mxu0 %v2997_v56 }
 0x140   :  { %2185 = vmatpush1.bf16.msra.mxu0 %v2995_v57 }
 0x143   :  { %2187 = vmatmul.mubr.bf16.vlgmr.msra.gmra.mrb[0].mxu0 %v2226_v58 }
 0x1d5   :  { %v1983_v59 = vpop.f32.mrb[0].mxu1 }
 0x1d6   :  { %v1985_v60 = vpop.f32.mrb[1].mxu1  ;;  %v2518_v6 = vadd.f32 %v1983_v59, %v316_v4 }
 0x1d7   :  { %v1987_v61 = vpop.f32.mrb[2].mxu1  ;;  %v2520_v7 = vadd.f32 %v1985_v60, %v320_v5 }
 0x1d8   :  { %v1988_v62 = vpop.f32.mrb[3].mxu1 }
 0x216   :  { %v2188_v8 = vpop.f32.mrb[0].mxu0 }
 0x217   :  { %v2519_v9 = vadd.f32 %v2518_v6, %v2188_v8  ;;  %v2190_v10 = vpop.f32.mrb[1].mxu0 }
 0x218   :  { %v2521_v11 = vadd.f32 %v2520_v7, %v2190_v10  ;;  %v2192_v12 = vpop.f32.mrb[2].mxu0 }
 0x219   :  { %v2195_v13 = vmax.f32 %v2519_v9, 0.0  ;;  %v2193_v14 = vpop.f32.mrb[3].mxu0 }
 0x21a   :  { %v2196_v15 = vmax.f32 %v2521_v11, 0.0 }
 0x21c   :  { %v2517_v16 = vpack.c.bf16 %v2196_v15, %v2195_v13 }
 0x21e   :  { %2205 = vst [vmem:[%s3962_s3] sm:$0xff] %v2517_v16 }

// kernel: neuron_counter_forward.33
= control target key start
LH: loop header
LB: loop body
LE: loop exit
PB: predicated region body
PF: predicated region fallthrough
CT: control target
= control target key end

     0   :  { %v301_v1 = vmov 0   ;;  %v37_v19 = vlaneseq  ;;  %s391_s1 = inlined_call_operand.vmem [shape: bf16[128,256], index: 1, kind: input, shape index: {}]   ;;  %s392_s0 = inlined_call_operand.vmem [shape: bf16[32,128], index: 0, kind: input, shape index: {}]   ;;  %s393_s2 = inlined_call_operand.vmem [shape: f32[1,256], index: 2, kind: input, shape index: {}]   ;;  %s394_s3 = inlined_call_operand.vmem [shape: bf16[32,256], index: 3, kind: output, shape index: {}]  }
   0x1   :  { %v275_v0 = vld [vmem:[%s391_s1 + $0x4] ss:$8 sps:$4 sm:$0xff]   ;;  %171 = vmatprep.mubr.bf16.mxu0 %v301_v1  ;;  %181 = vmatprep.mubr.bf16.mxu1 %v301_v1  ;;  %v277_v2 = vld [vmem:[%s391_s1] ss:$8 sps:$4 sm:$0xff]   ;;  %v278_v3 = vld [vmem:[%s391_s1 + $0x14] ss:$8 sps:$4 sm:$0xff]  }
   0x2   :  { %139 = vmatprep.subr.bf16.mxu0 %v275_v0  ;;  %258 = vmatprep.subr.bf16.mxu1 %v275_v0  ;;  %v280_v4 = vld [vmem:[%s391_s1 + $0x10] ss:$8 sps:$4 sm:$0xff]   ;;  %v281_v5 = vld [vmem:[%s391_s1 + $0x24] ss:$8 sps:$4 sm:$0xff]   ;;  %v283_v6 = vld [vmem:[%s391_s1 + $0x20] ss:$8 sps:$4 sm:$0xff]  }
   0x3   :  { %140 = vmatpush1.bf16.msra.mxu0 %v277_v2  ;;  %266 = vmatpush1.bf16.msra.mxu1 %v277_v2  ;;  %v284_v7 = vld [vmem:[%s391_s1 + $0x34] ss:$8 sps:$4 sm:$0xff]   ;;  %v286_v8 = vld [vmem:[%s391_s1 + $0x30] ss:$8 sps:$4 sm:$0xff]   ;;  %v287_v9 = vld [vmem:[%s391_s1 + $0x44] ss:$8 sps:$4 sm:$0xff]  }
   0x4   :  { %141 = vmatprep.subr.bf16.mxu0 %v278_v3  ;;  %259 = vmatprep.subr.bf16.mxu1 %v278_v3  ;;  %v289_v10 = vld [vmem:[%s391_s1 + $0x40] ss:$8 sps:$4 sm:$0xff]   ;;  %v290_v11 = vld [vmem:[%s391_s1 + $0x54] ss:$8 sps:$4 sm:$0xff]   ;;  %v292_v12 = vld [vmem:[%s391_s1 + $0x50] ss:$8 sps:$4 sm:$0xff]  }
   0x5   :  { %v293_v13 = vld [vmem:[%s391_s1 + $0x64] ss:$8 sps:$4 sm:$0xff]   ;;  %v295_v14 = vld [vmem:[%s391_s1 + $0x60] ss:$8 sps:$4 sm:$0xff]   ;;  %v296_v15 = vld [vmem:[%s391_s1 + $0x74] ss:$8 sps:$4 sm:$0xff]  }
   0x6   :  { %v298_v16 = vld [vmem:[%s391_s1 + $0x70] ss:$8 sps:$4 sm:$0xff]   ;;  %v299_v17 = vld [vmem:[%s392_s0] sm:$0xff]   ;;  %v300_v18 = vld [vmem:[%s392_s0 + $0x8] sm:$0xff]   ;;  %v38_v20 = vshrl.u32 %v37_v19, 7 }
   0x7   :  { %142 = vmatpush1.bf16.msra.mxu0 %v280_v4  ;;  %267 = vmatpush1.bf16.msra.mxu1 %v280_v4  ;;  %v35_v22 = vld [vmem:[%s393_s2] sm:$0x3] }
   0x8   :  { %143 = vmatprep.subr.bf16.mxu0 %v281_v5  ;;  %260 = vmatprep.subr.bf16.mxu1 %v281_v5  ;;  %v39_v21 = vsub.s32 0, %v38_v20  ;;  %v43_v23 = vsub.s32 1, %v38_v20 }
   0xa   :  { %v40_v24 = vrot.slane %v35_v22, %v39_v21  ;;  %v44_v25 = vrot.slane %v35_v22, %v43_v23 }
   0xb   :  { %144 = vmatpush1.bf16.msra.mxu0 %v283_v6  ;;  %268 = vmatpush1.bf16.msra.mxu1 %v283_v6 }
   0xc   :  { %145 = vmatprep.subr.bf16.mxu0 %v284_v7  ;;  %261 = vmatprep.subr.bf16.mxu1 %v284_v7 }
   0xf   :  { %146 = vmatpush1.bf16.msra.mxu0 %v286_v8  ;;  %269 = vmatpush1.bf16.msra.mxu1 %v286_v8 }
  0x10   :  { %147 = vmatprep.subr.bf16.mxu0 %v287_v9  ;;  %262 = vmatprep.subr.bf16.mxu1 %v287_v9 }
  0x13   :  { %148 = vmatpush1.bf16.msra.mxu0 %v289_v10  ;;  %270 = vmatpush1.bf16.msra.mxu1 %v289_v10 }
  0x14   :  { %149 = vmatprep.subr.bf16.mxu0 %v290_v11  ;;  %263 = vmatprep.subr.bf16.mxu1 %v290_v11 }
  0x17   :  { %150 = vmatpush1.bf16.msra.mxu0 %v292_v12  ;;  %271 = vmatpush1.bf16.msra.mxu1 %v292_v12 }
  0x18   :  { %151 = vmatprep.subr.bf16.mxu0 %v293_v13  ;;  %264 = vmatprep.subr.bf16.mxu1 %v293_v13 }
  0x1b   :  { %152 = vmatpush1.bf16.msra.mxu0 %v295_v14  ;;  %272 = vmatpush1.bf16.msra.mxu1 %v295_v14 }
  0x1c   :  { %153 = vmatprep.subr.bf16.mxu0 %v296_v15  ;;  %265 = vmatprep.subr.bf16.mxu1 %v296_v15 }
  0x1f   :  { %154 = vmatpush1.bf16.msra.mxu0 %v298_v16  ;;  %273 = vmatpush1.bf16.msra.mxu1 %v298_v16 }
  0x22   :  { %172 = vmatmul.mubr.bf16.vlgmr.msra.gmra.mrb[0].mxu0 %v299_v17  ;;  %182 = vmatmul.mubr.bf16.vlgmr.msra.gmra.mrb[0].mxu1 %v300_v18 }
  0xf5   :  { %v173_v26 = vpop.f32.mrb[0].mxu0  ;;  %v183_v27 = vpop.f32.mrb[0].mxu1 }
  0xf6   :  { %v174_v28 = vadd.f32 %v173_v26, %v40_v24  ;;  %v184_v29 = vadd.f32 %v183_v27, %v40_v24  ;;  %v175_v30 = vpop.f32.mrb[1].mxu0  ;;  %v185_v31 = vpop.f32.mrb[1].mxu1 }
  0xf7   :  { %v176_v32 = vadd.f32 %v175_v30, %v44_v25  ;;  %v186_v33 = vadd.f32 %v185_v31, %v44_v25  ;;  %v177_v34 = vpop.f32.mrb[2].mxu0  ;;  %v187_v35 = vpop.f32.mrb[2].mxu1 }
  0xf8   :  { %v192_v36 = vmax.f32 %v174_v28, 0.0  ;;  %v196_v37 = vmax.f32 %v184_v29, 0.0  ;;  %v178_v38 = vadd.f32 %v177_v34, %v40_v24  ;;  %v188_v39 = vadd.f32 %v187_v35, %v40_v24  ;;  %v179_v40 = vpop.f32.mrb[3].mxu0  ;;  %v189_v41 = vpop.f32.mrb[3].mxu1 }
  0xf9   :  { %v193_v42 = vmax.f32 %v176_v32, 0.0  ;;  %v197_v43 = vmax.f32 %v186_v33, 0.0  ;;  %v180_v44 = vadd.f32 %v179_v40, %v44_v25  ;;  %v190_v45 = vadd.f32 %v189_v41, %v44_v25 }
  0xfa   :  { %v194_v46 = vmax.f32 %v178_v38, 0.0  ;;  %v198_v47 = vmax.f32 %v188_v39, 0.0 }
  0xfb   :  { %v254_v48 = vpack.c.bf16 %v193_v42, %v192_v36  ;;  %v256_v49 = vpack.c.bf16 %v197_v43, %v196_v37  ;;  %v195_v50 = vmax.f32 %v180_v44, 0.0  ;;  %v199_v51 = vmax.f32 %v190_v45, 0.0 }
  0xfd   :  { %224 = vst [vmem:[%s394_s3] sm:$0xff] %v254_v48  ;;  %226 = vst [vmem:[%s394_s3 + $0x10] sm:$0xff] %v256_v49  ;;  %v255_v52 = vpack.c.bf16 %v195_v50, %v194_v46  ;;  %v257_v53 = vpack.c.bf16 %v199_v51, %v198_v47 }
  0xff   :  { %225 = vst [vmem:[%s394_s3 + $0x8] sm:$0xff] %v255_v52  ;;  %227 = vst [vmem:[%s394_s3 + $0x18] sm:$0xff] %v257_v53 }

// kernel: tile.33
= control target key start
LH: loop header
LB: loop body
LE: loop exit
PB: predicated region body
PF: predicated region fallthrough
CT: control target
= control target key end

     0   :  { %s22_s0 = inlined_call_operand.vmem [shape: f32[32], index: 0, kind: input, shape index: {}]   ;;  %s23_s1 = inlined_call_operand.vmem [shape: f32[4,32], index: 1, kind: output, shape index: {}]  }
   0x1   :  { %v4_v0 = vld [vmem:[%s22_s0] ss:$0 sm:$0xff] }
   0x2   :  { %5 = vst [vmem:[%s23_s1] sm:$0xf] %v4_v0 }

// kernel: tile.34
= control target key start
LH: loop header
LB: loop body
LE: loop exit
PB: predicated region body
PF: predicated region fallthrough
CT: control target
= control target key end

     0   :  { %vm7_vm0 = vcmask 261120   ;;  %s37_s8 = smov 32   ;;  %s38_s9 = smov 64   ;;  %vm13_vm1 = vcmask 1048320   ;;  %vm19_vm2 = vcmask 785920   ;;  %vm25_vm3 = vcmask 523520   ;;  %s55_s0 = inlined_call_operand.vmem [shape: f32[4,32], index: 0, kind: input, shape index: {}]   ;;  %s56_s1 = inlined_call_operand.vmem [shape: f32[1,128], index: 1, kind: output, shape index: {}]  }
   0x1   :  { %v4_v0 = vld [vmem:[%s55_s0] sm:$0xf]  ;;  %s36_s0 = smov 96  }
   0x2   :  { %5 = vst [vmem:[#allocation1] sm:$0xf] %v4_v0 }
   0x9   :  { %v10_v1 = vld [vmem:[#allocation1 + $0x3] sm:$0x1]   ;;  %v22_v2 = vld [vmem:[#allocation1 + $0x1] sm:$0x1]   ;;  %v6_v3 = vld [vmem:[#allocation1] sm:$0x1]  }
   0xa   :  { %11 = vrot.lane.b32.xlu0 %v10_v1, %s36_s0  ;;  %23 = vrot.lane.b32.xlu1 %v22_v2, %s37_s8  ;;  %v16_v4 = vld [vmem:[#allocation1 + $0x2] sm:$0x1]   ;;  %8 = vst.msk [vmem:[#allocation0] sm:$0x1] %vm7_vm0, %v6_v3  }
   0xe   :  { %17 = vrot.lane.b32.xlu0 %v16_v4, %s38_s9 }
  0x7c   :  { %v12_v5 = vpop.permute.xlu0 %11   ;;  %v24_v6 = vpop.permute.xlu1 %23  }
  0x7d   :  { %14 = vst.msk [vmem:[#allocation0] sm:$0x1] %vm13_vm1, %v12_v5  }
  0x80   :  { %v18_v7 = vpop.permute.xlu0 %17  }
  0x81   :  { %20 = vst.msk [vmem:[#allocation0] sm:$0x1] %vm19_vm2, %v18_v7  }
  0x82   :  { %26 = vst.msk [vmem:[#allocation0] sm:$0x1] %vm25_vm3, %v24_v6  }
  0x89   :  { %v30_v8 = vld [vmem:[#allocation0] sm:$0x1] }
  0x8a   :  { %32 = vst [vmem:[%s56_s1] sm:$0x1] %v30_v8 }

// kernel: neuron_counter_forward.34
= control target key start
LH: loop header
LB: loop body
LE: loop exit
PB: predicated region body
PF: predicated region fallthrough
CT: control target
= control target key end

     0   :  { %vm110_vm0 = vcmask 523264   ;;  %s579_s1 = inlined_call_operand.vmem [shape: bf16[64,128], index: 1, kind: input, shape index: {}]   ;;  %s580_s0 = inlined_call_operand.vmem [shape: bf16[128,64], index: 0, kind: input, shape index: {}]   ;;  %s581_s2 = inlined_call_operand.vmem [shape: f32[1,128], index: 2, kind: input, shape index: {}]   ;;  %s582_s3 = inlined_call_operand.vmem [shape: bf16[128,128], index: 3, kind: output, shape index: {}]  }
   0x1   :  { %v476_v0 = vld [vmem:[%s579_s1] sm:$0xff]   ;;  %v477_v1 = vld [vmem:[%s579_s1 + $0x8] sm:$0xff]   ;;  %v478_v2 = vld [vmem:[%s579_s1 + $0x10] sm:$0xff]  }
   0x2   :  { %444 = vmatprep.subr.bf16.mxu0 %v476_v0  ;;  %468 = vmatprep.subr.bf16.mxu1 %v476_v0  ;;  %v480_v3 = vld [vmem:[%s580_s0] sm:$0xff]   ;;  %v479_v5 = vld [vmem:[%s579_s1 + $0x18] sm:$0xff]   ;;  %v482_v6 = vld [vmem:[%s580_s0 + $0x8] sm:$0xff]  }
   0x3   :  { %445 = vmatpush3.bf16.msra.mxu0 %v476_v0  ;;  %472 = vmatpush3.bf16.msra.mxu1 %v476_v0  ;;  %v481_v4 = vld [vmem:[%s580_s0 + $0x20] sm:$0xff]   ;;  %v483_v7 = vld [vmem:[%s580_s0 + $0x28] sm:$0xff]   ;;  %v484_v8 = vld [vmem:[%s580_s0 + $0x10] sm:$0xff]  }
   0x4   :  { %446 = vmatprep.subr.bf16.mxu0 %v477_v1  ;;  %469 = vmatprep.subr.bf16.mxu1 %v477_v1  ;;  %v485_v9 = vld [vmem:[%s580_s0 + $0x30] sm:$0xff]   ;;  %v486_v10 = vld [vmem:[%s580_s0 + $0x18] sm:$0xff]   ;;  %v332_v12 = vld [vmem:[%s581_s2] ss:$0 sm:$0xff] }
   0x5   :  { %452 = vmatprep.mubr.msk.bf16.mxu0 %vm110_vm0, %v480_v3  ;;  %460 = vmatprep.mubr.msk.bf16.mxu1 %vm110_vm0, %v481_v4  ;;  %v487_v11 = vld [vmem:[%s580_s0 + $0x38] sm:$0xff]  }
   0x7   :  { %447 = vmatpush3.bf16.msra.mxu0 %v477_v1  ;;  %473 = vmatpush3.bf16.msra.mxu1 %v477_v1 }
   0x8   :  { %448 = vmatprep.subr.bf16.mxu0 %v478_v2  ;;  %470 = vmatprep.subr.bf16.mxu1 %v478_v2 }
   0xb   :  { %449 = vmatpush3.bf16.msra.mxu0 %v478_v2  ;;  %474 = vmatpush3.bf16.msra.mxu1 %v478_v2 }
   0xc   :  { %450 = vmatprep.subr.bf16.mxu0 %v479_v5  ;;  %471 = vmatprep.subr.bf16.mxu1 %v479_v5 }
   0xf   :  { %451 = vmatpush3.bf16.msra.mxu0 %v479_v5  ;;  %475 = vmatpush3.bf16.msra.mxu1 %v479_v5 }
  0x12   :  { %453 = vmatmul.mubr.msk.bf16.vlgmr.msra.gmra.mrb[0].mxu0 %vm110_vm0, %v482_v6  ;;  %461 = vmatmul.mubr.msk.bf16.vlgmr.msra.gmra.mrb[0].mxu1 %vm110_vm0, %v483_v7 }
  0x13   :  { %456 = vmatprep.mubr.msk.bf16.mxu0 %vm110_vm0, %v484_v8  ;;  %464 = vmatprep.mubr.msk.bf16.mxu1 %vm110_vm0, %v485_v9 }
  0x1a   :  { %457 = vmatmul.mubr.msk.bf16.gmra.mrb[4].mxu0 %vm110_vm0, %v486_v10  ;;  %465 = vmatmul.mubr.msk.bf16.gmra.mrb[4].mxu1 %vm110_vm0, %v487_v11 }
  0xe5   :  { %v454_v13 = vpop.f32.mrb[0].mxu0  ;;  %v462_v14 = vpop.f32.mrb[0].mxu1 }
  0xe6   :  { %v178_v15 = vadd.f32 %v454_v13, %v332_v12  ;;  %v210_v16 = vadd.f32 %v462_v14, %v332_v12  ;;  %v169_v17 = vpop.f32.mrb[1].mxu0  ;;  %v201_v18 = vpop.f32.mrb[1].mxu1 }
  0xe7   :  { %v170_v19 = vadd.f32 %v332_v12, %v169_v17  ;;  %v202_v20 = vadd.f32 %v332_v12, %v201_v18  ;;  %v455_v21 = vpop.f32.mrb[2].mxu0  ;;  %v463_v22 = vpop.f32.mrb[2].mxu1 }
  0xe8   :  { %v181_v23 = vadd.f32 %v455_v21, %v332_v12  ;;  %v213_v24 = vadd.f32 %v463_v22, %v332_v12  ;;  %v172_v25 = vpop.f32.mrb[3].mxu0  ;;  %v204_v26 = vpop.f32.mrb[3].mxu1  ;;  %v234_v29 = vmax.f32 %v178_v15, 0.0  ;;  %v242_v30 = vmax.f32 %v210_v16, 0.0 }
  0xe9   :  { %v173_v27 = vadd.f32 %v332_v12, %v172_v25  ;;  %v205_v28 = vadd.f32 %v332_v12, %v204_v26  ;;  %v232_v33 = vmax.f32 %v170_v19, 0.0  ;;  %v240_v34 = vmax.f32 %v202_v20, 0.0 }
  0xea   :  { %v235_v31 = vmax.f32 %v181_v23, 0.0  ;;  %v243_v32 = vmax.f32 %v213_v24, 0.0 }
  0xeb   :  { %v233_v35 = vmax.f32 %v173_v27, 0.0  ;;  %v241_v36 = vmax.f32 %v205_v28, 0.0 }
  0xec   :  { %v393_v37 = vpack.c.bf16 %v235_v31, %v234_v29  ;;  %v413_v38 = vpack.c.bf16 %v243_v32, %v242_v30 }
  0xed   :  { %v388_v39 = vpack.c.bf16 %v233_v35, %v232_v33  ;;  %v408_v40 = vpack.c.bf16 %v241_v36, %v240_v34  ;;  %v458_v41 = vpop.f32.mrb[4].mxu0  ;;  %v466_v42 = vpop.f32.mrb[4].mxu1 }
  0xee   :  { %425 = vst [vmem:[%s582_s3 + $0x8] sm:$0xff] %v393_v37   ;;  %429 = vst [vmem:[%s582_s3 + $0x28] sm:$0xff] %v413_v38   ;;  %v194_v43 = vadd.f32 %v458_v41, %v332_v12  ;;  %v226_v44 = vadd.f32 %v466_v42, %v332_v12  ;;  %v185_v45 = vpop.f32.mrb[5].mxu0  ;;  %v217_v46 = vpop.f32.mrb[5].mxu1 }
  0xef   :  { %389 = vst [vmem:[%s582_s3] sm:$0xff] %v388_v39   ;;  %428 = vst [vmem:[%s582_s3 + $0x20] sm:$0xff] %v408_v40   ;;  %v186_v47 = vadd.f32 %v332_v12, %v185_v45  ;;  %v218_v48 = vadd.f32 %v332_v12, %v217_v46  ;;  %v459_v49 = vpop.f32.mrb[6].mxu0  ;;  %v467_v50 = vpop.f32.mrb[6].mxu1 }
  0xf0   :  { %v197_v51 = vadd.f32 %v459_v49, %v332_v12  ;;  %v229_v52 = vadd.f32 %v467_v50, %v332_v12  ;;  %v188_v53 = vpop.f32.mrb[7].mxu0  ;;  %v220_v54 = vpop.f32.mrb[7].mxu1  ;;  %v238_v57 = vmax.f32 %v194_v43, 0.0  ;;  %v246_v58 = vmax.f32 %v226_v44, 0.0 }
  0xf1   :  { %v189_v55 = vadd.f32 %v332_v12, %v188_v53  ;;  %v221_v56 = vadd.f32 %v332_v12, %v220_v54  ;;  %v236_v61 = vmax.f32 %v186_v47, 0.0  ;;  %v244_v62 = vmax.f32 %v218_v48, 0.0 }
  0xf2   :  { %v239_v59 = vmax.f32 %v197_v51, 0.0  ;;  %v247_v60 = vmax.f32 %v229_v52, 0.0 }
  0xf3   :  { %v237_v63 = vmax.f32 %v189_v55, 0.0  ;;  %v245_v0 = vmax.f32 %v221_v56, 0.0 }
  0xf4   :  { %v403_v1 = vpack.c.bf16 %v239_v59, %v238_v57  ;;  %v423_v2 = vpack.c.bf16 %v247_v60, %v246_v58 }
  0xf5   :  { %v398_v3 = vpack.c.bf16 %v237_v63, %v236_v61  ;;  %v418_v4 = vpack.c.bf16 %v245_v0, %v244_v62 }
  0xf6   :  { %427 = vst [vmem:[%s582_s3 + $0x18] sm:$0xff] %v403_v1   ;;  %431 = vst [vmem:[%s582_s3 + $0x38] sm:$0xff] %v423_v2  }
  0xf7   :  { %426 = vst [vmem:[%s582_s3 + $0x10] sm:$0xff] %v398_v3   ;;  %430 = vst [vmem:[%s582_s3 + $0x30] sm:$0xff] %v418_v4  }

// kernel: neuron_counter_forward.35
= control target key start
LH: loop header
LB: loop body
LE: loop exit
PB: predicated region body
PF: predicated region fallthrough
CT: control target
= control target key end

     0   :  { %s1118_s12 = smov 0   ;;  %s1274_s0 = inlined_call_operand.vmem [shape: bf16[512,32], index: 0, kind: input, shape index: {}]   ;;  %s1275_s1 = inlined_call_operand.vmem [shape: bf16[32,128], index: 1, kind: input, shape index: {}]   ;;  %s1276_s2 = inlined_call_operand.vmem [shape: f32[1,128], index: 2, kind: input, shape index: {}]   ;;  %s1277_s3 = inlined_call_operand.vmem [shape: f32[512,128], index: 3, kind: output, shape index: {}]  }
   0x1 LB: > { %s800_s13 = sadd.s32 4294967295, %s1096_s12   ;;  %p804_p0 = scmp.ge.s32.totalorder %s1096_s12, 1  ;;  %s1096_s12 = sphi %s1118_s12, %s13_s12  }
   0x2   : > { %p138_p1 = scmp.lt.s32.totalorder %s1096_s12, 3 }
   0x4   : > { %p139_p2 = pnand %p804_p0, %p138_p1 }
   0x5   : > { %v944_v0 = vld [vmem:[%s1275_s1] sm:$0xff] (!%p139_p2)   ;;  %s805_s16 = sshll.u32 (!%p139_p2), %s800_s13, 5  ;;  %v945_v1 = vld [vmem:[%s1275_s1 + $0x8] sm:$0xff] (!%p139_p2)   ;;  %vm310_vm0 = vcmask (!%p139_p2), 261120  }
   0x6   : > { %142 = sbr.rel (%p139_p2) target bundleno = 318 (0x13e), region = 32  ;;  %p163_p3 = scmp.lt.s32.totalorder (!%p139_p2), %s805_s16, 63  ;;  %896 = vmatprep.subr.bf16.mxu0 (!%p139_p2), %v944_v0  ;;  %932 = vmatprep.subr.bf16.mxu1 (!%p139_p2), %v944_v0  ;;  %v1175_v18 = vld [vmem:[%s1276_s2] ss:$0 sm:$0xff] (!%p139_p2) }
   0x7   : > { %897 = vmatpush3.bf16.msra.mxu0 (!%p139_p2), %v944_v0  ;;  %934 = vmatpush3.bf16.msra.mxu1 (!%p139_p2), %v944_v0 }
   0x8   : > { %898 = vmatprep.subr.bf16.mxu0 (!%p139_p2), %v945_v1  ;;  %933 = vmatprep.subr.bf16.mxu1 (!%p139_p2), %v945_v1 }
   0xb   : > { %899 = vmatpush3.bf16.msra.mxu0 (!%p139_p2), %v945_v1  ;;  %935 = vmatpush3.bf16.msra.mxu1 (!%p139_p2), %v945_v1 }
   0xd   : > { %s1279_s16 = smov (!%p163_p3, %s805_s16), 63 }
   0xe   : > { %s806_s19 = sshll.u32 %s1279_s16, 2  ;;  %s808_s25 = sshll.u32 %s1279_s16, 3 }
   0xf   : > { %s1138_s22 = scalar_lea.vmem %s1274_s0, %s806_s19  ;;  %s1203_s28 = scalar_lea.vmem %s1277_s3, %s808_s25 }
  0x10   : > { %v946_v2 = vld [vmem:[%s1138_s22] sm:$0xff]   ;;  %v948_v4 = vld [vmem:[%s1138_s22 + $0x8] sm:$0xff]   ;;  %v950_v6 = vld [vmem:[%s1138_s22 + $0x10] sm:$0xff]  }
  0x11   : > { %v947_v3 = vld [vmem:[%s1138_s22 + $0x40] sm:$0xff]   ;;  %900 = vmatprep.mubr.msk.bf16.mxu0 %vm310_vm0, %v946_v2  ;;  %v949_v5 = vld [vmem:[%s1138_s22 + $0x48] sm:$0xff]   ;;  %v951_v7 = vld [vmem:[%s1138_s22 + $0x50] sm:$0xff]  }
  0x12   : > { %916 = vmatprep.mubr.msk.bf16.mxu1 %vm310_vm0, %v947_v3  ;;  %901 = vmatmul.mubr.msk.bf16.vlgmr.msra.gmra.mrb[0].mxu0 %vm310_vm0, %v948_v4  ;;  %v952_v8 = vld [vmem:[%s1138_s22 + $0x18] sm:$0xff]   ;;  %v954_v10 = vld [vmem:[%s1138_s22 + $0x20] sm:$0xff]   ;;  %v956_v12 = vld [vmem:[%s1138_s22 + $0x28] sm:$0xff]  }
  0x13   : > { %917 = vmatmul.mubr.msk.bf16.vlgmr.msra.gmra.mrb[0].mxu1 %vm310_vm0, %v949_v5  ;;  %904 = vmatprep.mubr.msk.bf16.mxu0 %vm310_vm0, %v950_v6  ;;  %v953_v9 = vld [vmem:[%s1138_s22 + $0x58] sm:$0xff]   ;;  %v955_v11 = vld [vmem:[%s1138_s22 + $0x60] sm:$0xff]   ;;  %v957_v13 = vld [vmem:[%s1138_s22 + $0x68] sm:$0xff]  }
  0x14   : > { %920 = vmatprep.mubr.msk.bf16.mxu1 %vm310_vm0, %v951_v7  ;;  %v958_v14 = vld [vmem:[%s1138_s22 + $0x30] sm:$0xff]   ;;  %v960_v16 = vld [vmem:[%s1138_s22 + $0x38] sm:$0xff]  }
  0x15   : > { %v959_v15 = vld [vmem:[%s1138_s22 + $0x70] sm:$0xff]   ;;  %v961_v17 = vld [vmem:[%s1138_s22 + $0x78] sm:$0xff]  }
  0x1a   : > { %905 = vmatmul.mubr.msk.bf16.gmra.mrb[4].mxu0 %vm310_vm0, %v952_v8 }
  0x1b   : > { %921 = vmatmul.mubr.msk.bf16.gmra.mrb[4].mxu1 %vm310_vm0, %v953_v9  ;;  %908 = vmatprep.mubr.msk.bf16.mxu0 %vm310_vm0, %v954_v10 }
  0x1c   : > { %924 = vmatprep.mubr.msk.bf16.mxu1 %vm310_vm0, %v955_v11 }
  0x22   : > { %909 = vmatmul.mubr.msk.bf16.gmra.mrb[8].mxu0 %vm310_vm0, %v956_v12 }
  0x23   : > { %925 = vmatmul.mubr.msk.bf16.gmra.mrb[8].mxu1 %vm310_vm0, %v957_v13  ;;  %912 = vmatprep.mubr.msk.bf16.mxu0 %vm310_vm0, %v958_v14 }
  0x24   : > { %928 = vmatprep.mubr.msk.bf16.mxu1 %vm310_vm0, %v959_v15 }
  0x2a   : > { %913 = vmatmul.mubr.msk.bf16.gmra.mrb[12].mxu0 %vm310_vm0, %v960_v16 }
  0x2b   : > { %929 = vmatmul.mubr.msk.bf16.gmra.mrb[12].mxu1 %vm310_vm0, %v961_v17 }
  0xe5   : > { %v902_v19 = vpop.f32.mrb[0].mxu0 }
  0xe6   : > { %v402_v20 = vadd.f32 %v902_v19, %v1175_v18  ;;  %v918_v21 = vpop.f32.mrb[0].mxu1  ;;  %v393_v22 = vpop.f32.mrb[1].mxu0 }
  0xe7   : > { %v466_v23 = vadd.f32 %v918_v21, %v1175_v18  ;;  %v394_v24 = vadd.f32 %v1175_v18, %v393_v22  ;;  %v457_v25 = vpop.f32.mrb[1].mxu1  ;;  %v903_v26 = vpop.f32.mrb[2].mxu0 }
  0xe8   : > { %v846_v27 = vmul.f32 -1.442695, %v402_v20  ;;  %v458_v28 = vadd.f32 %v1175_v18, %v457_v25  ;;  %v405_v29 = vadd.f32 %v903_v26, %v1175_v18  ;;  %v919_v30 = vpop.f32.mrb[2].mxu1  ;;  %v396_v31 = vpop.f32.mrb[3].mxu0 }
  0xe9   : > { %v862_v32 = vmul.f32 -1.442695, %v466_v23  ;;  %v844_v33 = vmul.f32 -1.442695, %v394_v24  ;;  %v469_v34 = vadd.f32 %v919_v30, %v1175_v18  ;;  %v397_v35 = vadd.f32 %v1175_v18, %v396_v31  ;;  %v460_v36 = vpop.f32.mrb[3].mxu1 }
  0xea   : > { %962 = vpow2.f32 %v846_v27  ;;  %v860_v37 = vmul.f32 -1.442695, %v458_v28  ;;  %v847_v38 = vmul.f32 -1.442695, %v405_v29  ;;  %v461_v39 = vadd.f32 %v1175_v18, %v460_v36 }
  0xeb   : > { %964 = vpow2.f32 %v862_v32  ;;  %v863_v40 = vmul.f32 -1.442695, %v469_v34  ;;  %v845_v41 = vmul.f32 -1.442695, %v397_v35 }
  0xec   : > { %966 = vpow2.f32 %v844_v33  ;;  %v861_v42 = vmul.f32 -1.442695, %v461_v39 }
  0xed   : > { %968 = vpow2.f32 %v860_v37  ;;  %v906_v43 = vpop.f32.mrb[4].mxu0 }
  0xee   : > { %970 = vpow2.f32 %v847_v38  ;;  %v418_v44 = vadd.f32 %v906_v43, %v1175_v18  ;;  %v922_v45 = vpop.f32.mrb[4].mxu1  ;;  %v409_v46 = vpop.f32.mrb[5].mxu0 }
  0xef   : > { %972 = vpow2.f32 %v863_v40  ;;  %v482_v47 = vadd.f32 %v922_v45, %v1175_v18  ;;  %v410_v48 = vadd.f32 %v1175_v18, %v409_v46  ;;  %v473_v49 = vpop.f32.mrb[5].mxu1  ;;  %v907_v50 = vpop.f32.mrb[6].mxu0 }
  0xf0   : > { %974 = vpow2.f32 %v845_v41  ;;  %v850_v51 = vmul.f32 -1.442695, %v418_v44  ;;  %v474_v52 = vadd.f32 %v1175_v18, %v473_v49  ;;  %v421_v53 = vadd.f32 %v907_v50, %v1175_v18  ;;  %v923_v54 = vpop.f32.mrb[6].mxu1  ;;  %v412_v55 = vpop.f32.mrb[7].mxu0 }
  0xf1   : > { %976 = vpow2.f32 %v861_v42  ;;  %v866_v56 = vmul.f32 -1.442695, %v482_v47  ;;  %v848_v57 = vmul.f32 -1.442695, %v410_v48  ;;  %v476_v58 = vpop.f32.mrb[7].mxu1  ;;  %v485_v23 = vadd.f32 %v923_v54, %v1175_v18 }
  0xf2   : > { %978 = vpow2.f32 %v850_v51  ;;  %v864_v59 = vmul.f32 -1.442695, %v474_v52  ;;  %v851_v60 = vmul.f32 -1.442695, %v421_v53  ;;  %v413_v26 = vadd.f32 %v1175_v18, %v412_v55 }
  0xf3   : > { %980 = vpow2.f32 %v866_v56  ;;  %v477_v30 = vadd.f32 %v1175_v18, %v476_v58  ;;  %v867_v40 = vmul.f32 -1.442695, %v485_v23 }
  0xf4   : > { %v963_v61 = vpop.eup %962  ;;  %982 = vpow2.f32 %v848_v57  ;;  %v849_v46 = vmul.f32 -1.442695, %v413_v26 }
  0xf5   : > { %v965_v62 = vpop.eup %964  ;;  %v618_v63 = vadd.f32 1.0, %v963_v61  ;;  %984 = vpow2.f32 %v864_v59  ;;  %v910_v0 = vpop.f32.mrb[8].mxu0  ;;  %v865_v50 = vmul.f32 -1.442695, %v477_v30 }
  0xf6   : > { %v967_v1 = vpop.eup %966  ;;  %v634_v2 = vadd.f32 1.0, %v965_v62  ;;  %986 = vpow2.f32 %v851_v60  ;;  %v926_v3 = vpop.f32.mrb[8].mxu1  ;;  %v434_v35 = vadd.f32 %v910_v0, %v1175_v18 }
  0xf7   : > { %v425_v4 = vpop.f32.mrb[9].mxu0  ;;  %v969_v5 = vpop.eup %968  ;;  %988 = vrcp.f32 %v618_v63  ;;  %v616_v6 = vadd.f32 1.0, %v967_v1  ;;  %v498_v41 = vadd.f32 %v926_v3, %v1175_v18 }
  0xf8   : > { %v489_v7 = vpop.f32.mrb[9].mxu1  ;;  %v911_v8 = vpop.f32.mrb[10].mxu0  ;;  %990 = vrcp.f32 %v634_v2  ;;  %v632_v10 = vadd.f32 1.0, %v969_v5  ;;  %v426_v47 = vadd.f32 %v1175_v18, %v425_v4  ;;  %v854_v53 = vmul.f32 -1.442695, %v434_v35 }
  0xf9   : > { %v971_v9 = vpop.eup %970  ;;  %v927_v11 = vpop.f32.mrb[10].mxu1  ;;  %992 = vrcp.f32 %v616_v6  ;;  %v490_v51 = vadd.f32 %v1175_v18, %v489_v7  ;;  %v437_v54 = vadd.f32 %v911_v8, %v1175_v18  ;;  %v870_v56 = vmul.f32 -1.442695, %v498_v41 }
  0xfa   : > { %v1190_v12 = vpop.f32.mrb[11].mxu0  ;;  %v973_v13 = vpop.eup %972  ;;  %v619_v14 = vadd.f32 1.0, %v971_v9  ;;  %994 = vrcp.f32 %v632_v10  ;;  %v501_v57 = vadd.f32 %v927_v11, %v1175_v18  ;;  %v852_v59 = vmul.f32 -1.442695, %v426_v47 }
  0xfb   : > { %v1192_v15 = vpop.f32.mrb[11].mxu1  ;;  %v975_v16 = vpop.eup %974  ;;  %v635_v17 = vadd.f32 1.0, %v973_v13  ;;  %v429_v60 = vadd.f32 %v1175_v18, %v1190_v12  ;;  %v868_v62 = vmul.f32 -1.442695, %v490_v51  ;;  %v855_v1 = vmul.f32 -1.442695, %v437_v54 }
  0xfc   : > { %v977_v19 = vpop.eup %976  ;;  %996 = vrcp.f32 %v619_v14  ;;  %v617_v20 = vadd.f32 1.0, %v975_v16  ;;  %v493_v63 = vadd.f32 %v1175_v18, %v1192_v15  ;;  %v871_v4 = vmul.f32 -1.442695, %v501_v57 }
  0xfd   : > { %v979_v21 = vpop.eup %978  ;;  %998 = vrcp.f32 %v635_v17  ;;  %v633_v22 = vadd.f32 1.0, %v977_v19  ;;  %v914_v27 = vpop.f32.mrb[12].mxu0  ;;  %v853_v7 = vmul.f32 -1.442695, %v429_v60 }
  0xfe   : > { %v981_v24 = vpop.eup %980  ;;  %1000 = vrcp.f32 %v617_v20  ;;  %v622_v25 = vadd.f32 1.0, %v979_v21  ;;  %v930_v31 = vpop.f32.mrb[12].mxu1  ;;  %v450_v2 = vadd.f32 %v914_v27, %v1175_v18  ;;  %v869_v9 = vmul.f32 -1.442695, %v493_v63 }
  0xff   : > { %v983_v28 = vpop.eup %982  ;;  %1002 = vrcp.f32 %v633_v22  ;;  %v638_v29 = vadd.f32 1.0, %v981_v24  ;;  %v1198_v32 = vpop.f32.mrb[13].mxu0  ;;  %v514_v5 = vadd.f32 %v930_v31, %v1175_v18 }
 0x100   : > { %v985_v33 = vpop.eup %984  ;;  %1004 = vrcp.f32 %v622_v25  ;;  %v620_v34 = vadd.f32 1.0, %v983_v28  ;;  %v1206_v36 = vpop.f32.mrb[13].mxu1  ;;  %v858_v11 = vmul.f32 -1.442695, %v450_v2 }
 0x101   : > { %v1208_v37 = vpop.f32.mrb[14].mxu0  ;;  %v987_v38 = vpop.eup %986  ;;  %1006 = vrcp.f32 %v638_v29  ;;  %v636_v39 = vadd.f32 1.0, %v985_v33  ;;  %v874_v13 = vmul.f32 -1.442695, %v514_v5 }
 0x102   : > { %v1211_v42 = vpop.f32.mrb[14].mxu1  ;;  %v1213_v43 = vpop.f32.mrb[15].mxu0  ;;  %1008 = vrcp.f32 %v620_v34  ;;  %v623_v45 = vadd.f32 1.0, %v987_v38  ;;  %v442_v34 = vadd.f32 %v1175_v18, %v1198_v32 }
 0x103   : > { %v989_v44 = vpop.eup %988  ;;  %v1216_v48 = vpop.f32.mrb[15].mxu1  ;;  %1010 = vrcp.f32 %v636_v39  ;;  %v506_v39 = vadd.f32 %v1175_v18, %v1206_v36  ;;  %v517_v47 = vadd.f32 %v1211_v42, %v1175_v18  ;;  %v445_v36 = vadd.f32 %v1175_v18, %v1213_v43 }
 0x104   : > { %v991_v49 = vpop.eup %990  ;;  %714 = vst [vmem:[%s1203_s28 + $0x10] sm:$0xff] %v989_v44  ;;  %1012 = vrcp.f32 %v623_v45  ;;  %v453_v44 = vadd.f32 %v1208_v37, %v1175_v18 }
 0x105   : > { %v993_v52 = vpop.eup %992  ;;  %730 = vst [vmem:[%s1203_s28 + $0x90] sm:$0xff] %v991_v49  ;;  %1014 = vpow2.f32 %v867_v40  ;;  %v872_v37 = vmul.f32 -1.442695, %v506_v39  ;;  %v857_v57 = vmul.f32 -1.442695, %v445_v36 }
 0x106   : > { %v995_v55 = vpop.eup %994  ;;  %712 = vst [vmem:[%s1203_s28] sm:$0xff] %v993_v52  ;;  %1016 = vpow2.f32 %v849_v46  ;;  %v859_v42 = vmul.f32 -1.442695, %v453_v44 }
 0x107   : > { %v997_v58 = vpop.eup %996  ;;  %728 = vst [vmem:[%s1203_s28 + $0x80] sm:$0xff] %v995_v55  ;;  %1018 = vpow2.f32 %v865_v50  ;;  %v856_v50 = vmul.f32 -1.442695, %v442_v34 }
 0x108   : > { %v999_v61 = vpop.eup %998  ;;  %715 = vst [vmem:[%s1203_s28 + $0x18] sm:$0xff] %v997_v58  ;;  %1020 = vpow2.f32 %v854_v53  ;;  %v509_v53 = vadd.f32 %v1175_v18, %v1216_v48 }
 0x109   : > { %v1001_v0 = vpop.eup %1000  ;;  %731 = vst [vmem:[%s1203_s28 + $0x98] sm:$0xff] %v999_v61  ;;  %1022 = vpow2.f32 %v870_v56  ;;  %v875_v56 = vmul.f32 -1.442695, %v517_v47 }
 0x10a   : > { %v1003_v3 = vpop.eup %1002  ;;  %713 = vst [vmem:[%s1203_s28 + $0x8] sm:$0xff] %v1001_v0  ;;  %1024 = vpow2.f32 %v852_v59  ;;  %v873_v18 = vmul.f32 -1.442695, %v509_v53 }
 0x10b   : > { %v1005_v6 = vpop.eup %1004  ;;  %729 = vst [vmem:[%s1203_s28 + $0x88] sm:$0xff] %v1003_v3  ;;  %1026 = vpow2.f32 %v868_v62 }
 0x10c   : > { %v1007_v8 = vpop.eup %1006  ;;  %718 = vst [vmem:[%s1203_s28 + $0x30] sm:$0xff] %v1005_v6  ;;  %1028 = vpow2.f32 %v855_v1 }
 0x10d   : > { %v1009_v10 = vpop.eup %1008  ;;  %734 = vst [vmem:[%s1203_s28 + $0xb0] sm:$0xff] %v1007_v8  ;;  %1030 = vpow2.f32 %v871_v4 }
 0x10e   : > { %v1011_v12 = vpop.eup %1010  ;;  %716 = vst [vmem:[%s1203_s28 + $0x20] sm:$0xff] %v1009_v10  ;;  %1032 = vpow2.f32 %v853_v7 }
 0x10f   : > { %v1013_v14 = vpop.eup %1012  ;;  %732 = vst [vmem:[%s1203_s28 + $0xa0] sm:$0xff] %v1011_v12  ;;  %1034 = vpow2.f32 %v869_v9 }
 0x110   : > { %v1015_v15 = vpop.eup %1014  ;;  %719 = vst [vmem:[%s1203_s28 + $0x38] sm:$0xff] %v1013_v14  ;;  %1036 = vpow2.f32 %v858_v11 }
 0x111   : > { %v1017_v16 = vpop.eup %1016  ;;  %v639_v17 = vadd.f32 1.0, %v1015_v15  ;;  %1038 = vpow2.f32 %v874_v13 }
 0x112   : > { %v1019_v19 = vpop.eup %1018  ;;  %v621_v20 = vadd.f32 1.0, %v1017_v16 }
 0x113   : > { %v1021_v21 = vpop.eup %1020  ;;  %1040 = vrcp.f32 %v639_v17  ;;  %v637_v22 = vadd.f32 1.0, %v1019_v19 }
 0x114   : > { %v1023_v23 = vpop.eup %1022  ;;  %1042 = vrcp.f32 %v621_v20  ;;  %v626_v24 = vadd.f32 1.0, %v1021_v21 }
 0x115   : > { %v1025_v25 = vpop.eup %1024  ;;  %1044 = vrcp.f32 %v637_v22  ;;  %v642_v26 = vadd.f32 1.0, %v1023_v23 }
 0x116   : > { %v1027_v27 = vpop.eup %1026  ;;  %1046 = vrcp.f32 %v626_v24  ;;  %v624_v28 = vadd.f32 1.0, %v1025_v25 }
 0x117   : > { %v1029_v29 = vpop.eup %1028  ;;  %1048 = vrcp.f32 %v642_v26  ;;  %v640_v30 = vadd.f32 1.0, %v1027_v27 }
 0x118   : > { %v1031_v31 = vpop.eup %1030  ;;  %1050 = vrcp.f32 %v624_v28  ;;  %v627_v33 = vadd.f32 1.0, %v1029_v29 }
 0x119   : > { %v1033_v35 = vpop.eup %1032  ;;  %1052 = vrcp.f32 %v640_v30  ;;  %v643_v38 = vadd.f32 1.0, %v1031_v31 }
 0x11a   : > { %v1035_v40 = vpop.eup %1034  ;;  %1054 = vrcp.f32 %v627_v33  ;;  %v625_v41 = vadd.f32 1.0, %v1033_v35 }
 0x11b   : > { %v1037_v45 = vpop.eup %1036  ;;  %1056 = vrcp.f32 %v643_v38  ;;  %v641_v46 = vadd.f32 1.0, %v1035_v40 }
 0x11c   : > { %v1039_v32 = vpop.eup %1038  ;;  %1058 = vrcp.f32 %v625_v41  ;;  %v630_v49 = vadd.f32 1.0, %v1037_v45 }
 0x11d   : > { %v1041_v51 = vpop.eup %1040  ;;  %1060 = vrcp.f32 %v641_v46  ;;  %v646_v52 = vadd.f32 1.0, %v1039_v32 }
 0x11e   : > { %v1043_v54 = vpop.eup %1042  ;;  %735 = vst [vmem:[%s1203_s28 + $0xb8] sm:$0xff] %v1041_v51  ;;  %1062 = vrcp.f32 %v630_v49 }
 0x11f   : > { %v1045_v55 = vpop.eup %1044  ;;  %717 = vst [vmem:[%s1203_s28 + $0x28] sm:$0xff] %v1043_v54  ;;  %1064 = vrcp.f32 %v646_v52 }
 0x120   : > { %v1047_v43 = vpop.eup %1046  ;;  %733 = vst [vmem:[%s1203_s28 + $0xa8] sm:$0xff] %v1045_v55  ;;  %1066 = vpow2.f32 %v856_v50 }
 0x121   : > { %v1049_v58 = vpop.eup %1048  ;;  %722 = vst [vmem:[%s1203_s28 + $0x50] sm:$0xff] %v1047_v43  ;;  %1068 = vpow2.f32 %v872_v37 }
 0x122   : > { %v1051_v48 = vpop.eup %1050  ;;  %738 = vst [vmem:[%s1203_s28 + $0xd0] sm:$0xff] %v1049_v58  ;;  %1070 = vpow2.f32 %v859_v42 }
 0x123   : > { %v1053_v59 = vpop.eup %1052  ;;  %720 = vst [vmem:[%s1203_s28 + $0x40] sm:$0xff] %v1051_v48  ;;  %1072 = vpow2.f32 %v875_v56 }
 0x124   : > { %v1055_v60 = vpop.eup %1054  ;;  %736 = vst [vmem:[%s1203_s28 + $0xc0] sm:$0xff] %v1053_v59  ;;  %1074 = vpow2.f32 %v857_v57 }
 0x125   : > { %v1057_v61 = vpop.eup %1056  ;;  %723 = vst [vmem:[%s1203_s28 + $0x58] sm:$0xff] %v1055_v60  ;;  %1076 = vpow2.f32 %v873_v18 }
 0x126   : > { %v1059_v62 = vpop.eup %1058  ;;  %739 = vst [vmem:[%s1203_s28 + $0xd8] sm:$0xff] %v1057_v61 }
 0x127   : > { %v1061_v63 = vpop.eup %1060  ;;  %721 = vst [vmem:[%s1203_s28 + $0x48] sm:$0xff] %v1059_v62 }
 0x128   : > { %v1063_v0 = vpop.eup %1062  ;;  %737 = vst [vmem:[%s1203_s28 + $0xc8] sm:$0xff] %v1061_v63 }
 0x129   : > { %v1065_v1 = vpop.eup %1064  ;;  %726 = vst [vmem:[%s1203_s28 + $0x70] sm:$0xff] %v1063_v0 }
 0x12a   : > { %v1067_v2 = vpop.eup %1066  ;;  %742 = vst [vmem:[%s1203_s28 + $0xf0] sm:$0xff] %v1065_v1 }
 0x12b   : > { %v1069_v3 = vpop.eup %1068  ;;  %v628_v4 = vadd.f32 1.0, %v1067_v2 }
 0x12c   : > { %v1071_v5 = vpop.eup %1070  ;;  %v644_v6 = vadd.f32 1.0, %v1069_v3 }
 0x12d   : > { %v1073_v7 = vpop.eup %1072  ;;  %1078 = vrcp.f32 %v628_v4  ;;  %v631_v8 = vadd.f32 1.0, %v1071_v5 }
 0x12e   : > { %v1075_v9 = vpop.eup %1074  ;;  %1080 = vrcp.f32 %v644_v6  ;;  %v647_v10 = vadd.f32 1.0, %v1073_v7 }
 0x12f   : > { %v1077_v11 = vpop.eup %1076  ;;  %1082 = vrcp.f32 %v631_v8  ;;  %v629_v12 = vadd.f32 1.0, %v1075_v9 }
 0x130   : > { %1084 = vrcp.f32 %v647_v10  ;;  %v645_v13 = vadd.f32 1.0, %v1077_v11 }
 0x131   : > { %1086 = vrcp.f32 %v629_v12 }
 0x132   : > { %1088 = vrcp.f32 %v645_v13 }
 0x137   : > { %v1079_v14 = vpop.eup %1078 }
 0x138   : > { %v1081_v15 = vpop.eup %1080  ;;  %724 = vst [vmem:[%s1203_s28 + $0x60] sm:$0xff] %v1079_v14 }
 0x139   : > { %v1083_v16 = vpop.eup %1082  ;;  %740 = vst [vmem:[%s1203_s28 + $0xe0] sm:$0xff] %v1081_v15 }
 0x13a   : > { %v1085_v17 = vpop.eup %1084  ;;  %727 = vst [vmem:[%s1203_s28 + $0x78] sm:$0xff] %v1083_v16 }
 0x13b   : > { %v1087_v19 = vpop.eup %1086  ;;  %743 = vst [vmem:[%s1203_s28 + $0xf8] sm:$0xff] %v1085_v17 }
 0x13c   : > { %v1089_v20 = vpop.eup %1088  ;;  %725 = vst [vmem:[%s1203_s28 + $0x68] sm:$0xff] %v1087_v19 }
 0x13d   : > { %741 = vst [vmem:[%s1203_s28 + $0xe8] sm:$0xff] %v1089_v20 }
 0x13e PF: > { %s13_s12 = sadd.s32 1, %s1096_s12  }
 0x13f   : > { %p10_p4 = scmp.ge.s32.totalorder %s13_s12, 4  }
 0x141   :  { %12 = sbr.rel (!%p10_p4) target bundleno = 1 (0x1), region = 62 }

// kernel: neuron_counter_forward.36
= control target key start
LH: loop header
LB: loop body
LE: loop exit
PB: predicated region body
PF: predicated region fallthrough
CT: control target
= control target key end

     0   :  { %s340_s1 = inlined_call_operand.vmem [shape: bf16[256,128], index: 1, kind: input, shape index: {}]   ;;  %s341_s0 = inlined_call_operand.vmem [shape: bf16[8,256], index: 0, kind: input, shape index: {}]   ;;  %s342_s2 = inlined_call_operand.vmem [shape: f32[1,128], index: 2, kind: input, shape index: {}]   ;;  %s343_s3 = inlined_call_operand.vmem [shape: f32[8,128], index: 3, kind: output, shape index: {}]  }
   0x1   :  { %v245_v0 = vld [vmem:[%s340_s1 + $0x40] sm:$0xff]   ;;  %v247_v2 = vld [vmem:[%s340_s1 + $0x48] sm:$0xff]   ;;  %v249_v4 = vld [vmem:[%s340_s1 + $0x50] sm:$0xff]  }
   0x2   :  { %v246_v1 = vld [vmem:[%s340_s1] sm:$0xff]   ;;  %223 = vmatprep.subr.bf16.mxu0 %v245_v0  ;;  %v248_v3 = vld [vmem:[%s340_s1 + $0x8] sm:$0xff]   ;;  %v250_v5 = vld [vmem:[%s340_s1 + $0x10] sm:$0xff]  }
   0x3   :  { %224 = vmatpush3.bf16.msra.mxu0 %v246_v1  ;;  %v251_v6 = vld [vmem:[%s340_s1 + $0x58] sm:$0xff]   ;;  %v253_v8 = vld [vmem:[%s340_s1 + $0x60] sm:$0xff]   ;;  %v255_v10 = vld [vmem:[%s340_s1 + $0x68] sm:$0xff]  }
   0x4   :  { %225 = vmatprep.subr.bf16.mxu0 %v247_v2  ;;  %v252_v7 = vld [vmem:[%s340_s1 + $0x18] sm:$0xff]   ;;  %v254_v9 = vld [vmem:[%s340_s1 + $0x20] sm:$0xff]   ;;  %v256_v13 = vld [vmem:[%s340_s1 + $0x28] sm:$0xff]  }
   0x5   :  { %v15_v11 = vld [vmem:[%s341_s0] sm:$0xff]  ;;  %v257_v14 = vld [vmem:[%s340_s1 + $0x70] sm:$0xff]   ;;  %v259_v16 = vld [vmem:[%s340_s1 + $0x78] sm:$0xff]  }
   0x6   :  { %v206_v12 = vcombine.high %v15_v11, %v15_v11  ;;  %v258_v15 = vld [vmem:[%s340_s1 + $0x30] sm:$0xff]   ;;  %v260_v17 = vld [vmem:[%s340_s1 + $0x38] sm:$0xff]   ;;  %v205_v18 = vcombine.low %v15_v11, %v15_v11  ;;  %v204_v20 = vld [vmem:[%s342_s2] ss:$0 sm:$0xff] }
   0x7   :  { %226 = vmatpush3.bf16.msra.mxu0 %v248_v3 }
   0x8   :  { %227 = vmatprep.subr.bf16.mxu0 %v249_v4  ;;  %190 = vmatprep.mubr.bf16.mxu0 %v206_v12 }
   0xb   :  { %228 = vmatpush3.bf16.msra.mxu0 %v250_v5 }
   0xc   :  { %229 = vmatprep.subr.bf16.mxu0 %v251_v6 }
   0xf   :  { %230 = vmatpush3.bf16.msra.mxu0 %v252_v7 }
  0x10   :  { %231 = vmatprep.subr.bf16.mxu0 %v253_v8 }
  0x13   :  { %232 = vmatpush3.bf16.msra.mxu0 %v254_v9 }
  0x14   :  { %233 = vmatprep.subr.bf16.mxu0 %v255_v10 }
  0x17   :  { %234 = vmatpush3.bf16.msra.mxu0 %v256_v13 }
  0x18   :  { %235 = vmatprep.subr.bf16.mxu0 %v257_v14 }
  0x1b   :  { %236 = vmatpush3.bf16.msra.mxu0 %v258_v15 }
  0x1c   :  { %237 = vmatprep.subr.bf16.mxu0 %v259_v16 }
  0x1f   :  { %238 = vmatpush3.bf16.msra.mxu0 %v260_v17 }
  0x22   :  { %191 = vmatmul.mubr.bf16.vlgmr.msra.gmra.mrb[0].mxu0 %v205_v18 }
  0xf5   :  { %v239_v19 = vpop.f32.mrb[0].mxu0 }
  0xf6   :  { %v240_v21 = vpop.f32.mrb[1].mxu0 }
  0xf7   :  { %v241_v22 = vadd.f32 %v240_v21, %v239_v19  ;;  %v242_v23 = vpop.f32.mrb[2].mxu0 }
  0xf8   :  { %v243_v24 = vpop.f32.mrb[3].mxu0 }
  0xf9   :  { %v193_v25 = vadd.f32 %v241_v22, %v204_v20 }
  0xfb   :  { %v198_v26 = vmax.f32 %v193_v25, 0.0 }
  0xfd   :  { %199 = vst [vmem:[%s343_s3] sm:$0xff] %v198_v26 }

// kernel: neuron_counter_forward.37
= control target key start
LH: loop header
LB: loop body
LE: loop exit
PB: predicated region body
PF: predicated region fallthrough
CT: control target
= control target key end

     0   :  { %v180_v0 = vmov 0.0   ;;  %vm181_vm0 = vmmov 0   ;;  %s235_s1 = inlined_call_operand.vmem [shape: bf16[128,128], index: 1, kind: input, shape index: {}]   ;;  %s236_s0 = inlined_call_operand.vmem [shape: bf16[8,128], index: 0, kind: input, shape index: {}]   ;;  %s237_s2 = inlined_call_operand.vmem [shape: f32[1,128], index: 2, kind: input, shape index: {}]   ;;  %s238_s3 = inlined_call_operand.vmem [shape: f32[8,128], index: 3, kind: output, shape index: {}]  }
   0x1   :  { %150 = vmatprep.subr.bf16.mxu0 %v180_v0  ;;  %v172_v1 = vld [vmem:[%s235_s1] sm:$0xff]   ;;  %166 = vmatprep.mubr.msk.bf16.mxu0 %vm181_vm0, %v180_v0  ;;  %v173_v2 = vld [vmem:[%s235_s1 + $0x8] sm:$0xff]   ;;  %v174_v3 = vld [vmem:[%s235_s1 + $0x10] sm:$0xff]  }
   0x2   :  { %151 = vmatpush3.bf16.msra.mxu0 %v172_v1  ;;  %v175_v4 = vld [vmem:[%s235_s1 + $0x18] sm:$0xff]   ;;  %v176_v5 = vld [vmem:[%s235_s1 + $0x20] sm:$0xff]   ;;  %v177_v6 = vld [vmem:[%s235_s1 + $0x28] sm:$0xff]  }
   0x3   :  { %152 = vmatprep.subr.bf16.mxu0 %v180_v0  ;;  %v178_v7 = vld [vmem:[%s235_s1 + $0x30] sm:$0xff]   ;;  %v179_v8 = vld [vmem:[%s235_s1 + $0x38] sm:$0xff]   ;;  %v15_v9 = vld [vmem:[%s236_s0] sm:$0xf] }
   0x4   :  { %v132_v10 = vld [vmem:[%s237_s2] ss:$0 sm:$0xff] }
   0x6   :  { %153 = vmatpush3.bf16.msra.mxu0 %v173_v2 }
   0x7   :  { %154 = vmatprep.subr.bf16.mxu0 %v180_v0 }
   0xa   :  { %155 = vmatpush3.bf16.msra.mxu0 %v174_v3 }
   0xb   :  { %156 = vmatprep.subr.bf16.mxu0 %v180_v0 }
   0xe   :  { %157 = vmatpush3.bf16.msra.mxu0 %v175_v4 }
   0xf   :  { %158 = vmatprep.subr.bf16.mxu0 %v180_v0 }
  0x12   :  { %159 = vmatpush3.bf16.msra.mxu0 %v176_v5 }
  0x13   :  { %160 = vmatprep.subr.bf16.mxu0 %v180_v0 }
  0x16   :  { %161 = vmatpush3.bf16.msra.mxu0 %v177_v6 }
  0x17   :  { %162 = vmatprep.subr.bf16.mxu0 %v180_v0 }
  0x1a   :  { %163 = vmatpush3.bf16.msra.mxu0 %v178_v7 }
  0x1b   :  { %164 = vmatprep.subr.bf16.mxu0 %v180_v0 }
  0x1e   :  { %165 = vmatpush3.bf16.msra.mxu0 %v179_v8 }
  0x21   :  { %167 = vmatmul.mubr.bf16.vlgmr.msra.gmra.mrb[0].mxu0 %v15_v9 }
  0xf4   :  { %v121_v11 = vpop.f32.mrb[0].mxu0 }
  0xf5   :  { %v122_v12 = vadd.f32 %v132_v10, %v121_v11  ;;  %v168_v13 = vpop.f32.mrb[1].mxu0 }
  0xf6   :  { %v124_v14 = vpop.f32.mrb[2].mxu0 }
  0xf7   :  { %127 = vst [vmem:[%s238_s3] sm:$0xff] %v122_v12  ;;  %v169_v15 = vpop.f32.mrb[3].mxu0 }

</bundles_post_ra>
